<compile_context>
chip_gen: v7x
topology: tpu7x:2x2x1
jax: 0.10.0
libtpu: 0.0.40
codegen_flags: <defaults>
</compile_context>

<pallas_src>
import functools

import jax
import jax.numpy as jnp
from jax import lax
from jax.experimental import pallas as pl
from jax.experimental.pallas import tpu as pltpu


# ---------------------------------------------------------------------------
# Pallas kernels
# ---------------------------------------------------------------------------
def _conv3x3_kernel(xf_ref, w_ref, o_ref, *, wp, rout, relu):
    """Valid 3x3 stride-1 conv on a row-flattened padded image (one batch item).

    xf_ref : (1, Rin, Cin)   flattened padded image rows (incl. headroom row)
    w_ref  : (9, Cin, Cout)  tap-major weights
    o_ref  : (1, Rout, Cout) Rout = Hout * Wp (last 2 columns of each image row
                             are wrap-around junk, discarded by the wrapper)
    """
    cout = o_ref.shape[-1]
    acc = jnp.zeros((rout, cout), jnp.float32)
    for dy in range(3):
        for dx in range(3):
            off = dy * wp + dx                               # static Python int
            acc = acc + jnp.dot(xf_ref[0, pl.ds(off, rout), :],
                                w_ref[dy * 3 + dx],
                                preferred_element_type=jnp.float32)
    if relu:
        acc = jnp.maximum(acc, 0.0)
    o_ref[0] = acc.astype(o_ref.dtype)


def _deconv_bn_kernel(xf_ref, w_ref, g_ref, b_ref, m_ref, o_ref,
                      *, wp, rout, count, relu, eps):
    """Valid 3x3 conv over the whole batch + fused training-mode BatchNorm(+ReLU).

    xf_ref : (N, Rin, Cin)   flattened (dilated + padded) images
    w_ref  : (9, Cin, Cout)
    g_ref  : (1, Cout)       BN gamma
    b_ref  : (1, Cout)       BN beta
    m_ref  : (Rout, 1)       1.0 on real output pixels, 0.0 on wrap-around cols
    o_ref  : (N, Rout, Cout)
    """
    n = xf_ref.shape[0]
    cout = o_ref.shape[-1]

    accs = []
    for b in range(n):
        acc = jnp.zeros((rout, cout), jnp.float32)
        for dy in range(3):
            for dx in range(3):
                off = dy * wp + dx
                acc = acc + jnp.dot(xf_ref[b, pl.ds(off, rout), :],
                                    w_ref[dy * 3 + dx],
                                    preferred_element_type=jnp.float32)
        accs.append(acc)

    # Masked batch statistics (biased variance), excluding the junk columns.
    mask = m_ref[...]
    inv = 1.0 / count
    s = jnp.zeros((1, cout), jnp.float32)
    ss = jnp.zeros((1, cout), jnp.float32)
    for acc in accs:
        am = acc * mask
        s = s + jnp.sum(am, axis=0, keepdims=True)
        ss = ss + jnp.sum(acc * am, axis=0, keepdims=True)
    mean = s * inv
    var = ss * inv - mean * mean
    scale = g_ref[...] * lax.rsqrt(var + eps)
    shift = b_ref[...] - mean * scale

    for b in range(n):
        y = accs[b] * scale + shift
        if relu:
            y = jnp.maximum(y, 0.0)
        o_ref[b] = y.astype(o_ref.dtype)


# ---------------------------------------------------------------------------
# Wrappers around the kernels
# ---------------------------------------------------------------------------
def _tap_weights(w_oihw):
    """(Cout, Cin, 3, 3) -> (9, Cin, Cout) tap-major weights."""
    cout, cin = w_oihw.shape[0], w_oihw.shape[1]
    return jnp.transpose(w_oihw, (2, 3, 1, 0)).reshape(9, cin, cout)


def conv3x3(x_nhwc, w_oihw, *, stride, relu):
    """3x3 conv, padding=1, no bias, optional fused ReLU. stride in {1, 2}."""
    n, h, w, cin = x_nhwc.shape
    cout = w_oihw.shape[0]
    hp, wp = h + 3, w + 2            # pad ((1, 2), (1, 1)); extra bottom row is
    rin = hp * wp                    # headroom for the last tap offset.
    rout = h * wp

    xp = jnp.pad(x_nhwc, ((0, 0), (1, 2), (1, 1), (0, 0)))
    xf = xp.reshape(n, rin, cin)
    w9 = _tap_weights(w_oihw)

    kern = functools.partial(_conv3x3_kernel, wp=wp, rout=rout, relu=relu)
    out = pl.pallas_call(
        kern,
        out_shape=jax.ShapeDtypeStruct((n, rout, cout), jnp.float32),
        grid=(n,),
        in_specs=[
            pl.BlockSpec((1, rin, cin), lambda b: (b, 0, 0)),
            pl.BlockSpec((9, cin, cout), lambda b: (0, 0, 0)),
        ],
        out_specs=pl.BlockSpec((1, rout, cout), lambda b: (b, 0, 0)),
        compiler_params=pltpu.CompilerParams(dimension_semantics=("parallel",)),
    )(xf, w9)

    y = out.reshape(n, h, wp, cout)[:, :, :w, :]
    if stride == 2:
        # TODO(synk): a polyphase stride-2 kernel would avoid the 4x overcompute
        # of "stride-1 then subsample"; irrelevant at these sizes.
        y = y[:, ::2, ::2, :]
    return y


def conv_transpose3x3_bn(x_nhwc, w_iohw, gamma, beta, *, relu, eps=1e-5):
    """ConvTranspose2d(k=3, s=2, p=1, output_padding=1, bias=False)
    + training-mode BatchNorm2d (+ optional ReLU), as one fused kernel."""
    n, h, w, cin = x_nhwc.shape
    cout = w_iohw.shape[1]
    hout, wout = 2 * h, 2 * w
    # zero-dilate by the stride, then pad (k-1-p, k-1-p+output_padding) = (1, 2);
    # one extra bottom row gives the flattened-offset headroom.
    hp, wp = 2 * h + 3, 2 * w + 2
    rin = hp * wp
    rout = hout * wp

    xd = jnp.zeros((n, hp, wp, cin), x_nhwc.dtype)
    xd = xd.at[:, 1:2 * h:2, 1:2 * w:2, :].set(x_nhwc)
    xf = xd.reshape(n, rin, cin)

    # equivalent direct-conv weight: flip spatially, swap in/out channels -> OIHW
    w_eq = jnp.transpose(jnp.flip(w_iohw, axis=(2, 3)), (1, 0, 2, 3))
    w9 = _tap_weights(w_eq)

    # validity mask for BN statistics (trailing wp-wout columns are junk)
    cols = jnp.arange(rout, dtype=jnp.int32) % wp
    mask = (cols < wout).astype(jnp.float32).reshape(rout, 1)
    count = float(n * hout * wout)

    kern = functools.partial(_deconv_bn_kernel, wp=wp, rout=rout,
                             count=count, relu=relu, eps=eps)
    out = pl.pallas_call(
        kern,
        out_shape=jax.ShapeDtypeStruct((n, rout, cout), jnp.float32),
        in_specs=[
            pl.BlockSpec((n, rin, cin), lambda: (0, 0, 0)),
            pl.BlockSpec((9, cin, cout), lambda: (0, 0, 0)),
            pl.BlockSpec((1, cout), lambda: (0, 0)),
            pl.BlockSpec((1, cout), lambda: (0, 0)),
            pl.BlockSpec((rout, 1), lambda: (0, 0)),
        ],
        out_specs=pl.BlockSpec((n, rout, cout), lambda: (0, 0, 0)),
    )(xf, w9, gamma.reshape(1, cout), beta.reshape(1, cout), mask)

    return out.reshape(n, hout, wp, cout)[:, :, :wout, :]


# ---------------------------------------------------------------------------
# hourglass_1 forward (NCHW in / NCHW out, like the PyTorch module)
# ---------------------------------------------------------------------------
def hourglass_1_forward(x, em1, em2, params):
    nhwc = lambda t: jnp.transpose(t, (0, 2, 3, 1))
    nchw = lambda t: jnp.transpose(t, (0, 3, 1, 2))
    xh, e1, e2 = nhwc(x), nhwc(em1), nhwc(em2)

    h = conv3x3(xh, params["w1"], stride=2, relu=True)            # conv1 + ReLU
    h = conv3x3(h, params["w2"], stride=1, relu=True)             # conv2 + F.relu
    xcat = jnp.concatenate([h, e1], axis=-1)                      # cat on channels

    hp = conv3x3(xcat, params["w3"], stride=2, relu=True)         # conv3 + ReLU
    hp = conv3x3(hp, params["w4"], stride=1, relu=True)           # conv4 + F.relu
    xpcat = jnp.concatenate([hp, e2], axis=-1)

    o = conv_transpose3x3_bn(xpcat, params["w5"], params["g5"], params["b5"],
                             relu=True)                           # conv5 + BN + ReLU
    o = conv_transpose3x3_bn(o, params["w6"], params["g6"], params["b6"],
                             relu=False)                          # conv6 + BN

    return nchw(o), nchw(xcat), nchw(xpcat)


# ---------------------------------------------------------------------------
# Pure-JAX reference for validation
# ---------------------------------------------------------------------------
def hourglass_1_reference(x, em1, em2, params):
    dn = ("NCHW", "OIHW", "NCHW")
    hi = jax.lax.Precision.HIGHEST

    def conv(t, w, stride):
        return jax.lax.conv_general_dilated(
            t, w, (stride, stride), ((1, 1), (1, 1)),
            dimension_numbers=dn, precision=hi)

    def tconv(t, w_iohw):
        w_eq = jnp.transpose(jnp.flip(w_iohw, axis=(2, 3)), (1, 0, 2, 3))
        return jax.lax.conv_general_dilated(
            t, w_eq, (1, 1), ((1, 2), (1, 2)), lhs_dilation=(2, 2),
            dimension_numbers=dn, precision=hi)

    def bn(t, g, b, relu):
        mu = jnp.mean(t, axis=(0, 2, 3), keepdims=True)
        var = jnp.var(t, axis=(0, 2, 3), keepdims=True)
        y = (t - mu) / jnp.sqrt(var + 1e-5)
        y = y * g.reshape(1, -1, 1, 1) + b.reshape(1, -1, 1, 1)
        return jnp.maximum(y, 0.0) if relu else y

    h = jnp.maximum(conv(x, params["w1"], 2), 0.0)
    h = jnp.maximum(conv(h, params["w2"], 1), 0.0)
    xcat = jnp.concatenate([h, em1], axis=1)
    hp = jnp.maximum(conv(xcat, params["w3"], 2), 0.0)
    hp = jnp.maximum(conv(hp, params["w4"], 1), 0.0)
    xpcat = jnp.concatenate([hp, em2], axis=1)
    o = bn(tconv(xpcat, params["w5"]), params["g5"], params["b5"], relu=True)
    o = bn(tconv(o, params["w6"]), params["g6"], params["b6"], relu=False)
    return o, xcat, xpcat


if __name__ == "__main__":
    C = 4  # channels_in
    key = jax.random.PRNGKey(0)
    ks = jax.random.split(key, 12)

    x = jax.random.normal(ks[0], (2, C, 16, 16), jnp.float32)
    em1 = jax.random.normal(ks[1], (2, C, 8, 8), jnp.float32)
    em2 = jax.random.normal(ks[2], (2, 2 * C, 4, 4), jnp.float32)

    params = {
        "w1": 0.2 * jax.random.normal(ks[3], (C, C, 3, 3), jnp.float32),
        "w2": 0.2 * jax.random.normal(ks[4], (C, C, 3, 3), jnp.float32),
        "w3": 0.2 * jax.random.normal(ks[5], (2 * C, 2 * C, 3, 3), jnp.float32),
        "w4": 0.2 * jax.random.normal(ks[6], (2 * C, 2 * C, 3, 3), jnp.float32),
        # ConvTranspose2d weights are stored as (C_in, C_out, kH, kW)
        "w5": 0.2 * jax.random.normal(ks[7], (4 * C, 2 * C, 3, 3), jnp.float32),
        "w6": 0.2 * jax.random.normal(ks[8], (2 * C, C, 3, 3), jnp.float32),
        "g5": 1.0 + 0.1 * jax.random.normal(ks[9], (2 * C,), jnp.float32),
        "b5": 0.1 * jax.random.normal(ks[10], (2 * C,), jnp.float32),
        "g6": 1.0 + 0.1 * jax.random.normal(ks[11], (C,), jnp.float32),
        "b6": jnp.zeros((C,), jnp.float32),
    }

    fwd = jax.jit(hourglass_1_forward)
    out, x_cat, xp_cat = fwd(x, em1, em2, params)
    out = jax.block_until_ready(out)

    assert out.shape == (2, C, 16, 16)
    assert x_cat.shape == (2, 2 * C, 8, 8)
    assert xp_cat.shape == (2, 4 * C, 4, 4)

    r_out, r_x, r_xp = hourglass_1_reference(x, em1, em2, params)
    for got, ref in ((out, r_out), (x_cat, r_x), (xp_cat, r_xp)):
        max_err = float(jnp.max(jnp.abs(got - ref)))
        assert jnp.allclose(got, ref, rtol=2e-2, atol=2e-2), max_err

    print("KERNEL_OK")
</pallas_src>

<mosaic_0001>
module attributes {stable_mosaic.version = 11 : i64} {
  func.func @_conv3x3_kernel(%arg0: i32, %arg1: memref<1x342x4xf32, #tpu.memory_space<vmem>>, %arg2: memref<9x4x4xf32, #tpu.memory_space<vmem>>, %arg3: memref<1x288x4xf32, #tpu.memory_space<vmem>>) attributes {dimension_semantics = [#tpu.dimension_semantics<parallel>], iteration_bounds = array<i64: 2>, scalar_prefetch = 0 : i64, scratch_operands = 0 : i64, tpu.core_type = #tpu.core_type<tc>, window_params = [{transform_indices = @transform_0, window_bounds = array<i64: 1, 342, 4>}, {pipeline_mode = #tpu.pipeline_mode<synchronous>, transform_indices = @transform_1, window_bounds = array<i64: 9, 4, 4>}, {transform_indices = @transform_2, window_bounds = array<i64: 1, 288, 4>}]} {
    %cst = arith.constant 0.000000e+00 : f32
    %0 = vector.broadcast %cst : f32 to vector<288x4xf32>
    %c0 = arith.constant 0 : index
    %c0_0 = arith.constant 0 : index
    %c0_1 = arith.constant 0 : index
    %1 = vector.load %arg1[%c0, %c0_0, %c0_1] : memref<1x342x4xf32, #tpu.memory_space<vmem>>, vector<1x288x4xf32>
    %2 = vector.shape_cast %1 : vector<1x288x4xf32> to vector<288x4xf32>
    %c0_2 = arith.constant 0 : index
    %c0_3 = arith.constant 0 : index
    %c0_4 = arith.constant 0 : index
    %3 = vector.load %arg2[%c0_2, %c0_3, %c0_4] : memref<9x4x4xf32, #tpu.memory_space<vmem>>, vector<1x4x4xf32>
    %4 = vector.shape_cast %3 : vector<1x4x4xf32> to vector<4x4xf32>
    %cst_5 = arith.constant dense<0.000000e+00> : vector<288x4xf32>
    %5 = tpu.matmul %2, %4, %cst_5 {dimension_numbers = #tpu.dot_dimension_numbers<[1], [0], [0], [1], [0, 0, 1, 1], [], []>} : vector<288x4xf32>, vector<4x4xf32>, vector<288x4xf32> -> vector<288x4xf32>
    %6 = arith.addf %0, %5 : vector<288x4xf32>
    %c0_6 = arith.constant 0 : index
    %c1 = arith.constant 1 : index
    %c0_7 = arith.constant 0 : index
    %7 = vector.load %arg1[%c0_6, %c1, %c0_7] : memref<1x342x4xf32, #tpu.memory_space<vmem>>, vector<1x288x4xf32>
    %8 = vector.shape_cast %7 : vector<1x288x4xf32> to vector<288x4xf32>
    %c1_8 = arith.constant 1 : index
    %c0_9 = arith.constant 0 : index
    %c0_10 = arith.constant 0 : index
    %9 = vector.load %arg2[%c1_8, %c0_9, %c0_10] : memref<9x4x4xf32, #tpu.memory_space<vmem>>, vector<1x4x4xf32>
    %10 = vector.shape_cast %9 : vector<1x4x4xf32> to vector<4x4xf32>
    %cst_11 = arith.constant dense<0.000000e+00> : vector<288x4xf32>
    %11 = tpu.matmul %8, %10, %cst_11 {dimension_numbers = #tpu.dot_dimension_numbers<[1], [0], [0], [1], [0, 0, 1, 1], [], []>} : vector<288x4xf32>, vector<4x4xf32>, vector<288x4xf32> -> vector<288x4xf32>
    %12 = arith.addf %6, %11 : vector<288x4xf32>
    %c0_12 = arith.constant 0 : index
    %c2 = arith.constant 2 : index
    %c0_13 = arith.constant 0 : index
    %13 = vector.load %arg1[%c0_12, %c2, %c0_13] : memref<1x342x4xf32, #tpu.memory_space<vmem>>, vector<1x288x4xf32>
    %14 = vector.shape_cast %13 : vector<1x288x4xf32> to vector<288x4xf32>
    %c2_14 = arith.constant 2 : index
    %c0_15 = arith.constant 0 : index
    %c0_16 = arith.constant 0 : index
    %15 = vector.load %arg2[%c2_14, %c0_15, %c0_16] : memref<9x4x4xf32, #tpu.memory_space<vmem>>, vector<1x4x4xf32>
    %16 = vector.shape_cast %15 : vector<1x4x4xf32> to vector<4x4xf32>
    %cst_17 = arith.constant dense<0.000000e+00> : vector<288x4xf32>
    %17 = tpu.matmul %14, %16, %cst_17 {dimension_numbers = #tpu.dot_dimension_numbers<[1], [0], [0], [1], [0, 0, 1, 1], [], []>} : vector<288x4xf32>, vector<4x4xf32>, vector<288x4xf32> -> vector<288x4xf32>
    %18 = arith.addf %12, %17 : vector<288x4xf32>
    %c0_18 = arith.constant 0 : index
    %c18 = arith.constant 18 : index
    %c0_19 = arith.constant 0 : index
    %19 = vector.load %arg1[%c0_18, %c18, %c0_19] : memref<1x342x4xf32, #tpu.memory_space<vmem>>, vector<1x288x4xf32>
    %20 = vector.shape_cast %19 : vector<1x288x4xf32> to vector<288x4xf32>
    %c3 = arith.constant 3 : index
    %c0_20 = arith.constant 0 : index
    %c0_21 = arith.constant 0 : index
    %21 = vector.load %arg2[%c3, %c0_20, %c0_21] : memref<9x4x4xf32, #tpu.memory_space<vmem>>, vector<1x4x4xf32>
    %22 = vector.shape_cast %21 : vector<1x4x4xf32> to vector<4x4xf32>
    %cst_22 = arith.constant dense<0.000000e+00> : vector<288x4xf32>
    %23 = tpu.matmul %20, %22, %cst_22 {dimension_numbers = #tpu.dot_dimension_numbers<[1], [0], [0], [1], [0, 0, 1, 1], [], []>} : vector<288x4xf32>, vector<4x4xf32>, vector<288x4xf32> -> vector<288x4xf32>
    %24 = arith.addf %18, %23 : vector<288x4xf32>
    %c0_23 = arith.constant 0 : index
    %c19 = arith.constant 19 : index
    %c0_24 = arith.constant 0 : index
    %25 = vector.load %arg1[%c0_23, %c19, %c0_24] : memref<1x342x4xf32, #tpu.memory_space<vmem>>, vector<1x288x4xf32>
    %26 = vector.shape_cast %25 : vector<1x288x4xf32> to vector<288x4xf32>
    %c4 = arith.constant 4 : index
    %c0_25 = arith.constant 0 : index
    %c0_26 = arith.constant 0 : index
    %27 = vector.load %arg2[%c4, %c0_25, %c0_26] : memref<9x4x4xf32, #tpu.memory_space<vmem>>, vector<1x4x4xf32>
    %28 = vector.shape_cast %27 : vector<1x4x4xf32> to vector<4x4xf32>
    %cst_27 = arith.constant dense<0.000000e+00> : vector<288x4xf32>
    %29 = tpu.matmul %26, %28, %cst_27 {dimension_numbers = #tpu.dot_dimension_numbers<[1], [0], [0], [1], [0, 0, 1, 1], [], []>} : vector<288x4xf32>, vector<4x4xf32>, vector<288x4xf32> -> vector<288x4xf32>
    %30 = arith.addf %24, %29 : vector<288x4xf32>
    %c0_28 = arith.constant 0 : index
    %c20 = arith.constant 20 : index
    %c0_29 = arith.constant 0 : index
    %31 = vector.load %arg1[%c0_28, %c20, %c0_29] : memref<1x342x4xf32, #tpu.memory_space<vmem>>, vector<1x288x4xf32>
    %32 = vector.shape_cast %31 : vector<1x288x4xf32> to vector<288x4xf32>
    %c5 = arith.constant 5 : index
    %c0_30 = arith.constant 0 : index
    %c0_31 = arith.constant 0 : index
    %33 = vector.load %arg2[%c5, %c0_30, %c0_31] : memref<9x4x4xf32, #tpu.memory_space<vmem>>, vector<1x4x4xf32>
    %34 = vector.shape_cast %33 : vector<1x4x4xf32> to vector<4x4xf32>
    %cst_32 = arith.constant dense<0.000000e+00> : vector<288x4xf32>
    %35 = tpu.matmul %32, %34, %cst_32 {dimension_numbers = #tpu.dot_dimension_numbers<[1], [0], [0], [1], [0, 0, 1, 1], [], []>} : vector<288x4xf32>, vector<4x4xf32>, vector<288x4xf32> -> vector<288x4xf32>
    %36 = arith.addf %30, %35 : vector<288x4xf32>
    %c0_33 = arith.constant 0 : index
    %c36 = arith.constant 36 : index
    %c0_34 = arith.constant 0 : index
    %37 = vector.load %arg1[%c0_33, %c36, %c0_34] : memref<1x342x4xf32, #tpu.memory_space<vmem>>, vector<1x288x4xf32>
    %38 = vector.shape_cast %37 : vector<1x288x4xf32> to vector<288x4xf32>
    %c6 = arith.constant 6 : index
    %c0_35 = arith.constant 0 : index
    %c0_36 = arith.constant 0 : index
    %39 = vector.load %arg2[%c6, %c0_35, %c0_36] : memref<9x4x4xf32, #tpu.memory_space<vmem>>, vector<1x4x4xf32>
    %40 = vector.shape_cast %39 : vector<1x4x4xf32> to vector<4x4xf32>
    %cst_37 = arith.constant dense<0.000000e+00> : vector<288x4xf32>
    %41 = tpu.matmul %38, %40, %cst_37 {dimension_numbers = #tpu.dot_dimension_numbers<[1], [0], [0], [1], [0, 0, 1, 1], [], []>} : vector<288x4xf32>, vector<4x4xf32>, vector<288x4xf32> -> vector<288x4xf32>
    %42 = arith.addf %36, %41 : vector<288x4xf32>
    %c0_38 = arith.constant 0 : index
    %c37 = arith.constant 37 : index
    %c0_39 = arith.constant 0 : index
    %43 = vector.load %arg1[%c0_38, %c37, %c0_39] : memref<1x342x4xf32, #tpu.memory_space<vmem>>, vector<1x288x4xf32>
    %44 = vector.shape_cast %43 : vector<1x288x4xf32> to vector<288x4xf32>
    %c7 = arith.constant 7 : index
    %c0_40 = arith.constant 0 : index
    %c0_41 = arith.constant 0 : index
    %45 = vector.load %arg2[%c7, %c0_40, %c0_41] : memref<9x4x4xf32, #tpu.memory_space<vmem>>, vector<1x4x4xf32>
    %46 = vector.shape_cast %45 : vector<1x4x4xf32> to vector<4x4xf32>
    %cst_42 = arith.constant dense<0.000000e+00> : vector<288x4xf32>
    %47 = tpu.matmul %44, %46, %cst_42 {dimension_numbers = #tpu.dot_dimension_numbers<[1], [0], [0], [1], [0, 0, 1, 1], [], []>} : vector<288x4xf32>, vector<4x4xf32>, vector<288x4xf32> -> vector<288x4xf32>
    %48 = arith.addf %42, %47 : vector<288x4xf32>
    %c0_43 = arith.constant 0 : index
    %c38 = arith.constant 38 : index
    %c0_44 = arith.constant 0 : index
    %49 = vector.load %arg1[%c0_43, %c38, %c0_44] : memref<1x342x4xf32, #tpu.memory_space<vmem>>, vector<1x288x4xf32>
    %50 = vector.shape_cast %49 : vector<1x288x4xf32> to vector<288x4xf32>
    %c8 = arith.constant 8 : index
    %c0_45 = arith.constant 0 : index
    %c0_46 = arith.constant 0 : index
    %51 = vector.load %arg2[%c8, %c0_45, %c0_46] : memref<9x4x4xf32, #tpu.memory_space<vmem>>, vector<1x4x4xf32>
    %52 = vector.shape_cast %51 : vector<1x4x4xf32> to vector<4x4xf32>
    %cst_47 = arith.constant dense<0.000000e+00> : vector<288x4xf32>
    %53 = tpu.matmul %50, %52, %cst_47 {dimension_numbers = #tpu.dot_dimension_numbers<[1], [0], [0], [1], [0, 0, 1, 1], [], []>} : vector<288x4xf32>, vector<4x4xf32>, vector<288x4xf32> -> vector<288x4xf32>
    %54 = arith.addf %48, %53 : vector<288x4xf32>
    %cst_48 = arith.constant 0.000000e+00 : f32
    %55 = vector.broadcast %cst_48 : f32 to vector<288x4xf32>
    %56 = arith.maximumf %54, %55 : vector<288x4xf32>
    %c0_49 = arith.constant 0 : index
    %c0_50 = arith.constant 0 : index
    %c0_51 = arith.constant 0 : index
    %57 = vector.load %arg3[%c0_49, %c0_50, %c0_51] : memref<1x288x4xf32, #tpu.memory_space<vmem>>, vector<1x288x4xf32>
    %58 = vector.shape_cast %57 : vector<1x288x4xf32> to vector<288x4xf32>
    %59 = vector.shape_cast %56 : vector<288x4xf32> to vector<1x288x4xf32>
    tpu.vector_store %arg3[%c0_49, %c0_50, %c0_51], %59 {strides = array<i32>} : memref<1x288x4xf32, #tpu.memory_space<vmem>>, vector<1x288x4xf32>,
    return
  }
  func.func @transform_0(%arg0: i32) -> (i32, i32, i32) {
    %c0_i32 = arith.constant 0 : i32
    %c0_i32_0 = arith.constant 0 : i32
    %c0_i32_1 = arith.constant 0 : i32
    return %arg0, %c0_i32, %c0_i32_0 : i32, i32, i32
  }
  func.func @transform_1(%arg0: i32) -> (i32, i32, i32) {
    %c0_i32 = arith.constant 0 : i32
    %c0_i32_0 = arith.constant 0 : i32
    %c0_i32_1 = arith.constant 0 : i32
    %c0_i32_2 = arith.constant 0 : i32
    return %c0_i32, %c0_i32_0, %c0_i32_1 : i32, i32, i32
  }
  func.func @transform_2(%arg0: i32) -> (i32, i32, i32) {
    %c0_i32 = arith.constant 0 : i32
    %c0_i32_0 = arith.constant 0 : i32
    %c0_i32_1 = arith.constant 0 : i32
    return %arg0, %c0_i32, %c0_i32_0 : i32, i32, i32
  }
}

module attributes {stable_mosaic.version = 11 : i64} {
  func.func @_conv3x3_kernel(%arg0: i32, %arg1: memref<1x110x4xf32, #tpu.memory_space<vmem>>, %arg2: memref<9x4x4xf32, #tpu.memory_space<vmem>>, %arg3: memref<1x80x4xf32, #tpu.memory_space<vmem>>) attributes {dimension_semantics = [#tpu.dimension_semantics<parallel>], iteration_bounds = array<i64: 2>, scalar_prefetch = 0 : i64, scratch_operands = 0 : i64, tpu.core_type = #tpu.core_type<tc>, window_params = [{transform_indices = @transform_0, window_bounds = array<i64: 1, 110, 4>}, {pipeline_mode = #tpu.pipeline_mode<synchronous>, transform_indices = @transform_1, window_bounds = array<i64: 9, 4, 4>}, {transform_indices = @transform_2, window_bounds = array<i64: 1, 80, 4>}]} {
    %cst = arith.constant 0.000000e+00 : f32
    %0 = vector.broadcast %cst : f32 to vector<80x4xf32>
    %c0 = arith.constant 0 : index
    %c0_0 = arith.constant 0 : index
    %c0_1 = arith.constant 0 : index
    %1 = vector.load %arg1[%c0, %c0_0, %c0_1] : memref<1x110x4xf32, #tpu.memory_space<vmem>>, vector<1x80x4xf32>
    %2 = vector.shape_cast %1 : vector<1x80x4xf32> to vector<80x4xf32>
    %c0_2 = arith.constant 0 : index
    %c0_3 = arith.constant 0 : index
    %c0_4 = arith.constant 0 : index
    %3 = vector.load %arg2[%c0_2, %c0_3, %c0_4] : memref<9x4x4xf32, #tpu.memory_space<vmem>>, vector<1x4x4xf32>
    %4 = vector.shape_cast %3 : vector<1x4x4xf32> to vector<4x4xf32>
    %cst_5 = arith.constant dense<0.000000e+00> : vector<80x4xf32>
    %5 = tpu.matmul %2, %4, %cst_5 {dimension_numbers = #tpu.dot_dimension_numbers<[1], [0], [0], [1], [0, 0, 1, 1], [], []>} : vector<80x4xf32>, vector<4x4xf32>, vector<80x4xf32> -> vector<80x4xf32>
    %6 = arith.addf %0, %5 : vector<80x4xf32>
    %c0_6 = arith.constant 0 : index
    %c1 = arith.constant 1 : index
    %c0_7 = arith.constant 0 : index
    %7 = vector.load %arg1[%c0_6, %c1, %c0_7] : memref<1x110x4xf32, #tpu.memory_space<vmem>>, vector<1x80x4xf32>
    %8 = vector.shape_cast %7 : vector<1x80x4xf32> to vector<80x4xf32>
    %c1_8 = arith.constant 1 : index
    %c0_9 = arith.constant 0 : index
    %c0_10 = arith.constant 0 : index
    %9 = vector.load %arg2[%c1_8, %c0_9, %c0_10] : memref<9x4x4xf32, #tpu.memory_space<vmem>>, vector<1x4x4xf32>
    %10 = vector.shape_cast %9 : vector<1x4x4xf32> to vector<4x4xf32>
    %cst_11 = arith.constant dense<0.000000e+00> : vector<80x4xf32>
    %11 = tpu.matmul %8, %10, %cst_11 {dimension_numbers = #tpu.dot_dimension_numbers<[1], [0], [0], [1], [0, 0, 1, 1], [], []>} : vector<80x4xf32>, vector<4x4xf32>, vector<80x4xf32> -> vector<80x4xf32>
    %12 = arith.addf %6, %11 : vector<80x4xf32>
    %c0_12 = arith.constant 0 : index
    %c2 = arith.constant 2 : index
    %c0_13 = arith.constant 0 : index
    %13 = vector.load %arg1[%c0_12, %c2, %c0_13] : memref<1x110x4xf32, #tpu.memory_space<vmem>>, vector<1x80x4xf32>
    %14 = vector.shape_cast %13 : vector<1x80x4xf32> to vector<80x4xf32>
    %c2_14 = arith.constant 2 : index
    %c0_15 = arith.constant 0 : index
    %c0_16 = arith.constant 0 : index
    %15 = vector.load %arg2[%c2_14, %c0_15, %c0_16] : memref<9x4x4xf32, #tpu.memory_space<vmem>>, vector<1x4x4xf32>
    %16 = vector.shape_cast %15 : vector<1x4x4xf32> to vector<4x4xf32>
    %cst_17 = arith.constant dense<0.000000e+00> : vector<80x4xf32>
    %17 = tpu.matmul %14, %16, %cst_17 {dimension_numbers = #tpu.dot_dimension_numbers<[1], [0], [0], [1], [0, 0, 1, 1], [], []>} : vector<80x4xf32>, vector<4x4xf32>, vector<80x4xf32> -> vector<80x4xf32>
    %18 = arith.addf %12, %17 : vector<80x4xf32>
    %c0_18 = arith.constant 0 : index
    %c10 = arith.constant 10 : index
    %c0_19 = arith.constant 0 : index
    %19 = vector.load %arg1[%c0_18, %c10, %c0_19] : memref<1x110x4xf32, #tpu.memory_space<vmem>>, vector<1x80x4xf32>
    %20 = vector.shape_cast %19 : vector<1x80x4xf32> to vector<80x4xf32>
    %c3 = arith.constant 3 : index
    %c0_20 = arith.constant 0 : index
    %c0_21 = arith.constant 0 : index
    %21 = vector.load %arg2[%c3, %c0_20, %c0_21] : memref<9x4x4xf32, #tpu.memory_space<vmem>>, vector<1x4x4xf32>
    %22 = vector.shape_cast %21 : vector<1x4x4xf32> to vector<4x4xf32>
    %cst_22 = arith.constant dense<0.000000e+00> : vector<80x4xf32>
    %23 = tpu.matmul %20, %22, %cst_22 {dimension_numbers = #tpu.dot_dimension_numbers<[1], [0], [0], [1], [0, 0, 1, 1], [], []>} : vector<80x4xf32>, vector<4x4xf32>, vector<80x4xf32> -> vector<80x4xf32>
    %24 = arith.addf %18, %23 : vector<80x4xf32>
    %c0_23 = arith.constant 0 : index
    %c11 = arith.constant 11 : index
    %c0_24 = arith.constant 0 : index
    %25 = vector.load %arg1[%c0_23, %c11, %c0_24] : memref<1x110x4xf32, #tpu.memory_space<vmem>>, vector<1x80x4xf32>
    %26 = vector.shape_cast %25 : vector<1x80x4xf32> to vector<80x4xf32>
    %c4 = arith.constant 4 : index
    %c0_25 = arith.constant 0 : index
    %c0_26 = arith.constant 0 : index
    %27 = vector.load %arg2[%c4, %c0_25, %c0_26] : memref<9x4x4xf32, #tpu.memory_space<vmem>>, vector<1x4x4xf32>
    %28 = vector.shape_cast %27 : vector<1x4x4xf32> to vector<4x4xf32>
    %cst_27 = arith.constant dense<0.000000e+00> : vector<80x4xf32>
    %29 = tpu.matmul %26, %28, %cst_27 {dimension_numbers = #tpu.dot_dimension_numbers<[1], [0], [0], [1], [0, 0, 1, 1], [], []>} : vector<80x4xf32>, vector<4x4xf32>, vector<80x4xf32> -> vector<80x4xf32>
    %30 = arith.addf %24, %29 : vector<80x4xf32>
    %c0_28 = arith.constant 0 : index
    %c12 = arith.constant 12 : index
    %c0_29 = arith.constant 0 : index
    %31 = vector.load %arg1[%c0_28, %c12, %c0_29] : memref<1x110x4xf32, #tpu.memory_space<vmem>>, vector<1x80x4xf32>
    %32 = vector.shape_cast %31 : vector<1x80x4xf32> to vector<80x4xf32>
    %c5 = arith.constant 5 : index
    %c0_30 = arith.constant 0 : index
    %c0_31 = arith.constant 0 : index
    %33 = vector.load %arg2[%c5, %c0_30, %c0_31] : memref<9x4x4xf32, #tpu.memory_space<vmem>>, vector<1x4x4xf32>
    %34 = vector.shape_cast %33 : vector<1x4x4xf32> to vector<4x4xf32>
    %cst_32 = arith.constant dense<0.000000e+00> : vector<80x4xf32>
    %35 = tpu.matmul %32, %34, %cst_32 {dimension_numbers = #tpu.dot_dimension_numbers<[1], [0], [0], [1], [0, 0, 1, 1], [], []>} : vector<80x4xf32>, vector<4x4xf32>, vector<80x4xf32> -> vector<80x4xf32>
    %36 = arith.addf %30, %35 : vector<80x4xf32>
    %c0_33 = arith.constant 0 : index
    %c20 = arith.constant 20 : index
    %c0_34 = arith.constant 0 : index
    %37 = vector.load %arg1[%c0_33, %c20, %c0_34] : memref<1x110x4xf32, #tpu.memory_space<vmem>>, vector<1x80x4xf32>
    %38 = vector.shape_cast %37 : vector<1x80x4xf32> to vector<80x4xf32>
    %c6 = arith.constant 6 : index
    %c0_35 = arith.constant 0 : index
    %c0_36 = arith.constant 0 : index
    %39 = vector.load %arg2[%c6, %c0_35, %c0_36] : memref<9x4x4xf32, #tpu.memory_space<vmem>>, vector<1x4x4xf32>
    %40 = vector.shape_cast %39 : vector<1x4x4xf32> to vector<4x4xf32>
    %cst_37 = arith.constant dense<0.000000e+00> : vector<80x4xf32>
    %41 = tpu.matmul %38, %40, %cst_37 {dimension_numbers = #tpu.dot_dimension_numbers<[1], [0], [0], [1], [0, 0, 1, 1], [], []>} : vector<80x4xf32>, vector<4x4xf32>, vector<80x4xf32> -> vector<80x4xf32>
    %42 = arith.addf %36, %41 : vector<80x4xf32>
    %c0_38 = arith.constant 0 : index
    %c21 = arith.constant 21 : index
    %c0_39 = arith.constant 0 : index
    %43 = vector.load %arg1[%c0_38, %c21, %c0_39] : memref<1x110x4xf32, #tpu.memory_space<vmem>>, vector<1x80x4xf32>
    %44 = vector.shape_cast %43 : vector<1x80x4xf32> to vector<80x4xf32>
    %c7 = arith.constant 7 : index
    %c0_40 = arith.constant 0 : index
    %c0_41 = arith.constant 0 : index
    %45 = vector.load %arg2[%c7, %c0_40, %c0_41] : memref<9x4x4xf32, #tpu.memory_space<vmem>>, vector<1x4x4xf32>
    %46 = vector.shape_cast %45 : vector<1x4x4xf32> to vector<4x4xf32>
    %cst_42 = arith.constant dense<0.000000e+00> : vector<80x4xf32>
    %47 = tpu.matmul %44, %46, %cst_42 {dimension_numbers = #tpu.dot_dimension_numbers<[1], [0], [0], [1], [0, 0, 1, 1], [], []>} : vector<80x4xf32>, vector<4x4xf32>, vector<80x4xf32> -> vector<80x4xf32>
    %48 = arith.addf %42, %47 : vector<80x4xf32>
    %c0_43 = arith.constant 0 : index
    %c22 = arith.constant 22 : index
    %c0_44 = arith.constant 0 : index
    %49 = vector.load %arg1[%c0_43, %c22, %c0_44] : memref<1x110x4xf32, #tpu.memory_space<vmem>>, vector<1x80x4xf32>
    %50 = vector.shape_cast %49 : vector<1x80x4xf32> to vector<80x4xf32>
    %c8 = arith.constant 8 : index
    %c0_45 = arith.constant 0 : index
    %c0_46 = arith.constant 0 : index
    %51 = vector.load %arg2[%c8, %c0_45, %c0_46] : memref<9x4x4xf32, #tpu.memory_space<vmem>>, vector<1x4x4xf32>
    %52 = vector.shape_cast %51 : vector<1x4x4xf32> to vector<4x4xf32>
    %cst_47 = arith.constant dense<0.000000e+00> : vector<80x4xf32>
    %53 = tpu.matmul %50, %52, %cst_47 {dimension_numbers = #tpu.dot_dimension_numbers<[1], [0], [0], [1], [0, 0, 1, 1], [], []>} : vector<80x4xf32>, vector<4x4xf32>, vector<80x4xf32> -> vector<80x4xf32>
    %54 = arith.addf %48, %53 : vector<80x4xf32>
    %cst_48 = arith.constant 0.000000e+00 : f32
    %55 = vector.broadcast %cst_48 : f32 to vector<80x4xf32>
    %56 = arith.maximumf %54, %55 : vector<80x4xf32>
    %c0_49 = arith.constant 0 : index
    %c0_50 = arith.constant 0 : index
    %c0_51 = arith.constant 0 : index
    %57 = vector.load %arg3[%c0_49, %c0_50, %c0_51] : memref<1x80x4xf32, #tpu.memory_space<vmem>>, vector<1x80x4xf32>
    %58 = vector.shape_cast %57 : vector<1x80x4xf32> to vector<80x4xf32>
    %59 = vector.shape_cast %56 : vector<80x4xf32> to vector<1x80x4xf32>
    tpu.vector_store %arg3[%c0_49, %c0_50, %c0_51], %59 {strides = array<i32>} : memref<1x80x4xf32, #tpu.memory_space<vmem>>, vector<1x80x4xf32>,
    return
  }
  func.func @transform_0(%arg0: i32) -> (i32, i32, i32) {
    %c0_i32 = arith.constant 0 : i32
    %c0_i32_0 = arith.constant 0 : i32
    %c0_i32_1 = arith.constant 0 : i32
    return %arg0, %c0_i32, %c0_i32_0 : i32, i32, i32
  }
  func.func @transform_1(%arg0: i32) -> (i32, i32, i32) {
    %c0_i32 = arith.constant 0 : i32
    %c0_i32_0 = arith.constant 0 : i32
    %c0_i32_1 = arith.constant 0 : i32
    %c0_i32_2 = arith.constant 0 : i32
    return %c0_i32, %c0_i32_0, %c0_i32_1 : i32, i32, i32
  }
  func.func @transform_2(%arg0: i32) -> (i32, i32, i32) {
    %c0_i32 = arith.constant 0 : i32
    %c0_i32_0 = arith.constant 0 : i32
    %c0_i32_1 = arith.constant 0 : i32
    return %arg0, %c0_i32, %c0_i32_0 : i32, i32, i32
  }
}

module attributes {stable_mosaic.version = 11 : i64} {
  func.func @_conv3x3_kernel(%arg0: i32, %arg1: memref<1x110x8xf32, #tpu.memory_space<vmem>>, %arg2: memref<9x8x8xf32, #tpu.memory_space<vmem>>, %arg3: memref<1x80x8xf32, #tpu.memory_space<vmem>>) attributes {dimension_semantics = [#tpu.dimension_semantics<parallel>], iteration_bounds = array<i64: 2>, scalar_prefetch = 0 : i64, scratch_operands = 0 : i64, tpu.core_type = #tpu.core_type<tc>, window_params = [{transform_indices = @transform_0, window_bounds = array<i64: 1, 110, 8>}, {pipeline_mode = #tpu.pipeline_mode<synchronous>, transform_indices = @transform_1, window_bounds = array<i64: 9, 8, 8>}, {transform_indices = @transform_2, window_bounds = array<i64: 1, 80, 8>}]} {
    %cst = arith.constant 0.000000e+00 : f32
    %0 = vector.broadcast %cst : f32 to vector<80x8xf32>
    %c0 = arith.constant 0 : index
    %c0_0 = arith.constant 0 : index
    %c0_1 = arith.constant 0 : index
    %1 = vector.load %arg1[%c0, %c0_0, %c0_1] : memref<1x110x8xf32, #tpu.memory_space<vmem>>, vector<1x80x8xf32>
    %2 = vector.shape_cast %1 : vector<1x80x8xf32> to vector<80x8xf32>
    %c0_2 = arith.constant 0 : index
    %c0_3 = arith.constant 0 : index
    %c0_4 = arith.constant 0 : index
    %3 = vector.load %arg2[%c0_2, %c0_3, %c0_4] : memref<9x8x8xf32, #tpu.memory_space<vmem>>, vector<1x8x8xf32>
    %4 = vector.shape_cast %3 : vector<1x8x8xf32> to vector<8x8xf32>
    %cst_5 = arith.constant dense<0.000000e+00> : vector<80x8xf32>
    %5 = tpu.matmul %2, %4, %cst_5 {dimension_numbers = #tpu.dot_dimension_numbers<[1], [0], [0], [1], [0, 0, 1, 1], [], []>} : vector<80x8xf32>, vector<8x8xf32>, vector<80x8xf32> -> vector<80x8xf32>
    %6 = arith.addf %0, %5 : vector<80x8xf32>
    %c0_6 = arith.constant 0 : index
    %c1 = arith.constant 1 : index
    %c0_7 = arith.constant 0 : index
    %7 = vector.load %arg1[%c0_6, %c1, %c0_7] : memref<1x110x8xf32, #tpu.memory_space<vmem>>, vector<1x80x8xf32>
    %8 = vector.shape_cast %7 : vector<1x80x8xf32> to vector<80x8xf32>
    %c1_8 = arith.constant 1 : index
    %c0_9 = arith.constant 0 : index
    %c0_10 = arith.constant 0 : index
    %9 = vector.load %arg2[%c1_8, %c0_9, %c0_10] : memref<9x8x8xf32, #tpu.memory_space<vmem>>, vector<1x8x8xf32>
    %10 = vector.shape_cast %9 : vector<1x8x8xf32> to vector<8x8xf32>
    %cst_11 = arith.constant dense<0.000000e+00> : vector<80x8xf32>
    %11 = tpu.matmul %8, %10, %cst_11 {dimension_numbers = #tpu.dot_dimension_numbers<[1], [0], [0], [1], [0, 0, 1, 1], [], []>} : vector<80x8xf32>, vector<8x8xf32>, vector<80x8xf32> -> vector<80x8xf32>
    %12 = arith.addf %6, %11 : vector<80x8xf32>
    %c0_12 = arith.constant 0 : index
    %c2 = arith.constant 2 : index
    %c0_13 = arith.constant 0 : index
    %13 = vector.load %arg1[%c0_12, %c2, %c0_13] : memref<1x110x8xf32, #tpu.memory_space<vmem>>, vector<1x80x8xf32>
    %14 = vector.shape_cast %13 : vector<1x80x8xf32> to vector<80x8xf32>
    %c2_14 = arith.constant 2 : index
    %c0_15 = arith.constant 0 : index
    %c0_16 = arith.constant 0 : index
    %15 = vector.load %arg2[%c2_14, %c0_15, %c0_16] : memref<9x8x8xf32, #tpu.memory_space<vmem>>, vector<1x8x8xf32>
    %16 = vector.shape_cast %15 : vector<1x8x8xf32> to vector<8x8xf32>
    %cst_17 = arith.constant dense<0.000000e+00> : vector<80x8xf32>
    %17 = tpu.matmul %14, %16, %cst_17 {dimension_numbers = #tpu.dot_dimension_numbers<[1], [0], [0], [1], [0, 0, 1, 1], [], []>} : vector<80x8xf32>, vector<8x8xf32>, vector<80x8xf32> -> vector<80x8xf32>
    %18 = arith.addf %12, %17 : vector<80x8xf32>
    %c0_18 = arith.constant 0 : index
    %c10 = arith.constant 10 : index
    %c0_19 = arith.constant 0 : index
    %19 = vector.load %arg1[%c0_18, %c10, %c0_19] : memref<1x110x8xf32, #tpu.memory_space<vmem>>, vector<1x80x8xf32>
    %20 = vector.shape_cast %19 : vector<1x80x8xf32> to vector<80x8xf32>
    %c3 = arith.constant 3 : index
    %c0_20 = arith.constant 0 : index
    %c0_21 = arith.constant 0 : index
    %21 = vector.load %arg2[%c3, %c0_20, %c0_21] : memref<9x8x8xf32, #tpu.memory_space<vmem>>, vector<1x8x8xf32>
    %22 = vector.shape_cast %21 : vector<1x8x8xf32> to vector<8x8xf32>
    %cst_22 = arith.constant dense<0.000000e+00> : vector<80x8xf32>
    %23 = tpu.matmul %20, %22, %cst_22 {dimension_numbers = #tpu.dot_dimension_numbers<[1], [0], [0], [1], [0, 0, 1, 1], [], []>} : vector<80x8xf32>, vector<8x8xf32>, vector<80x8xf32> -> vector<80x8xf32>
    %24 = arith.addf %18, %23 : vector<80x8xf32>
    %c0_23 = arith.constant 0 : index
    %c11 = arith.constant 11 : index
    %c0_24 = arith.constant 0 : index
    %25 = vector.load %arg1[%c0_23, %c11, %c0_24] : memref<1x110x8xf32, #tpu.memory_space<vmem>>, vector<1x80x8xf32>
    %26 = vector.shape_cast %25 : vector<1x80x8xf32> to vector<80x8xf32>
    %c4 = arith.constant 4 : index
    %c0_25 = arith.constant 0 : index
    %c0_26 = arith.constant 0 : index
    %27 = vector.load %arg2[%c4, %c0_25, %c0_26] : memref<9x8x8xf32, #tpu.memory_space<vmem>>, vector<1x8x8xf32>
    %28 = vector.shape_cast %27 : vector<1x8x8xf32> to vector<8x8xf32>
    %cst_27 = arith.constant dense<0.000000e+00> : vector<80x8xf32>
    %29 = tpu.matmul %26, %28, %cst_27 {dimension_numbers = #tpu.dot_dimension_numbers<[1], [0], [0], [1], [0, 0, 1, 1], [], []>} : vector<80x8xf32>, vector<8x8xf32>, vector<80x8xf32> -> vector<80x8xf32>
    %30 = arith.addf %24, %29 : vector<80x8xf32>
    %c0_28 = arith.constant 0 : index
    %c12 = arith.constant 12 : index
    %c0_29 = arith.constant 0 : index
    %31 = vector.load %arg1[%c0_28, %c12, %c0_29] : memref<1x110x8xf32, #tpu.memory_space<vmem>>, vector<1x80x8xf32>
    %32 = vector.shape_cast %31 : vector<1x80x8xf32> to vector<80x8xf32>
    %c5 = arith.constant 5 : index
    %c0_30 = arith.constant 0 : index
    %c0_31 = arith.constant 0 : index
    %33 = vector.load %arg2[%c5, %c0_30, %c0_31] : memref<9x8x8xf32, #tpu.memory_space<vmem>>, vector<1x8x8xf32>
    %34 = vector.shape_cast %33 : vector<1x8x8xf32> to vector<8x8xf32>
    %cst_32 = arith.constant dense<0.000000e+00> : vector<80x8xf32>
    %35 = tpu.matmul %32, %34, %cst_32 {dimension_numbers = #tpu.dot_dimension_numbers<[1], [0], [0], [1], [0, 0, 1, 1], [], []>} : vector<80x8xf32>, vector<8x8xf32>, vector<80x8xf32> -> vector<80x8xf32>
    %36 = arith.addf %30, %35 : vector<80x8xf32>
    %c0_33 = arith.constant 0 : index
    %c20 = arith.constant 20 : index
    %c0_34 = arith.constant 0 : index
    %37 = vector.load %arg1[%c0_33, %c20, %c0_34] : memref<1x110x8xf32, #tpu.memory_space<vmem>>, vector<1x80x8xf32>
    %38 = vector.shape_cast %37 : vector<1x80x8xf32> to vector<80x8xf32>
    %c6 = arith.constant 6 : index
    %c0_35 = arith.constant 0 : index
    %c0_36 = arith.constant 0 : index
    %39 = vector.load %arg2[%c6, %c0_35, %c0_36] : memref<9x8x8xf32, #tpu.memory_space<vmem>>, vector<1x8x8xf32>
    %40 = vector.shape_cast %39 : vector<1x8x8xf32> to vector<8x8xf32>
    %cst_37 = arith.constant dense<0.000000e+00> : vector<80x8xf32>
    %41 = tpu.matmul %38, %40, %cst_37 {dimension_numbers = #tpu.dot_dimension_numbers<[1], [0], [0], [1], [0, 0, 1, 1], [], []>} : vector<80x8xf32>, vector<8x8xf32>, vector<80x8xf32> -> vector<80x8xf32>
    %42 = arith.addf %36, %41 : vector<80x8xf32>
    %c0_38 = arith.constant 0 : index
    %c21 = arith.constant 21 : index
    %c0_39 = arith.constant 0 : index
    %43 = vector.load %arg1[%c0_38, %c21, %c0_39] : memref<1x110x8xf32, #tpu.memory_space<vmem>>, vector<1x80x8xf32>
    %44 = vector.shape_cast %43 : vector<1x80x8xf32> to vector<80x8xf32>
    %c7 = arith.constant 7 : index
    %c0_40 = arith.constant 0 : index
    %c0_41 = arith.constant 0 : index
    %45 = vector.load %arg2[%c7, %c0_40, %c0_41] : memref<9x8x8xf32, #tpu.memory_space<vmem>>, vector<1x8x8xf32>
    %46 = vector.shape_cast %45 : vector<1x8x8xf32> to vector<8x8xf32>
    %cst_42 = arith.constant dense<0.000000e+00> : vector<80x8xf32>
    %47 = tpu.matmul %44, %46, %cst_42 {dimension_numbers = #tpu.dot_dimension_numbers<[1], [0], [0], [1], [0, 0, 1, 1], [], []>} : vector<80x8xf32>, vector<8x8xf32>, vector<80x8xf32> -> vector<80x8xf32>
    %48 = arith.addf %42, %47 : vector<80x8xf32>
    %c0_43 = arith.constant 0 : index
    %c22 = arith.constant 22 : index
    %c0_44 = arith.constant 0 : index
    %49 = vector.load %arg1[%c0_43, %c22, %c0_44] : memref<1x110x8xf32, #tpu.memory_space<vmem>>, vector<1x80x8xf32>
    %50 = vector.shape_cast %49 : vector<1x80x8xf32> to vector<80x8xf32>
    %c8 = arith.constant 8 : index
    %c0_45 = arith.constant 0 : index
    %c0_46 = arith.constant 0 : index
    %51 = vector.load %arg2[%c8, %c0_45, %c0_46] : memref<9x8x8xf32, #tpu.memory_space<vmem>>, vector<1x8x8xf32>
    %52 = vector.shape_cast %51 : vector<1x8x8xf32> to vector<8x8xf32>
    %cst_47 = arith.constant dense<0.000000e+00> : vector<80x8xf32>
    %53 = tpu.matmul %50, %52, %cst_47 {dimension_numbers = #tpu.dot_dimension_numbers<[1], [0], [0], [1], [0, 0, 1, 1], [], []>} : vector<80x8xf32>, vector<8x8xf32>, vector<80x8xf32> -> vector<80x8xf32>
    %54 = arith.addf %48, %53 : vector<80x8xf32>
    %cst_48 = arith.constant 0.000000e+00 : f32
    %55 = vector.broadcast %cst_48 : f32 to vector<80x8xf32>
    %56 = arith.maximumf %54, %55 : vector<80x8xf32>
    %c0_49 = arith.constant 0 : index
    %c0_50 = arith.constant 0 : index
    %c0_51 = arith.constant 0 : index
    %57 = vector.load %arg3[%c0_49, %c0_50, %c0_51] : memref<1x80x8xf32, #tpu.memory_space<vmem>>, vector<1x80x8xf32>
    %58 = vector.shape_cast %57 : vector<1x80x8xf32> to vector<80x8xf32>
    %59 = vector.shape_cast %56 : vector<80x8xf32> to vector<1x80x8xf32>
    tpu.vector_store %arg3[%c0_49, %c0_50, %c0_51], %59 {strides = array<i32>} : memref<1x80x8xf32, #tpu.memory_space<vmem>>, vector<1x80x8xf32>,
    return
  }
  func.func @transform_0(%arg0: i32) -> (i32, i32, i32) {
    %c0_i32 = arith.constant 0 : i32
    %c0_i32_0 = arith.constant 0 : i32
    %c0_i32_1 = arith.constant 0 : i32
    return %arg0, %c0_i32, %c0_i32_0 : i32, i32, i32
  }
  func.func @transform_1(%arg0: i32) -> (i32, i32, i32) {
    %c0_i32 = arith.constant 0 : i32
    %c0_i32_0 = arith.constant 0 : i32
    %c0_i32_1 = arith.constant 0 : i32
    %c0_i32_2 = arith.constant 0 : i32
    return %c0_i32, %c0_i32_0, %c0_i32_1 : i32, i32, i32
  }
  func.func @transform_2(%arg0: i32) -> (i32, i32, i32) {
    %c0_i32 = arith.constant 0 : i32
    %c0_i32_0 = arith.constant 0 : i32
    %c0_i32_1 = arith.constant 0 : i32
    return %arg0, %c0_i32, %c0_i32_0 : i32, i32, i32
  }
}

module attributes {stable_mosaic.version = 11 : i64} {
  func.func @_conv3x3_kernel(%arg0: i32, %arg1: memref<1x42x8xf32, #tpu.memory_space<vmem>>, %arg2: memref<9x8x8xf32, #tpu.memory_space<vmem>>, %arg3: memref<1x24x8xf32, #tpu.memory_space<vmem>>) attributes {dimension_semantics = [#tpu.dimension_semantics<parallel>], iteration_bounds = array<i64: 2>, scalar_prefetch = 0 : i64, scratch_operands = 0 : i64, tpu.core_type = #tpu.core_type<tc>, window_params = [{transform_indices = @transform_0, window_bounds = array<i64: 1, 42, 8>}, {pipeline_mode = #tpu.pipeline_mode<synchronous>, transform_indices = @transform_1, window_bounds = array<i64: 9, 8, 8>}, {transform_indices = @transform_2, window_bounds = array<i64: 1, 24, 8>}]} {
    %cst = arith.constant 0.000000e+00 : f32
    %0 = vector.broadcast %cst : f32 to vector<24x8xf32>
    %c0 = arith.constant 0 : index
    %c0_0 = arith.constant 0 : index
    %c0_1 = arith.constant 0 : index
    %1 = vector.load %arg1[%c0, %c0_0, %c0_1] : memref<1x42x8xf32, #tpu.memory_space<vmem>>, vector<1x24x8xf32>
    %2 = vector.shape_cast %1 : vector<1x24x8xf32> to vector<24x8xf32>
    %c0_2 = arith.constant 0 : index
    %c0_3 = arith.constant 0 : index
    %c0_4 = arith.constant 0 : index
    %3 = vector.load %arg2[%c0_2, %c0_3, %c0_4] : memref<9x8x8xf32, #tpu.memory_space<vmem>>, vector<1x8x8xf32>
    %4 = vector.shape_cast %3 : vector<1x8x8xf32> to vector<8x8xf32>
    %cst_5 = arith.constant dense<0.000000e+00> : vector<24x8xf32>
    %5 = tpu.matmul %2, %4, %cst_5 {dimension_numbers = #tpu.dot_dimension_numbers<[1], [0], [0], [1], [0, 0, 1, 1], [], []>} : vector<24x8xf32>, vector<8x8xf32>, vector<24x8xf32> -> vector<24x8xf32>
    %6 = arith.addf %0, %5 : vector<24x8xf32>
    %c0_6 = arith.constant 0 : index
    %c1 = arith.constant 1 : index
    %c0_7 = arith.constant 0 : index
    %7 = vector.load %arg1[%c0_6, %c1, %c0_7] : memref<1x42x8xf32, #tpu.memory_space<vmem>>, vector<1x24x8xf32>
    %8 = vector.shape_cast %7 : vector<1x24x8xf32> to vector<24x8xf32>
    %c1_8 = arith.constant 1 : index
    %c0_9 = arith.constant 0 : index
    %c0_10 = arith.constant 0 : index
    %9 = vector.load %arg2[%c1_8, %c0_9, %c0_10] : memref<9x8x8xf32, #tpu.memory_space<vmem>>, vector<1x8x8xf32>
    %10 = vector.shape_cast %9 : vector<1x8x8xf32> to vector<8x8xf32>
    %cst_11 = arith.constant dense<0.000000e+00> : vector<24x8xf32>
    %11 = tpu.matmul %8, %10, %cst_11 {dimension_numbers = #tpu.dot_dimension_numbers<[1], [0], [0], [1], [0, 0, 1, 1], [], []>} : vector<24x8xf32>, vector<8x8xf32>, vector<24x8xf32> -> vector<24x8xf32>
    %12 = arith.addf %6, %11 : vector<24x8xf32>
    %c0_12 = arith.constant 0 : index
    %c2 = arith.constant 2 : index
    %c0_13 = arith.constant 0 : index
    %13 = vector.load %arg1[%c0_12, %c2, %c0_13] : memref<1x42x8xf32, #tpu.memory_space<vmem>>, vector<1x24x8xf32>
    %14 = vector.shape_cast %13 : vector<1x24x8xf32> to vector<24x8xf32>
    %c2_14 = arith.constant 2 : index
    %c0_15 = arith.constant 0 : index
    %c0_16 = arith.constant 0 : index
    %15 = vector.load %arg2[%c2_14, %c0_15, %c0_16] : memref<9x8x8xf32, #tpu.memory_space<vmem>>, vector<1x8x8xf32>
    %16 = vector.shape_cast %15 : vector<1x8x8xf32> to vector<8x8xf32>
    %cst_17 = arith.constant dense<0.000000e+00> : vector<24x8xf32>
    %17 = tpu.matmul %14, %16, %cst_17 {dimension_numbers = #tpu.dot_dimension_numbers<[1], [0], [0], [1], [0, 0, 1, 1], [], []>} : vector<24x8xf32>, vector<8x8xf32>, vector<24x8xf32> -> vector<24x8xf32>
    %18 = arith.addf %12, %17 : vector<24x8xf32>
    %c0_18 = arith.constant 0 : index
    %c6 = arith.constant 6 : index
    %c0_19 = arith.constant 0 : index
    %19 = vector.load %arg1[%c0_18, %c6, %c0_19] : memref<1x42x8xf32, #tpu.memory_space<vmem>>, vector<1x24x8xf32>
    %20 = vector.shape_cast %19 : vector<1x24x8xf32> to vector<24x8xf32>
    %c3 = arith.constant 3 : index
    %c0_20 = arith.constant 0 : index
    %c0_21 = arith.constant 0 : index
    %21 = vector.load %arg2[%c3, %c0_20, %c0_21] : memref<9x8x8xf32, #tpu.memory_space<vmem>>, vector<1x8x8xf32>
    %22 = vector.shape_cast %21 : vector<1x8x8xf32> to vector<8x8xf32>
    %cst_22 = arith.constant dense<0.000000e+00> : vector<24x8xf32>
    %23 = tpu.matmul %20, %22, %cst_22 {dimension_numbers = #tpu.dot_dimension_numbers<[1], [0], [0], [1], [0, 0, 1, 1], [], []>} : vector<24x8xf32>, vector<8x8xf32>, vector<24x8xf32> -> vector<24x8xf32>
    %24 = arith.addf %18, %23 : vector<24x8xf32>
    %c0_23 = arith.constant 0 : index
    %c7 = arith.constant 7 : index
    %c0_24 = arith.constant 0 : index
    %25 = vector.load %arg1[%c0_23, %c7, %c0_24] : memref<1x42x8xf32, #tpu.memory_space<vmem>>, vector<1x24x8xf32>
    %26 = vector.shape_cast %25 : vector<1x24x8xf32> to vector<24x8xf32>
    %c4 = arith.constant 4 : index
    %c0_25 = arith.constant 0 : index
    %c0_26 = arith.constant 0 : index
    %27 = vector.load %arg2[%c4, %c0_25, %c0_26] : memref<9x8x8xf32, #tpu.memory_space<vmem>>, vector<1x8x8xf32>
    %28 = vector.shape_cast %27 : vector<1x8x8xf32> to vector<8x8xf32>
    %cst_27 = arith.constant dense<0.000000e+00> : vector<24x8xf32>
    %29 = tpu.matmul %26, %28, %cst_27 {dimension_numbers = #tpu.dot_dimension_numbers<[1], [0], [0], [1], [0, 0, 1, 1], [], []>} : vector<24x8xf32>, vector<8x8xf32>, vector<24x8xf32> -> vector<24x8xf32>
    %30 = arith.addf %24, %29 : vector<24x8xf32>
    %c0_28 = arith.constant 0 : index
    %c8 = arith.constant 8 : index
    %c0_29 = arith.constant 0 : index
    %31 = vector.load %arg1[%c0_28, %c8, %c0_29] : memref<1x42x8xf32, #tpu.memory_space<vmem>>, vector<1x24x8xf32>
    %32 = vector.shape_cast %31 : vector<1x24x8xf32> to vector<24x8xf32>
    %c5 = arith.constant 5 : index
    %c0_30 = arith.constant 0 : index
    %c0_31 = arith.constant 0 : index
    %33 = vector.load %arg2[%c5, %c0_30, %c0_31] : memref<9x8x8xf32, #tpu.memory_space<vmem>>, vector<1x8x8xf32>
    %34 = vector.shape_cast %33 : vector<1x8x8xf32> to vector<8x8xf32>
    %cst_32 = arith.constant dense<0.000000e+00> : vector<24x8xf32>
    %35 = tpu.matmul %32, %34, %cst_32 {dimension_numbers = #tpu.dot_dimension_numbers<[1], [0], [0], [1], [0, 0, 1, 1], [], []>} : vector<24x8xf32>, vector<8x8xf32>, vector<24x8xf32> -> vector<24x8xf32>
    %36 = arith.addf %30, %35 : vector<24x8xf32>
    %c0_33 = arith.constant 0 : index
    %c12 = arith.constant 12 : index
    %c0_34 = arith.constant 0 : index
    %37 = vector.load %arg1[%c0_33, %c12, %c0_34] : memref<1x42x8xf32, #tpu.memory_space<vmem>>, vector<1x24x8xf32>
    %38 = vector.shape_cast %37 : vector<1x24x8xf32> to vector<24x8xf32>
    %c6_35 = arith.constant 6 : index
    %c0_36 = arith.constant 0 : index
    %c0_37 = arith.constant 0 : index
    %39 = vector.load %arg2[%c6_35, %c0_36, %c0_37] : memref<9x8x8xf32, #tpu.memory_space<vmem>>, vector<1x8x8xf32>
    %40 = vector.shape_cast %39 : vector<1x8x8xf32> to vector<8x8xf32>
    %cst_38 = arith.constant dense<0.000000e+00> : vector<24x8xf32>
    %41 = tpu.matmul %38, %40, %cst_38 {dimension_numbers = #tpu.dot_dimension_numbers<[1], [0], [0], [1], [0, 0, 1, 1], [], []>} : vector<24x8xf32>, vector<8x8xf32>, vector<24x8xf32> -> vector<24x8xf32>
    %42 = arith.addf %36, %41 : vector<24x8xf32>
    %c0_39 = arith.constant 0 : index
    %c13 = arith.constant 13 : index
    %c0_40 = arith.constant 0 : index
    %43 = vector.load %arg1[%c0_39, %c13, %c0_40] : memref<1x42x8xf32, #tpu.memory_space<vmem>>, vector<1x24x8xf32>
    %44 = vector.shape_cast %43 : vector<1x24x8xf32> to vector<24x8xf32>
    %c7_41 = arith.constant 7 : index
    %c0_42 = arith.constant 0 : index
    %c0_43 = arith.constant 0 : index
    %45 = vector.load %arg2[%c7_41, %c0_42, %c0_43] : memref<9x8x8xf32, #tpu.memory_space<vmem>>, vector<1x8x8xf32>
    %46 = vector.shape_cast %45 : vector<1x8x8xf32> to vector<8x8xf32>
    %cst_44 = arith.constant dense<0.000000e+00> : vector<24x8xf32>
    %47 = tpu.matmul %44, %46, %cst_44 {dimension_numbers = #tpu.dot_dimension_numbers<[1], [0], [0], [1], [0, 0, 1, 1], [], []>} : vector<24x8xf32>, vector<8x8xf32>, vector<24x8xf32> -> vector<24x8xf32>
    %48 = arith.addf %42, %47 : vector<24x8xf32>
    %c0_45 = arith.constant 0 : index
    %c14 = arith.constant 14 : index
    %c0_46 = arith.constant 0 : index
    %49 = vector.load %arg1[%c0_45, %c14, %c0_46] : memref<1x42x8xf32, #tpu.memory_space<vmem>>, vector<1x24x8xf32>
    %50 = vector.shape_cast %49 : vector<1x24x8xf32> to vector<24x8xf32>
    %c8_47 = arith.constant 8 : index
    %c0_48 = arith.constant 0 : index
    %c0_49 = arith.constant 0 : index
    %51 = vector.load %arg2[%c8_47, %c0_48, %c0_49] : memref<9x8x8xf32, #tpu.memory_space<vmem>>, vector<1x8x8xf32>
    %52 = vector.shape_cast %51 : vector<1x8x8xf32> to vector<8x8xf32>
    %cst_50 = arith.constant dense<0.000000e+00> : vector<24x8xf32>
    %53 = tpu.matmul %50, %52, %cst_50 {dimension_numbers = #tpu.dot_dimension_numbers<[1], [0], [0], [1], [0, 0, 1, 1], [], []>} : vector<24x8xf32>, vector<8x8xf32>, vector<24x8xf32> -> vector<24x8xf32>
    %54 = arith.addf %48, %53 : vector<24x8xf32>
    %cst_51 = arith.constant 0.000000e+00 : f32
    %55 = vector.broadcast %cst_51 : f32 to vector<24x8xf32>
    %56 = arith.maximumf %54, %55 : vector<24x8xf32>
    %c0_52 = arith.constant 0 : index
    %c0_53 = arith.constant 0 : index
    %c0_54 = arith.constant 0 : index
    %57 = vector.load %arg3[%c0_52, %c0_53, %c0_54] : memref<1x24x8xf32, #tpu.memory_space<vmem>>, vector<1x24x8xf32>
    %58 = vector.shape_cast %57 : vector<1x24x8xf32> to vector<24x8xf32>
    %59 = vector.shape_cast %56 : vector<24x8xf32> to vector<1x24x8xf32>
    tpu.vector_store %arg3[%c0_52, %c0_53, %c0_54], %59 {strides = array<i32>} : memref<1x24x8xf32, #tpu.memory_space<vmem>>, vector<1x24x8xf32>,
    return
  }
  func.func @transform_0(%arg0: i32) -> (i32, i32, i32) {
    %c0_i32 = arith.constant 0 : i32
    %c0_i32_0 = arith.constant 0 : i32
    %c0_i32_1 = arith.constant 0 : i32
    return %arg0, %c0_i32, %c0_i32_0 : i32, i32, i32
  }
  func.func @transform_1(%arg0: i32) -> (i32, i32, i32) {
    %c0_i32 = arith.constant 0 : i32
    %c0_i32_0 = arith.constant 0 : i32
    %c0_i32_1 = arith.constant 0 : i32
    %c0_i32_2 = arith.constant 0 : i32
    return %c0_i32, %c0_i32_0, %c0_i32_1 : i32, i32, i32
  }
  func.func @transform_2(%arg0: i32) -> (i32, i32, i32) {
    %c0_i32 = arith.constant 0 : i32
    %c0_i32_0 = arith.constant 0 : i32
    %c0_i32_1 = arith.constant 0 : i32
    return %arg0, %c0_i32, %c0_i32_0 : i32, i32, i32
  }
}

module attributes {stable_mosaic.version = 11 : i64} {
  func.func @_deconv_bn_kernel(%arg0: memref<2x110x16xf32, #tpu.memory_space<vmem>>, %arg1: memref<9x16x8xf32, #tpu.memory_space<vmem>>, %arg2: memref<1x8xf32, #tpu.memory_space<vmem>>, %arg3: memref<1x8xf32, #tpu.memory_space<vmem>>, %arg4: memref<80x1xf32, #tpu.memory_space<vmem>>, %arg5: memref<2x80x8xf32, #tpu.memory_space<vmem>>) attributes {dimension_semantics = [], scalar_prefetch = 0 : i64, scratch_operands = 0 : i64, tpu.core_type = #tpu.core_type<tc>} {
    %cst = arith.constant 0.000000e+00 : f32
    %0 = vector.broadcast %cst : f32 to vector<80x8xf32>
    %c0 = arith.constant 0 : index
    %c0_0 = arith.constant 0 : index
    %c0_1 = arith.constant 0 : index
    %1 = vector.load %arg0[%c0, %c0_0, %c0_1] : memref<2x110x16xf32, #tpu.memory_space<vmem>>, vector<1x80x16xf32>
    %2 = vector.shape_cast %1 : vector<1x80x16xf32> to vector<80x16xf32>
    %c0_2 = arith.constant 0 : index
    %c0_3 = arith.constant 0 : index
    %c0_4 = arith.constant 0 : index
    %3 = vector.load %arg1[%c0_2, %c0_3, %c0_4] : memref<9x16x8xf32, #tpu.memory_space<vmem>>, vector<1x16x8xf32>
    %4 = vector.shape_cast %3 : vector<1x16x8xf32> to vector<16x8xf32>
    %cst_5 = arith.constant dense<0.000000e+00> : vector<80x8xf32>
    %5 = tpu.matmul %2, %4, %cst_5 {dimension_numbers = #tpu.dot_dimension_numbers<[1], [0], [0], [1], [0, 0, 1, 1], [], []>} : vector<80x16xf32>, vector<16x8xf32>, vector<80x8xf32> -> vector<80x8xf32>
    %6 = arith.addf %0, %5 : vector<80x8xf32>
    %c0_6 = arith.constant 0 : index
    %c1 = arith.constant 1 : index
    %c0_7 = arith.constant 0 : index
    %7 = vector.load %arg0[%c0_6, %c1, %c0_7] : memref<2x110x16xf32, #tpu.memory_space<vmem>>, vector<1x80x16xf32>
    %8 = vector.shape_cast %7 : vector<1x80x16xf32> to vector<80x16xf32>
    %c1_8 = arith.constant 1 : index
    %c0_9 = arith.constant 0 : index
    %c0_10 = arith.constant 0 : index
    %9 = vector.load %arg1[%c1_8, %c0_9, %c0_10] : memref<9x16x8xf32, #tpu.memory_space<vmem>>, vector<1x16x8xf32>
    %10 = vector.shape_cast %9 : vector<1x16x8xf32> to vector<16x8xf32>
    %cst_11 = arith.constant dense<0.000000e+00> : vector<80x8xf32>
    %11 = tpu.matmul %8, %10, %cst_11 {dimension_numbers = #tpu.dot_dimension_numbers<[1], [0], [0], [1], [0, 0, 1, 1], [], []>} : vector<80x16xf32>, vector<16x8xf32>, vector<80x8xf32> -> vector<80x8xf32>
    %12 = arith.addf %6, %11 : vector<80x8xf32>
    %c0_12 = arith.constant 0 : index
    %c2 = arith.constant 2 : index
    %c0_13 = arith.constant 0 : index
    %13 = vector.load %arg0[%c0_12, %c2, %c0_13] : memref<2x110x16xf32, #tpu.memory_space<vmem>>, vector<1x80x16xf32>
    %14 = vector.shape_cast %13 : vector<1x80x16xf32> to vector<80x16xf32>
    %c2_14 = arith.constant 2 : index
    %c0_15 = arith.constant 0 : index
    %c0_16 = arith.constant 0 : index
    %15 = vector.load %arg1[%c2_14, %c0_15, %c0_16] : memref<9x16x8xf32, #tpu.memory_space<vmem>>, vector<1x16x8xf32>
    %16 = vector.shape_cast %15 : vector<1x16x8xf32> to vector<16x8xf32>
    %cst_17 = arith.constant dense<0.000000e+00> : vector<80x8xf32>
    %17 = tpu.matmul %14, %16, %cst_17 {dimension_numbers = #tpu.dot_dimension_numbers<[1], [0], [0], [1], [0, 0, 1, 1], [], []>} : vector<80x16xf32>, vector<16x8xf32>, vector<80x8xf32> -> vector<80x8xf32>
    %18 = arith.addf %12, %17 : vector<80x8xf32>
    %c0_18 = arith.constant 0 : index
    %c10 = arith.constant 10 : index
    %c0_19 = arith.constant 0 : index
    %19 = vector.load %arg0[%c0_18, %c10, %c0_19] : memref<2x110x16xf32, #tpu.memory_space<vmem>>, vector<1x80x16xf32>
    %20 = vector.shape_cast %19 : vector<1x80x16xf32> to vector<80x16xf32>
    %c3 = arith.constant 3 : index
    %c0_20 = arith.constant 0 : index
    %c0_21 = arith.constant 0 : index
    %21 = vector.load %arg1[%c3, %c0_20, %c0_21] : memref<9x16x8xf32, #tpu.memory_space<vmem>>, vector<1x16x8xf32>
    %22 = vector.shape_cast %21 : vector<1x16x8xf32> to vector<16x8xf32>
    %cst_22 = arith.constant dense<0.000000e+00> : vector<80x8xf32>
    %23 = tpu.matmul %20, %22, %cst_22 {dimension_numbers = #tpu.dot_dimension_numbers<[1], [0], [0], [1], [0, 0, 1, 1], [], []>} : vector<80x16xf32>, vector<16x8xf32>, vector<80x8xf32> -> vector<80x8xf32>
    %24 = arith.addf %18, %23 : vector<80x8xf32>
    %c0_23 = arith.constant 0 : index
    %c11 = arith.constant 11 : index
    %c0_24 = arith.constant 0 : index
    %25 = vector.load %arg0[%c0_23, %c11, %c0_24] : memref<2x110x16xf32, #tpu.memory_space<vmem>>, vector<1x80x16xf32>
    %26 = vector.shape_cast %25 : vector<1x80x16xf32> to vector<80x16xf32>
    %c4 = arith.constant 4 : index
    %c0_25 = arith.constant 0 : index
    %c0_26 = arith.constant 0 : index
    %27 = vector.load %arg1[%c4, %c0_25, %c0_26] : memref<9x16x8xf32, #tpu.memory_space<vmem>>, vector<1x16x8xf32>
    %28 = vector.shape_cast %27 : vector<1x16x8xf32> to vector<16x8xf32>
    %cst_27 = arith.constant dense<0.000000e+00> : vector<80x8xf32>
    %29 = tpu.matmul %26, %28, %cst_27 {dimension_numbers = #tpu.dot_dimension_numbers<[1], [0], [0], [1], [0, 0, 1, 1], [], []>} : vector<80x16xf32>, vector<16x8xf32>, vector<80x8xf32> -> vector<80x8xf32>
    %30 = arith.addf %24, %29 : vector<80x8xf32>
    %c0_28 = arith.constant 0 : index
    %c12 = arith.constant 12 : index
    %c0_29 = arith.constant 0 : index
    %31 = vector.load %arg0[%c0_28, %c12, %c0_29] : memref<2x110x16xf32, #tpu.memory_space<vmem>>, vector<1x80x16xf32>
    %32 = vector.shape_cast %31 : vector<1x80x16xf32> to vector<80x16xf32>
    %c5 = arith.constant 5 : index
    %c0_30 = arith.constant 0 : index
    %c0_31 = arith.constant 0 : index
    %33 = vector.load %arg1[%c5, %c0_30, %c0_31] : memref<9x16x8xf32, #tpu.memory_space<vmem>>, vector<1x16x8xf32>
    %34 = vector.shape_cast %33 : vector<1x16x8xf32> to vector<16x8xf32>
    %cst_32 = arith.constant dense<0.000000e+00> : vector<80x8xf32>
    %35 = tpu.matmul %32, %34, %cst_32 {dimension_numbers = #tpu.dot_dimension_numbers<[1], [0], [0], [1], [0, 0, 1, 1], [], []>} : vector<80x16xf32>, vector<16x8xf32>, vector<80x8xf32> -> vector<80x8xf32>
    %36 = arith.addf %30, %35 : vector<80x8xf32>
    %c0_33 = arith.constant 0 : index
    %c20 = arith.constant 20 : index
    %c0_34 = arith.constant 0 : index
    %37 = vector.load %arg0[%c0_33, %c20, %c0_34] : memref<2x110x16xf32, #tpu.memory_space<vmem>>, vector<1x80x16xf32>
    %38 = vector.shape_cast %37 : vector<1x80x16xf32> to vector<80x16xf32>
    %c6 = arith.constant 6 : index
    %c0_35 = arith.constant 0 : index
    %c0_36 = arith.constant 0 : index
    %39 = vector.load %arg1[%c6, %c0_35, %c0_36] : memref<9x16x8xf32, #tpu.memory_space<vmem>>, vector<1x16x8xf32>
    %40 = vector.shape_cast %39 : vector<1x16x8xf32> to vector<16x8xf32>
    %cst_37 = arith.constant dense<0.000000e+00> : vector<80x8xf32>
    %41 = tpu.matmul %38, %40, %cst_37 {dimension_numbers = #tpu.dot_dimension_numbers<[1], [0], [0], [1], [0, 0, 1, 1], [], []>} : vector<80x16xf32>, vector<16x8xf32>, vector<80x8xf32> -> vector<80x8xf32>
    %42 = arith.addf %36, %41 : vector<80x8xf32>
    %c0_38 = arith.constant 0 : index
    %c21 = arith.constant 21 : index
    %c0_39 = arith.constant 0 : index
    %43 = vector.load %arg0[%c0_38, %c21, %c0_39] : memref<2x110x16xf32, #tpu.memory_space<vmem>>, vector<1x80x16xf32>
    %44 = vector.shape_cast %43 : vector<1x80x16xf32> to vector<80x16xf32>
    %c7 = arith.constant 7 : index
    %c0_40 = arith.constant 0 : index
    %c0_41 = arith.constant 0 : index
    %45 = vector.load %arg1[%c7, %c0_40, %c0_41] : memref<9x16x8xf32, #tpu.memory_space<vmem>>, vector<1x16x8xf32>
    %46 = vector.shape_cast %45 : vector<1x16x8xf32> to vector<16x8xf32>
    %cst_42 = arith.constant dense<0.000000e+00> : vector<80x8xf32>
    %47 = tpu.matmul %44, %46, %cst_42 {dimension_numbers = #tpu.dot_dimension_numbers<[1], [0], [0], [1], [0, 0, 1, 1], [], []>} : vector<80x16xf32>, vector<16x8xf32>, vector<80x8xf32> -> vector<80x8xf32>
    %48 = arith.addf %42, %47 : vector<80x8xf32>
    %c0_43 = arith.constant 0 : index
    %c22 = arith.constant 22 : index
    %c0_44 = arith.constant 0 : index
    %49 = vector.load %arg0[%c0_43, %c22, %c0_44] : memref<2x110x16xf32, #tpu.memory_space<vmem>>, vector<1x80x16xf32>
    %50 = vector.shape_cast %49 : vector<1x80x16xf32> to vector<80x16xf32>
    %c8 = arith.constant 8 : index
    %c0_45 = arith.constant 0 : index
    %c0_46 = arith.constant 0 : index
    %51 = vector.load %arg1[%c8, %c0_45, %c0_46] : memref<9x16x8xf32, #tpu.memory_space<vmem>>, vector<1x16x8xf32>
    %52 = vector.shape_cast %51 : vector<1x16x8xf32> to vector<16x8xf32>
    %cst_47 = arith.constant dense<0.000000e+00> : vector<80x8xf32>
    %53 = tpu.matmul %50, %52, %cst_47 {dimension_numbers = #tpu.dot_dimension_numbers<[1], [0], [0], [1], [0, 0, 1, 1], [], []>} : vector<80x16xf32>, vector<16x8xf32>, vector<80x8xf32> -> vector<80x8xf32>
    %54 = arith.addf %48, %53 : vector<80x8xf32>
    %cst_48 = arith.constant 0.000000e+00 : f32
    %55 = vector.broadcast %cst_48 : f32 to vector<80x8xf32>
    %c1_49 = arith.constant 1 : index
    %c0_50 = arith.constant 0 : index
    %c0_51 = arith.constant 0 : index
    %56 = vector.load %arg0[%c1_49, %c0_50, %c0_51] : memref<2x110x16xf32, #tpu.memory_space<vmem>>, vector<1x80x16xf32>
    %57 = vector.shape_cast %56 : vector<1x80x16xf32> to vector<80x16xf32>
    %c0_52 = arith.constant 0 : index
    %c0_53 = arith.constant 0 : index
    %c0_54 = arith.constant 0 : index
    %58 = vector.load %arg1[%c0_52, %c0_53, %c0_54] : memref<9x16x8xf32, #tpu.memory_space<vmem>>, vector<1x16x8xf32>
    %59 = vector.shape_cast %58 : vector<1x16x8xf32> to vector<16x8xf32>
    %cst_55 = arith.constant dense<0.000000e+00> : vector<80x8xf32>
    %60 = tpu.matmul %57, %59, %cst_55 {dimension_numbers = #tpu.dot_dimension_numbers<[1], [0], [0], [1], [0, 0, 1, 1], [], []>} : vector<80x16xf32>, vector<16x8xf32>, vector<80x8xf32> -> vector<80x8xf32>
    %61 = arith.addf %55, %60 : vector<80x8xf32>
    %c1_56 = arith.constant 1 : index
    %c1_57 = arith.constant 1 : index
    %c0_58 = arith.constant 0 : index
    %62 = vector.load %arg0[%c1_56, %c1_57, %c0_58] : memref<2x110x16xf32, #tpu.memory_space<vmem>>, vector<1x80x16xf32>
    %63 = vector.shape_cast %62 : vector<1x80x16xf32> to vector<80x16xf32>
    %c1_59 = arith.constant 1 : index
    %c0_60 = arith.constant 0 : index
    %c0_61 = arith.constant 0 : index
    %64 = vector.load %arg1[%c1_59, %c0_60, %c0_61] : memref<9x16x8xf32, #tpu.memory_space<vmem>>, vector<1x16x8xf32>
    %65 = vector.shape_cast %64 : vector<1x16x8xf32> to vector<16x8xf32>
    %cst_62 = arith.constant dense<0.000000e+00> : vector<80x8xf32>
    %66 = tpu.matmul %63, %65, %cst_62 {dimension_numbers = #tpu.dot_dimension_numbers<[1], [0], [0], [1], [0, 0, 1, 1], [], []>} : vector<80x16xf32>, vector<16x8xf32>, vector<80x8xf32> -> vector<80x8xf32>
    %67 = arith.addf %61, %66 : vector<80x8xf32>
    %c1_63 = arith.constant 1 : index
    %c2_64 = arith.constant 2 : index
    %c0_65 = arith.constant 0 : index
    %68 = vector.load %arg0[%c1_63, %c2_64, %c0_65] : memref<2x110x16xf32, #tpu.memory_space<vmem>>, vector<1x80x16xf32>
    %69 = vector.shape_cast %68 : vector<1x80x16xf32> to vector<80x16xf32>
    %c2_66 = arith.constant 2 : index
    %c0_67 = arith.constant 0 : index
    %c0_68 = arith.constant 0 : index
    %70 = vector.load %arg1[%c2_66, %c0_67, %c0_68] : memref<9x16x8xf32, #tpu.memory_space<vmem>>, vector<1x16x8xf32>
    %71 = vector.shape_cast %70 : vector<1x16x8xf32> to vector<16x8xf32>
    %cst_69 = arith.constant dense<0.000000e+00> : vector<80x8xf32>
    %72 = tpu.matmul %69, %71, %cst_69 {dimension_numbers = #tpu.dot_dimension_numbers<[1], [0], [0], [1], [0, 0, 1, 1], [], []>} : vector<80x16xf32>, vector<16x8xf32>, vector<80x8xf32> -> vector<80x8xf32>
    %73 = arith.addf %67, %72 : vector<80x8xf32>
    %c1_70 = arith.constant 1 : index
    %c10_71 = arith.constant 10 : index
    %c0_72 = arith.constant 0 : index
    %74 = vector.load %arg0[%c1_70, %c10_71, %c0_72] : memref<2x110x16xf32, #tpu.memory_space<vmem>>, vector<1x80x16xf32>
    %75 = vector.shape_cast %74 : vector<1x80x16xf32> to vector<80x16xf32>
    %c3_73 = arith.constant 3 : index
    %c0_74 = arith.constant 0 : index
    %c0_75 = arith.constant 0 : index
    %76 = vector.load %arg1[%c3_73, %c0_74, %c0_75] : memref<9x16x8xf32, #tpu.memory_space<vmem>>, vector<1x16x8xf32>
    %77 = vector.shape_cast %76 : vector<1x16x8xf32> to vector<16x8xf32>
    %cst_76 = arith.constant dense<0.000000e+00> : vector<80x8xf32>
    %78 = tpu.matmul %75, %77, %cst_76 {dimension_numbers = #tpu.dot_dimension_numbers<[1], [0], [0], [1], [0, 0, 1, 1], [], []>} : vector<80x16xf32>, vector<16x8xf32>, vector<80x8xf32> -> vector<80x8xf32>
    %79 = arith.addf %73, %78 : vector<80x8xf32>
    %c1_77 = arith.constant 1 : index
    %c11_78 = arith.constant 11 : index
    %c0_79 = arith.constant 0 : index
    %80 = vector.load %arg0[%c1_77, %c11_78, %c0_79] : memref<2x110x16xf32, #tpu.memory_space<vmem>>, vector<1x80x16xf32>
    %81 = vector.shape_cast %80 : vector<1x80x16xf32> to vector<80x16xf32>
    %c4_80 = arith.constant 4 : index
    %c0_81 = arith.constant 0 : index
    %c0_82 = arith.constant 0 : index
    %82 = vector.load %arg1[%c4_80, %c0_81, %c0_82] : memref<9x16x8xf32, #tpu.memory_space<vmem>>, vector<1x16x8xf32>
    %83 = vector.shape_cast %82 : vector<1x16x8xf32> to vector<16x8xf32>
    %cst_83 = arith.constant dense<0.000000e+00> : vector<80x8xf32>
    %84 = tpu.matmul %81, %83, %cst_83 {dimension_numbers = #tpu.dot_dimension_numbers<[1], [0], [0], [1], [0, 0, 1, 1], [], []>} : vector<80x16xf32>, vector<16x8xf32>, vector<80x8xf32> -> vector<80x8xf32>
    %85 = arith.addf %79, %84 : vector<80x8xf32>
    %c1_84 = arith.constant 1 : index
    %c12_85 = arith.constant 12 : index
    %c0_86 = arith.constant 0 : index
    %86 = vector.load %arg0[%c1_84, %c12_85, %c0_86] : memref<2x110x16xf32, #tpu.memory_space<vmem>>, vector<1x80x16xf32>
    %87 = vector.shape_cast %86 : vector<1x80x16xf32> to vector<80x16xf32>
    %c5_87 = arith.constant 5 : index
    %c0_88 = arith.constant 0 : index
    %c0_89 = arith.constant 0 : index
    %88 = vector.load %arg1[%c5_87, %c0_88, %c0_89] : memref<9x16x8xf32, #tpu.memory_space<vmem>>, vector<1x16x8xf32>
    %89 = vector.shape_cast %88 : vector<1x16x8xf32> to vector<16x8xf32>
    %cst_90 = arith.constant dense<0.000000e+00> : vector<80x8xf32>
    %90 = tpu.matmul %87, %89, %cst_90 {dimension_numbers = #tpu.dot_dimension_numbers<[1], [0], [0], [1], [0, 0, 1, 1], [], []>} : vector<80x16xf32>, vector<16x8xf32>, vector<80x8xf32> -> vector<80x8xf32>
    %91 = arith.addf %85, %90 : vector<80x8xf32>
    %c1_91 = arith.constant 1 : index
    %c20_92 = arith.constant 20 : index
    %c0_93 = arith.constant 0 : index
    %92 = vector.load %arg0[%c1_91, %c20_92, %c0_93] : memref<2x110x16xf32, #tpu.memory_space<vmem>>, vector<1x80x16xf32>
    %93 = vector.shape_cast %92 : vector<1x80x16xf32> to vector<80x16xf32>
    %c6_94 = arith.constant 6 : index
    %c0_95 = arith.constant 0 : index
    %c0_96 = arith.constant 0 : index
    %94 = vector.load %arg1[%c6_94, %c0_95, %c0_96] : memref<9x16x8xf32, #tpu.memory_space<vmem>>, vector<1x16x8xf32>
    %95 = vector.shape_cast %94 : vector<1x16x8xf32> to vector<16x8xf32>
    %cst_97 = arith.constant dense<0.000000e+00> : vector<80x8xf32>
    %96 = tpu.matmul %93, %95, %cst_97 {dimension_numbers = #tpu.dot_dimension_numbers<[1], [0], [0], [1], [0, 0, 1, 1], [], []>} : vector<80x16xf32>, vector<16x8xf32>, vector<80x8xf32> -> vector<80x8xf32>
    %97 = arith.addf %91, %96 : vector<80x8xf32>
    %c1_98 = arith.constant 1 : index
    %c21_99 = arith.constant 21 : index
    %c0_100 = arith.constant 0 : index
    %98 = vector.load %arg0[%c1_98, %c21_99, %c0_100] : memref<2x110x16xf32, #tpu.memory_space<vmem>>, vector<1x80x16xf32>
    %99 = vector.shape_cast %98 : vector<1x80x16xf32> to vector<80x16xf32>
    %c7_101 = arith.constant 7 : index
    %c0_102 = arith.constant 0 : index
    %c0_103 = arith.constant 0 : index
    %100 = vector.load %arg1[%c7_101, %c0_102, %c0_103] : memref<9x16x8xf32, #tpu.memory_space<vmem>>, vector<1x16x8xf32>
    %101 = vector.shape_cast %100 : vector<1x16x8xf32> to vector<16x8xf32>
    %cst_104 = arith.constant dense<0.000000e+00> : vector<80x8xf32>
    %102 = tpu.matmul %99, %101, %cst_104 {dimension_numbers = #tpu.dot_dimension_numbers<[1], [0], [0], [1], [0, 0, 1, 1], [], []>} : vector<80x16xf32>, vector<16x8xf32>, vector<80x8xf32> -> vector<80x8xf32>
    %103 = arith.addf %97, %102 : vector<80x8xf32>
    %c1_105 = arith.constant 1 : index
    %c22_106 = arith.constant 22 : index
    %c0_107 = arith.constant 0 : index
    %104 = vector.load %arg0[%c1_105, %c22_106, %c0_107] : memref<2x110x16xf32, #tpu.memory_space<vmem>>, vector<1x80x16xf32>
    %105 = vector.shape_cast %104 : vector<1x80x16xf32> to vector<80x16xf32>
    %c8_108 = arith.constant 8 : index
    %c0_109 = arith.constant 0 : index
    %c0_110 = arith.constant 0 : index
    %106 = vector.load %arg1[%c8_108, %c0_109, %c0_110] : memref<9x16x8xf32, #tpu.memory_space<vmem>>, vector<1x16x8xf32>
    %107 = vector.shape_cast %106 : vector<1x16x8xf32> to vector<16x8xf32>
    %cst_111 = arith.constant dense<0.000000e+00> : vector<80x8xf32>
    %108 = tpu.matmul %105, %107, %cst_111 {dimension_numbers = #tpu.dot_dimension_numbers<[1], [0], [0], [1], [0, 0, 1, 1], [], []>} : vector<80x16xf32>, vector<16x8xf32>, vector<80x8xf32> -> vector<80x8xf32>
    %109 = arith.addf %103, %108 : vector<80x8xf32>
    %c0_112 = arith.constant 0 : index
    %c0_113 = arith.constant 0 : index
    %110 = vector.load %arg4[%c0_112, %c0_113] : memref<80x1xf32, #tpu.memory_space<vmem>>, vector<80x1xf32>
    %cst_114 = arith.constant 0.000000e+00 : f32
    %111 = vector.broadcast %cst_114 : f32 to vector<1x8xf32>
    %cst_115 = arith.constant 0.000000e+00 : f32
    %112 = vector.broadcast %cst_115 : f32 to vector<1x8xf32>
    %113 = vector.broadcast %110 : vector<80x1xf32> to vector<80x8xf32>
    %114 = arith.mulf %54, %113 : vector<80x8xf32>
    %cst_116 = arith.constant dense<0.000000e+00> : vector<8xf32>
    %115 = vector.multi_reduction <add>, %114, %cst_116 [0] : vector<80x8xf32> to vector<8xf32>
    %116 = vector.shape_cast %115 : vector<8xf32> to vector<1x8xf32>
    %117 = arith.addf %111, %116 : vector<1x8xf32>
    %118 = arith.mulf %54, %114 : vector<80x8xf32>
    %cst_117 = arith.constant dense<0.000000e+00> : vector<8xf32>
    %119 = vector.multi_reduction <add>, %118, %cst_117 [0] : vector<80x8xf32> to vector<8xf32>
    %120 = vector.shape_cast %119 : vector<8xf32> to vector<1x8xf32>
    %121 = arith.addf %112, %120 : vector<1x8xf32>
    %122 = vector.broadcast %110 : vector<80x1xf32> to vector<80x8xf32>
    %123 = arith.mulf %109, %122 : vector<80x8xf32>
    %cst_118 = arith.constant dense<0.000000e+00> : vector<8xf32>
    %124 = vector.multi_reduction <add>, %123, %cst_118 [0] : vector<80x8xf32> to vector<8xf32>
    %125 = vector.shape_cast %124 : vector<8xf32> to vector<1x8xf32>
    %126 = arith.addf %117, %125 : vector<1x8xf32>
    %127 = arith.mulf %109, %123 : vector<80x8xf32>
    %cst_119 = arith.constant dense<0.000000e+00> : vector<8xf32>
    %128 = vector.multi_reduction <add>, %127, %cst_119 [0] : vector<80x8xf32> to vector<8xf32>
    %129 = vector.shape_cast %128 : vector<8xf32> to vector<1x8xf32>
    %130 = arith.addf %121, %129 : vector<1x8xf32>
    %cst_120 = arith.constant 7.812500e-03 : f32
    %131 = vector.broadcast %cst_120 : f32 to vector<1x8xf32>
    %132 = arith.mulf %126, %131 : vector<1x8xf32>
    %cst_121 = arith.constant 7.812500e-03 : f32
    %133 = vector.broadcast %cst_121 : f32 to vector<1x8xf32>
    %134 = arith.mulf %130, %133 : vector<1x8xf32>
    %135 = arith.mulf %132, %132 : vector<1x8xf32>
    %136 = arith.subf %134, %135 : vector<1x8xf32>
    %c0_122 = arith.constant 0 : index
    %c0_123 = arith.constant 0 : index
    %137 = vector.load %arg2[%c0_122, %c0_123] : memref<1x8xf32, #tpu.memory_space<vmem>>, vector<1x8xf32>
    %cst_124 = arith.constant 9.99999974E-6 : f32
    %138 = vector.broadcast %cst_124 : f32 to vector<1x8xf32>
    %139 = arith.addf %136, %138 : vector<1x8xf32>
    %140 = math.rsqrt %139 : vector<1x8xf32>
    %141 = arith.mulf %137, %140 : vector<1x8xf32>
    %c0_125 = arith.constant 0 : index
    %c0_126 = arith.constant 0 : index
    %142 = vector.load %arg3[%c0_125, %c0_126] : memref<1x8xf32, #tpu.memory_space<vmem>>, vector<1x8xf32>
    %143 = arith.mulf %132, %141 : vector<1x8xf32>
    %144 = arith.subf %142, %143 : vector<1x8xf32>
    %145 = vector.broadcast %141 : vector<1x8xf32> to vector<80x8xf32>
    %146 = arith.mulf %54, %145 : vector<80x8xf32>
    %147 = vector.broadcast %144 : vector<1x8xf32> to vector<80x8xf32>
    %148 = arith.addf %146, %147 : vector<80x8xf32>
    %cst_127 = arith.constant 0.000000e+00 : f32
    %149 = vector.broadcast %cst_127 : f32 to vector<80x8xf32>
    %150 = arith.maximumf %148, %149 : vector<80x8xf32>
    %c0_128 = arith.constant 0 : index
    %c0_129 = arith.constant 0 : index
    %c0_130 = arith.constant 0 : index
    %151 = vector.load %arg5[%c0_128, %c0_129, %c0_130] : memref<2x80x8xf32, #tpu.memory_space<vmem>>, vector<1x80x8xf32>
    %152 = vector.shape_cast %151 : vector<1x80x8xf32> to vector<80x8xf32>
    %153 = vector.shape_cast %150 : vector<80x8xf32> to vector<1x80x8xf32>
    tpu.vector_store %arg5[%c0_128, %c0_129, %c0_130], %153 {strides = array<i32>} : memref<2x80x8xf32, #tpu.memory_space<vmem>>, vector<1x80x8xf32>,
    %154 = vector.broadcast %141 : vector<1x8xf32> to vector<80x8xf32>
    %155 = arith.mulf %109, %154 : vector<80x8xf32>
    %156 = vector.broadcast %144 : vector<1x8xf32> to vector<80x8xf32>
    %157 = arith.addf %155, %156 : vector<80x8xf32>
    %cst_131 = arith.constant 0.000000e+00 : f32
    %158 = vector.broadcast %cst_131 : f32 to vector<80x8xf32>
    %159 = arith.maximumf %157, %158 : vector<80x8xf32>
    %c1_132 = arith.constant 1 : index
    %c0_133 = arith.constant 0 : index
    %c0_134 = arith.constant 0 : index
    %160 = vector.load %arg5[%c1_132, %c0_133, %c0_134] : memref<2x80x8xf32, #tpu.memory_space<vmem>>, vector<1x80x8xf32>
    %161 = vector.shape_cast %160 : vector<1x80x8xf32> to vector<80x8xf32>
    %162 = vector.shape_cast %159 : vector<80x8xf32> to vector<1x80x8xf32>
    tpu.vector_store %arg5[%c1_132, %c0_133, %c0_134], %162 {strides = array<i32>} : memref<2x80x8xf32, #tpu.memory_space<vmem>>, vector<1x80x8xf32>,
    return
  }
}

module attributes {stable_mosaic.version = 11 : i64} {
  func.func @_deconv_bn_kernel(%arg0: memref<2x342x8xf32, #tpu.memory_space<vmem>>, %arg1: memref<9x8x4xf32, #tpu.memory_space<vmem>>, %arg2: memref<1x4xf32, #tpu.memory_space<vmem>>, %arg3: memref<1x4xf32, #tpu.memory_space<vmem>>, %arg4: memref<288x1xf32, #tpu.memory_space<vmem>>, %arg5: memref<2x288x4xf32, #tpu.memory_space<vmem>>) attributes {dimension_semantics = [], scalar_prefetch = 0 : i64, scratch_operands = 0 : i64, tpu.core_type = #tpu.core_type<tc>} {
    %cst = arith.constant 0.000000e+00 : f32
    %0 = vector.broadcast %cst : f32 to vector<288x4xf32>
    %c0 = arith.constant 0 : index
    %c0_0 = arith.constant 0 : index
    %c0_1 = arith.constant 0 : index
    %1 = vector.load %arg0[%c0, %c0_0, %c0_1] : memref<2x342x8xf32, #tpu.memory_space<vmem>>, vector<1x288x8xf32>
    %2 = vector.shape_cast %1 : vector<1x288x8xf32> to vector<288x8xf32>
    %c0_2 = arith.constant 0 : index
    %c0_3 = arith.constant 0 : index
    %c0_4 = arith.constant 0 : index
    %3 = vector.load %arg1[%c0_2, %c0_3, %c0_4] : memref<9x8x4xf32, #tpu.memory_space<vmem>>, vector<1x8x4xf32>
    %4 = vector.shape_cast %3 : vector<1x8x4xf32> to vector<8x4xf32>
    %cst_5 = arith.constant dense<0.000000e+00> : vector<288x4xf32>
    %5 = tpu.matmul %2, %4, %cst_5 {dimension_numbers = #tpu.dot_dimension_numbers<[1], [0], [0], [1], [0, 0, 1, 1], [], []>} : vector<288x8xf32>, vector<8x4xf32>, vector<288x4xf32> -> vector<288x4xf32>
    %6 = arith.addf %0, %5 : vector<288x4xf32>
    %c0_6 = arith.constant 0 : index
    %c1 = arith.constant 1 : index
    %c0_7 = arith.constant 0 : index
    %7 = vector.load %arg0[%c0_6, %c1, %c0_7] : memref<2x342x8xf32, #tpu.memory_space<vmem>>, vector<1x288x8xf32>
    %8 = vector.shape_cast %7 : vector<1x288x8xf32> to vector<288x8xf32>
    %c1_8 = arith.constant 1 : index
    %c0_9 = arith.constant 0 : index
    %c0_10 = arith.constant 0 : index
    %9 = vector.load %arg1[%c1_8, %c0_9, %c0_10] : memref<9x8x4xf32, #tpu.memory_space<vmem>>, vector<1x8x4xf32>
    %10 = vector.shape_cast %9 : vector<1x8x4xf32> to vector<8x4xf32>
    %cst_11 = arith.constant dense<0.000000e+00> : vector<288x4xf32>
    %11 = tpu.matmul %8, %10, %cst_11 {dimension_numbers = #tpu.dot_dimension_numbers<[1], [0], [0], [1], [0, 0, 1, 1], [], []>} : vector<288x8xf32>, vector<8x4xf32>, vector<288x4xf32> -> vector<288x4xf32>
    %12 = arith.addf %6, %11 : vector<288x4xf32>
    %c0_12 = arith.constant 0 : index
    %c2 = arith.constant 2 : index
    %c0_13 = arith.constant 0 : index
    %13 = vector.load %arg0[%c0_12, %c2, %c0_13] : memref<2x342x8xf32, #tpu.memory_space<vmem>>, vector<1x288x8xf32>
    %14 = vector.shape_cast %13 : vector<1x288x8xf32> to vector<288x8xf32>
    %c2_14 = arith.constant 2 : index
    %c0_15 = arith.constant 0 : index
    %c0_16 = arith.constant 0 : index
    %15 = vector.load %arg1[%c2_14, %c0_15, %c0_16] : memref<9x8x4xf32, #tpu.memory_space<vmem>>, vector<1x8x4xf32>
    %16 = vector.shape_cast %15 : vector<1x8x4xf32> to vector<8x4xf32>
    %cst_17 = arith.constant dense<0.000000e+00> : vector<288x4xf32>
    %17 = tpu.matmul %14, %16, %cst_17 {dimension_numbers = #tpu.dot_dimension_numbers<[1], [0], [0], [1], [0, 0, 1, 1], [], []>} : vector<288x8xf32>, vector<8x4xf32>, vector<288x4xf32> -> vector<288x4xf32>
    %18 = arith.addf %12, %17 : vector<288x4xf32>
    %c0_18 = arith.constant 0 : index
    %c18 = arith.constant 18 : index
    %c0_19 = arith.constant 0 : index
    %19 = vector.load %arg0[%c0_18, %c18, %c0_19] : memref<2x342x8xf32, #tpu.memory_space<vmem>>, vector<1x288x8xf32>
    %20 = vector.shape_cast %19 : vector<1x288x8xf32> to vector<288x8xf32>
    %c3 = arith.constant 3 : index
    %c0_20 = arith.constant 0 : index
    %c0_21 = arith.constant 0 : index
    %21 = vector.load %arg1[%c3, %c0_20, %c0_21] : memref<9x8x4xf32, #tpu.memory_space<vmem>>, vector<1x8x4xf32>
    %22 = vector.shape_cast %21 : vector<1x8x4xf32> to vector<8x4xf32>
    %cst_22 = arith.constant dense<0.000000e+00> : vector<288x4xf32>
    %23 = tpu.matmul %20, %22, %cst_22 {dimension_numbers = #tpu.dot_dimension_numbers<[1], [0], [0], [1], [0, 0, 1, 1], [], []>} : vector<288x8xf32>, vector<8x4xf32>, vector<288x4xf32> -> vector<288x4xf32>
    %24 = arith.addf %18, %23 : vector<288x4xf32>
    %c0_23 = arith.constant 0 : index
    %c19 = arith.constant 19 : index
    %c0_24 = arith.constant 0 : index
    %25 = vector.load %arg0[%c0_23, %c19, %c0_24] : memref<2x342x8xf32, #tpu.memory_space<vmem>>, vector<1x288x8xf32>
    %26 = vector.shape_cast %25 : vector<1x288x8xf32> to vector<288x8xf32>
    %c4 = arith.constant 4 : index
    %c0_25 = arith.constant 0 : index
    %c0_26 = arith.constant 0 : index
    %27 = vector.load %arg1[%c4, %c0_25, %c0_26] : memref<9x8x4xf32, #tpu.memory_space<vmem>>, vector<1x8x4xf32>
    %28 = vector.shape_cast %27 : vector<1x8x4xf32> to vector<8x4xf32>
    %cst_27 = arith.constant dense<0.000000e+00> : vector<288x4xf32>
    %29 = tpu.matmul %26, %28, %cst_27 {dimension_numbers = #tpu.dot_dimension_numbers<[1], [0], [0], [1], [0, 0, 1, 1], [], []>} : vector<288x8xf32>, vector<8x4xf32>, vector<288x4xf32> -> vector<288x4xf32>
    %30 = arith.addf %24, %29 : vector<288x4xf32>
    %c0_28 = arith.constant 0 : index
    %c20 = arith.constant 20 : index
    %c0_29 = arith.constant 0 : index
    %31 = vector.load %arg0[%c0_28, %c20, %c0_29] : memref<2x342x8xf32, #tpu.memory_space<vmem>>, vector<1x288x8xf32>
    %32 = vector.shape_cast %31 : vector<1x288x8xf32> to vector<288x8xf32>
    %c5 = arith.constant 5 : index
    %c0_30 = arith.constant 0 : index
    %c0_31 = arith.constant 0 : index
    %33 = vector.load %arg1[%c5, %c0_30, %c0_31] : memref<9x8x4xf32, #tpu.memory_space<vmem>>, vector<1x8x4xf32>
    %34 = vector.shape_cast %33 : vector<1x8x4xf32> to vector<8x4xf32>
    %cst_32 = arith.constant dense<0.000000e+00> : vector<288x4xf32>
    %35 = tpu.matmul %32, %34, %cst_32 {dimension_numbers = #tpu.dot_dimension_numbers<[1], [0], [0], [1], [0, 0, 1, 1], [], []>} : vector<288x8xf32>, vector<8x4xf32>, vector<288x4xf32> -> vector<288x4xf32>
    %36 = arith.addf %30, %35 : vector<288x4xf32>
    %c0_33 = arith.constant 0 : index
    %c36 = arith.constant 36 : index
    %c0_34 = arith.constant 0 : index
    %37 = vector.load %arg0[%c0_33, %c36, %c0_34] : memref<2x342x8xf32, #tpu.memory_space<vmem>>, vector<1x288x8xf32>
    %38 = vector.shape_cast %37 : vector<1x288x8xf32> to vector<288x8xf32>
    %c6 = arith.constant 6 : index
    %c0_35 = arith.constant 0 : index
    %c0_36 = arith.constant 0 : index
    %39 = vector.load %arg1[%c6, %c0_35, %c0_36] : memref<9x8x4xf32, #tpu.memory_space<vmem>>, vector<1x8x4xf32>
    %40 = vector.shape_cast %39 : vector<1x8x4xf32> to vector<8x4xf32>
    %cst_37 = arith.constant dense<0.000000e+00> : vector<288x4xf32>
    %41 = tpu.matmul %38, %40, %cst_37 {dimension_numbers = #tpu.dot_dimension_numbers<[1], [0], [0], [1], [0, 0, 1, 1], [], []>} : vector<288x8xf32>, vector<8x4xf32>, vector<288x4xf32> -> vector<288x4xf32>
    %42 = arith.addf %36, %41 : vector<288x4xf32>
    %c0_38 = arith.constant 0 : index
    %c37 = arith.constant 37 : index
    %c0_39 = arith.constant 0 : index
    %43 = vector.load %arg0[%c0_38, %c37, %c0_39] : memref<2x342x8xf32, #tpu.memory_space<vmem>>, vector<1x288x8xf32>
    %44 = vector.shape_cast %43 : vector<1x288x8xf32> to vector<288x8xf32>
    %c7 = arith.constant 7 : index
    %c0_40 = arith.constant 0 : index
    %c0_41 = arith.constant 0 : index
    %45 = vector.load %arg1[%c7, %c0_40, %c0_41] : memref<9x8x4xf32, #tpu.memory_space<vmem>>, vector<1x8x4xf32>
    %46 = vector.shape_cast %45 : vector<1x8x4xf32> to vector<8x4xf32>
    %cst_42 = arith.constant dense<0.000000e+00> : vector<288x4xf32>
    %47 = tpu.matmul %44, %46, %cst_42 {dimension_numbers = #tpu.dot_dimension_numbers<[1], [0], [0], [1], [0, 0, 1, 1], [], []>} : vector<288x8xf32>, vector<8x4xf32>, vector<288x4xf32> -> vector<288x4xf32>
    %48 = arith.addf %42, %47 : vector<288x4xf32>
    %c0_43 = arith.constant 0 : index
    %c38 = arith.constant 38 : index
    %c0_44 = arith.constant 0 : index
    %49 = vector.load %arg0[%c0_43, %c38, %c0_44] : memref<2x342x8xf32, #tpu.memory_space<vmem>>, vector<1x288x8xf32>
    %50 = vector.shape_cast %49 : vector<1x288x8xf32> to vector<288x8xf32>
    %c8 = arith.constant 8 : index
    %c0_45 = arith.constant 0 : index
    %c0_46 = arith.constant 0 : index
    %51 = vector.load %arg1[%c8, %c0_45, %c0_46] : memref<9x8x4xf32, #tpu.memory_space<vmem>>, vector<1x8x4xf32>
    %52 = vector.shape_cast %51 : vector<1x8x4xf32> to vector<8x4xf32>
    %cst_47 = arith.constant dense<0.000000e+00> : vector<288x4xf32>
    %53 = tpu.matmul %50, %52, %cst_47 {dimension_numbers = #tpu.dot_dimension_numbers<[1], [0], [0], [1], [0, 0, 1, 1], [], []>} : vector<288x8xf32>, vector<8x4xf32>, vector<288x4xf32> -> vector<288x4xf32>
    %54 = arith.addf %48, %53 : vector<288x4xf32>
    %cst_48 = arith.constant 0.000000e+00 : f32
    %55 = vector.broadcast %cst_48 : f32 to vector<288x4xf32>
    %c1_49 = arith.constant 1 : index
    %c0_50 = arith.constant 0 : index
    %c0_51 = arith.constant 0 : index
    %56 = vector.load %arg0[%c1_49, %c0_50, %c0_51] : memref<2x342x8xf32, #tpu.memory_space<vmem>>, vector<1x288x8xf32>
    %57 = vector.shape_cast %56 : vector<1x288x8xf32> to vector<288x8xf32>
    %c0_52 = arith.constant 0 : index
    %c0_53 = arith.constant 0 : index
    %c0_54 = arith.constant 0 : index
    %58 = vector.load %arg1[%c0_52, %c0_53, %c0_54] : memref<9x8x4xf32, #tpu.memory_space<vmem>>, vector<1x8x4xf32>
    %59 = vector.shape_cast %58 : vector<1x8x4xf32> to vector<8x4xf32>
    %cst_55 = arith.constant dense<0.000000e+00> : vector<288x4xf32>
    %60 = tpu.matmul %57, %59, %cst_55 {dimension_numbers = #tpu.dot_dimension_numbers<[1], [0], [0], [1], [0, 0, 1, 1], [], []>} : vector<288x8xf32>, vector<8x4xf32>, vector<288x4xf32> -> vector<288x4xf32>
    %61 = arith.addf %55, %60 : vector<288x4xf32>
    %c1_56 = arith.constant 1 : index
    %c1_57 = arith.constant 1 : index
    %c0_58 = arith.constant 0 : index
    %62 = vector.load %arg0[%c1_56, %c1_57, %c0_58] : memref<2x342x8xf32, #tpu.memory_space<vmem>>, vector<1x288x8xf32>
    %63 = vector.shape_cast %62 : vector<1x288x8xf32> to vector<288x8xf32>
    %c1_59 = arith.constant 1 : index
    %c0_60 = arith.constant 0 : index
    %c0_61 = arith.constant 0 : index
    %64 = vector.load %arg1[%c1_59, %c0_60, %c0_61] : memref<9x8x4xf32, #tpu.memory_space<vmem>>, vector<1x8x4xf32>
    %65 = vector.shape_cast %64 : vector<1x8x4xf32> to vector<8x4xf32>
    %cst_62 = arith.constant dense<0.000000e+00> : vector<288x4xf32>
    %66 = tpu.matmul %63, %65, %cst_62 {dimension_numbers = #tpu.dot_dimension_numbers<[1], [0], [0], [1], [0, 0, 1, 1], [], []>} : vector<288x8xf32>, vector<8x4xf32>, vector<288x4xf32> -> vector<288x4xf32>
    %67 = arith.addf %61, %66 : vector<288x4xf32>
    %c1_63 = arith.constant 1 : index
    %c2_64 = arith.constant 2 : index
    %c0_65 = arith.constant 0 : index
    %68 = vector.load %arg0[%c1_63, %c2_64, %c0_65] : memref<2x342x8xf32, #tpu.memory_space<vmem>>, vector<1x288x8xf32>
    %69 = vector.shape_cast %68 : vector<1x288x8xf32> to vector<288x8xf32>
    %c2_66 = arith.constant 2 : index
    %c0_67 = arith.constant 0 : index
    %c0_68 = arith.constant 0 : index
    %70 = vector.load %arg1[%c2_66, %c0_67, %c0_68] : memref<9x8x4xf32, #tpu.memory_space<vmem>>, vector<1x8x4xf32>
    %71 = vector.shape_cast %70 : vector<1x8x4xf32> to vector<8x4xf32>
    %cst_69 = arith.constant dense<0.000000e+00> : vector<288x4xf32>
    %72 = tpu.matmul %69, %71, %cst_69 {dimension_numbers = #tpu.dot_dimension_numbers<[1], [0], [0], [1], [0, 0, 1, 1], [], []>} : vector<288x8xf32>, vector<8x4xf32>, vector<288x4xf32> -> vector<288x4xf32>
    %73 = arith.addf %67, %72 : vector<288x4xf32>
    %c1_70 = arith.constant 1 : index
    %c18_71 = arith.constant 18 : index
    %c0_72 = arith.constant 0 : index
    %74 = vector.load %arg0[%c1_70, %c18_71, %c0_72] : memref<2x342x8xf32, #tpu.memory_space<vmem>>, vector<1x288x8xf32>
    %75 = vector.shape_cast %74 : vector<1x288x8xf32> to vector<288x8xf32>
    %c3_73 = arith.constant 3 : index
    %c0_74 = arith.constant 0 : index
    %c0_75 = arith.constant 0 : index
    %76 = vector.load %arg1[%c3_73, %c0_74, %c0_75] : memref<9x8x4xf32, #tpu.memory_space<vmem>>, vector<1x8x4xf32>
    %77 = vector.shape_cast %76 : vector<1x8x4xf32> to vector<8x4xf32>
    %cst_76 = arith.constant dense<0.000000e+00> : vector<288x4xf32>
    %78 = tpu.matmul %75, %77, %cst_76 {dimension_numbers = #tpu.dot_dimension_numbers<[1], [0], [0], [1], [0, 0, 1, 1], [], []>} : vector<288x8xf32>, vector<8x4xf32>, vector<288x4xf32> -> vector<288x4xf32>
    %79 = arith.addf %73, %78 : vector<288x4xf32>
    %c1_77 = arith.constant 1 : index
    %c19_78 = arith.constant 19 : index
    %c0_79 = arith.constant 0 : index
    %80 = vector.load %arg0[%c1_77, %c19_78, %c0_79] : memref<2x342x8xf32, #tpu.memory_space<vmem>>, vector<1x288x8xf32>
    %81 = vector.shape_cast %80 : vector<1x288x8xf32> to vector<288x8xf32>
    %c4_80 = arith.constant 4 : index
    %c0_81 = arith.constant 0 : index
    %c0_82 = arith.constant 0 : index
    %82 = vector.load %arg1[%c4_80, %c0_81, %c0_82] : memref<9x8x4xf32, #tpu.memory_space<vmem>>, vector<1x8x4xf32>
    %83 = vector.shape_cast %82 : vector<1x8x4xf32> to vector<8x4xf32>
    %cst_83 = arith.constant dense<0.000000e+00> : vector<288x4xf32>
    %84 = tpu.matmul %81, %83, %cst_83 {dimension_numbers = #tpu.dot_dimension_numbers<[1], [0], [0], [1], [0, 0, 1, 1], [], []>} : vector<288x8xf32>, vector<8x4xf32>, vector<288x4xf32> -> vector<288x4xf32>
    %85 = arith.addf %79, %84 : vector<288x4xf32>
    %c1_84 = arith.constant 1 : index
    %c20_85 = arith.constant 20 : index
    %c0_86 = arith.constant 0 : index
    %86 = vector.load %arg0[%c1_84, %c20_85, %c0_86] : memref<2x342x8xf32, #tpu.memory_space<vmem>>, vector<1x288x8xf32>
    %87 = vector.shape_cast %86 : vector<1x288x8xf32> to vector<288x8xf32>
    %c5_87 = arith.constant 5 : index
    %c0_88 = arith.constant 0 : index
    %c0_89 = arith.constant 0 : index
    %88 = vector.load %arg1[%c5_87, %c0_88, %c0_89] : memref<9x8x4xf32, #tpu.memory_space<vmem>>, vector<1x8x4xf32>
    %89 = vector.shape_cast %88 : vector<1x8x4xf32> to vector<8x4xf32>
    %cst_90 = arith.constant dense<0.000000e+00> : vector<288x4xf32>
    %90 = tpu.matmul %87, %89, %cst_90 {dimension_numbers = #tpu.dot_dimension_numbers<[1], [0], [0], [1], [0, 0, 1, 1], [], []>} : vector<288x8xf32>, vector<8x4xf32>, vector<288x4xf32> -> vector<288x4xf32>
    %91 = arith.addf %85, %90 : vector<288x4xf32>
    %c1_91 = arith.constant 1 : index
    %c36_92 = arith.constant 36 : index
    %c0_93 = arith.constant 0 : index
    %92 = vector.load %arg0[%c1_91, %c36_92, %c0_93] : memref<2x342x8xf32, #tpu.memory_space<vmem>>, vector<1x288x8xf32>
    %93 = vector.shape_cast %92 : vector<1x288x8xf32> to vector<288x8xf32>
    %c6_94 = arith.constant 6 : index
    %c0_95 = arith.constant 0 : index
    %c0_96 = arith.constant 0 : index
    %94 = vector.load %arg1[%c6_94, %c0_95, %c0_96] : memref<9x8x4xf32, #tpu.memory_space<vmem>>, vector<1x8x4xf32>
    %95 = vector.shape_cast %94 : vector<1x8x4xf32> to vector<8x4xf32>
    %cst_97 = arith.constant dense<0.000000e+00> : vector<288x4xf32>
    %96 = tpu.matmul %93, %95, %cst_97 {dimension_numbers = #tpu.dot_dimension_numbers<[1], [0], [0], [1], [0, 0, 1, 1], [], []>} : vector<288x8xf32>, vector<8x4xf32>, vector<288x4xf32> -> vector<288x4xf32>
    %97 = arith.addf %91, %96 : vector<288x4xf32>
    %c1_98 = arith.constant 1 : index
    %c37_99 = arith.constant 37 : index
    %c0_100 = arith.constant 0 : index
    %98 = vector.load %arg0[%c1_98, %c37_99, %c0_100] : memref<2x342x8xf32, #tpu.memory_space<vmem>>, vector<1x288x8xf32>
    %99 = vector.shape_cast %98 : vector<1x288x8xf32> to vector<288x8xf32>
    %c7_101 = arith.constant 7 : index
    %c0_102 = arith.constant 0 : index
    %c0_103 = arith.constant 0 : index
    %100 = vector.load %arg1[%c7_101, %c0_102, %c0_103] : memref<9x8x4xf32, #tpu.memory_space<vmem>>, vector<1x8x4xf32>
    %101 = vector.shape_cast %100 : vector<1x8x4xf32> to vector<8x4xf32>
    %cst_104 = arith.constant dense<0.000000e+00> : vector<288x4xf32>
    %102 = tpu.matmul %99, %101, %cst_104 {dimension_numbers = #tpu.dot_dimension_numbers<[1], [0], [0], [1], [0, 0, 1, 1], [], []>} : vector<288x8xf32>, vector<8x4xf32>, vector<288x4xf32> -> vector<288x4xf32>
    %103 = arith.addf %97, %102 : vector<288x4xf32>
    %c1_105 = arith.constant 1 : index
    %c38_106 = arith.constant 38 : index
    %c0_107 = arith.constant 0 : index
    %104 = vector.load %arg0[%c1_105, %c38_106, %c0_107] : memref<2x342x8xf32, #tpu.memory_space<vmem>>, vector<1x288x8xf32>
    %105 = vector.shape_cast %104 : vector<1x288x8xf32> to vector<288x8xf32>
    %c8_108 = arith.constant 8 : index
    %c0_109 = arith.constant 0 : index
    %c0_110 = arith.constant 0 : index
    %106 = vector.load %arg1[%c8_108, %c0_109, %c0_110] : memref<9x8x4xf32, #tpu.memory_space<vmem>>, vector<1x8x4xf32>
    %107 = vector.shape_cast %106 : vector<1x8x4xf32> to vector<8x4xf32>
    %cst_111 = arith.constant dense<0.000000e+00> : vector<288x4xf32>
    %108 = tpu.matmul %105, %107, %cst_111 {dimension_numbers = #tpu.dot_dimension_numbers<[1], [0], [0], [1], [0, 0, 1, 1], [], []>} : vector<288x8xf32>, vector<8x4xf32>, vector<288x4xf32> -> vector<288x4xf32>
    %109 = arith.addf %103, %108 : vector<288x4xf32>
    %c0_112 = arith.constant 0 : index
    %c0_113 = arith.constant 0 : index
    %110 = vector.load %arg4[%c0_112, %c0_113] : memref<288x1xf32, #tpu.memory_space<vmem>>, vector<288x1xf32>
    %cst_114 = arith.constant 0.000000e+00 : f32
    %111 = vector.broadcast %cst_114 : f32 to vector<1x4xf32>
    %cst_115 = arith.constant 0.000000e+00 : f32
    %112 = vector.broadcast %cst_115 : f32 to vector<1x4xf32>
    %113 = vector.broadcast %110 : vector<288x1xf32> to vector<288x4xf32>
    %114 = arith.mulf %54, %113 : vector<288x4xf32>
    %cst_116 = arith.constant dense<0.000000e+00> : vector<4xf32>
    %115 = vector.multi_reduction <add>, %114, %cst_116 [0] : vector<288x4xf32> to vector<4xf32>
    %116 = vector.shape_cast %115 : vector<4xf32> to vector<1x4xf32>
    %117 = arith.addf %111, %116 : vector<1x4xf32>
    %118 = arith.mulf %54, %114 : vector<288x4xf32>
    %cst_117 = arith.constant dense<0.000000e+00> : vector<4xf32>
    %119 = vector.multi_reduction <add>, %118, %cst_117 [0] : vector<288x4xf32> to vector<4xf32>
    %120 = vector.shape_cast %119 : vector<4xf32> to vector<1x4xf32>
    %121 = arith.addf %112, %120 : vector<1x4xf32>
    %122 = vector.broadcast %110 : vector<288x1xf32> to vector<288x4xf32>
    %123 = arith.mulf %109, %122 : vector<288x4xf32>
    %cst_118 = arith.constant dense<0.000000e+00> : vector<4xf32>
    %124 = vector.multi_reduction <add>, %123, %cst_118 [0] : vector<288x4xf32> to vector<4xf32>
    %125 = vector.shape_cast %124 : vector<4xf32> to vector<1x4xf32>
    %126 = arith.addf %117, %125 : vector<1x4xf32>
    %127 = arith.mulf %109, %123 : vector<288x4xf32>
    %cst_119 = arith.constant dense<0.000000e+00> : vector<4xf32>
    %128 = vector.multi_reduction <add>, %127, %cst_119 [0] : vector<288x4xf32> to vector<4xf32>
    %129 = vector.shape_cast %128 : vector<4xf32> to vector<1x4xf32>
    %130 = arith.addf %121, %129 : vector<1x4xf32>
    %cst_120 = arith.constant 0.001953125 : f32
    %131 = vector.broadcast %cst_120 : f32 to vector<1x4xf32>
    %132 = arith.mulf %126, %131 : vector<1x4xf32>
    %cst_121 = arith.constant 0.001953125 : f32
    %133 = vector.broadcast %cst_121 : f32 to vector<1x4xf32>
    %134 = arith.mulf %130, %133 : vector<1x4xf32>
    %135 = arith.mulf %132, %132 : vector<1x4xf32>
    %136 = arith.subf %134, %135 : vector<1x4xf32>
    %c0_122 = arith.constant 0 : index
    %c0_123 = arith.constant 0 : index
    %137 = vector.load %arg2[%c0_122, %c0_123] : memref<1x4xf32, #tpu.memory_space<vmem>>, vector<1x4xf32>
    %cst_124 = arith.constant 9.99999974E-6 : f32
    %138 = vector.broadcast %cst_124 : f32 to vector<1x4xf32>
    %139 = arith.addf %136, %138 : vector<1x4xf32>
    %140 = math.rsqrt %139 : vector<1x4xf32>
    %141 = arith.mulf %137, %140 : vector<1x4xf32>
    %c0_125 = arith.constant 0 : index
    %c0_126 = arith.constant 0 : index
    %142 = vector.load %arg3[%c0_125, %c0_126] : memref<1x4xf32, #tpu.memory_space<vmem>>, vector<1x4xf32>
    %143 = arith.mulf %132, %141 : vector<1x4xf32>
    %144 = arith.subf %142, %143 : vector<1x4xf32>
    %145 = vector.broadcast %141 : vector<1x4xf32> to vector<288x4xf32>
    %146 = arith.mulf %54, %145 : vector<288x4xf32>
    %147 = vector.broadcast %144 : vector<1x4xf32> to vector<288x4xf32>
    %148 = arith.addf %146, %147 : vector<288x4xf32>
    %c0_127 = arith.constant 0 : index
    %c0_128 = arith.constant 0 : index
    %c0_129 = arith.constant 0 : index
    %149 = vector.load %arg5[%c0_127, %c0_128, %c0_129] : memref<2x288x4xf32, #tpu.memory_space<vmem>>, vector<1x288x4xf32>
    %150 = vector.shape_cast %149 : vector<1x288x4xf32> to vector<288x4xf32>
    %151 = vector.shape_cast %148 : vector<288x4xf32> to vector<1x288x4xf32>
    tpu.vector_store %arg5[%c0_127, %c0_128, %c0_129], %151 {strides = array<i32>} : memref<2x288x4xf32, #tpu.memory_space<vmem>>, vector<1x288x4xf32>,
    %152 = vector.broadcast %141 : vector<1x4xf32> to vector<288x4xf32>
    %153 = arith.mulf %109, %152 : vector<288x4xf32>
    %154 = vector.broadcast %144 : vector<1x4xf32> to vector<288x4xf32>
    %155 = arith.addf %153, %154 : vector<288x4xf32>
    %c1_130 = arith.constant 1 : index
    %c0_131 = arith.constant 0 : index
    %c0_132 = arith.constant 0 : index
    %156 = vector.load %arg5[%c1_130, %c0_131, %c0_132] : memref<2x288x4xf32, #tpu.memory_space<vmem>>, vector<1x288x4xf32>
    %157 = vector.shape_cast %156 : vector<1x288x4xf32> to vector<288x4xf32>
    %158 = vector.shape_cast %155 : vector<288x4xf32> to vector<1x288x4xf32>
    tpu.vector_store %arg5[%c1_130, %c0_131, %c0_132], %158 {strides = array<i32>} : memref<2x288x4xf32, #tpu.memory_space<vmem>>, vector<1x288x4xf32>,
    return
  }
}

</mosaic_0001>

<bundles_post_ra>
// kernel: hourglass_1_forward.8
= control target key start
LH: loop header
LB: loop body
LE: loop exit
PB: predicated region body
PF: predicated region fallthrough
CT: control target
= control target key end

     0   :  { %s2176_s9 = smov 0   ;;  %s2416_s0 = inlined_call_operand.vmem [shape: f32[2,110,8], index: 0, kind: input, shape index: {}]   ;;  %s2417_s1 = inlined_call_operand.vmem [shape: f32[9,8,8], index: 1, kind: input, shape index: {}]   ;;  %s2418_s2 = inlined_call_operand.vmem [shape: f32[2,80,8], index: 2, kind: output, shape index: {}]  }
   0x1 LB: > { %s1702_s10 = sadd.s32 4294967295, %s2159_s9   ;;  %p1706_p0 = scmp.ge.s32.totalorder %s2159_s9, 1  ;;  %s2159_s9 = sphi %s2176_s9, %s12_s9  }
   0x2   : > { %p112_p1 = scmp.lt.s32.totalorder %s2159_s9, 3 }
   0x4   : > { %p113_p2 = pnand %p1706_p0, %p112_p1 }
   0x5   : > { %v2187_v0 = vld [vmem:[%s2417_s1 + $0x20] sm:$0xff] (!%p113_p2)  ;;  %v1709_v1 = vld [vmem:[%s2417_s1 + $0x8] sm:$0xff] (!%p113_p2)  ;;  %p134_p3 = scmp.lt.s32.totalorder (!%p113_p2), %s1702_s10, 1  ;;  %vm167_vm0 = vcmask (!%p113_p2), 64512   ;;  %v1774_v10 = vld [vmem:[%s2417_s1 + $0x30] sm:$0xff] (!%p113_p2) }
   0x6   : > { %116 = sbr.rel (%p113_p2) target bundleno = 325 (0x145), region = 28  ;;  %v1763_v2 = vld [vmem:[%s2417_s1 + $0x28] sm:$0xff] (!%p113_p2)  ;;  %1976 = vmatprep.subr.mxu0 (!%p113_p2), %v2187_v0  ;;  %1908 = vmatprep.subr.mxu1 (!%p113_p2), %v1709_v1  ;;  %v154_v3 = vld [vmem:[%s2417_s1] sm:$0xff] (!%p113_p2)  ;;  %v1730_v11 = vld [vmem:[%s2417_s1 + $0x10] sm:$0xff] (!%p113_p2) }
   0x7   : > { %1977 = vmatpush3.msra.mxu0 (!%p113_p2), %v2187_v0  ;;  %1909 = vmatpush3.msra.mxu1 (!%p113_p2), %v1709_v1  ;;  %v1785_v24 = vld [vmem:[%s2417_s1 + $0x38] sm:$0xff] (!%p113_p2)  ;;  %v1796_v43 = vld [vmem:[%s2417_s1 + $0x40] sm:$0xff] (!%p113_p2) }
   0x8   : > { %1993 = vmatprep.subr.mxu0 (!%p113_p2), %v1763_v2  ;;  %1925 = vmatprep.subr.mxu1 (!%p113_p2), %v154_v3  ;;  %v1741_v33 = vld [vmem:[%s2417_s1 + $0x18] sm:$0xff] (!%p113_p2) }
   0xd   : > { %s2420_s10 = smov (!%p134_p3, %s1702_s10), 1 }
   0xe   : > { %s2143_s19 = smul.u32 112, %s2420_s10 }
   0xf   : > { %s2144_s5 = smul.u32 80, %s2420_s10 }
  0x10   : > { %s2206_s22 = scalar_lea.vmem %s2416_s0, %s2143_s19 }
  0x11   : > { %v155_v4 = vld [vmem:[%s2206_s22 + $0x1] sm:$0xff]  ;;  %v792_v5 = vld [vmem:[%s2206_s22 + $0xb] sm:$0xff]  ;;  %v793_v7 = vld [vmem:[%s2206_s22 + $0x13] sm:$0xff]  ;;  %s2391_s8 = scalar_lea.vmem %s2418_s2, %s2144_s5 }
  0x12   : > { %v156_v6 = vld [vmem:[%s2206_s22 + $0x9] sm:$0xff]  ;;  %1910 = vmatprep.mubr.msk.f32.mxu1 %vm167_vm0, %v155_v4  ;;  %1978 = vmatprep.mubr.msk.f32.mxu0 %vm167_vm0, %v792_v5  ;;  %v157_v8 = vld [vmem:[%s2206_s22 + $0x11] sm:$0xff]  ;;  %v794_v9 = vld [vmem:[%s2206_s22 + $0x1b] sm:$0xff] }
  0x13   : > { %1911 = vmatmul.mubr.msk.f32.vlgmr.msra.gmra.mrb[0].mxu1 %vm167_vm0, %v156_v6  ;;  %1979 = vmatmul.mubr.msk.f32.vlgmr.msra.gmra.mrb[0].mxu0 %vm167_vm0, %v793_v7  ;;  %v158_v12 = vld [vmem:[%s2206_s22 + $0x19] sm:$0xff]  ;;  %v795_v13 = vld [vmem:[%s2206_s22 + $0x23] sm:$0xff]  ;;  %v796_v15 = vld [vmem:[%s2206_s22 + $0x2b] sm:$0xff] }
  0x14   : > { %1994 = vmatpush3.msra.mxu0 %v1763_v2  ;;  %1913 = vmatprep.mubr.msk.f32.mxu1 %vm167_vm0, %v157_v8  ;;  %v159_v14 = vld [vmem:[%s2206_s22 + $0x21] sm:$0xff]  ;;  %v160_v16 = vld [vmem:[%s2206_s22 + $0x29] sm:$0xff]  ;;  %v797_v17 = vld [vmem:[%s2206_s22 + $0x33] sm:$0xff] }
  0x15   : > { %1981 = vmatprep.mubr.msk.f32.mxu0 %vm167_vm0, %v794_v9  ;;  %1926 = vmatpush3.msra.mxu1 %v154_v3  ;;  %v161_v18 = vld [vmem:[%s2206_s22 + $0x31] sm:$0xff]  ;;  %v162_v20 = vld [vmem:[%s2206_s22 + $0x39] sm:$0xff]  ;;  %v163_v22 = vld [vmem:[%s2206_s22 + $0x41] sm:$0xff] }
  0x16   : > { %2010 = vmatprep.subr.mxu0 %v1774_v10  ;;  %1942 = vmatprep.subr.mxu1 %v1730_v11  ;;  %v959_v19 = vld [vmem:[%s2206_s22 + $0xc] sm:$0xff]  ;;  %v960_v21 = vld [vmem:[%s2206_s22 + $0x14] sm:$0xff]  ;;  %v961_v23 = vld [vmem:[%s2206_s22 + $0x1c] sm:$0xff] }
  0x17   : > { %1914 = vmatmul.mubr.msk.f32.gmra.mrb[2].mxu1 %vm167_vm0, %v158_v12  ;;  %1982 = vmatmul.mubr.msk.f32.gmra.mrb[2].mxu0 %vm167_vm0, %v795_v13  ;;  %v164_v25 = vld [vmem:[%s2206_s22 + $0x49] sm:$0xff]  ;;  %v144_v27 = vld [vmem:[%s2206_s22] sm:$0xff]  ;;  %v964_v30 = vld [vmem:[%s2206_s22 + $0x34] sm:$0xff] }
  0x18   : > { %1916 = vmatprep.mubr.msk.f32.mxu1 %vm167_vm0, %v159_v14  ;;  %1984 = vmatprep.mubr.msk.f32.mxu0 %vm167_vm0, %v796_v15  ;;  %v962_v26 = vld [vmem:[%s2206_s22 + $0x24] sm:$0xff]  ;;  %v963_v28 = vld [vmem:[%s2206_s22 + $0x2c] sm:$0xff]  ;;  %v965_v32 = vld [vmem:[%s2206_s22 + $0x3c] sm:$0xff] }
  0x19   : > { %v145_v29 = vld [vmem:[%s2206_s22 + $0x8] sm:$0xff]  ;;  %v146_v31 = vld [vmem:[%s2206_s22 + $0x10] sm:$0xff]  ;;  %v147_v34 = vld [vmem:[%s2206_s22 + $0x18] sm:$0xff] }
  0x1a   : > { %v966_v35 = vld [vmem:[%s2206_s22 + $0x44] sm:$0xff]  ;;  %v967_v37 = vld [vmem:[%s2206_s22 + $0x4c] sm:$0xff]  ;;  %v968_v39 = vld [vmem:[%s2206_s22 + $0x54] sm:$0xff] }
  0x1b   : > { %1917 = vmatmul.mubr.msk.f32.gmra.mrb[4].mxu1 %vm167_vm0, %v160_v16  ;;  %1985 = vmatmul.mubr.msk.f32.gmra.mrb[4].mxu0 %vm167_vm0, %v797_v17  ;;  %v148_v36 = vld [vmem:[%s2206_s22 + $0x20] sm:$0xff]  ;;  %v149_v38 = vld [vmem:[%s2206_s22 + $0x28] sm:$0xff]  ;;  %v150_v40 = vld [vmem:[%s2206_s22 + $0x30] sm:$0xff] }
  0x1c   : > { %1919 = vmatprep.mubr.msk.f32.mxu1 %vm167_vm0, %v161_v18  ;;  %1995 = vmatprep.mubr.msk.f32.mxu0 %vm167_vm0, %v959_v19  ;;  %v151_v41 = vld [vmem:[%s2206_s22 + $0x38] sm:$0xff]  ;;  %v152_v42 = vld [vmem:[%s2206_s22 + $0x40] sm:$0xff]  ;;  %v153_v44 = vld [vmem:[%s2206_s22 + $0x48] sm:$0xff] }
  0x1d   : > { %v458_v45 = vld [vmem:[%s2206_s22 + $0x2] sm:$0xff]  ;;  %v459_v46 = vld [vmem:[%s2206_s22 + $0xa] sm:$0xff]  ;;  %v460_v47 = vld [vmem:[%s2206_s22 + $0x12] sm:$0xff] }
  0x1e   : > { %v461_v48 = vld [vmem:[%s2206_s22 + $0x1a] sm:$0xff]  ;;  %v462_v49 = vld [vmem:[%s2206_s22 + $0x22] sm:$0xff]  ;;  %v463_v50 = vld [vmem:[%s2206_s22 + $0x2a] sm:$0xff] }
  0x1f   : > { %1920 = vmatmul.mubr.msk.f32.gmra.mrb[6].mxu1 %vm167_vm0, %v162_v20  ;;  %1996 = vmatmul.mubr.msk.f32.vlgmr.msra.gmra.mrb[0].mxu0 %vm167_vm0, %v960_v21  ;;  %v1135_v51 = vld [vmem:[%s2206_s22 + $0x5c] sm:$0xff]  ;;  %v464_v52 = vld [vmem:[%s2206_s22 + $0x32] sm:$0xff]  ;;  %v1295_v57 = vld [vmem:[%s2206_s22 + $0x25] sm:$0xff] }
  0x20   : > { %2011 = vmatpush3.msra.mxu0 %v1774_v10  ;;  %1922 = vmatprep.mubr.msk.f32.mxu1 %vm167_vm0, %v163_v22  ;;  %v1293_v53 = vld [vmem:[%s2206_s22 + $0x15] sm:$0xff]  ;;  %v1294_v55 = vld [vmem:[%s2206_s22 + $0x1d] sm:$0xff]  ;;  %v467_v58 = vld [vmem:[%s2206_s22 + $0x4a] sm:$0xff] }
  0x21   : > { %1998 = vmatprep.mubr.msk.f32.mxu0 %vm167_vm0, %v961_v23  ;;  %2027 = vmatprep.subr.mxu0 %v1785_v24  ;;  %v465_v54 = vld [vmem:[%s2206_s22 + $0x3a] sm:$0xff]  ;;  %v466_v56 = vld [vmem:[%s2206_s22 + $0x42] sm:$0xff]  ;;  %v1296_v59 = vld [vmem:[%s2206_s22 + $0x2d] sm:$0xff] }
  0x22   : > { %v1297_v60 = vld [vmem:[%s2206_s22 + $0x35] sm:$0xff]  ;;  %v1298_v61 = vld [vmem:[%s2206_s22 + $0x3d] sm:$0xff]  ;;  %v1299_v62 = vld [vmem:[%s2206_s22 + $0x45] sm:$0xff] }
  0x23   : > { %1923 = vmatmul.mubr.msk.f32.gmra.mrb[8].mxu1 %vm167_vm0, %v164_v25  ;;  %1999 = vmatmul.mubr.msk.f32.gmra.mrb[2].mxu0 %vm167_vm0, %v962_v26  ;;  %v1300_v63 = vld [vmem:[%s2206_s22 + $0x4d] sm:$0xff]  ;;  %v1301_v1 = vld [vmem:[%s2206_s22 + $0x55] sm:$0xff]  ;;  %v1302_v2 = vld [vmem:[%s2206_s22 + $0x5d] sm:$0xff] }
  0x24   : > { %1927 = vmatprep.mubr.msk.f32.mxu1 %vm167_vm0, %v144_v27  ;;  %2001 = vmatprep.mubr.msk.f32.mxu0 %vm167_vm0, %v963_v28  ;;  %v1460_v3 = vld [vmem:[%s2206_s22 + $0x16] sm:$0xff]  ;;  %v1462_v4 = vld [vmem:[%s2206_s22 + $0x26] sm:$0xff]  ;;  %v1463_v6 = vld [vmem:[%s2206_s22 + $0x2e] sm:$0xff] }
  0x25   : > { %v634_v5 = vld [vmem:[%s2206_s22 + $0x52] sm:$0xff]  ;;  %v798_v7 = vld [vmem:[%s2206_s22 + $0x3b] sm:$0xff]  ;;  %v799_v9 = vld [vmem:[%s2206_s22 + $0x43] sm:$0xff] }
  0x26   : > { %v1464_v8 = vld [vmem:[%s2206_s22 + $0x36] sm:$0xff]  ;;  %v1465_v10 = vld [vmem:[%s2206_s22 + $0x3e] sm:$0xff]  ;;  %v1466_v12 = vld [vmem:[%s2206_s22 + $0x46] sm:$0xff] }
  0x27   : > { %1928 = vmatmul.mubr.msk.f32.vlgmr.msra.gmra.mrb[0].mxu1 %vm167_vm0, %v145_v29  ;;  %2002 = vmatmul.mubr.msk.f32.gmra.mrb[4].mxu0 %vm167_vm0, %v964_v30  ;;  %v801_v13 = vld [vmem:[%s2206_s22 + $0x53] sm:$0xff]  ;;  %v1469_v16 = vld [vmem:[%s2206_s22 + $0x5e] sm:$0xff] }
  0x28   : > { %1930 = vmatprep.mubr.msk.f32.mxu1 %vm167_vm0, %v146_v31  ;;  %2004 = vmatprep.mubr.msk.f32.mxu0 %vm167_vm0, %v965_v32  ;;  %v1467_v14 = vld [vmem:[%s2206_s22 + $0x4e] sm:$0xff]  ;;  %v1468_v15 = vld [vmem:[%s2206_s22 + $0x56] sm:$0xff] }
  0x29   : > { %1943 = vmatpush3.msra.mxu1 %v1730_v11  ;;  %v800_v11 = vld [vmem:[%s2206_s22 + $0x4b] sm:$0xff] }
  0x2a   : > { %1959 = vmatprep.subr.mxu1 %v1741_v33 }
  0x2b   : > { %1931 = vmatmul.mubr.msk.f32.gmra.mrb[2].mxu1 %vm167_vm0, %v147_v34  ;;  %2005 = vmatmul.mubr.msk.f32.gmra.mrb[6].mxu0 %vm167_vm0, %v966_v35 }
  0x2c   : > { %1933 = vmatprep.mubr.msk.f32.mxu1 %vm167_vm0, %v148_v36  ;;  %2007 = vmatprep.mubr.msk.f32.mxu0 %vm167_vm0, %v967_v37 }
  0x2f   : > { %1934 = vmatmul.mubr.msk.f32.gmra.mrb[4].mxu1 %vm167_vm0, %v149_v38  ;;  %2008 = vmatmul.mubr.msk.f32.gmra.mrb[8].mxu0 %vm167_vm0, %v968_v39 }
  0x30   : > { %1936 = vmatprep.mubr.msk.f32.mxu1 %vm167_vm0, %v150_v40  ;;  %2012 = vmatprep.mubr.msk.f32.mxu0 %vm167_vm0, %v960_v21 }
  0x33   : > { %1937 = vmatmul.mubr.msk.f32.gmra.mrb[6].mxu1 %vm167_vm0, %v151_v41  ;;  %2013 = vmatmul.mubr.msk.f32.vlgmr.msra.gmra.mrb[0].mxu0 %vm167_vm0, %v961_v23 }
  0x34   : > { %2028 = vmatpush3.msra.mxu0 %v1785_v24  ;;  %1939 = vmatprep.mubr.msk.f32.mxu1 %vm167_vm0, %v152_v42 }
  0x35   : > { %2015 = vmatprep.mubr.msk.f32.mxu0 %vm167_vm0, %v962_v26  ;;  %2044 = vmatprep.subr.mxu0 %v1796_v43 }
  0x37   : > { %1940 = vmatmul.mubr.msk.f32.gmra.mrb[8].mxu1 %vm167_vm0, %v153_v44  ;;  %2016 = vmatmul.mubr.msk.f32.gmra.mrb[2].mxu0 %vm167_vm0, %v963_v28 }
  0x38   : > { %1944 = vmatprep.mubr.msk.f32.mxu1 %vm167_vm0, %v458_v45  ;;  %2018 = vmatprep.mubr.msk.f32.mxu0 %vm167_vm0, %v964_v30 }
  0x3b   : > { %1945 = vmatmul.mubr.msk.f32.vlgmr.msra.gmra.mrb[0].mxu1 %vm167_vm0, %v459_v46  ;;  %2019 = vmatmul.mubr.msk.f32.gmra.mrb[4].mxu0 %vm167_vm0, %v965_v32 }
  0x3c   : > { %1947 = vmatprep.mubr.msk.f32.mxu1 %vm167_vm0, %v460_v47  ;;  %2021 = vmatprep.mubr.msk.f32.mxu0 %vm167_vm0, %v966_v35 }
  0x3d   : > { %1960 = vmatpush3.msra.mxu1 %v1741_v33 }
  0x3e   : > { %2061 = vmatprep.subr.mxu1 %v2187_v0 }
  0x3f   : > { %1948 = vmatmul.mubr.msk.f32.gmra.mrb[2].mxu1 %vm167_vm0, %v461_v48  ;;  %2022 = vmatmul.mubr.msk.f32.gmra.mrb[6].mxu0 %vm167_vm0, %v967_v37 }
  0x40   : > { %1950 = vmatprep.mubr.msk.f32.mxu1 %vm167_vm0, %v462_v49  ;;  %2024 = vmatprep.mubr.msk.f32.mxu0 %vm167_vm0, %v968_v39 }
  0x43   : > { %1951 = vmatmul.mubr.msk.f32.gmra.mrb[4].mxu1 %vm167_vm0, %v463_v50  ;;  %2025 = vmatmul.mubr.msk.f32.gmra.mrb[8].mxu0 %vm167_vm0, %v1135_v51 }
  0x44   : > { %1953 = vmatprep.mubr.msk.f32.mxu1 %vm167_vm0, %v464_v52  ;;  %2029 = vmatprep.mubr.msk.f32.mxu0 %vm167_vm0, %v1293_v53 }
  0x47   : > { %1954 = vmatmul.mubr.msk.f32.gmra.mrb[6].mxu1 %vm167_vm0, %v465_v54  ;;  %2030 = vmatmul.mubr.msk.f32.vlgmr.msra.gmra.mrb[0].mxu0 %vm167_vm0, %v1294_v55 }
  0x48   : > { %2045 = vmatpush3.msra.mxu0 %v1796_v43  ;;  %1956 = vmatprep.mubr.msk.f32.mxu1 %vm167_vm0, %v466_v56 }
  0x49   : > { %2032 = vmatprep.mubr.msk.f32.mxu0 %vm167_vm0, %v1295_v57 }
  0x4b   : > { %1957 = vmatmul.mubr.msk.f32.gmra.mrb[8].mxu1 %vm167_vm0, %v467_v58  ;;  %2033 = vmatmul.mubr.msk.f32.gmra.mrb[2].mxu0 %vm167_vm0, %v1296_v59 }
  0x4c   : > { %1961 = vmatprep.mubr.msk.f32.mxu1 %vm167_vm0, %v459_v46  ;;  %2035 = vmatprep.mubr.msk.f32.mxu0 %vm167_vm0, %v1297_v60 }
  0x4f   : > { %1962 = vmatmul.mubr.msk.f32.vlgmr.msra.gmra.mrb[0].mxu1 %vm167_vm0, %v460_v47  ;;  %2036 = vmatmul.mubr.msk.f32.gmra.mrb[4].mxu0 %vm167_vm0, %v1298_v61 }
  0x50   : > { %1964 = vmatprep.mubr.msk.f32.mxu1 %vm167_vm0, %v461_v48  ;;  %2038 = vmatprep.mubr.msk.f32.mxu0 %vm167_vm0, %v1299_v62 }
  0x51   : > { %2062 = vmatpush3.msra.mxu1 %v2187_v0  ;;  %v1461_v0 = vld [vmem:[%s2206_s22 + $0x1e] sm:$0xff] }
  0x53   : > { %1965 = vmatmul.mubr.msk.f32.gmra.mrb[2].mxu1 %vm167_vm0, %v462_v49  ;;  %2039 = vmatmul.mubr.msk.f32.gmra.mrb[6].mxu0 %vm167_vm0, %v1300_v63 }
  0x54   : > { %1967 = vmatprep.mubr.msk.f32.mxu1 %vm167_vm0, %v463_v50  ;;  %2041 = vmatprep.mubr.msk.f32.mxu0 %vm167_vm0, %v1301_v1 }
  0x57   : > { %1968 = vmatmul.mubr.msk.f32.gmra.mrb[4].mxu1 %vm167_vm0, %v464_v52  ;;  %2042 = vmatmul.mubr.msk.f32.gmra.mrb[8].mxu0 %vm167_vm0, %v1302_v2 }
  0x58   : > { %1970 = vmatprep.mubr.msk.f32.mxu1 %vm167_vm0, %v465_v54  ;;  %2046 = vmatprep.mubr.msk.f32.mxu0 %vm167_vm0, %v1460_v3 }
  0x5b   : > { %1971 = vmatmul.mubr.msk.f32.gmra.mrb[6].mxu1 %vm167_vm0, %v466_v56  ;;  %2047 = vmatmul.mubr.msk.f32.vlgmr.msra.gmra.mrb[0].mxu0 %vm167_vm0, %v1461_v0 }
  0x5c   : > { %1973 = vmatprep.mubr.msk.f32.mxu1 %vm167_vm0, %v467_v58  ;;  %2049 = vmatprep.mubr.msk.f32.mxu0 %vm167_vm0, %v1462_v4 }
  0x5f   : > { %1974 = vmatmul.mubr.msk.f32.gmra.mrb[8].mxu1 %vm167_vm0, %v634_v5  ;;  %2050 = vmatmul.mubr.msk.f32.gmra.mrb[2].mxu0 %vm167_vm0, %v1463_v6 }
  0x60   : > { %1987 = vmatprep.mubr.msk.f32.mxu1 %vm167_vm0, %v798_v7  ;;  %2052 = vmatprep.mubr.msk.f32.mxu0 %vm167_vm0, %v1464_v8 }
  0x63   : > { %1988 = vmatmul.mubr.msk.f32.vlgmr.msra.gmra.mrb[6].mxu1 %vm167_vm0, %v799_v9  ;;  %2053 = vmatmul.mubr.msk.f32.gmra.mrb[4].mxu0 %vm167_vm0, %v1465_v10 }
  0x64   : > { %1990 = vmatprep.mubr.msk.f32.mxu1 %vm167_vm0, %v800_v11  ;;  %2055 = vmatprep.mubr.msk.f32.mxu0 %vm167_vm0, %v1466_v12 }
  0x67   : > { %1991 = vmatmul.mubr.msk.f32.gmra.mrb[8].mxu1 %vm167_vm0, %v801_v13  ;;  %2056 = vmatmul.mubr.msk.f32.gmra.mrb[6].mxu0 %vm167_vm0, %v1467_v14 }
  0x68   : > { %2058 = vmatprep.mubr.msk.f32.mxu0 %vm167_vm0, %v1468_v15 }
  0x6b   : > { %2059 = vmatmul.mubr.msk.f32.gmra.mrb[8].mxu0 %vm167_vm0, %v1469_v16 }
 0x122   : > { %v1963_v17 = vpop.f32.mrb[0].mxu1 }
 0x123   : > { %v733_v18 = vpop.f32.mrb[1].mxu1 }
 0x126   : > { %v1966_v19 = vpop.f32.mrb[2].mxu1 }
 0x127   : > { %v743_v20 = vpop.f32.mrb[3].mxu1 }
 0x12a   : > { %v1969_v21 = vpop.f32.mrb[4].mxu1 }
 0x12b   : > { %v753_v22 = vpop.f32.mrb[5].mxu1 }
 0x12e   : > { %v2048_v23 = vpop.f32.mrb[0].mxu0 }
 0x12f   : > { %v2063_v24 = vadd.f32 %v2048_v23, %v1963_v17  ;;  %v1568_v25 = vpop.f32.mrb[1].mxu0 }
 0x130   : > { %v2064_v26 = vadd.f32 %v1568_v25, %v733_v18 }
 0x131   : > { %v1628_v27 = vmax.f32 %v2063_v24, 0.0 }
 0x132   : > { %v1627_v28 = vmax.f32 %v2064_v26, 0.0  ;;  %v2051_v29 = vpop.f32.mrb[2].mxu0 }
 0x133   : > { %1638 = vst.msk [vmem:[%s2391_s8 + $0x8] sm:$0xff] %vm167_vm0, %v1628_v27  ;;  %v2065_v30 = vadd.f32 %v2051_v29, %v1966_v19  ;;  %v1578_v31 = vpop.f32.mrb[3].mxu0 }
 0x134   : > { %1637 = vst.msk [vmem:[%s2391_s8] sm:$0xff] %vm167_vm0, %v1627_v28  ;;  %v2066_v32 = vadd.f32 %v1578_v31, %v743_v20 }
 0x135   : > { %v1630_v33 = vmax.f32 %v2065_v30, 0.0 }
 0x136   : > { %v1629_v34 = vmax.f32 %v2066_v32, 0.0  ;;  %v1989_v35 = vpop.f32.mrb[6].mxu1  ;;  %v2054_v36 = vpop.f32.mrb[4].mxu0 }
 0x137   : > { %1640 = vst.msk [vmem:[%s2391_s8 + $0x18] sm:$0xff] %vm167_vm0, %v1630_v33  ;;  %v2067_v37 = vadd.f32 %v2054_v36, %v1969_v21  ;;  %v930_v38 = vpop.f32.mrb[7].mxu1  ;;  %v1588_v39 = vpop.f32.mrb[5].mxu0 }
 0x138   : > { %1639 = vst.msk [vmem:[%s2391_s8 + $0x10] sm:$0xff] %vm167_vm0, %v1629_v34  ;;  %v2068_v40 = vadd.f32 %v1588_v39, %v753_v22 }
 0x139   : > { %v1632_v41 = vmax.f32 %v2067_v37, 0.0 }
 0x13a   : > { %v1631_v42 = vmax.f32 %v2068_v40, 0.0  ;;  %v1992_v43 = vpop.f32.mrb[8].mxu1  ;;  %v2057_v44 = vpop.f32.mrb[6].mxu0 }
 0x13b   : > { %1642 = vst.msk [vmem:[%s2391_s8 + $0x28] sm:$0xff] %vm167_vm0, %v1632_v41  ;;  %v2069_v45 = vadd.f32 %v2057_v44, %v1989_v35  ;;  %v940_v46 = vpop.f32.mrb[9].mxu1  ;;  %v1598_v47 = vpop.f32.mrb[7].mxu0 }
 0x13c   : > { %1641 = vst.msk [vmem:[%s2391_s8 + $0x20] sm:$0xff] %vm167_vm0, %v1631_v42  ;;  %v2070_v48 = vadd.f32 %v1598_v47, %v930_v38 }
 0x13d   : > { %v1634_v49 = vmax.f32 %v2069_v45, 0.0 }
 0x13e   : > { %v1633_v50 = vmax.f32 %v2070_v48, 0.0  ;;  %v2060_v51 = vpop.f32.mrb[8].mxu0 }
 0x13f   : > { %1644 = vst.msk [vmem:[%s2391_s8 + $0x38] sm:$0xff] %vm167_vm0, %v1634_v49  ;;  %v2071_v52 = vadd.f32 %v2060_v51, %v1992_v43  ;;  %v1608_v53 = vpop.f32.mrb[9].mxu0 }
 0x140   : > { %1643 = vst.msk [vmem:[%s2391_s8 + $0x30] sm:$0xff] %vm167_vm0, %v1633_v50  ;;  %v2072_v54 = vadd.f32 %v1608_v53, %v940_v46 }
 0x141   : > { %v1636_v55 = vmax.f32 %v2071_v52, 0.0 }
 0x142   : > { %v1635_v56 = vmax.f32 %v2072_v54, 0.0 }
 0x143   : > { %1646 = vst.msk [vmem:[%s2391_s8 + $0x48] sm:$0xff] %vm167_vm0, %v1636_v55 }
 0x144   : > { %1645 = vst.msk [vmem:[%s2391_s8 + $0x40] sm:$0xff] %vm167_vm0, %v1635_v56 }
 0x145 PF: > { %s12_s9 = sadd.s32 1, %s2159_s9  }
 0x146   : > { %p9_p4 = scmp.ge.s32.totalorder %s12_s9, 4  }
 0x148   :  { %11 = sbr.rel (!%p9_p4) target bundleno = 1 (0x1), region = 66 }

// kernel: hourglass_1_forward.7
= control target key start
LH: loop header
LB: loop body
LE: loop exit
PB: predicated region body
PF: predicated region fallthrough
CT: control target
= control target key end

     0   :  { %s2213_s9 = smov 0   ;;  %s2473_s0 = inlined_call_operand.vmem [shape: f32[2,110,4], index: 0, kind: input, shape index: {}]   ;;  %s2474_s1 = inlined_call_operand.vmem [shape: f32[9,4,4], index: 1, kind: input, shape index: {}]   ;;  %s2475_s2 = inlined_call_operand.vmem [shape: f32[2,80,4], index: 2, kind: output, shape index: {}]  }
   0x1 LB: > { %s1730_s10 = sadd.s32 4294967295, %s2196_s9   ;;  %p1734_p0 = scmp.ge.s32.totalorder %s2196_s9, 1  ;;  %s2196_s9 = sphi %s2213_s9, %s12_s9  }
   0x2   : > { %p112_p1 = scmp.lt.s32.totalorder %s2196_s9, 3 }
   0x4   : > { %p113_p2 = pnand %p1734_p0, %p112_p1 }
   0x5   : > { %vm198_vm0 = vcmask (!%p113_p2), 1043456   ;;  %v2224_v0 = vld [vmem:[%s2474_s1 + $0x10] sm:$0xf] (!%p113_p2)  ;;  %v1737_v1 = vld [vmem:[%s2474_s1 + $0x4] sm:$0xf] (!%p113_p2)  ;;  %p134_p3 = scmp.lt.s32.totalorder (!%p113_p2), %s1730_s10, 1 }
   0x6   : > { %116 = sbr.rel (%p113_p2) target bundleno = 325 (0x145), region = 28  ;;  %2013 = vmatprep.subr.msk.mxu0 (!%p113_p2), %vm198_vm0, %v2224_v0  ;;  %1945 = vmatprep.subr.msk.mxu1 (!%p113_p2), %vm198_vm0, %v1737_v1  ;;  %v1796_v2 = vld [vmem:[%s2474_s1 + $0x14] sm:$0xf] (!%p113_p2)  ;;  %v154_v3 = vld [vmem:[%s2474_s1] sm:$0xf] (!%p113_p2)  ;;  %vm167_vm1 = vcmask (!%p113_p2), 31744  }
   0x7   : > { %2014 = vmatpush3.msk.msra.mxu0 (!%p113_p2), %vm198_vm0, %v2224_v0  ;;  %1946 = vmatpush3.msk.msra.mxu1 (!%p113_p2), %vm198_vm0, %v1737_v1  ;;  %v1808_v10 = vld [vmem:[%s2474_s1 + $0x18] sm:$0xf] (!%p113_p2)  ;;  %v1760_v11 = vld [vmem:[%s2474_s1 + $0x8] sm:$0xf] (!%p113_p2)  ;;  %v1820_v24 = vld [vmem:[%s2474_s1 + $0x1c] sm:$0xf] (!%p113_p2) }
   0x8   : > { %2030 = vmatprep.subr.msk.mxu0 (!%p113_p2), %vm198_vm0, %v1796_v2  ;;  %1962 = vmatprep.subr.msk.mxu1 (!%p113_p2), %vm198_vm0, %v154_v3  ;;  %v1772_v33 = vld [vmem:[%s2474_s1 + $0xc] sm:$0xf] (!%p113_p2)  ;;  %v1832_v43 = vld [vmem:[%s2474_s1 + $0x20] sm:$0xf] (!%p113_p2) }
   0xd   : > { %s2477_s10 = smov (!%p134_p3, %s1730_s10), 1 }
   0xe   : > { %s2180_s19 = smul.u32 112, %s2477_s10 }
   0xf   : > { %s2181_s5 = smul.u32 80, %s2477_s10 }
  0x10   : > { %s2249_s22 = scalar_lea.vmem %s2473_s0, %s2180_s19 }
  0x11   : > { %v155_v4 = vld [vmem:[%s2249_s22 + $0x1] sm:$0xff]  ;;  %v805_v5 = vld [vmem:[%s2249_s22 + $0xb] sm:$0xff]  ;;  %v806_v7 = vld [vmem:[%s2249_s22 + $0x13] sm:$0xff]  ;;  %s2448_s8 = scalar_lea.vmem %s2475_s2, %s2181_s5 }
  0x12   : > { %v156_v6 = vld [vmem:[%s2249_s22 + $0x9] sm:$0xff]  ;;  %1947 = vmatprep.mubr.msk.f32.mxu1 %vm167_vm1, %v155_v4  ;;  %2015 = vmatprep.mubr.msk.f32.mxu0 %vm167_vm1, %v805_v5  ;;  %v157_v8 = vld [vmem:[%s2249_s22 + $0x11] sm:$0xff]  ;;  %v807_v9 = vld [vmem:[%s2249_s22 + $0x1b] sm:$0xff] }
  0x13   : > { %1948 = vmatmul.mubr.msk.f32.vlgmr.msra.gmra.mrb[0].mxu1 %vm167_vm1, %v156_v6  ;;  %2016 = vmatmul.mubr.msk.f32.vlgmr.msra.gmra.mrb[0].mxu0 %vm167_vm1, %v806_v7  ;;  %v158_v12 = vld [vmem:[%s2249_s22 + $0x19] sm:$0xff]  ;;  %v808_v13 = vld [vmem:[%s2249_s22 + $0x23] sm:$0xff]  ;;  %v809_v15 = vld [vmem:[%s2249_s22 + $0x2b] sm:$0xff] }
  0x14   : > { %2031 = vmatpush3.msk.msra.mxu0 %vm198_vm0, %v1796_v2  ;;  %1950 = vmatprep.mubr.msk.f32.mxu1 %vm167_vm1, %v157_v8  ;;  %v159_v14 = vld [vmem:[%s2249_s22 + $0x21] sm:$0xff]  ;;  %v160_v16 = vld [vmem:[%s2249_s22 + $0x29] sm:$0xff]  ;;  %v810_v17 = vld [vmem:[%s2249_s22 + $0x33] sm:$0xff] }
  0x15   : > { %2018 = vmatprep.mubr.msk.f32.mxu0 %vm167_vm1, %v807_v9  ;;  %1963 = vmatpush3.msk.msra.mxu1 %vm198_vm0, %v154_v3  ;;  %v161_v18 = vld [vmem:[%s2249_s22 + $0x31] sm:$0xff]  ;;  %v162_v20 = vld [vmem:[%s2249_s22 + $0x39] sm:$0xff]  ;;  %v163_v22 = vld [vmem:[%s2249_s22 + $0x41] sm:$0xff] }
  0x16   : > { %2047 = vmatprep.subr.msk.mxu0 %vm198_vm0, %v1808_v10  ;;  %1979 = vmatprep.subr.msk.mxu1 %vm198_vm0, %v1760_v11  ;;  %v975_v19 = vld [vmem:[%s2249_s22 + $0xc] sm:$0xff]  ;;  %v976_v21 = vld [vmem:[%s2249_s22 + $0x14] sm:$0xff]  ;;  %v977_v23 = vld [vmem:[%s2249_s22 + $0x1c] sm:$0xff] }
  0x17   : > { %1951 = vmatmul.mubr.msk.f32.gmra.mrb[2].mxu1 %vm167_vm1, %v158_v12  ;;  %2019 = vmatmul.mubr.msk.f32.gmra.mrb[2].mxu0 %vm167_vm1, %v808_v13  ;;  %v164_v25 = vld [vmem:[%s2249_s22 + $0x49] sm:$0xff]  ;;  %v144_v27 = vld [vmem:[%s2249_s22] sm:$0xff]  ;;  %v980_v30 = vld [vmem:[%s2249_s22 + $0x34] sm:$0xff] }
  0x18   : > { %1953 = vmatprep.mubr.msk.f32.mxu1 %vm167_vm1, %v159_v14  ;;  %2021 = vmatprep.mubr.msk.f32.mxu0 %vm167_vm1, %v809_v15  ;;  %v978_v26 = vld [vmem:[%s2249_s22 + $0x24] sm:$0xff]  ;;  %v979_v28 = vld [vmem:[%s2249_s22 + $0x2c] sm:$0xff]  ;;  %v981_v32 = vld [vmem:[%s2249_s22 + $0x3c] sm:$0xff] }
  0x19   : > { %v145_v29 = vld [vmem:[%s2249_s22 + $0x8] sm:$0xff]  ;;  %v146_v31 = vld [vmem:[%s2249_s22 + $0x10] sm:$0xff]  ;;  %v147_v34 = vld [vmem:[%s2249_s22 + $0x18] sm:$0xff] }
  0x1a   : > { %v982_v35 = vld [vmem:[%s2249_s22 + $0x44] sm:$0xff]  ;;  %v983_v37 = vld [vmem:[%s2249_s22 + $0x4c] sm:$0xff]  ;;  %v984_v39 = vld [vmem:[%s2249_s22 + $0x54] sm:$0xff] }
  0x1b   : > { %1954 = vmatmul.mubr.msk.f32.gmra.mrb[4].mxu1 %vm167_vm1, %v160_v16  ;;  %2022 = vmatmul.mubr.msk.f32.gmra.mrb[4].mxu0 %vm167_vm1, %v810_v17  ;;  %v148_v36 = vld [vmem:[%s2249_s22 + $0x20] sm:$0xff]  ;;  %v149_v38 = vld [vmem:[%s2249_s22 + $0x28] sm:$0xff]  ;;  %v150_v40 = vld [vmem:[%s2249_s22 + $0x30] sm:$0xff] }
  0x1c   : > { %1956 = vmatprep.mubr.msk.f32.mxu1 %vm167_vm1, %v161_v18  ;;  %2032 = vmatprep.mubr.msk.f32.mxu0 %vm167_vm1, %v975_v19  ;;  %v151_v41 = vld [vmem:[%s2249_s22 + $0x38] sm:$0xff]  ;;  %v152_v42 = vld [vmem:[%s2249_s22 + $0x40] sm:$0xff]  ;;  %v153_v44 = vld [vmem:[%s2249_s22 + $0x48] sm:$0xff] }
  0x1d   : > { %v465_v45 = vld [vmem:[%s2249_s22 + $0x2] sm:$0xff]  ;;  %v466_v46 = vld [vmem:[%s2249_s22 + $0xa] sm:$0xff]  ;;  %v467_v47 = vld [vmem:[%s2249_s22 + $0x12] sm:$0xff] }
  0x1e   : > { %v468_v48 = vld [vmem:[%s2249_s22 + $0x1a] sm:$0xff]  ;;  %v469_v49 = vld [vmem:[%s2249_s22 + $0x22] sm:$0xff]  ;;  %v470_v50 = vld [vmem:[%s2249_s22 + $0x2a] sm:$0xff] }
  0x1f   : > { %1957 = vmatmul.mubr.msk.f32.gmra.mrb[6].mxu1 %vm167_vm1, %v162_v20  ;;  %2033 = vmatmul.mubr.msk.f32.vlgmr.msra.gmra.mrb[0].mxu0 %vm167_vm1, %v976_v21  ;;  %v1154_v51 = vld [vmem:[%s2249_s22 + $0x5c] sm:$0xff]  ;;  %v471_v52 = vld [vmem:[%s2249_s22 + $0x32] sm:$0xff]  ;;  %v1317_v57 = vld [vmem:[%s2249_s22 + $0x25] sm:$0xff] }
  0x20   : > { %2048 = vmatpush3.msk.msra.mxu0 %vm198_vm0, %v1808_v10  ;;  %1959 = vmatprep.mubr.msk.f32.mxu1 %vm167_vm1, %v163_v22  ;;  %v1315_v53 = vld [vmem:[%s2249_s22 + $0x15] sm:$0xff]  ;;  %v1316_v55 = vld [vmem:[%s2249_s22 + $0x1d] sm:$0xff]  ;;  %v474_v58 = vld [vmem:[%s2249_s22 + $0x4a] sm:$0xff] }
  0x21   : > { %2035 = vmatprep.mubr.msk.f32.mxu0 %vm167_vm1, %v977_v23  ;;  %2064 = vmatprep.subr.msk.mxu0 %vm198_vm0, %v1820_v24  ;;  %v472_v54 = vld [vmem:[%s2249_s22 + $0x3a] sm:$0xff]  ;;  %v473_v56 = vld [vmem:[%s2249_s22 + $0x42] sm:$0xff]  ;;  %v1318_v59 = vld [vmem:[%s2249_s22 + $0x2d] sm:$0xff] }
  0x22   : > { %v1319_v60 = vld [vmem:[%s2249_s22 + $0x35] sm:$0xff]  ;;  %v1320_v61 = vld [vmem:[%s2249_s22 + $0x3d] sm:$0xff]  ;;  %v1321_v62 = vld [vmem:[%s2249_s22 + $0x45] sm:$0xff] }
  0x23   : > { %1960 = vmatmul.mubr.msk.f32.gmra.mrb[8].mxu1 %vm167_vm1, %v164_v25  ;;  %2036 = vmatmul.mubr.msk.f32.gmra.mrb[2].mxu0 %vm167_vm1, %v978_v26  ;;  %v1322_v63 = vld [vmem:[%s2249_s22 + $0x4d] sm:$0xff]  ;;  %v1323_v1 = vld [vmem:[%s2249_s22 + $0x55] sm:$0xff]  ;;  %v1324_v2 = vld [vmem:[%s2249_s22 + $0x5d] sm:$0xff] }
  0x24   : > { %1964 = vmatprep.mubr.msk.f32.mxu1 %vm167_vm1, %v144_v27  ;;  %2038 = vmatprep.mubr.msk.f32.mxu0 %vm167_vm1, %v979_v28  ;;  %v1485_v3 = vld [vmem:[%s2249_s22 + $0x16] sm:$0xff]  ;;  %v1487_v4 = vld [vmem:[%s2249_s22 + $0x26] sm:$0xff]  ;;  %v1488_v6 = vld [vmem:[%s2249_s22 + $0x2e] sm:$0xff] }
  0x25   : > { %v644_v5 = vld [vmem:[%s2249_s22 + $0x52] sm:$0xff]  ;;  %v811_v7 = vld [vmem:[%s2249_s22 + $0x3b] sm:$0xff]  ;;  %v812_v9 = vld [vmem:[%s2249_s22 + $0x43] sm:$0xff] }
  0x26   : > { %v1489_v8 = vld [vmem:[%s2249_s22 + $0x36] sm:$0xff]  ;;  %v1490_v10 = vld [vmem:[%s2249_s22 + $0x3e] sm:$0xff]  ;;  %v1491_v12 = vld [vmem:[%s2249_s22 + $0x46] sm:$0xff] }
  0x27   : > { %1965 = vmatmul.mubr.msk.f32.vlgmr.msra.gmra.mrb[0].mxu1 %vm167_vm1, %v145_v29  ;;  %2039 = vmatmul.mubr.msk.f32.gmra.mrb[4].mxu0 %vm167_vm1, %v980_v30  ;;  %v814_v13 = vld [vmem:[%s2249_s22 + $0x53] sm:$0xff]  ;;  %v1494_v16 = vld [vmem:[%s2249_s22 + $0x5e] sm:$0xff] }
  0x28   : > { %1967 = vmatprep.mubr.msk.f32.mxu1 %vm167_vm1, %v146_v31  ;;  %2041 = vmatprep.mubr.msk.f32.mxu0 %vm167_vm1, %v981_v32  ;;  %v1492_v14 = vld [vmem:[%s2249_s22 + $0x4e] sm:$0xff]  ;;  %v1493_v15 = vld [vmem:[%s2249_s22 + $0x56] sm:$0xff] }
  0x29   : > { %1980 = vmatpush3.msk.msra.mxu1 %vm198_vm0, %v1760_v11  ;;  %v813_v11 = vld [vmem:[%s2249_s22 + $0x4b] sm:$0xff] }
  0x2a   : > { %1996 = vmatprep.subr.msk.mxu1 %vm198_vm0, %v1772_v33 }
  0x2b   : > { %1968 = vmatmul.mubr.msk.f32.gmra.mrb[2].mxu1 %vm167_vm1, %v147_v34  ;;  %2042 = vmatmul.mubr.msk.f32.gmra.mrb[6].mxu0 %vm167_vm1, %v982_v35 }
  0x2c   : > { %1970 = vmatprep.mubr.msk.f32.mxu1 %vm167_vm1, %v148_v36  ;;  %2044 = vmatprep.mubr.msk.f32.mxu0 %vm167_vm1, %v983_v37 }
  0x2f   : > { %1971 = vmatmul.mubr.msk.f32.gmra.mrb[4].mxu1 %vm167_vm1, %v149_v38  ;;  %2045 = vmatmul.mubr.msk.f32.gmra.mrb[8].mxu0 %vm167_vm1, %v984_v39 }
  0x30   : > { %1973 = vmatprep.mubr.msk.f32.mxu1 %vm167_vm1, %v150_v40  ;;  %2049 = vmatprep.mubr.msk.f32.mxu0 %vm167_vm1, %v976_v21 }
  0x33   : > { %1974 = vmatmul.mubr.msk.f32.gmra.mrb[6].mxu1 %vm167_vm1, %v151_v41  ;;  %2050 = vmatmul.mubr.msk.f32.vlgmr.msra.gmra.mrb[0].mxu0 %vm167_vm1, %v977_v23 }
  0x34   : > { %2065 = vmatpush3.msk.msra.mxu0 %vm198_vm0, %v1820_v24  ;;  %1976 = vmatprep.mubr.msk.f32.mxu1 %vm167_vm1, %v152_v42 }
  0x35   : > { %2052 = vmatprep.mubr.msk.f32.mxu0 %vm167_vm1, %v978_v26  ;;  %2081 = vmatprep.subr.msk.mxu0 %vm198_vm0, %v1832_v43 }
  0x37   : > { %1977 = vmatmul.mubr.msk.f32.gmra.mrb[8].mxu1 %vm167_vm1, %v153_v44  ;;  %2053 = vmatmul.mubr.msk.f32.gmra.mrb[2].mxu0 %vm167_vm1, %v979_v28 }
  0x38   : > { %1981 = vmatprep.mubr.msk.f32.mxu1 %vm167_vm1, %v465_v45  ;;  %2055 = vmatprep.mubr.msk.f32.mxu0 %vm167_vm1, %v980_v30 }
  0x3b   : > { %1982 = vmatmul.mubr.msk.f32.vlgmr.msra.gmra.mrb[0].mxu1 %vm167_vm1, %v466_v46  ;;  %2056 = vmatmul.mubr.msk.f32.gmra.mrb[4].mxu0 %vm167_vm1, %v981_v32 }
  0x3c   : > { %1984 = vmatprep.mubr.msk.f32.mxu1 %vm167_vm1, %v467_v47  ;;  %2058 = vmatprep.mubr.msk.f32.mxu0 %vm167_vm1, %v982_v35 }
  0x3d   : > { %1997 = vmatpush3.msk.msra.mxu1 %vm198_vm0, %v1772_v33 }
  0x3e   : > { %2098 = vmatprep.subr.msk.mxu1 %vm198_vm0, %v2224_v0 }
  0x3f   : > { %1985 = vmatmul.mubr.msk.f32.gmra.mrb[2].mxu1 %vm167_vm1, %v468_v48  ;;  %2059 = vmatmul.mubr.msk.f32.gmra.mrb[6].mxu0 %vm167_vm1, %v983_v37 }
  0x40   : > { %1987 = vmatprep.mubr.msk.f32.mxu1 %vm167_vm1, %v469_v49  ;;  %2061 = vmatprep.mubr.msk.f32.mxu0 %vm167_vm1, %v984_v39 }
  0x43   : > { %1988 = vmatmul.mubr.msk.f32.gmra.mrb[4].mxu1 %vm167_vm1, %v470_v50  ;;  %2062 = vmatmul.mubr.msk.f32.gmra.mrb[8].mxu0 %vm167_vm1, %v1154_v51 }
  0x44   : > { %1990 = vmatprep.mubr.msk.f32.mxu1 %vm167_vm1, %v471_v52  ;;  %2066 = vmatprep.mubr.msk.f32.mxu0 %vm167_vm1, %v1315_v53 }
  0x47   : > { %1991 = vmatmul.mubr.msk.f32.gmra.mrb[6].mxu1 %vm167_vm1, %v472_v54  ;;  %2067 = vmatmul.mubr.msk.f32.vlgmr.msra.gmra.mrb[0].mxu0 %vm167_vm1, %v1316_v55 }
  0x48   : > { %2082 = vmatpush3.msk.msra.mxu0 %vm198_vm0, %v1832_v43  ;;  %1993 = vmatprep.mubr.msk.f32.mxu1 %vm167_vm1, %v473_v56 }
  0x49   : > { %2069 = vmatprep.mubr.msk.f32.mxu0 %vm167_vm1, %v1317_v57 }
  0x4b   : > { %1994 = vmatmul.mubr.msk.f32.gmra.mrb[8].mxu1 %vm167_vm1, %v474_v58  ;;  %2070 = vmatmul.mubr.msk.f32.gmra.mrb[2].mxu0 %vm167_vm1, %v1318_v59 }
  0x4c   : > { %1998 = vmatprep.mubr.msk.f32.mxu1 %vm167_vm1, %v466_v46  ;;  %2072 = vmatprep.mubr.msk.f32.mxu0 %vm167_vm1, %v1319_v60 }
  0x4f   : > { %1999 = vmatmul.mubr.msk.f32.vlgmr.msra.gmra.mrb[0].mxu1 %vm167_vm1, %v467_v47  ;;  %2073 = vmatmul.mubr.msk.f32.gmra.mrb[4].mxu0 %vm167_vm1, %v1320_v61 }
  0x50   : > { %2001 = vmatprep.mubr.msk.f32.mxu1 %vm167_vm1, %v468_v48  ;;  %2075 = vmatprep.mubr.msk.f32.mxu0 %vm167_vm1, %v1321_v62 }
  0x51   : > { %2099 = vmatpush3.msk.msra.mxu1 %vm198_vm0, %v2224_v0  ;;  %v1486_v0 = vld [vmem:[%s2249_s22 + $0x1e] sm:$0xff] }
  0x53   : > { %2002 = vmatmul.mubr.msk.f32.gmra.mrb[2].mxu1 %vm167_vm1, %v469_v49  ;;  %2076 = vmatmul.mubr.msk.f32.gmra.mrb[6].mxu0 %vm167_vm1, %v1322_v63 }
  0x54   : > { %2004 = vmatprep.mubr.msk.f32.mxu1 %vm167_vm1, %v470_v50  ;;  %2078 = vmatprep.mubr.msk.f32.mxu0 %vm167_vm1, %v1323_v1 }
  0x57   : > { %2005 = vmatmul.mubr.msk.f32.gmra.mrb[4].mxu1 %vm167_vm1, %v471_v52  ;;  %2079 = vmatmul.mubr.msk.f32.gmra.mrb[8].mxu0 %vm167_vm1, %v1324_v2 }
  0x58   : > { %2007 = vmatprep.mubr.msk.f32.mxu1 %vm167_vm1, %v472_v54  ;;  %2083 = vmatprep.mubr.msk.f32.mxu0 %vm167_vm1, %v1485_v3 }
  0x5b   : > { %2008 = vmatmul.mubr.msk.f32.gmra.mrb[6].mxu1 %vm167_vm1, %v473_v56  ;;  %2084 = vmatmul.mubr.msk.f32.vlgmr.msra.gmra.mrb[0].mxu0 %vm167_vm1, %v1486_v0 }
  0x5c   : > { %2010 = vmatprep.mubr.msk.f32.mxu1 %vm167_vm1, %v474_v58  ;;  %2086 = vmatprep.mubr.msk.f32.mxu0 %vm167_vm1, %v1487_v4 }
  0x5f   : > { %2011 = vmatmul.mubr.msk.f32.gmra.mrb[8].mxu1 %vm167_vm1, %v644_v5  ;;  %2087 = vmatmul.mubr.msk.f32.gmra.mrb[2].mxu0 %vm167_vm1, %v1488_v6 }
  0x60   : > { %2024 = vmatprep.mubr.msk.f32.mxu1 %vm167_vm1, %v811_v7  ;;  %2089 = vmatprep.mubr.msk.f32.mxu0 %vm167_vm1, %v1489_v8 }
  0x63   : > { %2025 = vmatmul.mubr.msk.f32.vlgmr.msra.gmra.mrb[6].mxu1 %vm167_vm1, %v812_v9  ;;  %2090 = vmatmul.mubr.msk.f32.gmra.mrb[4].mxu0 %vm167_vm1, %v1490_v10 }
  0x64   : > { %2027 = vmatprep.mubr.msk.f32.mxu1 %vm167_vm1, %v813_v11  ;;  %2092 = vmatprep.mubr.msk.f32.mxu0 %vm167_vm1, %v1491_v12 }
  0x67   : > { %2028 = vmatmul.mubr.msk.f32.gmra.mrb[8].mxu1 %vm167_vm1, %v814_v13  ;;  %2093 = vmatmul.mubr.msk.f32.gmra.mrb[6].mxu0 %vm167_vm1, %v1492_v14 }
  0x68   : > { %2095 = vmatprep.mubr.msk.f32.mxu0 %vm167_vm1, %v1493_v15 }
  0x6b   : > { %2096 = vmatmul.mubr.msk.f32.gmra.mrb[8].mxu0 %vm167_vm1, %v1494_v16 }
 0x122   : > { %v2000_v17 = vpop.f32.mrb[0].mxu1 }
 0x123   : > { %v746_v18 = vpop.f32.mrb[1].mxu1 }
 0x126   : > { %v2003_v19 = vpop.f32.mrb[2].mxu1 }
 0x127   : > { %v756_v20 = vpop.f32.mrb[3].mxu1 }
 0x12a   : > { %v2006_v21 = vpop.f32.mrb[4].mxu1 }
 0x12b   : > { %v766_v22 = vpop.f32.mrb[5].mxu1 }
 0x12e   : > { %v2085_v23 = vpop.f32.mrb[0].mxu0 }
 0x12f   : > { %v2100_v24 = vadd.f32 %v2085_v23, %v2000_v17  ;;  %v1596_v25 = vpop.f32.mrb[1].mxu0 }
 0x130   : > { %v2101_v26 = vadd.f32 %v1596_v25, %v746_v18 }
 0x131   : > { %v1656_v27 = vmax.f32 %v2100_v24, 0.0 }
 0x132   : > { %v1655_v28 = vmax.f32 %v2101_v26, 0.0  ;;  %v2088_v29 = vpop.f32.mrb[2].mxu0 }
 0x133   : > { %1666 = vst.msk [vmem:[%s2448_s8 + $0x8] sm:$0xff] %vm167_vm1, %v1656_v27  ;;  %v2102_v30 = vadd.f32 %v2088_v29, %v2003_v19  ;;  %v1606_v31 = vpop.f32.mrb[3].mxu0 }
 0x134   : > { %1665 = vst.msk [vmem:[%s2448_s8] sm:$0xff] %vm167_vm1, %v1655_v28  ;;  %v2103_v32 = vadd.f32 %v1606_v31, %v756_v20 }
 0x135   : > { %v1658_v33 = vmax.f32 %v2102_v30, 0.0 }
 0x136   : > { %v1657_v34 = vmax.f32 %v2103_v32, 0.0  ;;  %v2026_v35 = vpop.f32.mrb[6].mxu1  ;;  %v2091_v36 = vpop.f32.mrb[4].mxu0 }
 0x137   : > { %1668 = vst.msk [vmem:[%s2448_s8 + $0x18] sm:$0xff] %vm167_vm1, %v1658_v33  ;;  %v2104_v37 = vadd.f32 %v2091_v36, %v2006_v21  ;;  %v946_v38 = vpop.f32.mrb[7].mxu1  ;;  %v1616_v39 = vpop.f32.mrb[5].mxu0 }
 0x138   : > { %1667 = vst.msk [vmem:[%s2448_s8 + $0x10] sm:$0xff] %vm167_vm1, %v1657_v34  ;;  %v2105_v40 = vadd.f32 %v1616_v39, %v766_v22 }
 0x139   : > { %v1660_v41 = vmax.f32 %v2104_v37, 0.0 }
 0x13a   : > { %v1659_v42 = vmax.f32 %v2105_v40, 0.0  ;;  %v2029_v43 = vpop.f32.mrb[8].mxu1  ;;  %v2094_v44 = vpop.f32.mrb[6].mxu0 }
 0x13b   : > { %1670 = vst.msk [vmem:[%s2448_s8 + $0x28] sm:$0xff] %vm167_vm1, %v1660_v41  ;;  %v2106_v45 = vadd.f32 %v2094_v44, %v2026_v35  ;;  %v956_v46 = vpop.f32.mrb[9].mxu1  ;;  %v1626_v47 = vpop.f32.mrb[7].mxu0 }
 0x13c   : > { %1669 = vst.msk [vmem:[%s2448_s8 + $0x20] sm:$0xff] %vm167_vm1, %v1659_v42  ;;  %v2107_v48 = vadd.f32 %v1626_v47, %v946_v38 }
 0x13d   : > { %v1662_v49 = vmax.f32 %v2106_v45, 0.0 }
 0x13e   : > { %v1661_v50 = vmax.f32 %v2107_v48, 0.0  ;;  %v2097_v51 = vpop.f32.mrb[8].mxu0 }
 0x13f   : > { %1672 = vst.msk [vmem:[%s2448_s8 + $0x38] sm:$0xff] %vm167_vm1, %v1662_v49  ;;  %v2108_v52 = vadd.f32 %v2097_v51, %v2029_v43  ;;  %v1636_v53 = vpop.f32.mrb[9].mxu0 }
 0x140   : > { %1671 = vst.msk [vmem:[%s2448_s8 + $0x30] sm:$0xff] %vm167_vm1, %v1661_v50  ;;  %v2109_v54 = vadd.f32 %v1636_v53, %v956_v46 }
 0x141   : > { %v1664_v55 = vmax.f32 %v2108_v52, 0.0 }
 0x142   : > { %v1663_v56 = vmax.f32 %v2109_v54, 0.0 }
 0x143   : > { %1674 = vst.msk [vmem:[%s2448_s8 + $0x48] sm:$0xff] %vm167_vm1, %v1664_v55 }
 0x144   : > { %1673 = vst.msk [vmem:[%s2448_s8 + $0x40] sm:$0xff] %vm167_vm1, %v1663_v56 }
 0x145 PF: > { %s12_s9 = sadd.s32 1, %s2196_s9  }
 0x146   : > { %p9_p4 = scmp.ge.s32.totalorder %s12_s9, 4  }
 0x148   :  { %11 = sbr.rel (!%p9_p4) target bundleno = 1 (0x1), region = 66 }

// kernel: hourglass_1_forward.9
= control target key start
LH: loop header
LB: loop body
LE: loop exit
PB: predicated region body
PF: predicated region fallthrough
CT: control target
= control target key end

     0   :  { %s1335_s9 = smov 0   ;;  %s1506_s0 = inlined_call_operand.vmem [shape: f32[2,42,8], index: 0, kind: input, shape index: {}]   ;;  %s1507_s1 = inlined_call_operand.vmem [shape: f32[9,8,8], index: 1, kind: input, shape index: {}]   ;;  %s1508_s2 = inlined_call_operand.vmem [shape: f32[2,24,8], index: 2, kind: output, shape index: {}]  }
   0x1 LB: > { %s1072_s10 = sadd.s32 4294967295, %s1316_s9   ;;  %p1076_p0 = scmp.ge.s32.totalorder %s1316_s9, 1  ;;  %s1316_s9 = sphi %s1335_s9, %s12_s9  }
   0x2   : > { %p112_p1 = scmp.lt.s32.totalorder %s1316_s9, 3 }
   0x4   : > { %p113_p2 = pnand %p1076_p0, %p112_p1 }
   0x5   : > { %v1079_v0 = vld [vmem:[%s1507_s1 + $0x8] sm:$0xff] (!%p113_p2)  ;;  %v1349_v1 = vld [vmem:[%s1507_s1 + $0x20] sm:$0xff] (!%p113_p2)  ;;  %p134_p3 = scmp.lt.s32.totalorder (!%p113_p2), %s1072_s10, 1  ;;  %v1318_v2 = vmov (!%p113_p2), 0.0   ;;  %vm1319_vm0 = vmmov (!%p113_p2), 0   ;;  %vm153_vm1 = vcmask (!%p113_p2), 64512  }
   0x6   : > { %116 = sbr.rel (%p113_p2) target bundleno = 288 (0x120), region = 28  ;;  %1152 = vmatprep.subr.mxu1 (!%p113_p2), %v1318_v2  ;;  %1196 = vmatprep.subr.mxu0 (!%p113_p2), %v1318_v2  ;;  %v147_v3 = vld [vmem:[%s1507_s1] sm:$0xff] (!%p113_p2)  ;;  %v1098_v4 = vld [vmem:[%s1507_s1 + $0x28] sm:$0xff] (!%p113_p2)  ;;  %v1102_v10 = vld [vmem:[%s1507_s1 + $0x30] sm:$0xff] (!%p113_p2) }
   0x7   : > { %1153 = vmatpush3.msra.mxu1 (!%p113_p2), %v1079_v0  ;;  %1197 = vmatpush3.msra.mxu0 (!%p113_p2), %v1349_v1  ;;  %v1086_v13 = vld [vmem:[%s1507_s1 + $0x10] sm:$0xff] (!%p113_p2)  ;;  %v1106_v16 = vld [vmem:[%s1507_s1 + $0x38] sm:$0xff] (!%p113_p2)  ;;  %v1110_v24 = vld [vmem:[%s1507_s1 + $0x40] sm:$0xff] (!%p113_p2) }
   0x8   : > { %1154 = vmatprep.mubr.msk.f32.mxu1 (!%p113_p2), %vm1319_vm0, %v1318_v2  ;;  %1163 = vmatprep.subr.mxu1 (!%p113_p2), %v1318_v2  ;;  %v1090_v19 = vld [vmem:[%s1507_s1 + $0x18] sm:$0xff] (!%p113_p2) }
   0x9   : > { %1198 = vmatprep.mubr.msk.f32.mxu0 (!%p113_p2), %vm1319_vm0, %v1318_v2  ;;  %1207 = vmatprep.subr.mxu0 (!%p113_p2), %v1318_v2 }
   0xd   : > { %s1510_s10 = smov (!%p134_p3, %s1072_s10), 1 }
   0xe   : > { %s1298_s15 = smul.u32 48, %s1510_s10 }
   0xf   : > { %s1299_s5 = smul.u32 24, %s1510_s10 }
  0x10   : > { %s1366_s18 = scalar_lea.vmem %s1506_s0, %s1298_s15 }
  0x11   : > { %v148_v5 = vld [vmem:[%s1366_s18 + $0x1] sm:$0xff]  ;;  %v149_v7 = vld [vmem:[%s1366_s18 + $0x9] sm:$0xff]  ;;  %v150_v8 = vld [vmem:[%s1366_s18 + $0x11] sm:$0xff]  ;;  %s143_s8 = scalar_lea.vmem %s1508_s2, %s1299_s5 }
  0x12   : > { %v526_v6 = vld [vmem:[%s1366_s18 + $0x7] sm:$0xff]  ;;  %1155 = vmatmul.mubr.msk.f32.vlgmr.msra.gmra.mrb[0].mxu1 %vm153_vm1, %v148_v5  ;;  %v624_v12 = vld [vmem:[%s1366_s18 + $0x10] sm:$0xff]  ;;  %v625_v14 = vld [vmem:[%s1366_s18 + $0x18] sm:$0xff] }
  0x13   : > { %1199 = vmatmul.mubr.msk.f32.vlgmr.msra.gmra.mrb[0].mxu0 %vm153_vm1, %v526_v6  ;;  %1164 = vmatpush3.msra.mxu1 %v147_v3  ;;  %v623_v9 = vld [vmem:[%s1366_s18 + $0x8] sm:$0xff]  ;;  %v144_v11 = vld [vmem:[%s1366_s18] sm:$0xff]  ;;  %v721_v18 = vld [vmem:[%s1366_s18 + $0x14] sm:$0xff] }
  0x14   : > { %1208 = vmatpush3.msra.mxu0 %v1098_v4  ;;  %1157 = vmatprep.mubr.msk.f32.mxu1 %vm1319_vm0, %v1318_v2  ;;  %v720_v15 = vld [vmem:[%s1366_s18 + $0xc] sm:$0xff]  ;;  %v332_v17 = vld [vmem:[%s1366_s18 + $0x2] sm:$0xff]  ;;  %v818_v26 = vld [vmem:[%s1366_s18 + $0x15] sm:$0xff] }
  0x15   : > { %1209 = vmatprep.mubr.msk.f32.mxu0 %vm1319_vm0, %v1318_v2  ;;  %1218 = vmatprep.subr.mxu0 %v1318_v2  ;;  %v333_v20 = vld [vmem:[%s1366_s18 + $0xa] sm:$0xff]  ;;  %v722_v21 = vld [vmem:[%s1366_s18 + $0x1c] sm:$0xff]  ;;  %v334_v22 = vld [vmem:[%s1366_s18 + $0x12] sm:$0xff] }
  0x16   : > { %1174 = vmatprep.subr.mxu1 %v1318_v2  ;;  %1158 = vmatmul.mubr.msk.f32.gmra.mrb[2].mxu1 %vm153_vm1, %v149_v7  ;;  %v817_v23 = vld [vmem:[%s1366_s18 + $0xd] sm:$0xff]  ;;  %v819_v28 = vld [vmem:[%s1366_s18 + $0x1d] sm:$0xff] }
  0x17   : > { %1160 = vmatprep.mubr.msk.f32.mxu1 %vm1319_vm0, %v1318_v2  ;;  %v429_v25 = vld [vmem:[%s1366_s18 + $0x6] sm:$0xff]  ;;  %v430_v27 = vld [vmem:[%s1366_s18 + $0xe] sm:$0xff]  ;;  %v431_v29 = vld [vmem:[%s1366_s18 + $0x16] sm:$0xff] }
  0x18   : > { %v527_v30 = vld [vmem:[%s1366_s18 + $0xf] sm:$0xff]  ;;  %v528_v31 = vld [vmem:[%s1366_s18 + $0x17] sm:$0xff] }
  0x19   : > { %v916_v32 = vld [vmem:[%s1366_s18 + $0x1e] sm:$0xff] }
  0x1a   : > { %1161 = vmatmul.mubr.msk.f32.gmra.mrb[4].mxu1 %vm153_vm1, %v150_v8 }
  0x1b   : > { %1210 = vmatmul.mubr.msk.f32.vlgmr.msra.gmra.mrb[0].mxu0 %vm153_vm1, %v623_v9  ;;  %1165 = vmatprep.mubr.msk.f32.mxu1 %vm1319_vm0, %v1318_v2 }
  0x1c   : > { %1219 = vmatpush3.msra.mxu0 %v1102_v10  ;;  %1212 = vmatprep.mubr.msk.f32.mxu0 %vm1319_vm0, %v1318_v2 }
  0x1d   : > { %1229 = vmatprep.subr.mxu0 %v1318_v2 }
  0x1e   : > { %1166 = vmatmul.mubr.msk.f32.vlgmr.msra.gmra.mrb[0].mxu1 %vm153_vm1, %v144_v11 }
  0x1f   : > { %1213 = vmatmul.mubr.msk.f32.gmra.mrb[2].mxu0 %vm153_vm1, %v624_v12  ;;  %1175 = vmatpush3.msra.mxu1 %v1086_v13 }
  0x20   : > { %1168 = vmatprep.mubr.msk.f32.mxu1 %vm1319_vm0, %v1318_v2  ;;  %1215 = vmatprep.mubr.msk.f32.mxu0 %vm1319_vm0, %v1318_v2 }
  0x21   : > { %1185 = vmatprep.subr.mxu1 %v1318_v2 }
  0x22   : > { %1169 = vmatmul.mubr.msk.f32.gmra.mrb[2].mxu1 %vm153_vm1, %v623_v9 }
  0x23   : > { %1216 = vmatmul.mubr.msk.f32.gmra.mrb[4].mxu0 %vm153_vm1, %v625_v14  ;;  %1171 = vmatprep.mubr.msk.f32.mxu1 %vm1319_vm0, %v1318_v2 }
  0x24   : > { %1220 = vmatprep.mubr.msk.f32.mxu0 %vm1319_vm0, %v1318_v2 }
  0x26   : > { %1172 = vmatmul.mubr.msk.f32.gmra.mrb[4].mxu1 %vm153_vm1, %v624_v12 }
  0x27   : > { %1221 = vmatmul.mubr.msk.f32.vlgmr.msra.gmra.mrb[0].mxu0 %vm153_vm1, %v720_v15  ;;  %1176 = vmatprep.mubr.msk.f32.mxu1 %vm1319_vm0, %v1318_v2 }
  0x28   : > { %1230 = vmatpush3.msra.mxu0 %v1106_v16  ;;  %1223 = vmatprep.mubr.msk.f32.mxu0 %vm1319_vm0, %v1318_v2 }
  0x29   : > { %1240 = vmatprep.subr.mxu0 %v1318_v2 }
  0x2a   : > { %1177 = vmatmul.mubr.msk.f32.vlgmr.msra.gmra.mrb[0].mxu1 %vm153_vm1, %v332_v17 }
  0x2b   : > { %1224 = vmatmul.mubr.msk.f32.gmra.mrb[2].mxu0 %vm153_vm1, %v721_v18  ;;  %1186 = vmatpush3.msra.mxu1 %v1090_v19 }
  0x2c   : > { %1179 = vmatprep.mubr.msk.f32.mxu1 %vm1319_vm0, %v1318_v2  ;;  %1226 = vmatprep.mubr.msk.f32.mxu0 %vm1319_vm0, %v1318_v2 }
  0x2d   : > { %1251 = vmatprep.subr.mxu1 %v1318_v2 }
  0x2e   : > { %1180 = vmatmul.mubr.msk.f32.gmra.mrb[2].mxu1 %vm153_vm1, %v333_v20 }
  0x2f   : > { %1227 = vmatmul.mubr.msk.f32.gmra.mrb[4].mxu0 %vm153_vm1, %v722_v21  ;;  %1182 = vmatprep.mubr.msk.f32.mxu1 %vm1319_vm0, %v1318_v2 }
  0x30   : > { %1231 = vmatprep.mubr.msk.f32.mxu0 %vm1319_vm0, %v1318_v2 }
  0x32   : > { %1183 = vmatmul.mubr.msk.f32.gmra.mrb[4].mxu1 %vm153_vm1, %v334_v22 }
  0x33   : > { %1232 = vmatmul.mubr.msk.f32.vlgmr.msra.gmra.mrb[0].mxu0 %vm153_vm1, %v817_v23  ;;  %1187 = vmatprep.mubr.msk.f32.mxu1 %vm1319_vm0, %v1318_v2 }
  0x34   : > { %1241 = vmatpush3.msra.mxu0 %v1110_v24  ;;  %1234 = vmatprep.mubr.msk.f32.mxu0 %vm1319_vm0, %v1318_v2 }
  0x36   : > { %1188 = vmatmul.mubr.msk.f32.vlgmr.msra.gmra.mrb[0].mxu1 %vm153_vm1, %v429_v25 }
  0x37   : > { %1235 = vmatmul.mubr.msk.f32.gmra.mrb[2].mxu0 %vm153_vm1, %v818_v26  ;;  %1252 = vmatpush3.msra.mxu1 %v1349_v1 }
  0x38   : > { %1190 = vmatprep.mubr.msk.f32.mxu1 %vm1319_vm0, %v1318_v2  ;;  %1237 = vmatprep.mubr.msk.f32.mxu0 %vm1319_vm0, %v1318_v2 }
  0x3a   : > { %1191 = vmatmul.mubr.msk.f32.gmra.mrb[2].mxu1 %vm153_vm1, %v430_v27 }
  0x3b   : > { %1238 = vmatmul.mubr.msk.f32.gmra.mrb[4].mxu0 %vm153_vm1, %v819_v28  ;;  %1193 = vmatprep.mubr.msk.f32.mxu1 %vm1319_vm0, %v1318_v2 }
  0x3c   : > { %1242 = vmatprep.mubr.msk.f32.mxu0 %vm1319_vm0, %v1318_v2 }
  0x3e   : > { %1194 = vmatmul.mubr.msk.f32.gmra.mrb[4].mxu1 %vm153_vm1, %v431_v29 }
  0x3f   : > { %1243 = vmatmul.mubr.msk.f32.vlgmr.msra.gmra.mrb[0].mxu0 %vm153_vm1, %v430_v27  ;;  %1201 = vmatprep.mubr.msk.f32.mxu1 %vm1319_vm0, %v1318_v2 }
  0x40   : > { %1245 = vmatprep.mubr.msk.f32.mxu0 %vm1319_vm0, %v1318_v2 }
  0x42   : > { %1202 = vmatmul.mubr.msk.f32.vlgmr.msra.gmra.mrb[2].mxu1 %vm153_vm1, %v527_v30 }
  0x43   : > { %1246 = vmatmul.mubr.msk.f32.gmra.mrb[2].mxu0 %vm153_vm1, %v431_v29  ;;  %1204 = vmatprep.mubr.msk.f32.mxu1 %vm1319_vm0, %v1318_v2 }
  0x44   : > { %1248 = vmatprep.mubr.msk.f32.mxu0 %vm1319_vm0, %v1318_v2 }
  0x46   : > { %1205 = vmatmul.mubr.msk.f32.gmra.mrb[4].mxu1 %vm153_vm1, %v528_v31 }
  0x47   : > { %1249 = vmatmul.mubr.msk.f32.gmra.mrb[4].mxu0 %vm153_vm1, %v916_v32 }
 0x109   : > { %v509_v33 = vpop.f32.mrb[0].mxu1 }
 0x10a   : > { %v1189_v34 = vpop.f32.mrb[1].mxu1 }
 0x112   : > { %v994_v35 = vpop.f32.mrb[0].mxu0 }
 0x113   : > { %v1253_v36 = vadd.f32 %v994_v35, %v509_v33  ;;  %v1244_v37 = vpop.f32.mrb[1].mxu0 }
 0x115   : > { %v1011_v38 = vmax.f32 %v1253_v36, 0.0  ;;  %v611_v39 = vpop.f32.mrb[2].mxu1 }
 0x116   : > { %v999_v40 = vpop.f32.mrb[2].mxu0  ;;  %v1203_v42 = vpop.f32.mrb[3].mxu1 }
 0x117   : > { %1014 = vst.msk [vmem:[%s143_s8] sm:$0xff] %vm153_vm1, %v1011_v38  ;;  %v1254_v41 = vadd.f32 %v999_v40, %v611_v39  ;;  %v1247_v43 = vpop.f32.mrb[3].mxu0 }
 0x119   : > { %v1012_v44 = vmax.f32 %v1254_v41, 0.0  ;;  %v616_v45 = vpop.f32.mrb[4].mxu1 }
 0x11a   : > { %v1004_v46 = vpop.f32.mrb[4].mxu0  ;;  %v1206_v48 = vpop.f32.mrb[5].mxu1 }
 0x11b   : > { %1015 = vst.msk [vmem:[%s143_s8 + $0x8] sm:$0xff] %vm153_vm1, %v1012_v44  ;;  %v1255_v47 = vadd.f32 %v1004_v46, %v616_v45  ;;  %v1250_v49 = vpop.f32.mrb[5].mxu0 }
 0x11d   : > { %v1013_v50 = vmax.f32 %v1255_v47, 0.0 }
 0x11f   : > { %1016 = vst.msk [vmem:[%s143_s8 + $0x10] sm:$0xff] %vm153_vm1, %v1013_v50 }
 0x120 PF: > { %s12_s9 = sadd.s32 1, %s1316_s9  }
 0x121   : > { %p9_p4 = scmp.ge.s32.totalorder %s12_s9, 4  }
 0x123   :  { %11 = sbr.rel (!%p9_p4) target bundleno = 1 (0x1), region = 66 }

// kernel: hourglass_1_forward.6
= control target key start
LH: loop header
LB: loop body
LE: loop exit
PB: predicated region body
PF: predicated region fallthrough
CT: control target
= control target key end

     0   :  { %s5580_s9 = smov 0   ;;  %s6611_s0 = inlined_call_operand.vmem [shape: f32[2,342,4], index: 0, kind: input, shape index: {}]   ;;  %s6612_s1 = inlined_call_operand.vmem [shape: f32[9,4,4], index: 1, kind: input, shape index: {}]   ;;  %s6613_s2 = inlined_call_operand.vmem [shape: f32[2,288,4], index: 2, kind: output, shape index: {}]  }
   0x1 LB: > { %s4070_s10 = sadd.s32 4294967295, %s5563_s9   ;;  %p4074_p0 = scmp.ge.s32.totalorder %s5563_s9, 1  ;;  %s5563_s9 = sphi %s5580_s9, %s12_s9  }
   0x2   : > { %p112_p1 = scmp.lt.s32.totalorder %s5563_s9, 3 }
   0x4   : > { %p113_p2 = pnand %p4074_p0, %p112_p1 }
   0x5   : > { %v4077_v0 = vld [vmem:[%s6612_s1 + $0x4] sm:$0xf] (!%p113_p2)  ;;  %vm328_vm0 = vcmask (!%p113_p2), 1043456   ;;  %v5594_v1 = vld [vmem:[%s6612_s1 + $0x10] sm:$0xf] (!%p113_p2)  ;;  %p134_p3 = scmp.lt.s32.totalorder (!%p113_p2), %s4070_s10, 1 }
   0x6   : > { %116 = sbr.rel (%p113_p2) target bundleno = 557 (0x22d), region = 28  ;;  %4753 = vmatprep.subr.msk.mxu1 (!%p113_p2), %vm328_vm0, %v4077_v0  ;;  %4977 = vmatprep.subr.msk.mxu0 (!%p113_p2), %vm328_vm0, %v5594_v1  ;;  %v180_v2 = vld [vmem:[%s6612_s1] sm:$0xf] (!%p113_p2)  ;;  %v4266_v3 = vld [vmem:[%s6612_s1 + $0x14] sm:$0xf] (!%p113_p2)  ;;  %vm219_vm1 = vcmask (!%p113_p2), 31744  }
   0x7   : > { %4754 = vmatpush3.msk.msra.mxu1 (!%p113_p2), %vm328_vm0, %v4077_v0  ;;  %4978 = vmatpush3.msk.msra.mxu0 (!%p113_p2), %vm328_vm0, %v5594_v1  ;;  %v5631_v10 = vld [vmem:[%s6612_s1 + $0x18] sm:$0xf] (!%p113_p2)  ;;  %v5636_v11 = vld [vmem:[%s6612_s1 + $0x8] sm:$0xf] (!%p113_p2)  ;;  %v5719_v48 = vld [vmem:[%s6612_s1 + $0x1c] sm:$0xf] (!%p113_p2) }
   0x8   : > { %4809 = vmatprep.subr.msk.mxu1 (!%p113_p2), %vm328_vm0, %v180_v2  ;;  %5033 = vmatprep.subr.msk.mxu0 (!%p113_p2), %vm328_vm0, %v4266_v3 }
   0xd   : > { %s6615_s10 = smov (!%p134_p3, %s4070_s10), 1 }
   0xe   : > { %s5547_s19 = smul.u32 344, %s6615_s10 }
   0xf   : > { %s5548_s5 = smul.u32 288, %s6615_s10 }
  0x10   : > { %s5616_s22 = scalar_lea.vmem %s6611_s0, %s5547_s19 }
  0x11   : > { %v181_v4 = vld [vmem:[%s5616_s22 + $0x1] sm:$0xff]  ;;  %v1793_v5 = vld [vmem:[%s5616_s22 + $0x13] sm:$0xff]  ;;  %v182_v6 = vld [vmem:[%s5616_s22 + $0x9] sm:$0xff]  ;;  %s6531_s8 = scalar_lea.vmem %s6613_s2, %s5548_s5 }
  0x12   : > { %4755 = vmatprep.mubr.msk.f32.mxu1 %vm219_vm1, %v181_v4  ;;  %4979 = vmatprep.mubr.msk.f32.mxu0 %vm219_vm1, %v1793_v5  ;;  %v1794_v7 = vld [vmem:[%s5616_s22 + $0x1b] sm:$0xff]  ;;  %v183_v8 = vld [vmem:[%s5616_s22 + $0x11] sm:$0xff]  ;;  %v1795_v9 = vld [vmem:[%s5616_s22 + $0x23] sm:$0xff] }
  0x13   : > { %4756 = vmatmul.mubr.msk.f32.vlgmr.msra.gmra.mrb[0].mxu1 %vm219_vm1, %v182_v6  ;;  %4980 = vmatmul.mubr.msk.f32.vlgmr.msra.gmra.mrb[0].mxu0 %vm219_vm1, %v1794_v7  ;;  %v184_v12 = vld [vmem:[%s5616_s22 + $0x19] sm:$0xff]  ;;  %v1796_v13 = vld [vmem:[%s5616_s22 + $0x2b] sm:$0xff]  ;;  %v185_v14 = vld [vmem:[%s5616_s22 + $0x21] sm:$0xff] }
  0x14   : > { %4810 = vmatpush3.msk.msra.mxu1 %vm328_vm0, %v180_v2  ;;  %5034 = vmatpush3.msk.msra.mxu0 %vm328_vm0, %v4266_v3  ;;  %v1797_v15 = vld [vmem:[%s5616_s22 + $0x33] sm:$0xff]  ;;  %v186_v16 = vld [vmem:[%s5616_s22 + $0x29] sm:$0xff]  ;;  %v1798_v17 = vld [vmem:[%s5616_s22 + $0x3b] sm:$0xff] }
  0x15   : > { %4758 = vmatprep.mubr.msk.f32.mxu1 %vm219_vm1, %v183_v8  ;;  %4982 = vmatprep.mubr.msk.f32.mxu0 %vm219_vm1, %v1795_v9  ;;  %v187_v18 = vld [vmem:[%s5616_s22 + $0x31] sm:$0xff]  ;;  %v1799_v19 = vld [vmem:[%s5616_s22 + $0x43] sm:$0xff]  ;;  %v188_v20 = vld [vmem:[%s5616_s22 + $0x39] sm:$0xff] }
  0x16   : > { %5089 = vmatprep.subr.msk.mxu0 %vm328_vm0, %v5631_v10  ;;  %4865 = vmatprep.subr.msk.mxu1 %vm328_vm0, %v5636_v11  ;;  %v1800_v21 = vld [vmem:[%s5616_s22 + $0x4b] sm:$0xff]  ;;  %v189_v22 = vld [vmem:[%s5616_s22 + $0x41] sm:$0xff]  ;;  %v1801_v23 = vld [vmem:[%s5616_s22 + $0x53] sm:$0xff] }
  0x17   : > { %4759 = vmatmul.mubr.msk.f32.gmra.mrb[2].mxu1 %vm219_vm1, %v184_v12  ;;  %4983 = vmatmul.mubr.msk.f32.gmra.mrb[2].mxu0 %vm219_vm1, %v1796_v13  ;;  %v190_v24 = vld [vmem:[%s5616_s22 + $0x49] sm:$0xff]  ;;  %v1802_v25 = vld [vmem:[%s5616_s22 + $0x5b] sm:$0xff]  ;;  %v191_v26 = vld [vmem:[%s5616_s22 + $0x51] sm:$0xff] }
  0x18   : > { %4761 = vmatprep.mubr.msk.f32.mxu1 %vm219_vm1, %v185_v14  ;;  %4985 = vmatprep.mubr.msk.f32.mxu0 %vm219_vm1, %v1797_v15  ;;  %v1803_v27 = vld [vmem:[%s5616_s22 + $0x63] sm:$0xff]  ;;  %v192_v28 = vld [vmem:[%s5616_s22 + $0x59] sm:$0xff]  ;;  %v1804_v29 = vld [vmem:[%s5616_s22 + $0x6b] sm:$0xff] }
  0x19   : > { %v193_v30 = vld [vmem:[%s5616_s22 + $0x61] sm:$0xff]  ;;  %v1805_v31 = vld [vmem:[%s5616_s22 + $0x73] sm:$0xff]  ;;  %v194_v32 = vld [vmem:[%s5616_s22 + $0x69] sm:$0xff] }
  0x1a   : > { %v1806_v33 = vld [vmem:[%s5616_s22 + $0x7b] sm:$0xff]  ;;  %v195_v34 = vld [vmem:[%s5616_s22 + $0x71] sm:$0xff]  ;;  %v1807_v35 = vld [vmem:[%s5616_s22 + $0x83] sm:$0xff] }
  0x1b   : > { %4762 = vmatmul.mubr.msk.f32.gmra.mrb[4].mxu1 %vm219_vm1, %v186_v16  ;;  %4986 = vmatmul.mubr.msk.f32.gmra.mrb[4].mxu0 %vm219_vm1, %v1798_v17  ;;  %v196_v36 = vld [vmem:[%s5616_s22 + $0x79] sm:$0xff]  ;;  %v1808_v37 = vld [vmem:[%s5616_s22 + $0x8b] sm:$0xff]  ;;  %v197_v38 = vld [vmem:[%s5616_s22 + $0x81] sm:$0xff] }
  0x1c   : > { %4764 = vmatprep.mubr.msk.f32.mxu1 %vm219_vm1, %v187_v18  ;;  %4988 = vmatprep.mubr.msk.f32.mxu0 %vm219_vm1, %v1799_v19  ;;  %v1809_v39 = vld [vmem:[%s5616_s22 + $0x93] sm:$0xff]  ;;  %v198_v40 = vld [vmem:[%s5616_s22 + $0x89] sm:$0xff]  ;;  %v1810_v41 = vld [vmem:[%s5616_s22 + $0x9b] sm:$0xff] }
  0x1d   : > { %v199_v42 = vld [vmem:[%s5616_s22 + $0x91] sm:$0xff]  ;;  %v200_v44 = vld [vmem:[%s5616_s22 + $0x99] sm:$0xff]  ;;  %v201_v46 = vld [vmem:[%s5616_s22 + $0xa1] sm:$0xff] }
  0x1e   : > { %v2223_v43 = vld [vmem:[%s5616_s22 + $0x14] sm:$0xff]  ;;  %v2224_v45 = vld [vmem:[%s5616_s22 + $0x1c] sm:$0xff]  ;;  %v5714_v47 = vld [vmem:[%s5616_s22 + $0x24] sm:$0xff] }
  0x1f   : > { %4765 = vmatmul.mubr.msk.f32.gmra.mrb[6].mxu1 %vm219_vm1, %v188_v20  ;;  %4989 = vmatmul.mubr.msk.f32.gmra.mrb[6].mxu0 %vm219_vm1, %v1800_v21  ;;  %v202_v49 = vld [vmem:[%s5616_s22 + $0xa9] sm:$0xff]  ;;  %v203_v51 = vld [vmem:[%s5616_s22 + $0xb1] sm:$0xff]  ;;  %v204_v53 = vld [vmem:[%s5616_s22 + $0xb9] sm:$0xff] }
  0x20   : > { %4767 = vmatprep.mubr.msk.f32.mxu1 %vm219_vm1, %v189_v22  ;;  %4991 = vmatprep.mubr.msk.f32.mxu0 %vm219_vm1, %v1801_v23  ;;  %v5728_v50 = vld [vmem:[%s5616_s22 + $0x2c] sm:$0xff]  ;;  %v5734_v52 = vld [vmem:[%s5616_s22 + $0x34] sm:$0xff]  ;;  %v5746_v54 = vld [vmem:[%s5616_s22 + $0x3c] sm:$0xff] }
  0x21   : > { %v205_v55 = vld [vmem:[%s5616_s22 + $0xc1] sm:$0xff]  ;;  %v206_v57 = vld [vmem:[%s5616_s22 + $0xc9] sm:$0xff]  ;;  %v207_v59 = vld [vmem:[%s5616_s22 + $0xd1] sm:$0xff] }
  0x22   : > { %v5750_v56 = vld [vmem:[%s5616_s22 + $0x44] sm:$0xff]  ;;  %v5760_v58 = vld [vmem:[%s5616_s22 + $0x4c] sm:$0xff]  ;;  %v5764_v60 = vld [vmem:[%s5616_s22 + $0x54] sm:$0xff] }
  0x23   : > { %4768 = vmatmul.mubr.msk.f32.gmra.mrb[8].mxu1 %vm219_vm1, %v190_v24  ;;  %4992 = vmatmul.mubr.msk.f32.gmra.mrb[8].mxu0 %vm219_vm1, %v1802_v25  ;;  %v208_v61 = vld [vmem:[%s5616_s22 + $0xd9] sm:$0xff]  ;;  %v209_v63 = vld [vmem:[%s5616_s22 + $0xe1] sm:$0xff]  ;;  %v210_v2 = vld [vmem:[%s5616_s22 + $0xe9] sm:$0xff] }
  0x24   : > { %4770 = vmatprep.mubr.msk.f32.mxu1 %vm219_vm1, %v191_v26  ;;  %4994 = vmatprep.mubr.msk.f32.mxu0 %vm219_vm1, %v1803_v27  ;;  %v5774_v62 = vld [vmem:[%s5616_s22 + $0x5c] sm:$0xff]  ;;  %v5778_v0 = vld [vmem:[%s5616_s22 + $0x64] sm:$0xff]  ;;  %v5788_v3 = vld [vmem:[%s5616_s22 + $0x6c] sm:$0xff] }
  0x25   : > { %v211_v4 = vld [vmem:[%s5616_s22 + $0xf1] sm:$0xff]  ;;  %v212_v6 = vld [vmem:[%s5616_s22 + $0xf9] sm:$0xff]  ;;  %v213_v8 = vld [vmem:[%s5616_s22 + $0x101] sm:$0xff] }
  0x26   : > { %v5792_v5 = vld [vmem:[%s5616_s22 + $0x74] sm:$0xff]  ;;  %v5802_v7 = vld [vmem:[%s5616_s22 + $0x7c] sm:$0xff]  ;;  %v5806_v9 = vld [vmem:[%s5616_s22 + $0x84] sm:$0xff] }
  0x27   : > { %4771 = vmatmul.mubr.msk.f32.gmra.mrb[10].mxu1 %vm219_vm1, %v192_v28  ;;  %4995 = vmatmul.mubr.msk.f32.gmra.mrb[10].mxu0 %vm219_vm1, %v1804_v29  ;;  %v5816_v12 = vld [vmem:[%s5616_s22 + $0x8c] sm:$0xff]  ;;  %v5820_v14 = vld [vmem:[%s5616_s22 + $0x94] sm:$0xff]  ;;  %v5830_v16 = vld [vmem:[%s5616_s22 + $0x9c] sm:$0xff] }
  0x28   : > { %4773 = vmatprep.mubr.msk.f32.mxu1 %vm219_vm1, %v193_v30  ;;  %4997 = vmatprep.mubr.msk.f32.mxu0 %vm219_vm1, %v1805_v31  ;;  %v215_v13 = vld [vmem:[%s5616_s22 + $0x111] sm:$0xff]  ;;  %v216_v15 = vld [vmem:[%s5616_s22 + $0x119] sm:$0xff]  ;;  %v5834_v18 = vld [vmem:[%s5616_s22 + $0xa4] sm:$0xff] }
  0x29   : > { %v144_v17 = vld [vmem:[%s5616_s22] sm:$0xff]  ;;  %v145_v19 = vld [vmem:[%s5616_s22 + $0x8] sm:$0xff]  ;;  %v146_v21 = vld [vmem:[%s5616_s22 + $0x10] sm:$0xff] }
  0x2a   : > { %v5844_v20 = vld [vmem:[%s5616_s22 + $0xac] sm:$0xff]  ;;  %v5848_v22 = vld [vmem:[%s5616_s22 + $0xb4] sm:$0xff]  ;;  %v5863_v25 = vld [vmem:[%s5616_s22 + $0xbc] sm:$0xff] }
  0x2b   : > { %4774 = vmatmul.mubr.msk.f32.gmra.mrb[12].mxu1 %vm219_vm1, %v194_v32  ;;  %4998 = vmatmul.mubr.msk.f32.gmra.mrb[12].mxu0 %vm219_vm1, %v1806_v33  ;;  %v5853_v23 = vld [vmem:[%s6612_s1 + $0xc] sm:$0xf]  ;;  %v147_v24 = vld [vmem:[%s5616_s22 + $0x18] sm:$0xff]  ;;  %v148_v26 = vld [vmem:[%s5616_s22 + $0x20] sm:$0xff] }
  0x2c   : > { %4776 = vmatprep.mubr.msk.f32.mxu1 %vm219_vm1, %v195_v34  ;;  %5000 = vmatprep.mubr.msk.f32.mxu0 %vm219_vm1, %v1807_v35  ;;  %v5869_v27 = vld [vmem:[%s5616_s22 + $0xc4] sm:$0xff]  ;;  %v5881_v28 = vld [vmem:[%s5616_s22 + $0xcc] sm:$0xff]  ;;  %v5885_v30 = vld [vmem:[%s5616_s22 + $0xd4] sm:$0xff] }
  0x2d   : > { %v150_v29 = vld [vmem:[%s5616_s22 + $0x30] sm:$0xff]  ;;  %v151_v31 = vld [vmem:[%s5616_s22 + $0x38] sm:$0xff]  ;;  %v152_v33 = vld [vmem:[%s5616_s22 + $0x40] sm:$0xff] }
  0x2e   : > { %v5895_v32 = vld [vmem:[%s5616_s22 + $0xdc] sm:$0xff]  ;;  %v5899_v34 = vld [vmem:[%s5616_s22 + $0xe4] sm:$0xff] }
  0x2f   : > { %4777 = vmatmul.mubr.msk.f32.gmra.mrb[14].mxu1 %vm219_vm1, %v196_v36  ;;  %5001 = vmatmul.mubr.msk.f32.gmra.mrb[14].mxu0 %vm219_vm1, %v1808_v37  ;;  %v153_v35 = vld [vmem:[%s5616_s22 + $0x48] sm:$0xff]  ;;  %v154_v37 = vld [vmem:[%s5616_s22 + $0x50] sm:$0xff] }
  0x30   : > { %4779 = vmatprep.mubr.msk.f32.mxu1 %vm219_vm1, %v197_v38  ;;  %5003 = vmatprep.mubr.msk.f32.mxu0 %vm219_vm1, %v1809_v39  ;;  %v5909_v36 = vld [vmem:[%s5616_s22 + $0xec] sm:$0xff]  ;;  %v5913_v38 = vld [vmem:[%s5616_s22 + $0xf4] sm:$0xff] }
  0x31   : > { %v155_v39 = vld [vmem:[%s5616_s22 + $0x58] sm:$0xff] }
  0x33   : > { %4780 = vmatmul.mubr.msk.f32.gmra.mrb[16].mxu1 %vm219_vm1, %v198_v40  ;;  %5004 = vmatmul.mubr.msk.f32.gmra.mrb[16].mxu0 %vm219_vm1, %v1810_v41  ;;  %v5923_v40 = vld [vmem:[%s5616_s22 + $0xfc] sm:$0xff] }
  0x34   : > { %4782 = vmatprep.mubr.msk.f32.mxu1 %vm219_vm1, %v199_v42  ;;  %5035 = vmatprep.mubr.msk.f32.mxu0 %vm219_vm1, %v2223_v43  ;;  %v156_v41 = vld [vmem:[%s5616_s22 + $0x60] sm:$0xff]  ;;  %v157_v43 = vld [vmem:[%s5616_s22 + $0x68] sm:$0xff] }
  0x35   : > { %v5927_v42 = vld [vmem:[%s5616_s22 + $0x104] sm:$0xff] }
  0x37   : > { %4783 = vmatmul.mubr.msk.f32.gmra.mrb[18].mxu1 %vm219_vm1, %v200_v44  ;;  %5036 = vmatmul.mubr.msk.f32.vlgmr.msra.gmra.mrb[0].mxu0 %vm219_vm1, %v2224_v45  ;;  %v5937_v44 = vld [vmem:[%s5616_s22 + $0x10c] sm:$0xff] }
  0x38   : > { %5090 = vmatpush3.msk.msra.mxu0 %vm328_vm0, %v5631_v10  ;;  %4785 = vmatprep.mubr.msk.f32.mxu1 %vm219_vm1, %v201_v46  ;;  %v214_v10 = vld [vmem:[%s5616_s22 + $0x109] sm:$0xff]  ;;  %v5941_v46 = vld [vmem:[%s5616_s22 + $0x114] sm:$0xff] }
  0x39   : > { %5038 = vmatprep.mubr.msk.f32.mxu0 %vm219_vm1, %v5714_v47  ;;  %5145 = vmatprep.subr.msk.mxu0 %vm328_vm0, %v5719_v48  ;;  %v158_v45 = vld [vmem:[%s5616_s22 + $0x70] sm:$0xff] }
  0x3b   : > { %4786 = vmatmul.mubr.msk.f32.gmra.mrb[20].mxu1 %vm219_vm1, %v202_v49  ;;  %5039 = vmatmul.mubr.msk.f32.gmra.mrb[2].mxu0 %vm219_vm1, %v5728_v50  ;;  %v159_v49 = vld [vmem:[%s5616_s22 + $0x78] sm:$0xff] }
  0x3c   : > { %4788 = vmatprep.mubr.msk.f32.mxu1 %vm219_vm1, %v203_v51  ;;  %5041 = vmatprep.mubr.msk.f32.mxu0 %vm219_vm1, %v5734_v52  ;;  %v5951_v51 = vld [vmem:[%s5616_s22 + $0x11c] sm:$0xff] }
  0x3f   : > { %4789 = vmatmul.mubr.msk.f32.gmra.mrb[22].mxu1 %vm219_vm1, %v204_v53  ;;  %5042 = vmatmul.mubr.msk.f32.gmra.mrb[4].mxu0 %vm219_vm1, %v5746_v54  ;;  %v160_v53 = vld [vmem:[%s5616_s22 + $0x80] sm:$0xff] }
  0x40   : > { %4791 = vmatprep.mubr.msk.f32.mxu1 %vm219_vm1, %v205_v55  ;;  %5044 = vmatprep.mubr.msk.f32.mxu0 %vm219_vm1, %v5750_v56  ;;  %v5955_v55 = vld [vmem:[%s5616_s22 + $0x124] sm:$0xff] }
  0x43   : > { %4792 = vmatmul.mubr.msk.f32.gmra.mrb[24].mxu1 %vm219_vm1, %v206_v57  ;;  %5045 = vmatmul.mubr.msk.f32.gmra.mrb[6].mxu0 %vm219_vm1, %v5760_v58  ;;  %v161_v57 = vld [vmem:[%s5616_s22 + $0x88] sm:$0xff] }
  0x44   : > { %4794 = vmatprep.mubr.msk.f32.mxu1 %vm219_vm1, %v207_v59  ;;  %5047 = vmatprep.mubr.msk.f32.mxu0 %vm219_vm1, %v5764_v60  ;;  %v5965_v59 = vld [vmem:[%s5616_s22 + $0x12c] sm:$0xff] }
  0x47   : > { %4795 = vmatmul.mubr.msk.f32.gmra.mrb[26].mxu1 %vm219_vm1, %v208_v61  ;;  %5048 = vmatmul.mubr.msk.f32.gmra.mrb[8].mxu0 %vm219_vm1, %v5774_v62  ;;  %v162_v61 = vld [vmem:[%s5616_s22 + $0x90] sm:$0xff] }
  0x48   : > { %4797 = vmatprep.mubr.msk.f32.mxu1 %vm219_vm1, %v209_v63  ;;  %5050 = vmatprep.mubr.msk.f32.mxu0 %vm219_vm1, %v5778_v0  ;;  %v163_v63 = vld [vmem:[%s5616_s22 + $0x98] sm:$0xff] }
  0x4b   : > { %4798 = vmatmul.mubr.msk.f32.gmra.mrb[28].mxu1 %vm219_vm1, %v210_v2  ;;  %5051 = vmatmul.mubr.msk.f32.gmra.mrb[10].mxu0 %vm219_vm1, %v5788_v3  ;;  %v164_v2 = vld [vmem:[%s5616_s22 + $0xa0] sm:$0xff] }
  0x4c   : > { %4800 = vmatprep.mubr.msk.f32.mxu1 %vm219_vm1, %v211_v4  ;;  %5053 = vmatprep.mubr.msk.f32.mxu0 %vm219_vm1, %v5792_v5  ;;  %v5979_v4 = vld [vmem:[%s6612_s1 + $0x20] sm:$0xf] }
  0x4f   : > { %4801 = vmatmul.mubr.msk.f32.gmra.mrb[30].mxu1 %vm219_vm1, %v212_v6  ;;  %5054 = vmatmul.mubr.msk.f32.gmra.mrb[12].mxu0 %vm219_vm1, %v5802_v7  ;;  %v166_v6 = vld [vmem:[%s5616_s22 + $0xb0] sm:$0xff] }
  0x50   : > { %4803 = vmatprep.mubr.msk.f32.mxu1 %vm219_vm1, %v213_v8  ;;  %5056 = vmatprep.mubr.msk.f32.mxu0 %vm219_vm1, %v5806_v9  ;;  %v179_v8 = vld [vmem:[%s5616_s22 + $0x118] sm:$0xff] }
  0x53   : > { %4804 = vmatmul.mubr.msk.f32.gmra.mrb[32].mxu1 %vm219_vm1, %v214_v10  ;;  %5057 = vmatmul.mubr.msk.f32.gmra.mrb[14].mxu0 %vm219_vm1, %v5816_v12  ;;  %v934_v10 = vld [vmem:[%s5616_s22 + $0xa] sm:$0xff] }
  0x54   : > { %4806 = vmatprep.mubr.msk.f32.mxu1 %vm219_vm1, %v215_v13  ;;  %5059 = vmatprep.mubr.msk.f32.mxu0 %vm219_vm1, %v5820_v14  ;;  %v6067_v13 = vld [vmem:[%s5616_s22 + $0x1a] sm:$0xff] }
  0x57   : > { %4807 = vmatmul.mubr.msk.f32.gmra.mrb[34].mxu1 %vm219_vm1, %v216_v15  ;;  %5060 = vmatmul.mubr.msk.f32.gmra.mrb[16].mxu0 %vm219_vm1, %v5830_v16  ;;  %v6085_v15 = vld [vmem:[%s5616_s22 + $0x2a] sm:$0xff] }
  0x58   : > { %4811 = vmatprep.mubr.msk.f32.mxu1 %vm219_vm1, %v144_v17  ;;  %5062 = vmatprep.mubr.msk.f32.mxu0 %vm219_vm1, %v5834_v18  ;;  %v6099_v17 = vld [vmem:[%s5616_s22 + $0x3a] sm:$0xff] }
  0x5b   : > { %4812 = vmatmul.mubr.msk.f32.vlgmr.msra.gmra.mrb[0].mxu1 %vm219_vm1, %v145_v19  ;;  %5063 = vmatmul.mubr.msk.f32.gmra.mrb[18].mxu0 %vm219_vm1, %v5844_v20  ;;  %v6113_v19 = vld [vmem:[%s5616_s22 + $0x4a] sm:$0xff] }
  0x5c   : > { %4866 = vmatpush3.msk.msra.mxu1 %vm328_vm0, %v5636_v11  ;;  %4814 = vmatprep.mubr.msk.f32.mxu1 %vm219_vm1, %v146_v21  ;;  %v149_v11 = vld [vmem:[%s5616_s22 + $0x28] sm:$0xff]  ;;  %v6127_v21 = vld [vmem:[%s5616_s22 + $0x5a] sm:$0xff] }
  0x5d   : > { %5065 = vmatprep.mubr.msk.f32.mxu0 %vm219_vm1, %v5848_v22  ;;  %4921 = vmatprep.subr.msk.mxu1 %vm328_vm0, %v5853_v23 }
  0x5f   : > { %4815 = vmatmul.mubr.msk.f32.gmra.mrb[2].mxu1 %vm219_vm1, %v147_v24  ;;  %5066 = vmatmul.mubr.msk.f32.gmra.mrb[20].mxu0 %vm219_vm1, %v5863_v25  ;;  %v6144_v24 = vld [vmem:[%s5616_s22 + $0x72] sm:$0xff] }
  0x60   : > { %4817 = vmatprep.mubr.msk.f32.mxu1 %vm219_vm1, %v148_v26  ;;  %5068 = vmatprep.mubr.msk.f32.mxu0 %vm219_vm1, %v5869_v27  ;;  %v6158_v26 = vld [vmem:[%s5616_s22 + $0x82] sm:$0xff] }
  0x63   : > { %4818 = vmatmul.mubr.msk.f32.gmra.mrb[4].mxu1 %vm219_vm1, %v149_v11  ;;  %5069 = vmatmul.mubr.msk.f32.gmra.mrb[22].mxu0 %vm219_vm1, %v5881_v28  ;;  %v6169_v11 = vld [vmem:[%s5616_s22 + $0x8a] sm:$0xff] }
  0x64   : > { %4820 = vmatprep.mubr.msk.f32.mxu1 %vm219_vm1, %v150_v29  ;;  %5071 = vmatprep.mubr.msk.f32.mxu0 %vm219_vm1, %v5885_v30  ;;  %v6173_v29 = vld [vmem:[%s5616_s22 + $0x92] sm:$0xff] }
  0x67   : > { %4821 = vmatmul.mubr.msk.f32.gmra.mrb[6].mxu1 %vm219_vm1, %v151_v31  ;;  %5072 = vmatmul.mubr.msk.f32.gmra.mrb[24].mxu0 %vm219_vm1, %v5895_v32  ;;  %v6183_v31 = vld [vmem:[%s5616_s22 + $0x9a] sm:$0xff] }
  0x68   : > { %4823 = vmatprep.mubr.msk.f32.mxu1 %vm219_vm1, %v152_v33  ;;  %5074 = vmatprep.mubr.msk.f32.mxu0 %vm219_vm1, %v5899_v34  ;;  %v6187_v33 = vld [vmem:[%s5616_s22 + $0xa2] sm:$0xff] }
  0x6b   : > { %4824 = vmatmul.mubr.msk.f32.gmra.mrb[8].mxu1 %vm219_vm1, %v153_v35  ;;  %5075 = vmatmul.mubr.msk.f32.gmra.mrb[26].mxu0 %vm219_vm1, %v5909_v36  ;;  %v6198_v35 = vld [vmem:[%s5616_s22 + $0xaa] sm:$0xff] }
  0x6c   : > { %4826 = vmatprep.mubr.msk.f32.mxu1 %vm219_vm1, %v154_v37  ;;  %5077 = vmatprep.mubr.msk.f32.mxu0 %vm219_vm1, %v5913_v38  ;;  %v6203_v37 = vld [vmem:[%s5616_s22 + $0xb2] sm:$0xff] }
  0x6f   : > { %4827 = vmatmul.mubr.msk.f32.gmra.mrb[10].mxu1 %vm219_vm1, %v155_v39  ;;  %5078 = vmatmul.mubr.msk.f32.gmra.mrb[28].mxu0 %vm219_vm1, %v5923_v40  ;;  %v6213_v39 = vld [vmem:[%s5616_s22 + $0xba] sm:$0xff] }
  0x70   : > { %4829 = vmatprep.mubr.msk.f32.mxu1 %vm219_vm1, %v156_v41  ;;  %5080 = vmatprep.mubr.msk.f32.mxu0 %vm219_vm1, %v5927_v42  ;;  %v6217_v41 = vld [vmem:[%s5616_s22 + $0xc2] sm:$0xff] }
  0x73   : > { %4830 = vmatmul.mubr.msk.f32.gmra.mrb[12].mxu1 %vm219_vm1, %v157_v43  ;;  %5081 = vmatmul.mubr.msk.f32.gmra.mrb[30].mxu0 %vm219_vm1, %v5937_v44  ;;  %v6227_v43 = vld [vmem:[%s5616_s22 + $0xca] sm:$0xff] }
  0x74   : > { %4832 = vmatprep.mubr.msk.f32.mxu1 %vm219_vm1, %v158_v45  ;;  %5083 = vmatprep.mubr.msk.f32.mxu0 %vm219_vm1, %v5941_v46  ;;  %v6231_v45 = vld [vmem:[%s5616_s22 + $0xd2] sm:$0xff] }
  0x77   : > { %4833 = vmatmul.mubr.msk.f32.gmra.mrb[14].mxu1 %vm219_vm1, %v159_v49  ;;  %5084 = vmatmul.mubr.msk.f32.gmra.mrb[32].mxu0 %vm219_vm1, %v5951_v51  ;;  %v6241_v49 = vld [vmem:[%s5616_s22 + $0xda] sm:$0xff] }
  0x78   : > { %4835 = vmatprep.mubr.msk.f32.mxu1 %vm219_vm1, %v160_v53  ;;  %5086 = vmatprep.mubr.msk.f32.mxu0 %vm219_vm1, %v5955_v55  ;;  %v6245_v53 = vld [vmem:[%s5616_s22 + $0xe2] sm:$0xff] }
  0x7b   : > { %4836 = vmatmul.mubr.msk.f32.gmra.mrb[16].mxu1 %vm219_vm1, %v161_v57  ;;  %5087 = vmatmul.mubr.msk.f32.gmra.mrb[34].mxu0 %vm219_vm1, %v5965_v59  ;;  %v6255_v57 = vld [vmem:[%s5616_s22 + $0xea] sm:$0xff] }
  0x7c   : > { %4838 = vmatprep.mubr.msk.f32.mxu1 %vm219_vm1, %v162_v61  ;;  %5091 = vmatprep.mubr.msk.f32.mxu0 %vm219_vm1, %v5714_v47  ;;  %v165_v47 = vld [vmem:[%s5616_s22 + $0xa8] sm:$0xff]  ;;  %v6259_v61 = vld [vmem:[%s5616_s22 + $0xf2] sm:$0xff] }
  0x7f   : > { %4839 = vmatmul.mubr.msk.f32.gmra.mrb[18].mxu1 %vm219_vm1, %v163_v63  ;;  %5092 = vmatmul.mubr.msk.f32.vlgmr.msra.gmra.mrb[0].mxu0 %vm219_vm1, %v5728_v50  ;;  %v168_v50 = vld [vmem:[%s5616_s22 + $0xc0] sm:$0xff] }
  0x80   : > { %5146 = vmatpush3.msk.msra.mxu0 %vm328_vm0, %v5719_v48  ;;  %4841 = vmatprep.mubr.msk.f32.mxu1 %vm219_vm1, %v164_v2  ;;  %v167_v48 = vld [vmem:[%s5616_s22 + $0xb8] sm:$0xff]  ;;  %v3095_v63 = vld [vmem:[%s5616_s22 + $0x85] sm:$0xff] }
  0x81   : > { %5094 = vmatprep.mubr.msk.f32.mxu0 %vm219_vm1, %v5734_v52  ;;  %5201 = vmatprep.subr.msk.mxu0 %vm328_vm0, %v5979_v4  ;;  %v169_v52 = vld [vmem:[%s5616_s22 + $0xc8] sm:$0xff]  ;;  %v6269_v2 = vld [vmem:[%s5616_s22 + $0xfa] sm:$0xff] }
  0x83   : > { %4842 = vmatmul.mubr.msk.f32.gmra.mrb[20].mxu1 %vm219_vm1, %v165_v47  ;;  %5095 = vmatmul.mubr.msk.f32.gmra.mrb[2].mxu0 %vm219_vm1, %v5746_v54  ;;  %v170_v54 = vld [vmem:[%s5616_s22 + $0xd0] sm:$0xff]  ;;  %v6273_v47 = vld [vmem:[%s5616_s22 + $0x102] sm:$0xff] }
  0x84   : > { %4844 = vmatprep.mubr.msk.f32.mxu1 %vm219_vm1, %v166_v6  ;;  %5097 = vmatprep.mubr.msk.f32.mxu0 %vm219_vm1, %v5750_v56  ;;  %v171_v56 = vld [vmem:[%s5616_s22 + $0xd8] sm:$0xff] }
  0x85   : > { %v3097_v6 = vld [vmem:[%s5616_s22 + $0x95] sm:$0xff] }
  0x87   : > { %4845 = vmatmul.mubr.msk.f32.gmra.mrb[22].mxu1 %vm219_vm1, %v167_v48  ;;  %5098 = vmatmul.mubr.msk.f32.gmra.mrb[4].mxu0 %vm219_vm1, %v5760_v58  ;;  %v172_v58 = vld [vmem:[%s5616_s22 + $0xe0] sm:$0xff]  ;;  %v6283_v48 = vld [vmem:[%s5616_s22 + $0x10a] sm:$0xff] }
  0x88   : > { %4847 = vmatprep.mubr.msk.f32.mxu1 %vm219_vm1, %v168_v50  ;;  %5100 = vmatprep.mubr.msk.f32.mxu0 %vm219_vm1, %v5764_v60  ;;  %v173_v60 = vld [vmem:[%s5616_s22 + $0xe8] sm:$0xff]  ;;  %v3098_v50 = vld [vmem:[%s5616_s22 + $0x9d] sm:$0xff] }
  0x8b   : > { %4848 = vmatmul.mubr.msk.f32.gmra.mrb[24].mxu1 %vm219_vm1, %v169_v52  ;;  %5101 = vmatmul.mubr.msk.f32.gmra.mrb[6].mxu0 %vm219_vm1, %v5774_v62  ;;  %v174_v62 = vld [vmem:[%s5616_s22 + $0xf0] sm:$0xff] }
  0x8c   : > { %4850 = vmatprep.mubr.msk.f32.mxu1 %vm219_vm1, %v170_v54  ;;  %5103 = vmatprep.mubr.msk.f32.mxu0 %vm219_vm1, %v5778_v0  ;;  %v175_v0 = vld [vmem:[%s5616_s22 + $0xf8] sm:$0xff]  ;;  %v3099_v54 = vld [vmem:[%s5616_s22 + $0xa5] sm:$0xff] }
  0x8d   : > { %v6287_v52 = vld [vmem:[%s5616_s22 + $0x112] sm:$0xff] }
  0x8f   : > { %4851 = vmatmul.mubr.msk.f32.gmra.mrb[26].mxu1 %vm219_vm1, %v171_v56  ;;  %5104 = vmatmul.mubr.msk.f32.gmra.mrb[8].mxu0 %vm219_vm1, %v5788_v3  ;;  %v176_v3 = vld [vmem:[%s5616_s22 + $0x100] sm:$0xff] }
  0x90   : > { %4853 = vmatprep.mubr.msk.f32.mxu1 %vm219_vm1, %v172_v58  ;;  %5106 = vmatprep.mubr.msk.f32.mxu0 %vm219_vm1, %v5792_v5  ;;  %v177_v5 = vld [vmem:[%s5616_s22 + $0x108] sm:$0xff]  ;;  %v6297_v56 = vld [vmem:[%s5616_s22 + $0x11a] sm:$0xff] }
  0x91   : > { %v3100_v58 = vld [vmem:[%s5616_s22 + $0xad] sm:$0xff] }
  0x93   : > { %4854 = vmatmul.mubr.msk.f32.gmra.mrb[28].mxu1 %vm219_vm1, %v173_v60  ;;  %5107 = vmatmul.mubr.msk.f32.gmra.mrb[10].mxu0 %vm219_vm1, %v5802_v7  ;;  %v178_v7 = vld [vmem:[%s5616_s22 + $0x110] sm:$0xff] }
  0x94   : > { %4856 = vmatprep.mubr.msk.f32.mxu1 %vm219_vm1, %v174_v62  ;;  %5109 = vmatprep.mubr.msk.f32.mxu0 %vm219_vm1, %v5806_v9  ;;  %v933_v9 = vld [vmem:[%s5616_s22 + $0x2] sm:$0xff]  ;;  %v3101_v60 = vld [vmem:[%s5616_s22 + $0xb5] sm:$0xff] }
  0x95   : > { %v3102_v62 = vld [vmem:[%s5616_s22 + $0xbd] sm:$0xff] }
  0x97   : > { %4857 = vmatmul.mubr.msk.f32.gmra.mrb[30].mxu1 %vm219_vm1, %v175_v0  ;;  %5110 = vmatmul.mubr.msk.f32.gmra.mrb[12].mxu0 %vm219_vm1, %v5816_v12  ;;  %v6057_v12 = vld [vmem:[%s5616_s22 + $0x12] sm:$0xff]  ;;  %v3103_v0 = vld [vmem:[%s5616_s22 + $0xc5] sm:$0xff] }
  0x98   : > { %4859 = vmatprep.mubr.msk.f32.mxu1 %vm219_vm1, %v176_v3  ;;  %5112 = vmatprep.mubr.msk.f32.mxu0 %vm219_vm1, %v5820_v14  ;;  %v6072_v14 = vld [vmem:[%s5616_s22 + $0x22] sm:$0xff]  ;;  %v3104_v3 = vld [vmem:[%s5616_s22 + $0xcd] sm:$0xff] }
  0x9b   : > { %4860 = vmatmul.mubr.msk.f32.gmra.mrb[32].mxu1 %vm219_vm1, %v177_v5  ;;  %5113 = vmatmul.mubr.msk.f32.gmra.mrb[14].mxu0 %vm219_vm1, %v5830_v16  ;;  %v6088_v16 = vld [vmem:[%s5616_s22 + $0x32] sm:$0xff] }
  0x9c   : > { %4862 = vmatprep.mubr.msk.f32.mxu1 %vm219_vm1, %v178_v7  ;;  %5115 = vmatprep.mubr.msk.f32.mxu0 %vm219_vm1, %v5834_v18  ;;  %v6102_v18 = vld [vmem:[%s5616_s22 + $0x42] sm:$0xff]  ;;  %v3105_v5 = vld [vmem:[%s5616_s22 + $0xd5] sm:$0xff] }
  0x9d   : > { %v3107_v7 = vld [vmem:[%s5616_s22 + $0xe5] sm:$0xff] }
  0x9f   : > { %4863 = vmatmul.mubr.msk.f32.gmra.mrb[34].mxu1 %vm219_vm1, %v179_v8  ;;  %5116 = vmatmul.mubr.msk.f32.gmra.mrb[16].mxu0 %vm219_vm1, %v5844_v20  ;;  %v6116_v20 = vld [vmem:[%s5616_s22 + $0x52] sm:$0xff] }
  0xa0   : > { %4867 = vmatprep.mubr.msk.f32.mxu1 %vm219_vm1, %v933_v9  ;;  %5118 = vmatprep.mubr.msk.f32.mxu0 %vm219_vm1, %v5848_v22  ;;  %v6130_v22 = vld [vmem:[%s5616_s22 + $0x62] sm:$0xff]  ;;  %v3108_v8 = vld [vmem:[%s5616_s22 + $0xed] sm:$0xff]  ;;  %v3109_v9 = vld [vmem:[%s5616_s22 + $0xf5] sm:$0xff] }
  0xa3   : > { %4868 = vmatmul.mubr.msk.f32.vlgmr.msra.gmra.mrb[0].mxu1 %vm219_vm1, %v934_v10  ;;  %5119 = vmatmul.mubr.msk.f32.gmra.mrb[18].mxu0 %vm219_vm1, %v5863_v25  ;;  %v6155_v25 = vld [vmem:[%s5616_s22 + $0x7a] sm:$0xff] }
  0xa4   : > { %4922 = vmatpush3.msk.msra.mxu1 %vm328_vm0, %v5853_v23  ;;  %4870 = vmatprep.mubr.msk.f32.mxu1 %vm219_vm1, %v6057_v12  ;;  %v6141_v23 = vld [vmem:[%s5616_s22 + $0x6a] sm:$0xff]  ;;  %v3110_v10 = vld [vmem:[%s5616_s22 + $0xfd] sm:$0xff] }
  0xa5   : > { %5121 = vmatprep.mubr.msk.f32.mxu0 %vm219_vm1, %v5869_v27  ;;  %5257 = vmatprep.subr.msk.mxu1 %vm328_vm0, %v5594_v1  ;;  %v2687_v27 = vld [vmem:[%s5616_s22 + $0x134] sm:$0xff] }
  0xa7   : > { %4871 = vmatmul.mubr.msk.f32.gmra.mrb[2].mxu1 %vm219_vm1, %v6067_v13  ;;  %5122 = vmatmul.mubr.msk.f32.gmra.mrb[20].mxu0 %vm219_vm1, %v5881_v28  ;;  %v2688_v28 = vld [vmem:[%s5616_s22 + $0x13c] sm:$0xff] }
  0xa8   : > { %4873 = vmatprep.mubr.msk.f32.mxu1 %vm219_vm1, %v6072_v14  ;;  %5124 = vmatprep.mubr.msk.f32.mxu0 %vm219_vm1, %v5885_v30  ;;  %v3083_v30 = vld [vmem:[%s5616_s22 + $0x25] sm:$0xff] }
  0xab   : > { %4874 = vmatmul.mubr.msk.f32.gmra.mrb[4].mxu1 %vm219_vm1, %v6085_v15  ;;  %5125 = vmatmul.mubr.msk.f32.gmra.mrb[22].mxu0 %vm219_vm1, %v5895_v32  ;;  %v3084_v32 = vld [vmem:[%s5616_s22 + $0x2d] sm:$0xff] }
  0xac   : > { %4876 = vmatprep.mubr.msk.f32.mxu1 %vm219_vm1, %v6088_v16  ;;  %5127 = vmatprep.mubr.msk.f32.mxu0 %vm219_vm1, %v5899_v34  ;;  %v3085_v34 = vld [vmem:[%s5616_s22 + $0x35] sm:$0xff] }
  0xaf   : > { %4877 = vmatmul.mubr.msk.f32.gmra.mrb[6].mxu1 %vm219_vm1, %v6099_v17  ;;  %5128 = vmatmul.mubr.msk.f32.gmra.mrb[24].mxu0 %vm219_vm1, %v5909_v36  ;;  %v3086_v36 = vld [vmem:[%s5616_s22 + $0x3d] sm:$0xff] }
  0xb0   : > { %4879 = vmatprep.mubr.msk.f32.mxu1 %vm219_vm1, %v6102_v18  ;;  %5130 = vmatprep.mubr.msk.f32.mxu0 %vm219_vm1, %v5913_v38  ;;  %v3087_v38 = vld [vmem:[%s5616_s22 + $0x45] sm:$0xff] }
  0xb3   : > { %4880 = vmatmul.mubr.msk.f32.gmra.mrb[8].mxu1 %vm219_vm1, %v6113_v19  ;;  %5131 = vmatmul.mubr.msk.f32.gmra.mrb[26].mxu0 %vm219_vm1, %v5923_v40  ;;  %v3088_v40 = vld [vmem:[%s5616_s22 + $0x4d] sm:$0xff] }
  0xb4   : > { %4882 = vmatprep.mubr.msk.f32.mxu1 %vm219_vm1, %v6116_v20  ;;  %5133 = vmatprep.mubr.msk.f32.mxu0 %vm219_vm1, %v5927_v42  ;;  %v3089_v42 = vld [vmem:[%s5616_s22 + $0x55] sm:$0xff] }
  0xb7   : > { %4883 = vmatmul.mubr.msk.f32.gmra.mrb[10].mxu1 %vm219_vm1, %v6127_v21  ;;  %5134 = vmatmul.mubr.msk.f32.gmra.mrb[28].mxu0 %vm219_vm1, %v5937_v44  ;;  %v3090_v44 = vld [vmem:[%s5616_s22 + $0x5d] sm:$0xff] }
  0xb8   : > { %4885 = vmatprep.mubr.msk.f32.mxu1 %vm219_vm1, %v6130_v22  ;;  %5136 = vmatprep.mubr.msk.f32.mxu0 %vm219_vm1, %v5941_v46  ;;  %v3091_v46 = vld [vmem:[%s5616_s22 + $0x65] sm:$0xff] }
  0xbb   : > { %4886 = vmatmul.mubr.msk.f32.gmra.mrb[12].mxu1 %vm219_vm1, %v6141_v23  ;;  %5137 = vmatmul.mubr.msk.f32.gmra.mrb[30].mxu0 %vm219_vm1, %v5951_v51  ;;  %v3092_v51 = vld [vmem:[%s5616_s22 + $0x6d] sm:$0xff] }
  0xbc   : > { %4888 = vmatprep.mubr.msk.f32.mxu1 %vm219_vm1, %v6144_v24  ;;  %5139 = vmatprep.mubr.msk.f32.mxu0 %vm219_vm1, %v5955_v55  ;;  %v3093_v55 = vld [vmem:[%s5616_s22 + $0x75] sm:$0xff] }
  0xbf   : > { %4889 = vmatmul.mubr.msk.f32.gmra.mrb[14].mxu1 %vm219_vm1, %v6155_v25  ;;  %5140 = vmatmul.mubr.msk.f32.gmra.mrb[32].mxu0 %vm219_vm1, %v5965_v59  ;;  %v3094_v59 = vld [vmem:[%s5616_s22 + $0x7d] sm:$0xff] }
  0xc0   : > { %4891 = vmatprep.mubr.msk.f32.mxu1 %vm219_vm1, %v6158_v26  ;;  %5142 = vmatprep.mubr.msk.f32.mxu0 %vm219_vm1, %v2687_v27  ;;  %v3520_v27 = vld [vmem:[%s5616_s22 + $0x5e] sm:$0xff] }
  0xc3   : > { %4892 = vmatmul.mubr.msk.f32.gmra.mrb[16].mxu1 %vm219_vm1, %v6169_v11  ;;  %5143 = vmatmul.mubr.msk.f32.gmra.mrb[34].mxu0 %vm219_vm1, %v2688_v28  ;;  %v3522_v28 = vld [vmem:[%s5616_s22 + $0x6e] sm:$0xff] }
  0xc4   : > { %4894 = vmatprep.mubr.msk.f32.mxu1 %vm219_vm1, %v6173_v29  ;;  %5147 = vmatprep.mubr.msk.f32.mxu0 %vm219_vm1, %v3083_v30  ;;  %v3524_v30 = vld [vmem:[%s5616_s22 + $0x7e] sm:$0xff] }
  0xc7   : > { %4895 = vmatmul.mubr.msk.f32.gmra.mrb[18].mxu1 %vm219_vm1, %v6183_v31  ;;  %5148 = vmatmul.mubr.msk.f32.vlgmr.msra.gmra.mrb[0].mxu0 %vm219_vm1, %v3084_v32  ;;  %v3526_v32 = vld [vmem:[%s5616_s22 + $0x8e] sm:$0xff] }
  0xc8   : > { %5202 = vmatpush3.msk.msra.mxu0 %vm328_vm0, %v5979_v4  ;;  %4897 = vmatprep.mubr.msk.f32.mxu1 %vm219_vm1, %v6187_v33  ;;  %v3096_v4 = vld [vmem:[%s5616_s22 + $0x8d] sm:$0xff] }
  0xc9   : > { %5150 = vmatprep.mubr.msk.f32.mxu0 %vm219_vm1, %v3085_v34  ;;  %v3528_v34 = vld [vmem:[%s5616_s22 + $0x9e] sm:$0xff] }
  0xcb   : > { %4898 = vmatmul.mubr.msk.f32.gmra.mrb[20].mxu1 %vm219_vm1, %v6198_v35  ;;  %5151 = vmatmul.mubr.msk.f32.gmra.mrb[2].mxu0 %vm219_vm1, %v3086_v36  ;;  %v3529_v36 = vld [vmem:[%s5616_s22 + $0xa6] sm:$0xff] }
  0xcc   : > { %4900 = vmatprep.mubr.msk.f32.mxu1 %vm219_vm1, %v6203_v37  ;;  %5153 = vmatprep.mubr.msk.f32.mxu0 %vm219_vm1, %v3087_v38  ;;  %v3530_v38 = vld [vmem:[%s5616_s22 + $0xae] sm:$0xff] }
  0xcf   : > { %4901 = vmatmul.mubr.msk.f32.gmra.mrb[22].mxu1 %vm219_vm1, %v6213_v39  ;;  %5154 = vmatmul.mubr.msk.f32.gmra.mrb[4].mxu0 %vm219_vm1, %v3088_v40  ;;  %v3531_v40 = vld [vmem:[%s5616_s22 + $0xb6] sm:$0xff] }
  0xd0   : > { %4903 = vmatprep.mubr.msk.f32.mxu1 %vm219_vm1, %v6217_v41  ;;  %5156 = vmatprep.mubr.msk.f32.mxu0 %vm219_vm1, %v3089_v42  ;;  %v3532_v42 = vld [vmem:[%s5616_s22 + $0xbe] sm:$0xff] }
  0xd3   : > { %4904 = vmatmul.mubr.msk.f32.gmra.mrb[24].mxu1 %vm219_vm1, %v6227_v43  ;;  %5157 = vmatmul.mubr.msk.f32.gmra.mrb[6].mxu0 %vm219_vm1, %v3090_v44  ;;  %v3533_v44 = vld [vmem:[%s5616_s22 + $0xc6] sm:$0xff] }
  0xd4   : > { %4906 = vmatprep.mubr.msk.f32.mxu1 %vm219_vm1, %v6231_v45  ;;  %5159 = vmatprep.mubr.msk.f32.mxu0 %vm219_vm1, %v3091_v46  ;;  %v3534_v46 = vld [vmem:[%s5616_s22 + $0xce] sm:$0xff] }
  0xd7   : > { %4907 = vmatmul.mubr.msk.f32.gmra.mrb[26].mxu1 %vm219_vm1, %v6241_v49  ;;  %5160 = vmatmul.mubr.msk.f32.gmra.mrb[8].mxu0 %vm219_vm1, %v3092_v51  ;;  %v3535_v51 = vld [vmem:[%s5616_s22 + $0xd6] sm:$0xff] }
  0xd8   : > { %4909 = vmatprep.mubr.msk.f32.mxu1 %vm219_vm1, %v6245_v53  ;;  %5162 = vmatprep.mubr.msk.f32.mxu0 %vm219_vm1, %v3093_v55  ;;  %v3536_v55 = vld [vmem:[%s5616_s22 + $0xde] sm:$0xff] }
  0xdb   : > { %4910 = vmatmul.mubr.msk.f32.gmra.mrb[28].mxu1 %vm219_vm1, %v6255_v57  ;;  %5163 = vmatmul.mubr.msk.f32.gmra.mrb[10].mxu0 %vm219_vm1, %v3094_v59  ;;  %v3537_v59 = vld [vmem:[%s5616_s22 + $0xe6] sm:$0xff] }
  0xdc   : > { %4912 = vmatprep.mubr.msk.f32.mxu1 %vm219_vm1, %v6259_v61  ;;  %5165 = vmatprep.mubr.msk.f32.mxu0 %vm219_vm1, %v3095_v63  ;;  %v3538_v63 = vld [vmem:[%s5616_s22 + $0xee] sm:$0xff] }
  0xdf   : > { %4913 = vmatmul.mubr.msk.f32.gmra.mrb[30].mxu1 %vm219_vm1, %v6269_v2  ;;  %5166 = vmatmul.mubr.msk.f32.gmra.mrb[12].mxu0 %vm219_vm1, %v3096_v4  ;;  %v3539_v4 = vld [vmem:[%s5616_s22 + $0xf6] sm:$0xff] }
  0xe0   : > { %4915 = vmatprep.mubr.msk.f32.mxu1 %vm219_vm1, %v6273_v47  ;;  %5168 = vmatprep.mubr.msk.f32.mxu0 %vm219_vm1, %v3097_v6  ;;  %v3540_v6 = vld [vmem:[%s5616_s22 + $0xfe] sm:$0xff] }
  0xe3   : > { %4916 = vmatmul.mubr.msk.f32.gmra.mrb[32].mxu1 %vm219_vm1, %v6283_v48  ;;  %5169 = vmatmul.mubr.msk.f32.gmra.mrb[14].mxu0 %vm219_vm1, %v3098_v50  ;;  %v3541_v50 = vld [vmem:[%s5616_s22 + $0x106] sm:$0xff] }
  0xe4   : > { %4918 = vmatprep.mubr.msk.f32.mxu1 %vm219_vm1, %v6287_v52  ;;  %5171 = vmatprep.mubr.msk.f32.mxu0 %vm219_vm1, %v3099_v54  ;;  %v3542_v54 = vld [vmem:[%s5616_s22 + $0x10e] sm:$0xff] }
  0xe7   : > { %4919 = vmatmul.mubr.msk.f32.gmra.mrb[34].mxu1 %vm219_vm1, %v6297_v56  ;;  %5172 = vmatmul.mubr.msk.f32.gmra.mrb[16].mxu0 %vm219_vm1, %v3100_v58  ;;  %v3543_v58 = vld [vmem:[%s5616_s22 + $0x116] sm:$0xff] }
  0xe8   : > { %4923 = vmatprep.mubr.msk.f32.mxu1 %vm219_vm1, %v6057_v12  ;;  %5174 = vmatprep.mubr.msk.f32.mxu0 %vm219_vm1, %v3101_v60  ;;  %v3111_v12 = vld [vmem:[%s5616_s22 + $0x105] sm:$0xff] }
  0xe9   : > { %v1824_v60 = vld [vmem:[%s5616_s22 + $0x10b] sm:$0xff] }
  0xeb   : > { %4924 = vmatmul.mubr.msk.f32.vlgmr.msra.gmra.mrb[0].mxu1 %vm219_vm1, %v6067_v13  ;;  %5175 = vmatmul.mubr.msk.f32.gmra.mrb[18].mxu0 %vm219_vm1, %v3102_v62  ;;  %v3112_v13 = vld [vmem:[%s5616_s22 + $0x10d] sm:$0xff]  ;;  %v3544_v62 = vld [vmem:[%s5616_s22 + $0x11e] sm:$0xff] }
  0xec   : > { %5258 = vmatpush3.msk.msra.mxu1 %vm328_vm0, %v5594_v1  ;;  %4926 = vmatprep.mubr.msk.f32.mxu1 %vm219_vm1, %v6072_v14  ;;  %v3106_v1 = vld [vmem:[%s5616_s22 + $0xdd] sm:$0xff]  ;;  %v3113_v14 = vld [vmem:[%s5616_s22 + $0x115] sm:$0xff] }
  0xed   : > { %5177 = vmatprep.mubr.msk.f32.mxu0 %vm219_vm1, %v3103_v0  ;;  %v1825_v0 = vld [vmem:[%s5616_s22 + $0x113] sm:$0xff] }
  0xef   : > { %4927 = vmatmul.mubr.msk.f32.gmra.mrb[2].mxu1 %vm219_vm1, %v6085_v15  ;;  %5178 = vmatmul.mubr.msk.f32.gmra.mrb[20].mxu0 %vm219_vm1, %v3104_v3  ;;  %v3114_v15 = vld [vmem:[%s5616_s22 + $0x11d] sm:$0xff]  ;;  %v3545_v3 = vld [vmem:[%s5616_s22 + $0x126] sm:$0xff] }
  0xf0   : > { %4929 = vmatprep.mubr.msk.f32.mxu1 %vm219_vm1, %v6088_v16  ;;  %5180 = vmatprep.mubr.msk.f32.mxu0 %vm219_vm1, %v3105_v5  ;;  %v3115_v16 = vld [vmem:[%s5616_s22 + $0x125] sm:$0xff]  ;;  %v1826_v5 = vld [vmem:[%s5616_s22 + $0x11b] sm:$0xff] }
  0xf3   : > { %4930 = vmatmul.mubr.msk.f32.gmra.mrb[4].mxu1 %vm219_vm1, %v6099_v17  ;;  %5181 = vmatmul.mubr.msk.f32.gmra.mrb[22].mxu0 %vm219_vm1, %v3106_v1  ;;  %v3116_v17 = vld [vmem:[%s5616_s22 + $0x12d] sm:$0xff] }
  0xf4   : > { %4932 = vmatprep.mubr.msk.f32.mxu1 %vm219_vm1, %v6102_v18  ;;  %5183 = vmatprep.mubr.msk.f32.mxu0 %vm219_vm1, %v3107_v7  ;;  %v3117_v18 = vld [vmem:[%s5616_s22 + $0x135] sm:$0xff]  ;;  %v1827_v7 = vld [vmem:[%s5616_s22 + $0x123] sm:$0xff] }
  0xf5   : > { %v3546_v1 = vld [vmem:[%s5616_s22 + $0x12e] sm:$0xff] }
  0xf7   : > { %4933 = vmatmul.mubr.msk.f32.gmra.mrb[6].mxu1 %vm219_vm1, %v6113_v19  ;;  %5184 = vmatmul.mubr.msk.f32.gmra.mrb[24].mxu0 %vm219_vm1, %v3108_v8  ;;  %v3118_v19 = vld [vmem:[%s5616_s22 + $0x13d] sm:$0xff] }
  0xf8   : > { %4935 = vmatprep.mubr.msk.f32.mxu1 %vm219_vm1, %v6116_v20  ;;  %5186 = vmatprep.mubr.msk.f32.mxu0 %vm219_vm1, %v3109_v9  ;;  %v3513_v20 = vld [vmem:[%s5616_s22 + $0x26] sm:$0xff]  ;;  %v3547_v8 = vld [vmem:[%s5616_s22 + $0x136] sm:$0xff] }
  0xf9   : > { %v1828_v9 = vld [vmem:[%s5616_s22 + $0x12b] sm:$0xff] }
  0xfb   : > { %4936 = vmatmul.mubr.msk.f32.gmra.mrb[8].mxu1 %vm219_vm1, %v6127_v21  ;;  %5187 = vmatmul.mubr.msk.f32.gmra.mrb[26].mxu0 %vm219_vm1, %v3110_v10  ;;  %v3514_v21 = vld [vmem:[%s5616_s22 + $0x2e] sm:$0xff]  ;;  %v3548_v10 = vld [vmem:[%s5616_s22 + $0x13e] sm:$0xff] }
  0xfc   : > { %4938 = vmatprep.mubr.msk.f32.mxu1 %vm219_vm1, %v6130_v22  ;;  %5189 = vmatprep.mubr.msk.f32.mxu0 %vm219_vm1, %v3111_v12  ;;  %v3515_v22 = vld [vmem:[%s5616_s22 + $0x36] sm:$0xff] }
  0xff   : > { %4939 = vmatmul.mubr.msk.f32.gmra.mrb[10].mxu1 %vm219_vm1, %v6141_v23  ;;  %5190 = vmatmul.mubr.msk.f32.gmra.mrb[28].mxu0 %vm219_vm1, %v3112_v13  ;;  %v3516_v23 = vld [vmem:[%s5616_s22 + $0x3e] sm:$0xff] }
 0x100   : > { %4941 = vmatprep.mubr.msk.f32.mxu1 %vm219_vm1, %v6144_v24  ;;  %5192 = vmatprep.mubr.msk.f32.mxu0 %vm219_vm1, %v3113_v14  ;;  %v3517_v24 = vld [vmem:[%s5616_s22 + $0x46] sm:$0xff] }
 0x103   : > { %4942 = vmatmul.mubr.msk.f32.gmra.mrb[12].mxu1 %vm219_vm1, %v6155_v25  ;;  %5193 = vmatmul.mubr.msk.f32.gmra.mrb[30].mxu0 %vm219_vm1, %v3114_v15  ;;  %v3518_v25 = vld [vmem:[%s5616_s22 + $0x4e] sm:$0xff] }
 0x104   : > { %4944 = vmatprep.mubr.msk.f32.mxu1 %vm219_vm1, %v6158_v26  ;;  %5195 = vmatprep.mubr.msk.f32.mxu0 %vm219_vm1, %v3115_v16  ;;  %v3519_v26 = vld [vmem:[%s5616_s22 + $0x56] sm:$0xff] }
 0x107   : > { %4945 = vmatmul.mubr.msk.f32.gmra.mrb[14].mxu1 %vm219_vm1, %v6169_v11  ;;  %5196 = vmatmul.mubr.msk.f32.gmra.mrb[32].mxu0 %vm219_vm1, %v3116_v17  ;;  %v3521_v11 = vld [vmem:[%s5616_s22 + $0x66] sm:$0xff] }
 0x108   : > { %4947 = vmatprep.mubr.msk.f32.mxu1 %vm219_vm1, %v6173_v29  ;;  %5198 = vmatprep.mubr.msk.f32.mxu0 %vm219_vm1, %v3117_v18  ;;  %v3523_v29 = vld [vmem:[%s5616_s22 + $0x76] sm:$0xff] }
 0x10b   : > { %4948 = vmatmul.mubr.msk.f32.gmra.mrb[16].mxu1 %vm219_vm1, %v6183_v31  ;;  %5199 = vmatmul.mubr.msk.f32.gmra.mrb[34].mxu0 %vm219_vm1, %v3118_v19  ;;  %v3525_v31 = vld [vmem:[%s5616_s22 + $0x86] sm:$0xff] }
 0x10c   : > { %4950 = vmatprep.mubr.msk.f32.mxu1 %vm219_vm1, %v6187_v33  ;;  %5203 = vmatprep.mubr.msk.f32.mxu0 %vm219_vm1, %v3513_v20  ;;  %v3527_v33 = vld [vmem:[%s5616_s22 + $0x96] sm:$0xff] }
 0x10f   : > { %4951 = vmatmul.mubr.msk.f32.gmra.mrb[18].mxu1 %vm219_vm1, %v6198_v35  ;;  %5204 = vmatmul.mubr.msk.f32.vlgmr.msra.gmra.mrb[0].mxu0 %vm219_vm1, %v3514_v21  ;;  %v1397_v35 = vld [vmem:[%s5616_s22 + $0x122] sm:$0xff] }
 0x110   : > { %4953 = vmatprep.mubr.msk.f32.mxu1 %vm219_vm1, %v6203_v37  ;;  %5206 = vmatprep.mubr.msk.f32.mxu0 %vm219_vm1, %v3515_v22  ;;  %v1398_v37 = vld [vmem:[%s5616_s22 + $0x12a] sm:$0xff] }
 0x113   : > { %4954 = vmatmul.mubr.msk.f32.gmra.mrb[20].mxu1 %vm219_vm1, %v6213_v39  ;;  %5207 = vmatmul.mubr.msk.f32.gmra.mrb[2].mxu0 %vm219_vm1, %v3516_v23  ;;  %v1811_v39 = vld [vmem:[%s5616_s22 + $0xa3] sm:$0xff] }
 0x114   : > { %4956 = vmatprep.mubr.msk.f32.mxu1 %vm219_vm1, %v6217_v41  ;;  %5209 = vmatprep.mubr.msk.f32.mxu0 %vm219_vm1, %v3517_v24  ;;  %v1812_v41 = vld [vmem:[%s5616_s22 + $0xab] sm:$0xff] }
 0x117   : > { %4957 = vmatmul.mubr.msk.f32.gmra.mrb[22].mxu1 %vm219_vm1, %v6227_v43  ;;  %5210 = vmatmul.mubr.msk.f32.gmra.mrb[4].mxu0 %vm219_vm1, %v3518_v25  ;;  %v1813_v43 = vld [vmem:[%s5616_s22 + $0xb3] sm:$0xff] }
 0x118   : > { %4959 = vmatprep.mubr.msk.f32.mxu1 %vm219_vm1, %v6231_v45  ;;  %5212 = vmatprep.mubr.msk.f32.mxu0 %vm219_vm1, %v3519_v26  ;;  %v1814_v45 = vld [vmem:[%s5616_s22 + $0xbb] sm:$0xff] }
 0x11b   : > { %4960 = vmatmul.mubr.msk.f32.gmra.mrb[24].mxu1 %vm219_vm1, %v6241_v49  ;;  %5213 = vmatmul.mubr.msk.f32.gmra.mrb[6].mxu0 %vm219_vm1, %v3520_v27  ;;  %v1815_v49 = vld [vmem:[%s5616_s22 + $0xc3] sm:$0xff] }
 0x11c   : > { %4962 = vmatprep.mubr.msk.f32.mxu1 %vm219_vm1, %v6245_v53  ;;  %5215 = vmatprep.mubr.msk.f32.mxu0 %vm219_vm1, %v3521_v11  ;;  %v1816_v53 = vld [vmem:[%s5616_s22 + $0xcb] sm:$0xff] }
 0x11f   : > { %4963 = vmatmul.mubr.msk.f32.gmra.mrb[26].mxu1 %vm219_vm1, %v6255_v57  ;;  %5216 = vmatmul.mubr.msk.f32.gmra.mrb[8].mxu0 %vm219_vm1, %v3522_v28  ;;  %v1817_v57 = vld [vmem:[%s5616_s22 + $0xd3] sm:$0xff] }
 0x120   : > { %4965 = vmatprep.mubr.msk.f32.mxu1 %vm219_vm1, %v6259_v61  ;;  %5218 = vmatprep.mubr.msk.f32.mxu0 %vm219_vm1, %v3523_v29  ;;  %v1818_v61 = vld [vmem:[%s5616_s22 + $0xdb] sm:$0xff] }
 0x123   : > { %4966 = vmatmul.mubr.msk.f32.gmra.mrb[28].mxu1 %vm219_vm1, %v6269_v2  ;;  %5219 = vmatmul.mubr.msk.f32.gmra.mrb[10].mxu0 %vm219_vm1, %v3524_v30  ;;  %v1819_v2 = vld [vmem:[%s5616_s22 + $0xe3] sm:$0xff] }
 0x124   : > { %4968 = vmatprep.mubr.msk.f32.mxu1 %vm219_vm1, %v6273_v47  ;;  %5221 = vmatprep.mubr.msk.f32.mxu0 %vm219_vm1, %v3525_v31  ;;  %v1820_v47 = vld [vmem:[%s5616_s22 + $0xeb] sm:$0xff] }
 0x127   : > { %4969 = vmatmul.mubr.msk.f32.gmra.mrb[30].mxu1 %vm219_vm1, %v6283_v48  ;;  %5222 = vmatmul.mubr.msk.f32.gmra.mrb[12].mxu0 %vm219_vm1, %v3526_v32  ;;  %v1821_v48 = vld [vmem:[%s5616_s22 + $0xf3] sm:$0xff] }
 0x128   : > { %4971 = vmatprep.mubr.msk.f32.mxu1 %vm219_vm1, %v6287_v52  ;;  %5224 = vmatprep.mubr.msk.f32.mxu0 %vm219_vm1, %v3527_v33  ;;  %v1822_v52 = vld [vmem:[%s5616_s22 + $0xfb] sm:$0xff] }
 0x12b   : > { %4972 = vmatmul.mubr.msk.f32.gmra.mrb[32].mxu1 %vm219_vm1, %v6297_v56  ;;  %5225 = vmatmul.mubr.msk.f32.gmra.mrb[14].mxu0 %vm219_vm1, %v3528_v34  ;;  %v1823_v56 = vld [vmem:[%s5616_s22 + $0x103] sm:$0xff] }
 0x12c   : > { %4974 = vmatprep.mubr.msk.f32.mxu1 %vm219_vm1, %v1397_v35  ;;  %5227 = vmatprep.mubr.msk.f32.mxu0 %vm219_vm1, %v3529_v36 }
 0x12f   : > { %4975 = vmatmul.mubr.msk.f32.gmra.mrb[34].mxu1 %vm219_vm1, %v1398_v37  ;;  %5228 = vmatmul.mubr.msk.f32.gmra.mrb[16].mxu0 %vm219_vm1, %v3530_v38 }
 0x130   : > { %5006 = vmatprep.mubr.msk.f32.mxu1 %vm219_vm1, %v1811_v39  ;;  %5230 = vmatprep.mubr.msk.f32.mxu0 %vm219_vm1, %v3531_v40 }
 0x133   : > { %5007 = vmatmul.mubr.msk.f32.vlgmr.msra.gmra.mrb[18].mxu1 %vm219_vm1, %v1812_v41  ;;  %5231 = vmatmul.mubr.msk.f32.gmra.mrb[18].mxu0 %vm219_vm1, %v3532_v42 }
 0x134   : > { %5009 = vmatprep.mubr.msk.f32.mxu1 %vm219_vm1, %v1813_v43  ;;  %5233 = vmatprep.mubr.msk.f32.mxu0 %vm219_vm1, %v3533_v44 }
 0x137   : > { %5010 = vmatmul.mubr.msk.f32.gmra.mrb[20].mxu1 %vm219_vm1, %v1814_v45  ;;  %5234 = vmatmul.mubr.msk.f32.gmra.mrb[20].mxu0 %vm219_vm1, %v3534_v46 }
 0x138   : > { %5012 = vmatprep.mubr.msk.f32.mxu1 %vm219_vm1, %v1815_v49  ;;  %5236 = vmatprep.mubr.msk.f32.mxu0 %vm219_vm1, %v3535_v51 }
 0x13b   : > { %5013 = vmatmul.mubr.msk.f32.gmra.mrb[22].mxu1 %vm219_vm1, %v1816_v53  ;;  %5237 = vmatmul.mubr.msk.f32.gmra.mrb[22].mxu0 %vm219_vm1, %v3536_v55 }
 0x13c   : > { %5015 = vmatprep.mubr.msk.f32.mxu1 %vm219_vm1, %v1817_v57  ;;  %5239 = vmatprep.mubr.msk.f32.mxu0 %vm219_vm1, %v3537_v59 }
 0x13f   : > { %5016 = vmatmul.mubr.msk.f32.gmra.mrb[24].mxu1 %vm219_vm1, %v1818_v61  ;;  %5240 = vmatmul.mubr.msk.f32.gmra.mrb[24].mxu0 %vm219_vm1, %v3538_v63 }
 0x140   : > { %5018 = vmatprep.mubr.msk.f32.mxu1 %vm219_vm1, %v1819_v2  ;;  %5242 = vmatprep.mubr.msk.f32.mxu0 %vm219_vm1, %v3539_v4 }
 0x143   : > { %5019 = vmatmul.mubr.msk.f32.gmra.mrb[26].mxu1 %vm219_vm1, %v1820_v47  ;;  %5243 = vmatmul.mubr.msk.f32.gmra.mrb[26].mxu0 %vm219_vm1, %v3540_v6 }
 0x144   : > { %5021 = vmatprep.mubr.msk.f32.mxu1 %vm219_vm1, %v1821_v48  ;;  %5245 = vmatprep.mubr.msk.f32.mxu0 %vm219_vm1, %v3541_v50 }
 0x147   : > { %5022 = vmatmul.mubr.msk.f32.gmra.mrb[28].mxu1 %vm219_vm1, %v1822_v52  ;;  %5246 = vmatmul.mubr.msk.f32.gmra.mrb[28].mxu0 %vm219_vm1, %v3542_v54 }
 0x148   : > { %5024 = vmatprep.mubr.msk.f32.mxu1 %vm219_vm1, %v1823_v56  ;;  %5248 = vmatprep.mubr.msk.f32.mxu0 %vm219_vm1, %v3543_v58 }
 0x14b   : > { %5025 = vmatmul.mubr.msk.f32.gmra.mrb[30].mxu1 %vm219_vm1, %v1824_v60  ;;  %5249 = vmatmul.mubr.msk.f32.gmra.mrb[30].mxu0 %vm219_vm1, %v3544_v62 }
 0x14c   : > { %5027 = vmatprep.mubr.msk.f32.mxu1 %vm219_vm1, %v1825_v0  ;;  %5251 = vmatprep.mubr.msk.f32.mxu0 %vm219_vm1, %v3545_v3 }
 0x14f   : > { %5028 = vmatmul.mubr.msk.f32.gmra.mrb[32].mxu1 %vm219_vm1, %v1826_v5  ;;  %5252 = vmatmul.mubr.msk.f32.gmra.mrb[32].mxu0 %vm219_vm1, %v3546_v1 }
 0x150   : > { %5030 = vmatprep.mubr.msk.f32.mxu1 %vm219_vm1, %v1827_v7  ;;  %5254 = vmatprep.mubr.msk.f32.mxu0 %vm219_vm1, %v3547_v8 }
 0x153   : > { %5031 = vmatmul.mubr.msk.f32.gmra.mrb[34].mxu1 %vm219_vm1, %v1828_v9  ;;  %5255 = vmatmul.mubr.msk.f32.gmra.mrb[34].mxu0 %vm219_vm1, %v3548_v10 }
 0x1be   : > { %v4925_v12 = vpop.f32.mrb[0].mxu1 }
 0x1bf   : > { %v1578_v13 = vpop.f32.mrb[1].mxu1 }
 0x1c2   : > { %v4928_v14 = vpop.f32.mrb[2].mxu1 }
 0x1c3   : > { %v1588_v15 = vpop.f32.mrb[3].mxu1 }
 0x1c6   : > { %v4931_v16 = vpop.f32.mrb[4].mxu1 }
 0x1c7   : > { %v1598_v17 = vpop.f32.mrb[5].mxu1 }
 0x1ca   : > { %v4934_v18 = vpop.f32.mrb[6].mxu1 }
 0x1cb   : > { %v1608_v19 = vpop.f32.mrb[7].mxu1 }
 0x1ce   : > { %v4937_v20 = vpop.f32.mrb[8].mxu1 }
 0x1cf   : > { %v1618_v21 = vpop.f32.mrb[9].mxu1 }
 0x1d2   : > { %v4940_v22 = vpop.f32.mrb[10].mxu1 }
 0x1d3   : > { %v1628_v23 = vpop.f32.mrb[11].mxu1 }
 0x1d6   : > { %v4943_v24 = vpop.f32.mrb[12].mxu1 }
 0x1d7   : > { %v1638_v25 = vpop.f32.mrb[13].mxu1 }
 0x1da   : > { %v4946_v26 = vpop.f32.mrb[14].mxu1 }
 0x1db   : > { %v6521_v27 = vpop.f32.mrb[15].mxu1 }
 0x1de   : > { %v6523_v11 = vpop.f32.mrb[16].mxu1 }
 0x1df   : > { %v6525_v28 = vpop.f32.mrb[17].mxu1 }
 0x1e2   : > { %v5205_v29 = vpop.f32.mrb[0].mxu0 }
 0x1e3   : > { %v5259_v30 = vadd.f32 %v5205_v29, %v4925_v12  ;;  %v3728_v31 = vpop.f32.mrb[1].mxu0 }
 0x1e4   : > { %v5260_v32 = vadd.f32 %v3728_v31, %v1578_v13 }
 0x1e5   : > { %v3944_v33 = vmax.f32 %v5259_v30, 0.0 }
 0x1e6   : > { %v3943_v34 = vmax.f32 %v5260_v32, 0.0  ;;  %v5208_v35 = vpop.f32.mrb[2].mxu0 }
 0x1e7   : > { %3980 = vst.msk [vmem:[%s6531_s8 + $0x8] sm:$0xff] %vm219_vm1, %v3944_v33  ;;  %v5261_v36 = vadd.f32 %v5208_v35, %v4928_v14  ;;  %v3738_v37 = vpop.f32.mrb[3].mxu0 }
 0x1e8   : > { %3979 = vst.msk [vmem:[%s6531_s8] sm:$0xff] %vm219_vm1, %v3943_v34  ;;  %v5262_v38 = vadd.f32 %v3738_v37, %v1588_v15 }
 0x1e9   : > { %v3946_v39 = vmax.f32 %v5261_v36, 0.0 }
 0x1ea   : > { %v3945_v40 = vmax.f32 %v5262_v38, 0.0  ;;  %v5211_v41 = vpop.f32.mrb[4].mxu0 }
 0x1eb   : > { %3982 = vst.msk [vmem:[%s6531_s8 + $0x18] sm:$0xff] %vm219_vm1, %v3946_v39  ;;  %v5263_v42 = vadd.f32 %v5211_v41, %v4931_v16  ;;  %v3748_v43 = vpop.f32.mrb[5].mxu0 }
 0x1ec   : > { %3981 = vst.msk [vmem:[%s6531_s8 + $0x10] sm:$0xff] %vm219_vm1, %v3945_v40  ;;  %v5264_v44 = vadd.f32 %v3748_v43, %v1598_v17 }
 0x1ed   : > { %v3948_v45 = vmax.f32 %v5263_v42, 0.0 }
 0x1ee   : > { %v3947_v46 = vmax.f32 %v5264_v44, 0.0  ;;  %v5214_v49 = vpop.f32.mrb[6].mxu0 }
 0x1ef   : > { %3984 = vst.msk [vmem:[%s6531_s8 + $0x28] sm:$0xff] %vm219_vm1, %v3948_v45  ;;  %v5265_v51 = vadd.f32 %v5214_v49, %v4934_v18  ;;  %v3758_v53 = vpop.f32.mrb[7].mxu0 }
 0x1f0   : > { %3983 = vst.msk [vmem:[%s6531_s8 + $0x20] sm:$0xff] %vm219_vm1, %v3947_v46  ;;  %v5266_v55 = vadd.f32 %v3758_v53, %v1608_v19 }
 0x1f1   : > { %v3950_v57 = vmax.f32 %v5265_v51, 0.0 }
 0x1f2   : > { %v3949_v59 = vmax.f32 %v5266_v55, 0.0  ;;  %v5217_v61 = vpop.f32.mrb[8].mxu0 }
 0x1f3   : > { %3986 = vst.msk [vmem:[%s6531_s8 + $0x38] sm:$0xff] %vm219_vm1, %v3950_v57  ;;  %v5267_v63 = vadd.f32 %v5217_v61, %v4937_v20  ;;  %v3768_v2 = vpop.f32.mrb[9].mxu0 }
 0x1f4   : > { %3985 = vst.msk [vmem:[%s6531_s8 + $0x30] sm:$0xff] %vm219_vm1, %v3949_v59  ;;  %v5268_v4 = vadd.f32 %v3768_v2, %v1618_v21 }
 0x1f5   : > { %v3952_v47 = vmax.f32 %v5267_v63, 0.0 }
 0x1f6   : > { %v3951_v6 = vmax.f32 %v5268_v4, 0.0  ;;  %v5220_v48 = vpop.f32.mrb[10].mxu0 }
 0x1f7   : > { %3988 = vst.msk [vmem:[%s6531_s8 + $0x48] sm:$0xff] %vm219_vm1, %v3952_v47  ;;  %v5269_v50 = vadd.f32 %v5220_v48, %v4940_v22  ;;  %v3778_v52 = vpop.f32.mrb[11].mxu0 }
 0x1f8   : > { %3987 = vst.msk [vmem:[%s6531_s8 + $0x40] sm:$0xff] %vm219_vm1, %v3951_v6  ;;  %v5270_v54 = vadd.f32 %v3778_v52, %v1628_v23 }
 0x1f9   : > { %v3954_v56 = vmax.f32 %v5269_v50, 0.0 }
 0x1fa   : > { %v3953_v58 = vmax.f32 %v5270_v54, 0.0  ;;  %v5223_v60 = vpop.f32.mrb[12].mxu0 }
 0x1fb   : > { %3990 = vst.msk [vmem:[%s6531_s8 + $0x58] sm:$0xff] %vm219_vm1, %v3954_v56  ;;  %v5271_v62 = vadd.f32 %v5223_v60, %v4943_v24  ;;  %v3788_v0 = vpop.f32.mrb[13].mxu0 }
 0x1fc   : > { %3989 = vst.msk [vmem:[%s6531_s8 + $0x50] sm:$0xff] %vm219_vm1, %v3953_v58  ;;  %v5272_v3 = vadd.f32 %v3788_v0, %v1638_v25 }
 0x1fd   : > { %v3956_v5 = vmax.f32 %v5271_v62, 0.0 }
 0x1fe   : > { %v3955_v1 = vmax.f32 %v5272_v3, 0.0  ;;  %v5226_v7 = vpop.f32.mrb[14].mxu0 }
 0x1ff   : > { %3992 = vst.msk [vmem:[%s6531_s8 + $0x68] sm:$0xff] %vm219_vm1, %v3956_v5  ;;  %v5273_v8 = vadd.f32 %v5226_v7, %v4946_v26  ;;  %v3798_v9 = vpop.f32.mrb[15].mxu0 }
 0x200   : > { %3991 = vst.msk [vmem:[%s6531_s8 + $0x60] sm:$0xff] %vm219_vm1, %v3955_v1  ;;  %v5274_v10 = vadd.f32 %v3798_v9, %v6521_v27 }
 0x201   : > { %v3958_v12 = vmax.f32 %v5273_v8, 0.0 }
 0x202   : > { %v3957_v13 = vmax.f32 %v5274_v10, 0.0  ;;  %v5229_v14 = vpop.f32.mrb[16].mxu0 }
 0x203   : > { %3994 = vst.msk [vmem:[%s6531_s8 + $0x78] sm:$0xff] %vm219_vm1, %v3958_v12  ;;  %v5275_v15 = vadd.f32 %v5229_v14, %v6523_v11  ;;  %v3808_v16 = vpop.f32.mrb[17].mxu0 }
 0x204   : > { %3993 = vst.msk [vmem:[%s6531_s8 + $0x70] sm:$0xff] %vm219_vm1, %v3957_v13  ;;  %v5276_v17 = vadd.f32 %v3808_v16, %v6525_v28 }
 0x205   : > { %v3960_v18 = vmax.f32 %v5275_v15, 0.0 }
 0x206   : > { %v3959_v19 = vmax.f32 %v5276_v17, 0.0  ;;  %v5008_v20 = vpop.f32.mrb[18].mxu1  ;;  %v5232_v21 = vpop.f32.mrb[18].mxu0 }
 0x207   : > { %3996 = vst.msk [vmem:[%s6531_s8 + $0x88] sm:$0xff] %vm219_vm1, %v3960_v18  ;;  %v5277_v22 = vadd.f32 %v5232_v21, %v5008_v20  ;;  %v2098_v23 = vpop.f32.mrb[19].mxu1  ;;  %v3818_v24 = vpop.f32.mrb[19].mxu0 }
 0x208   : > { %3995 = vst.msk [vmem:[%s6531_s8 + $0x80] sm:$0xff] %vm219_vm1, %v3959_v19  ;;  %v5278_v25 = vadd.f32 %v3818_v24, %v2098_v23 }
 0x209   : > { %v3962_v26 = vmax.f32 %v5277_v22, 0.0 }
 0x20a   : > { %v3961_v27 = vmax.f32 %v5278_v25, 0.0  ;;  %v5011_v11 = vpop.f32.mrb[20].mxu1  ;;  %v5235_v29 = vpop.f32.mrb[20].mxu0 }
 0x20b   : > { %3998 = vst.msk [vmem:[%s6531_s8 + $0x98] sm:$0xff] %vm219_vm1, %v3962_v26  ;;  %v5279_v28 = vadd.f32 %v5235_v29, %v5011_v11  ;;  %v2108_v30 = vpop.f32.mrb[21].mxu1  ;;  %v3828_v31 = vpop.f32.mrb[21].mxu0 }
 0x20c   : > { %3997 = vst.msk [vmem:[%s6531_s8 + $0x90] sm:$0xff] %vm219_vm1, %v3961_v27  ;;  %v5280_v32 = vadd.f32 %v3828_v31, %v2108_v30 }
 0x20d   : > { %v3964_v33 = vmax.f32 %v5279_v28, 0.0 }
 0x20e   : > { %v3963_v34 = vmax.f32 %v5280_v32, 0.0  ;;  %v5014_v35 = vpop.f32.mrb[22].mxu1  ;;  %v5238_v36 = vpop.f32.mrb[22].mxu0 }
 0x20f   : > { %4000 = vst.msk [vmem:[%s6531_s8 + $0xa8] sm:$0xff] %vm219_vm1, %v3964_v33  ;;  %v5281_v37 = vadd.f32 %v5238_v36, %v5014_v35  ;;  %v2118_v38 = vpop.f32.mrb[23].mxu1  ;;  %v3838_v39 = vpop.f32.mrb[23].mxu0 }
 0x210   : > { %3999 = vst.msk [vmem:[%s6531_s8 + $0xa0] sm:$0xff] %vm219_vm1, %v3963_v34  ;;  %v5282_v40 = vadd.f32 %v3838_v39, %v2118_v38 }
 0x211   : > { %v3966_v41 = vmax.f32 %v5281_v37, 0.0 }
 0x212   : > { %v3965_v42 = vmax.f32 %v5282_v40, 0.0  ;;  %v5017_v43 = vpop.f32.mrb[24].mxu1  ;;  %v5241_v44 = vpop.f32.mrb[24].mxu0 }
 0x213   : > { %4002 = vst.msk [vmem:[%s6531_s8 + $0xb8] sm:$0xff] %vm219_vm1, %v3966_v41  ;;  %v5283_v45 = vadd.f32 %v5241_v44, %v5017_v43  ;;  %v2128_v46 = vpop.f32.mrb[25].mxu1  ;;  %v3848_v49 = vpop.f32.mrb[25].mxu0 }
 0x214   : > { %4001 = vst.msk [vmem:[%s6531_s8 + $0xb0] sm:$0xff] %vm219_vm1, %v3965_v42  ;;  %v5284_v51 = vadd.f32 %v3848_v49, %v2128_v46 }
 0x215   : > { %v3968_v53 = vmax.f32 %v5283_v45, 0.0 }
 0x216   : > { %v3967_v55 = vmax.f32 %v5284_v51, 0.0  ;;  %v5020_v57 = vpop.f32.mrb[26].mxu1  ;;  %v5244_v59 = vpop.f32.mrb[26].mxu0 }
 0x217   : > { %4004 = vst.msk [vmem:[%s6531_s8 + $0xc8] sm:$0xff] %vm219_vm1, %v3968_v53  ;;  %v5285_v61 = vadd.f32 %v5244_v59, %v5020_v57  ;;  %v2138_v63 = vpop.f32.mrb[27].mxu1  ;;  %v3858_v2 = vpop.f32.mrb[27].mxu0 }
 0x218   : > { %4003 = vst.msk [vmem:[%s6531_s8 + $0xc0] sm:$0xff] %vm219_vm1, %v3967_v55  ;;  %v5286_v4 = vadd.f32 %v3858_v2, %v2138_v63 }
 0x219   : > { %v3970_v47 = vmax.f32 %v5285_v61, 0.0 }
 0x21a   : > { %v3969_v6 = vmax.f32 %v5286_v4, 0.0  ;;  %v5023_v48 = vpop.f32.mrb[28].mxu1  ;;  %v5247_v50 = vpop.f32.mrb[28].mxu0 }
 0x21b   : > { %4006 = vst.msk [vmem:[%s6531_s8 + $0xd8] sm:$0xff] %vm219_vm1, %v3970_v47  ;;  %v5287_v52 = vadd.f32 %v5247_v50, %v5023_v48  ;;  %v2148_v54 = vpop.f32.mrb[29].mxu1  ;;  %v3868_v56 = vpop.f32.mrb[29].mxu0 }
 0x21c   : > { %4005 = vst.msk [vmem:[%s6531_s8 + $0xd0] sm:$0xff] %vm219_vm1, %v3969_v6  ;;  %v5288_v58 = vadd.f32 %v3868_v56, %v2148_v54 }
 0x21d   : > { %v3972_v60 = vmax.f32 %v5287_v52, 0.0 }
 0x21e   : > { %v3971_v62 = vmax.f32 %v5288_v58, 0.0  ;;  %v5026_v0 = vpop.f32.mrb[30].mxu1  ;;  %v5250_v3 = vpop.f32.mrb[30].mxu0 }
 0x21f   : > { %4008 = vst.msk [vmem:[%s6531_s8 + $0xe8] sm:$0xff] %vm219_vm1, %v3972_v60  ;;  %v5289_v5 = vadd.f32 %v5250_v3, %v5026_v0  ;;  %v2158_v1 = vpop.f32.mrb[31].mxu1  ;;  %v3878_v7 = vpop.f32.mrb[31].mxu0 }
 0x220   : > { %4007 = vst.msk [vmem:[%s6531_s8 + $0xe0] sm:$0xff] %vm219_vm1, %v3971_v62  ;;  %v5290_v8 = vadd.f32 %v3878_v7, %v2158_v1 }
 0x221   : > { %v3974_v9 = vmax.f32 %v5289_v5, 0.0 }
 0x222   : > { %v3973_v10 = vmax.f32 %v5290_v8, 0.0  ;;  %v5029_v12 = vpop.f32.mrb[32].mxu1  ;;  %v5253_v13 = vpop.f32.mrb[32].mxu0 }
 0x223   : > { %4010 = vst.msk [vmem:[%s6531_s8 + $0xf8] sm:$0xff] %vm219_vm1, %v3974_v9  ;;  %v5291_v14 = vadd.f32 %v5253_v13, %v5029_v12  ;;  %v2168_v15 = vpop.f32.mrb[33].mxu1  ;;  %v3888_v16 = vpop.f32.mrb[33].mxu0 }
 0x224   : > { %4009 = vst.msk [vmem:[%s6531_s8 + $0xf0] sm:$0xff] %vm219_vm1, %v3973_v10  ;;  %v5292_v17 = vadd.f32 %v3888_v16, %v2168_v15 }
 0x225   : > { %v3976_v18 = vmax.f32 %v5291_v14, 0.0 }
 0x226   : > { %v3975_v19 = vmax.f32 %v5292_v17, 0.0  ;;  %v5032_v20 = vpop.f32.mrb[34].mxu1  ;;  %v5256_v21 = vpop.f32.mrb[34].mxu0 }
 0x227   : > { %4012 = vst.msk [vmem:[%s6531_s8 + $0x108] sm:$0xff] %vm219_vm1, %v3976_v18  ;;  %v5293_v22 = vadd.f32 %v5256_v21, %v5032_v20  ;;  %v2178_v23 = vpop.f32.mrb[35].mxu1  ;;  %v3898_v24 = vpop.f32.mrb[35].mxu0 }
 0x228   : > { %4011 = vst.msk [vmem:[%s6531_s8 + $0x100] sm:$0xff] %vm219_vm1, %v3975_v19  ;;  %v5294_v25 = vadd.f32 %v3898_v24, %v2178_v23 }
 0x229   : > { %v3978_v26 = vmax.f32 %v5293_v22, 0.0 }
 0x22a   : > { %v3977_v27 = vmax.f32 %v5294_v25, 0.0 }
 0x22b   : > { %4014 = vst.msk [vmem:[%s6531_s8 + $0x118] sm:$0xff] %vm219_vm1, %v3978_v26 }
 0x22c   : > { %4013 = vst.msk [vmem:[%s6531_s8 + $0x110] sm:$0xff] %vm219_vm1, %v3977_v27 }
 0x22d PF: > { %s12_s9 = sadd.s32 1, %s5563_s9  }
 0x22e   : > { %p9_p4 = scmp.ge.s32.totalorder %s12_s9, 4  }
 0x230   :  { %11 = sbr.rel (!%p9_p4) target bundleno = 1 (0x1), region = 66 }

// kernel: hourglass_1_forward.10
= control target key start
LH: loop header
LB: loop body
LE: loop exit
PB: predicated region body
PF: predicated region fallthrough
CT: control target
= control target key end

     0   :  { %vm45_vm0 = vcmask 130048   ;;  %vm3048_vm1 = vcmask 64512   ;;  %s5335_s1 = inlined_call_operand.vmem [shape: f32[9,16,8], index: 1, kind: input, shape index: {}]   ;;  %s5336_s0 = inlined_call_operand.vmem [shape: f32[2,110,16], index: 0, kind: input, shape index: {}]   ;;  %s5337_s4 = inlined_call_operand.vmem [shape: f32[80,1], index: 4, kind: input, shape index: {}]   ;;  %s5338_s2 = inlined_call_operand.vmem [shape: f32[1,8], index: 2, kind: input, shape index: {}]   ;;  %s5339_s3 = inlined_call_operand.vmem [shape: f32[1,8], index: 3, kind: input, shape index: {}]   ;;  %s5340_s5 = inlined_call_operand.vmem [shape: f32[2,80,8], index: 5, kind: output, shape index: {}]  }
   0x1   :  { %v3291_v0 = vld [vmem:[%s5335_s1 + $0x10] sm:$0xff]  ;;  %v3292_v1 = vld [vmem:[%s5335_s1 + $0x18] sm:$0xff]  ;;  %v32_v2 = vld [vmem:[%s5336_s0 + $0x1] sm:$0xff] }
   0x2   :  { %v4145_v3 = vpack.c.bf16 %v3292_v1, %v3291_v0  ;;  %3807 = vmatprep.mubr.msk.f32.mxu0 %vm45_vm0, %v32_v2  ;;  %v3407_v4 = vld [vmem:[%s5336_s0 + $0x71] sm:$0xff]  ;;  %v30_v5 = vld [vmem:[%s5335_s1] sm:$0xff]  ;;  %v31_v6 = vld [vmem:[%s5335_s1 + $0x8] sm:$0xff] }
   0x3   :  { %3978 = vmatprep.mubr.msk.f32.mxu1 %vm45_vm0, %v3407_v4  ;;  %v4149_v7 = vpack.c.bf16 %v31_v6, %v30_v5  ;;  %v33_v8 = vld [vmem:[%s5336_s0 + $0x9] sm:$0xff]  ;;  %v3408_v9 = vld [vmem:[%s5336_s0 + $0x79] sm:$0xff]  ;;  %v34_v10 = vld [vmem:[%s5336_s0 + $0x11] sm:$0xff] }
   0x4   :  { %4146 = vmatprep.subr.bf16.mxu0 %v4145_v3  ;;  %4182 = vmatprep.subr.bf16.mxu1 %v4145_v3  ;;  %v3409_v11 = vld [vmem:[%s5336_s0 + $0x81] sm:$0xff]  ;;  %v35_v12 = vld [vmem:[%s5336_s0 + $0x19] sm:$0xff]  ;;  %v3410_v13 = vld [vmem:[%s5336_s0 + $0x89] sm:$0xff] }
   0x5   :  { %4148 = vmatpush3.bf16.msra.mxu0 %v4145_v3  ;;  %4184 = vmatpush3.bf16.msra.mxu1 %v4145_v3  ;;  %v36_v14 = vld [vmem:[%s5336_s0 + $0x21] sm:$0xff]  ;;  %v3411_v15 = vld [vmem:[%s5336_s0 + $0x91] sm:$0xff]  ;;  %v37_v19 = vld [vmem:[%s5336_s0 + $0x29] sm:$0xff] }
   0x6   :  { %4150 = vmatprep.subr.bf16.mxu0 %v4149_v7  ;;  %4186 = vmatprep.subr.bf16.mxu1 %v4149_v7  ;;  %v3313_v16 = vld [vmem:[%s5335_s1 + $0x20] sm:$0xff]  ;;  %v3314_v17 = vld [vmem:[%s5335_s1 + $0x28] sm:$0xff]  ;;  %v38_v21 = vld [vmem:[%s5336_s0 + $0x31] sm:$0xff] }
   0x7   :  { %v4153_v18 = vpack.c.bf16 %v3314_v17, %v3313_v16  ;;  %v3412_v20 = vld [vmem:[%s5336_s0 + $0x99] sm:$0xff]  ;;  %v3413_v22 = vld [vmem:[%s5336_s0 + $0xa1] sm:$0xff]  ;;  %v3414_v24 = vld [vmem:[%s5336_s0 + $0xa9] sm:$0xff] }
   0x8   :  { %3808 = vmatmul.mubr.msk.f32.vlgmr.msra.gmra.mrb[0].mxu0 %vm45_vm0, %v33_v8  ;;  %3979 = vmatmul.mubr.msk.f32.vlgmr.msra.gmra.mrb[0].mxu1 %vm45_vm0, %v3408_v9  ;;  %v39_v23 = vld [vmem:[%s5336_s0 + $0x39] sm:$0xff]  ;;  %v40_v25 = vld [vmem:[%s5336_s0 + $0x41] sm:$0xff]  ;;  %v3415_v26 = vld [vmem:[%s5336_s0 + $0xb1] sm:$0xff] }
   0x9   :  { %4152 = vmatpush3.bf16.msra.mxu0 %v4149_v7  ;;  %4188 = vmatpush3.bf16.msra.mxu1 %v4149_v7  ;;  %v41_v27 = vld [vmem:[%s5336_s0 + $0x49] sm:$0xff]  ;;  %v3416_v28 = vld [vmem:[%s5336_s0 + $0xb9] sm:$0xff] }
   0xa   :  { %3810 = vmatprep.mubr.msk.f32.mxu0 %vm45_vm0, %v34_v10  ;;  %3981 = vmatprep.mubr.msk.f32.mxu1 %vm45_vm0, %v3409_v11  ;;  %v20_v29 = vld [vmem:[%s5336_s0] sm:$0xff]  ;;  %v3397_v30 = vld [vmem:[%s5336_s0 + $0x70] sm:$0xff]  ;;  %v3326_v32 = vld [vmem:[%s5335_s1 + $0x38] sm:$0xff]  ;;  %v4382_v11 = vmov 0  }
   0xb   :  { %4154 = vmatprep.subr.bf16.mxu0 %v4153_v18  ;;  %4190 = vmatprep.subr.bf16.mxu1 %v4153_v18  ;;  %v3325_v31 = vld [vmem:[%s5335_s1 + $0x30] sm:$0xff]  ;;  %v21_v33 = vld [vmem:[%s5336_s0 + $0x8] sm:$0xff]  ;;  %v3398_v34 = vld [vmem:[%s5336_s0 + $0x78] sm:$0xff] }
   0xc   :  { %3811 = vmatmul.mubr.msk.f32.gmra.mrb[2].mxu0 %vm45_vm0, %v35_v12  ;;  %3982 = vmatmul.mubr.msk.f32.gmra.mrb[2].mxu1 %vm45_vm0, %v3410_v13  ;;  %v22_v35 = vld [vmem:[%s5336_s0 + $0x10] sm:$0xff]  ;;  %v3399_v36 = vld [vmem:[%s5336_s0 + $0x80] sm:$0xff]  ;;  %v4157_v37 = vpack.c.bf16 %v3326_v32, %v3325_v31  ;;  %v23_v38 = vld [vmem:[%s5336_s0 + $0x18] sm:$0xff] }
   0xd   :  { %3813 = vmatprep.mubr.msk.f32.mxu0 %vm45_vm0, %v36_v14  ;;  %3984 = vmatprep.mubr.msk.f32.mxu1 %vm45_vm0, %v3411_v15  ;;  %v3400_v39 = vld [vmem:[%s5336_s0 + $0x88] sm:$0xff]  ;;  %v24_v40 = vld [vmem:[%s5336_s0 + $0x20] sm:$0xff]  ;;  %v3401_v41 = vld [vmem:[%s5336_s0 + $0x90] sm:$0xff] }
   0xe   :  { %v25_v42 = vld [vmem:[%s5336_s0 + $0x28] sm:$0xff]  ;;  %v3402_v43 = vld [vmem:[%s5336_s0 + $0x98] sm:$0xff]  ;;  %v26_v44 = vld [vmem:[%s5336_s0 + $0x30] sm:$0xff]  ;;  %4378 = vset.pattern.permute.xlu0 %v4382_v11  ;;  %4379 = vset.pattern.permute.xlu1 %v4382_v11 }
   0xf   :  { %v3403_v45 = vld [vmem:[%s5336_s0 + $0xa0] sm:$0xff]  ;;  %v27_v46 = vld [vmem:[%s5336_s0 + $0x38] sm:$0xff]  ;;  %v3404_v47 = vld [vmem:[%s5336_s0 + $0xa8] sm:$0xff] }
  0x10   :  { %3814 = vmatmul.mubr.msk.f32.gmra.mrb[4].mxu0 %vm45_vm0, %v37_v19  ;;  %3985 = vmatmul.mubr.msk.f32.gmra.mrb[4].mxu1 %vm45_vm0, %v3412_v20  ;;  %v28_v48 = vld [vmem:[%s5336_s0 + $0x40] sm:$0xff]  ;;  %v3405_v49 = vld [vmem:[%s5336_s0 + $0xb0] sm:$0xff]  ;;  %v29_v50 = vld [vmem:[%s5336_s0 + $0x48] sm:$0xff] }
  0x11   :  { %3816 = vmatprep.mubr.msk.f32.mxu0 %vm45_vm0, %v38_v21  ;;  %3987 = vmatprep.mubr.msk.f32.mxu1 %vm45_vm0, %v3413_v22  ;;  %v3406_v51 = vld [vmem:[%s5336_s0 + $0xb8] sm:$0xff]  ;;  %v336_v52 = vld [vmem:[%s5336_s0 + $0x2] sm:$0xff]  ;;  %v337_v56 = vld [vmem:[%s5336_s0 + $0xa] sm:$0xff] }
  0x12   :  { %v3437_v53 = vld [vmem:[%s5336_s0 + $0x72] sm:$0xff]  ;;  %v3337_v54 = vld [vmem:[%s5335_s1 + $0x40] sm:$0xff]  ;;  %v3338_v55 = vld [vmem:[%s5335_s1 + $0x48] sm:$0xff] }
  0x13   :  { %v3438_v57 = vld [vmem:[%s5336_s0 + $0x7a] sm:$0xff]  ;;  %v338_v58 = vld [vmem:[%s5336_s0 + $0x12] sm:$0xff]  ;;  %v3439_v59 = vld [vmem:[%s5336_s0 + $0x82] sm:$0xff]  ;;  %v4161_v60 = vpack.c.bf16 %v3338_v55, %v3337_v54 }
  0x14   :  { %3817 = vmatmul.mubr.msk.f32.gmra.mrb[6].mxu0 %vm45_vm0, %v39_v23  ;;  %3988 = vmatmul.mubr.msk.f32.gmra.mrb[6].mxu1 %vm45_vm0, %v3414_v24  ;;  %v339_v61 = vld [vmem:[%s5336_s0 + $0x1a] sm:$0xff]  ;;  %v3440_v62 = vld [vmem:[%s5336_s0 + $0x8a] sm:$0xff]  ;;  %v340_v63 = vld [vmem:[%s5336_s0 + $0x22] sm:$0xff] }
  0x15   :  { %3819 = vmatprep.mubr.msk.f32.mxu0 %vm45_vm0, %v40_v25  ;;  %3990 = vmatprep.mubr.msk.f32.mxu1 %vm45_vm0, %v3415_v26  ;;  %v3441_v0 = vld [vmem:[%s5336_s0 + $0x92] sm:$0xff]  ;;  %v341_v1 = vld [vmem:[%s5336_s0 + $0x2a] sm:$0xff]  ;;  %v3442_v2 = vld [vmem:[%s5336_s0 + $0x9a] sm:$0xff] }
  0x16   :  { %v342_v3 = vld [vmem:[%s5336_s0 + $0x32] sm:$0xff]  ;;  %v3443_v4 = vld [vmem:[%s5336_s0 + $0xa2] sm:$0xff]  ;;  %v343_v5 = vld [vmem:[%s5336_s0 + $0x3a] sm:$0xff] }
  0x17   :  { %v3444_v6 = vld [vmem:[%s5336_s0 + $0xaa] sm:$0xff]  ;;  %v2978_v7 = vld [vmem:[%s5337_s4] sm:$0xff]  ;;  %v3445_v10 = vld [vmem:[%s5336_s0 + $0xb2] sm:$0xff] }
  0x18   :  { %3820 = vmatmul.mubr.msk.f32.gmra.mrb[8].mxu0 %vm45_vm0, %v41_v27  ;;  %3991 = vmatmul.mubr.msk.f32.gmra.mrb[8].mxu1 %vm45_vm0, %v3416_v28  ;;  %v2980_v8 = vld [vmem:[%s5337_s4 + $0x10] sm:$0xff]  ;;  %v344_v9 = vld [vmem:[%s5336_s0 + $0x42] sm:$0xff]  ;;  %v2981_v13 = vld [vmem:[%s5337_s4 + $0x18] sm:$0xff] }
  0x19   :  { %3826 = vmatprep.mubr.msk.f32.mxu0 %vm45_vm0, %v20_v29  ;;  %3997 = vmatprep.mubr.msk.f32.mxu1 %vm45_vm0, %v3397_v30  ;;  %v2979_v12 = vld [vmem:[%s5337_s4 + $0x8] sm:$0xff]  ;;  %v3446_v15 = vld [vmem:[%s5336_s0 + $0xba] sm:$0xff]  ;;  %v3349_v16 = vld [vmem:[%s5335_s1 + $0x50] sm:$0xff] }
  0x1a   :  { %2990 = vperm.xlu0 %4378, %v2978_v7   ;;  %3000 = vperm.xlu1 %4379, %v2980_v8   ;;  %v345_v14 = vld [vmem:[%s5336_s0 + $0x4a] sm:$0xff]  ;;  %v3350_v17 = vld [vmem:[%s5335_s1 + $0x58] sm:$0xff]  ;;  %v2986_v23 = vld [vmem:[%s5337_s4 + $0x40] sm:$0xff] }
  0x1b   :  { %v2983_v19 = vld [vmem:[%s5337_s4 + $0x28] sm:$0xff]  ;;  %v4165_v20 = vpack.c.bf16 %v3350_v17, %v3349_v16  ;;  %v2984_v21 = vld [vmem:[%s5337_s4 + $0x30] sm:$0xff]  ;;  %v2985_v22 = vld [vmem:[%s5337_s4 + $0x38] sm:$0xff] }
  0x1c   :  { %3827 = vmatmul.mubr.msk.f32.vlgmr.msra.gmra.mrb[0].mxu0 %vm45_vm0, %v21_v33  ;;  %3998 = vmatmul.mubr.msk.f32.vlgmr.msra.gmra.mrb[0].mxu1 %vm45_vm0, %v3398_v34  ;;  %v2987_v24 = vld [vmem:[%s5337_s4 + $0x48] sm:$0xff]  ;;  %v513_v25 = vld [vmem:[%s5336_s0 + $0x52] sm:$0xff]  ;;  %v3477_v28 = vld [vmem:[%s5336_s0 + $0x7b] sm:$0xff] }
  0x1d   :  { %4156 = vmatpush3.bf16.msra.mxu0 %v4153_v18  ;;  %4192 = vmatpush3.bf16.msra.mxu1 %v4153_v18  ;;  %v2982_v18 = vld [vmem:[%s5337_s4 + $0x20] sm:$0xff]  ;;  %v672_v27 = vld [vmem:[%s5336_s0 + $0xb] sm:$0xff]  ;;  %v673_v31 = vld [vmem:[%s5336_s0 + $0x13] sm:$0xff] }
  0x1e   :  { %3829 = vmatprep.mubr.msk.f32.mxu0 %vm45_vm0, %v22_v35  ;;  %4000 = vmatprep.mubr.msk.f32.mxu1 %vm45_vm0, %v3399_v36  ;;  %v3466_v26 = vld [vmem:[%s5336_s0 + $0xc2] sm:$0xff]  ;;  %v3479_v34 = vld [vmem:[%s5336_s0 + $0x8b] sm:$0xff]  ;;  %v841_v54 = vld [vmem:[%s5336_s0 + $0x14] sm:$0xff] }
  0x1f   :  { %4158 = vmatprep.subr.bf16.mxu0 %v4157_v37  ;;  %4194 = vmatprep.subr.bf16.mxu1 %v4157_v37  ;;  %v3361_v29 = vld [vmem:[%s5335_s1 + $0x60] sm:$0xff]  ;;  %v3362_v30 = vld [vmem:[%s5335_s1 + $0x68] sm:$0xff]  ;;  %v849_v7 = vld [vmem:[%s5336_s0 + $0x54] sm:$0xff] }
  0x20   :  { %3830 = vmatmul.mubr.msk.f32.gmra.mrb[2].mxu0 %vm45_vm0, %v23_v38  ;;  %4001 = vmatmul.mubr.msk.f32.gmra.mrb[2].mxu1 %vm45_vm0, %v3400_v39  ;;  %v3478_v32 = vld [vmem:[%s5336_s0 + $0x83] sm:$0xff]  ;;  %v674_v33 = vld [vmem:[%s5336_s0 + $0x1b] sm:$0xff]  ;;  %v4169_v35 = vpack.c.bf16 %v3362_v30, %v3361_v29  ;;  %v676_v38 = vld [vmem:[%s5336_s0 + $0x2b] sm:$0xff] }
  0x21   :  { %3832 = vmatprep.mubr.msk.f32.mxu0 %vm45_vm0, %v24_v40  ;;  %4003 = vmatprep.mubr.msk.f32.mxu1 %vm45_vm0, %v3401_v41  ;;  %v675_v36 = vld [vmem:[%s5336_s0 + $0x23] sm:$0xff]  ;;  %v3481_v39 = vld [vmem:[%s5336_s0 + $0x9b] sm:$0xff]  ;;  %v677_v40 = vld [vmem:[%s5336_s0 + $0x33] sm:$0xff] }
  0x22   :  { %2995 = vperm.xlu0 %4378, %v2979_v12   ;;  %3005 = vperm.xlu1 %4379, %v2981_v13   ;;  %v3482_v41 = vld [vmem:[%s5336_s0 + $0xa3] sm:$0xff]  ;;  %v3526_v13 = vld [vmem:[%s5336_s0 + $0xcc] sm:$0xff]  ;;  %v1184_v30 = vld [vmem:[%s5336_s0 + $0x55] sm:$0xff] }
  0x23   :  { %v3498_v55 = vld [vmem:[%s5336_s0 + $0x84] sm:$0xff]  ;;  %v1017_v12 = vld [vmem:[%s5336_s0 + $0x5c] sm:$0xff]  ;;  %v3538_v17 = vld [vmem:[%s5336_s0 + $0x8d] sm:$0xff] }
  0x24   :  { %3833 = vmatmul.mubr.msk.f32.gmra.mrb[4].mxu0 %vm45_vm0, %v25_v42  ;;  %4004 = vmatmul.mubr.msk.f32.gmra.mrb[4].mxu1 %vm45_vm0, %v3402_v43  ;;  %v678_v42 = vld [vmem:[%s5336_s0 + $0x3b] sm:$0xff]  ;;  %v3483_v43 = vld [vmem:[%s5336_s0 + $0xab] sm:$0xff] }
  0x25   :  { %3835 = vmatprep.mubr.msk.f32.mxu0 %vm45_vm0, %v26_v44  ;;  %4006 = vmatprep.mubr.msk.f32.mxu1 %vm45_vm0, %v3403_v45  ;;  %v679_v44 = vld [vmem:[%s5336_s0 + $0x43] sm:$0xff]  ;;  %v3484_v45 = vld [vmem:[%s5336_s0 + $0xb3] sm:$0xff] }
  0x26   :  { %3010 = vperm.xlu0 %4378, %v2982_v18   ;;  %3015 = vperm.xlu1 %4379, %v2983_v19   ;;  %v3506_v8 = vld [vmem:[%s5336_s0 + $0xc4] sm:$0xff]  ;;  %v3539_v19 = vld [vmem:[%s5336_s0 + $0x95] sm:$0xff] }
  0x27   :  { %v1177_v16 = vld [vmem:[%s5336_s0 + $0x1d] sm:$0xff]  ;;  %v1178_v18 = vld [vmem:[%s5336_s0 + $0x25] sm:$0xff] }
  0x28   :  { %3836 = vmatmul.mubr.msk.f32.gmra.mrb[6].mxu0 %vm45_vm0, %v27_v46  ;;  %4007 = vmatmul.mubr.msk.f32.gmra.mrb[6].mxu1 %vm45_vm0, %v3404_v47  ;;  %v680_v46 = vld [vmem:[%s5336_s0 + $0x4b] sm:$0xff]  ;;  %v3485_v47 = vld [vmem:[%s5336_s0 + $0xbb] sm:$0xff] }
  0x29   :  { %3838 = vmatprep.mubr.msk.f32.mxu0 %vm45_vm0, %v28_v48  ;;  %4009 = vmatprep.mubr.msk.f32.mxu1 %vm45_vm0, %v3405_v49  ;;  %v681_v48 = vld [vmem:[%s5336_s0 + $0x53] sm:$0xff]  ;;  %v3486_v49 = vld [vmem:[%s5336_s0 + $0xc3] sm:$0xff] }
  0x2a   :  { %3020 = vperm.xlu0 %4378, %v2984_v21   ;;  %3025 = vperm.xlu1 %4379, %v2985_v22   ;;  %v3540_v21 = vld [vmem:[%s5336_s0 + $0x9d] sm:$0xff]  ;;  %v1180_v22 = vld [vmem:[%s5336_s0 + $0x35] sm:$0xff] }
  0x2b   :  { %v3544_v29 = vld [vmem:[%s5336_s0 + $0xbd] sm:$0xff] }
  0x2c   :  { %3839 = vmatmul.mubr.msk.f32.gmra.mrb[8].mxu0 %vm45_vm0, %v29_v50  ;;  %4010 = vmatmul.mubr.msk.f32.gmra.mrb[8].mxu1 %vm45_vm0, %v3406_v51  ;;  %v840_v50 = vld [vmem:[%s5336_s0 + $0xc] sm:$0xff]  ;;  %v3497_v51 = vld [vmem:[%s5336_s0 + $0x7c] sm:$0xff] }
  0x2d   :  { %3845 = vmatprep.mubr.msk.f32.mxu0 %vm45_vm0, %v336_v52  ;;  %4016 = vmatprep.mubr.msk.f32.mxu1 %vm45_vm0, %v3437_v53  ;;  %v3373_v52 = vld [vmem:[%s5335_s1 + $0x70] sm:$0xff]  ;;  %v3374_v53 = vld [vmem:[%s5335_s1 + $0x78] sm:$0xff] }
  0x2e   :  { %3030 = vperm.xlu0 %4378, %v2986_v23   ;;  %3035 = vperm.xlu1 %4379, %v2987_v24   ;;  %v3541_v23 = vld [vmem:[%s5336_s0 + $0xa5] sm:$0xff]  ;;  %v1181_v24 = vld [vmem:[%s5336_s0 + $0x3d] sm:$0xff] }
  0x30   :  { %3846 = vmatmul.mubr.msk.f32.vlgmr.msra.gmra.mrb[0].mxu0 %vm45_vm0, %v337_v56  ;;  %4017 = vmatmul.mubr.msk.f32.vlgmr.msra.gmra.mrb[0].mxu1 %vm45_vm0, %v3438_v57 }
  0x31   :  { %4160 = vmatpush3.bf16.msra.mxu0 %v4157_v37  ;;  %4196 = vmatpush3.bf16.msra.mxu1 %v4157_v37  ;;  %v3480_v37 = vld [vmem:[%s5336_s0 + $0x93] sm:$0xff] }
  0x32   :  { %3848 = vmatprep.mubr.msk.f32.mxu0 %vm45_vm0, %v338_v58  ;;  %4019 = vmatprep.mubr.msk.f32.mxu1 %vm45_vm0, %v3439_v59 }
  0x33   :  { %4162 = vmatprep.subr.bf16.mxu0 %v4161_v60  ;;  %4198 = vmatprep.subr.bf16.mxu1 %v4161_v60 }
  0x34   :  { %3849 = vmatmul.mubr.msk.f32.gmra.mrb[2].mxu0 %vm45_vm0, %v339_v61  ;;  %4020 = vmatmul.mubr.msk.f32.gmra.mrb[2].mxu1 %vm45_vm0, %v3440_v62 }
  0x35   :  { %3851 = vmatprep.mubr.msk.f32.mxu0 %vm45_vm0, %v340_v63  ;;  %4022 = vmatprep.mubr.msk.f32.mxu1 %vm45_vm0, %v3441_v0 }
  0x38   :  { %3852 = vmatmul.mubr.msk.f32.gmra.mrb[4].mxu0 %vm45_vm0, %v341_v1  ;;  %4023 = vmatmul.mubr.msk.f32.gmra.mrb[4].mxu1 %vm45_vm0, %v3442_v2 }
  0x39   :  { %3854 = vmatprep.mubr.msk.f32.mxu0 %vm45_vm0, %v342_v3  ;;  %4025 = vmatprep.mubr.msk.f32.mxu1 %vm45_vm0, %v3443_v4 }
  0x3c   :  { %3855 = vmatmul.mubr.msk.f32.gmra.mrb[6].mxu0 %vm45_vm0, %v343_v5  ;;  %4026 = vmatmul.mubr.msk.f32.gmra.mrb[6].mxu1 %vm45_vm0, %v3444_v6 }
  0x3d   :  { %3857 = vmatprep.mubr.msk.f32.mxu0 %vm45_vm0, %v344_v9  ;;  %4028 = vmatprep.mubr.msk.f32.mxu1 %vm45_vm0, %v3445_v10 }
  0x40   :  { %3858 = vmatmul.mubr.msk.f32.gmra.mrb[8].mxu0 %vm45_vm0, %v345_v14  ;;  %4029 = vmatmul.mubr.msk.f32.gmra.mrb[8].mxu1 %vm45_vm0, %v3446_v15 }
  0x41   :  { %3864 = vmatprep.mubr.msk.f32.mxu0 %vm45_vm0, %v337_v56  ;;  %4035 = vmatprep.mubr.msk.f32.mxu1 %vm45_vm0, %v3438_v57  ;;  %v842_v56 = vld [vmem:[%s5336_s0 + $0x1c] sm:$0xff]  ;;  %v3499_v57 = vld [vmem:[%s5336_s0 + $0x8c] sm:$0xff] }
  0x44   :  { %3865 = vmatmul.mubr.msk.f32.vlgmr.msra.gmra.mrb[0].mxu0 %vm45_vm0, %v338_v58  ;;  %4036 = vmatmul.mubr.msk.f32.vlgmr.msra.gmra.mrb[0].mxu1 %vm45_vm0, %v3439_v59  ;;  %v4173_v58 = vpack.c.bf16 %v3374_v53, %v3373_v52  ;;  %v843_v59 = vld [vmem:[%s5336_s0 + $0x24] sm:$0xff]  ;;  %v3566_v53 = vld [vmem:[%s5336_s0 + $0xce] sm:$0xff] }
  0x45   :  { %4164 = vmatpush3.bf16.msra.mxu0 %v4161_v60  ;;  %4200 = vmatpush3.bf16.msra.mxu1 %v4161_v60  ;;  %v3500_v60 = vld [vmem:[%s5336_s0 + $0x94] sm:$0xff]  ;;  %v1353_v52 = vld [vmem:[%s5336_s0 + $0x5e] sm:$0xff] }
  0x46   :  { %3867 = vmatprep.mubr.msk.f32.mxu0 %vm45_vm0, %v339_v61  ;;  %4038 = vmatprep.mubr.msk.f32.mxu1 %vm45_vm0, %v3440_v62  ;;  %v844_v61 = vld [vmem:[%s5336_s0 + $0x2c] sm:$0xff]  ;;  %v3501_v62 = vld [vmem:[%s5336_s0 + $0x9c] sm:$0xff] }
  0x47   :  { %4166 = vmatprep.subr.bf16.mxu0 %v4165_v20  ;;  %4202 = vmatprep.subr.bf16.mxu1 %v4165_v20 }
  0x48   :  { %3868 = vmatmul.mubr.msk.f32.gmra.mrb[2].mxu0 %vm45_vm0, %v340_v63  ;;  %4039 = vmatmul.mubr.msk.f32.gmra.mrb[2].mxu1 %vm45_vm0, %v3441_v0  ;;  %v845_v63 = vld [vmem:[%s5336_s0 + $0x34] sm:$0xff]  ;;  %v3502_v0 = vld [vmem:[%s5336_s0 + $0xa4] sm:$0xff] }
  0x49   :  { %3870 = vmatprep.mubr.msk.f32.mxu0 %vm45_vm0, %v341_v1  ;;  %4041 = vmatprep.mubr.msk.f32.mxu1 %vm45_vm0, %v3442_v2  ;;  %v846_v1 = vld [vmem:[%s5336_s0 + $0x3c] sm:$0xff]  ;;  %v3503_v2 = vld [vmem:[%s5336_s0 + $0xac] sm:$0xff] }
  0x4c   :  { %3871 = vmatmul.mubr.msk.f32.gmra.mrb[4].mxu0 %vm45_vm0, %v342_v3  ;;  %4042 = vmatmul.mubr.msk.f32.gmra.mrb[4].mxu1 %vm45_vm0, %v3443_v4  ;;  %v847_v3 = vld [vmem:[%s5336_s0 + $0x44] sm:$0xff]  ;;  %v3504_v4 = vld [vmem:[%s5336_s0 + $0xb4] sm:$0xff] }
  0x4d   :  { %3873 = vmatprep.mubr.msk.f32.mxu0 %vm45_vm0, %v343_v5  ;;  %4044 = vmatprep.mubr.msk.f32.mxu1 %vm45_vm0, %v3444_v6  ;;  %v848_v5 = vld [vmem:[%s5336_s0 + $0x4c] sm:$0xff]  ;;  %v3505_v6 = vld [vmem:[%s5336_s0 + $0xbc] sm:$0xff] }
  0x50   :  { %3874 = vmatmul.mubr.msk.f32.gmra.mrb[6].mxu0 %vm45_vm0, %v344_v9  ;;  %4045 = vmatmul.mubr.msk.f32.gmra.mrb[6].mxu1 %vm45_vm0, %v3445_v10  ;;  %v3385_v9 = vld [vmem:[%s5335_s1 + $0x80] sm:$0xff]  ;;  %v3386_v10 = vld [vmem:[%s5335_s1 + $0x88] sm:$0xff] }
  0x51   :  { %3876 = vmatprep.mubr.msk.f32.mxu0 %vm45_vm0, %v345_v14  ;;  %4047 = vmatprep.mubr.msk.f32.mxu1 %vm45_vm0, %v3446_v15  ;;  %v4177_v11 = vpack.c.bf16 %v3386_v10, %v3385_v9  ;;  %v1176_v14 = vld [vmem:[%s5336_s0 + $0x15] sm:$0xff]  ;;  %v3537_v15 = vld [vmem:[%s5336_s0 + $0x85] sm:$0xff] }
  0x54   :  { %3877 = vmatmul.mubr.msk.f32.gmra.mrb[8].mxu0 %vm45_vm0, %v513_v25  ;;  %4048 = vmatmul.mubr.msk.f32.gmra.mrb[8].mxu1 %vm45_vm0, %v3466_v26  ;;  %v3542_v25 = vld [vmem:[%s5336_s0 + $0xad] sm:$0xff]  ;;  %v1182_v26 = vld [vmem:[%s5336_s0 + $0x45] sm:$0xff] }
  0x55   :  { %3883 = vmatprep.mubr.msk.f32.mxu0 %vm45_vm0, %v672_v27  ;;  %4054 = vmatprep.mubr.msk.f32.mxu1 %vm45_vm0, %v3477_v28  ;;  %v3543_v27 = vld [vmem:[%s5336_s0 + $0xb5] sm:$0xff]  ;;  %v1183_v28 = vld [vmem:[%s5336_s0 + $0x4d] sm:$0xff] }
  0x58   :  { %3884 = vmatmul.mubr.msk.f32.vlgmr.msra.gmra.mrb[0].mxu0 %vm45_vm0, %v673_v31  ;;  %4055 = vmatmul.mubr.msk.f32.vlgmr.msra.gmra.mrb[0].mxu1 %vm45_vm0, %v3478_v32  ;;  %v3545_v31 = vld [vmem:[%s5336_s0 + $0xc5] sm:$0xff]  ;;  %v1185_v32 = vld [vmem:[%s5336_s0 + $0x5d] sm:$0xff] }
  0x59   :  { %4168 = vmatpush3.bf16.msra.mxu0 %v4165_v20  ;;  %4204 = vmatpush3.bf16.msra.mxu1 %v4165_v20  ;;  %v1179_v20 = vld [vmem:[%s5336_s0 + $0x2d] sm:$0xff] }
  0x5a   :  { %3886 = vmatprep.mubr.msk.f32.mxu0 %vm45_vm0, %v674_v33  ;;  %4057 = vmatprep.mubr.msk.f32.mxu1 %vm45_vm0, %v3479_v34  ;;  %v3546_v33 = vld [vmem:[%s5336_s0 + $0xcd] sm:$0xff]  ;;  %v1344_v34 = vld [vmem:[%s5336_s0 + $0x16] sm:$0xff] }
  0x5b   :  { %4170 = vmatprep.subr.bf16.mxu0 %v4169_v35  ;;  %4206 = vmatprep.subr.bf16.mxu1 %v4169_v35 }
  0x5c   :  { %3887 = vmatmul.mubr.msk.f32.gmra.mrb[2].mxu0 %vm45_vm0, %v675_v36  ;;  %4058 = vmatmul.mubr.msk.f32.gmra.mrb[2].mxu1 %vm45_vm0, %v3480_v37  ;;  %v1345_v36 = vld [vmem:[%s5336_s0 + $0x1e] sm:$0xff]  ;;  %v3558_v37 = vld [vmem:[%s5336_s0 + $0x8e] sm:$0xff] }
  0x5d   :  { %3889 = vmatprep.mubr.msk.f32.mxu0 %vm45_vm0, %v676_v38  ;;  %4060 = vmatprep.mubr.msk.f32.mxu1 %vm45_vm0, %v3481_v39  ;;  %v1346_v38 = vld [vmem:[%s5336_s0 + $0x26] sm:$0xff]  ;;  %v3559_v39 = vld [vmem:[%s5336_s0 + $0x96] sm:$0xff] }
  0x60   :  { %3890 = vmatmul.mubr.msk.f32.gmra.mrb[4].mxu0 %vm45_vm0, %v677_v40  ;;  %4061 = vmatmul.mubr.msk.f32.gmra.mrb[4].mxu1 %vm45_vm0, %v3482_v41  ;;  %v1347_v40 = vld [vmem:[%s5336_s0 + $0x2e] sm:$0xff]  ;;  %v3560_v41 = vld [vmem:[%s5336_s0 + $0x9e] sm:$0xff] }
  0x61   :  { %3892 = vmatprep.mubr.msk.f32.mxu0 %vm45_vm0, %v678_v42  ;;  %4063 = vmatprep.mubr.msk.f32.mxu1 %vm45_vm0, %v3483_v43  ;;  %v1348_v42 = vld [vmem:[%s5336_s0 + $0x36] sm:$0xff]  ;;  %v3561_v43 = vld [vmem:[%s5336_s0 + $0xa6] sm:$0xff] }
  0x64   :  { %3893 = vmatmul.mubr.msk.f32.gmra.mrb[6].mxu0 %vm45_vm0, %v679_v44  ;;  %4064 = vmatmul.mubr.msk.f32.gmra.mrb[6].mxu1 %vm45_vm0, %v3484_v45  ;;  %v1349_v44 = vld [vmem:[%s5336_s0 + $0x3e] sm:$0xff]  ;;  %v3562_v45 = vld [vmem:[%s5336_s0 + $0xae] sm:$0xff] }
  0x65   :  { %3895 = vmatprep.mubr.msk.f32.mxu0 %vm45_vm0, %v680_v46  ;;  %4066 = vmatprep.mubr.msk.f32.mxu1 %vm45_vm0, %v3485_v47  ;;  %v1350_v46 = vld [vmem:[%s5336_s0 + $0x46] sm:$0xff]  ;;  %v3563_v47 = vld [vmem:[%s5336_s0 + $0xb6] sm:$0xff] }
  0x68   :  { %3896 = vmatmul.mubr.msk.f32.gmra.mrb[8].mxu0 %vm45_vm0, %v681_v48  ;;  %4067 = vmatmul.mubr.msk.f32.gmra.mrb[8].mxu1 %vm45_vm0, %v3486_v49  ;;  %v1351_v48 = vld [vmem:[%s5336_s0 + $0x4e] sm:$0xff]  ;;  %v3564_v49 = vld [vmem:[%s5336_s0 + $0xbe] sm:$0xff] }
  0x69   :  { %3902 = vmatprep.mubr.msk.f32.mxu0 %vm45_vm0, %v840_v50  ;;  %4073 = vmatprep.mubr.msk.f32.mxu1 %vm45_vm0, %v3497_v51  ;;  %v1352_v50 = vld [vmem:[%s5336_s0 + $0x56] sm:$0xff]  ;;  %v3565_v51 = vld [vmem:[%s5336_s0 + $0xc6] sm:$0xff] }
  0x6c   :  { %3903 = vmatmul.mubr.msk.f32.vlgmr.msra.gmra.mrb[0].mxu0 %vm45_vm0, %v841_v54  ;;  %4074 = vmatmul.mubr.msk.f32.vlgmr.msra.gmra.mrb[0].mxu1 %vm45_vm0, %v3498_v55 }
  0x6d   :  { %4172 = vmatpush3.bf16.msra.mxu0 %v4169_v35  ;;  %4208 = vmatpush3.bf16.msra.mxu1 %v4169_v35  ;;  %v3557_v35 = vld [vmem:[%s5336_s0 + $0x86] sm:$0xff] }
  0x6e   :  { %3905 = vmatprep.mubr.msk.f32.mxu0 %vm45_vm0, %v842_v56  ;;  %4076 = vmatprep.mubr.msk.f32.mxu1 %vm45_vm0, %v3499_v57 }
  0x6f   :  { %4174 = vmatprep.subr.bf16.mxu0 %v4173_v58  ;;  %4210 = vmatprep.subr.bf16.mxu1 %v4173_v58 }
  0x70   :  { %3906 = vmatmul.mubr.msk.f32.gmra.mrb[2].mxu0 %vm45_vm0, %v843_v59  ;;  %4077 = vmatmul.mubr.msk.f32.gmra.mrb[2].mxu1 %vm45_vm0, %v3500_v60 }
  0x71   :  { %3908 = vmatprep.mubr.msk.f32.mxu0 %vm45_vm0, %v844_v61  ;;  %4079 = vmatprep.mubr.msk.f32.mxu1 %vm45_vm0, %v3501_v62 }
  0x74   :  { %3909 = vmatmul.mubr.msk.f32.gmra.mrb[4].mxu0 %vm45_vm0, %v845_v63  ;;  %4080 = vmatmul.mubr.msk.f32.gmra.mrb[4].mxu1 %vm45_vm0, %v3502_v0 }
  0x75   :  { %3911 = vmatprep.mubr.msk.f32.mxu0 %vm45_vm0, %v846_v1  ;;  %4082 = vmatprep.mubr.msk.f32.mxu1 %vm45_vm0, %v3503_v2 }
  0x78   :  { %3912 = vmatmul.mubr.msk.f32.gmra.mrb[6].mxu0 %vm45_vm0, %v847_v3  ;;  %4083 = vmatmul.mubr.msk.f32.gmra.mrb[6].mxu1 %vm45_vm0, %v3504_v4 }
  0x79   :  { %3914 = vmatprep.mubr.msk.f32.mxu0 %vm45_vm0, %v848_v5  ;;  %4085 = vmatprep.mubr.msk.f32.mxu1 %vm45_vm0, %v3505_v6 }
  0x7c   :  { %3915 = vmatmul.mubr.msk.f32.gmra.mrb[8].mxu0 %vm45_vm0, %v849_v7  ;;  %4086 = vmatmul.mubr.msk.f32.gmra.mrb[8].mxu1 %vm45_vm0, %v3506_v8 }
  0x7d   :  { %3921 = vmatprep.mubr.msk.f32.mxu0 %vm45_vm0, %v841_v54  ;;  %4092 = vmatprep.mubr.msk.f32.mxu1 %vm45_vm0, %v3498_v55 }
  0x80   :  { %3922 = vmatmul.mubr.msk.f32.vlgmr.msra.gmra.mrb[0].mxu0 %vm45_vm0, %v842_v56  ;;  %4093 = vmatmul.mubr.msk.f32.vlgmr.msra.gmra.mrb[0].mxu1 %vm45_vm0, %v3499_v57 }
  0x81   :  { %4176 = vmatpush3.bf16.msra.mxu0 %v4173_v58  ;;  %4212 = vmatpush3.bf16.msra.mxu1 %v4173_v58 }
  0x82   :  { %3924 = vmatprep.mubr.msk.f32.mxu0 %vm45_vm0, %v843_v59  ;;  %4095 = vmatprep.mubr.msk.f32.mxu1 %vm45_vm0, %v3500_v60 }
  0x83   :  { %4178 = vmatprep.subr.bf16.mxu0 %v4177_v11  ;;  %4214 = vmatprep.subr.bf16.mxu1 %v4177_v11 }
  0x84   :  { %3925 = vmatmul.mubr.msk.f32.gmra.mrb[2].mxu0 %vm45_vm0, %v844_v61  ;;  %4096 = vmatmul.mubr.msk.f32.gmra.mrb[2].mxu1 %vm45_vm0, %v3501_v62 }
  0x85   :  { %3927 = vmatprep.mubr.msk.f32.mxu0 %vm45_vm0, %v845_v63  ;;  %4098 = vmatprep.mubr.msk.f32.mxu1 %vm45_vm0, %v3502_v0 }
  0x88   :  { %3928 = vmatmul.mubr.msk.f32.gmra.mrb[4].mxu0 %vm45_vm0, %v846_v1  ;;  %4099 = vmatmul.mubr.msk.f32.gmra.mrb[4].mxu1 %vm45_vm0, %v3503_v2 }
  0x89   :  { %3930 = vmatprep.mubr.msk.f32.mxu0 %vm45_vm0, %v847_v3  ;;  %4101 = vmatprep.mubr.msk.f32.mxu1 %vm45_vm0, %v3504_v4 }
  0x8c   :  { %3931 = vmatmul.mubr.msk.f32.gmra.mrb[6].mxu0 %vm45_vm0, %v848_v5  ;;  %4102 = vmatmul.mubr.msk.f32.gmra.mrb[6].mxu1 %vm45_vm0, %v3505_v6 }
  0x8d   :  { %3933 = vmatprep.mubr.msk.f32.mxu0 %vm45_vm0, %v849_v7  ;;  %4104 = vmatprep.mubr.msk.f32.mxu1 %vm45_vm0, %v3506_v8 }
  0x90   :  { %3934 = vmatmul.mubr.msk.f32.gmra.mrb[8].mxu0 %vm45_vm0, %v1017_v12  ;;  %4105 = vmatmul.mubr.msk.f32.gmra.mrb[8].mxu1 %vm45_vm0, %v3526_v13 }
  0x91   :  { %3940 = vmatprep.mubr.msk.f32.mxu0 %vm45_vm0, %v1176_v14  ;;  %4111 = vmatprep.mubr.msk.f32.mxu1 %vm45_vm0, %v3537_v15 }
  0x94   :  { %3941 = vmatmul.mubr.msk.f32.vlgmr.msra.gmra.mrb[0].mxu0 %vm45_vm0, %v1177_v16  ;;  %4112 = vmatmul.mubr.msk.f32.vlgmr.msra.gmra.mrb[0].mxu1 %vm45_vm0, %v3538_v17 }
  0x95   :  { %4180 = vmatpush3.bf16.msra.mxu0 %v4177_v11  ;;  %4216 = vmatpush3.bf16.msra.mxu1 %v4177_v11 }
  0x96   :  { %3943 = vmatprep.mubr.msk.f32.mxu0 %vm45_vm0, %v1178_v18  ;;  %4114 = vmatprep.mubr.msk.f32.mxu1 %vm45_vm0, %v3539_v19 }
  0x98   :  { %3944 = vmatmul.mubr.msk.f32.gmra.mrb[2].mxu0 %vm45_vm0, %v1179_v20  ;;  %4115 = vmatmul.mubr.msk.f32.gmra.mrb[2].mxu1 %vm45_vm0, %v3540_v21 }
  0x99   :  { %3946 = vmatprep.mubr.msk.f32.mxu0 %vm45_vm0, %v1180_v22  ;;  %4117 = vmatprep.mubr.msk.f32.mxu1 %vm45_vm0, %v3541_v23  ;;  %v2991_v54 = vpop.permute.xlu0 %2990  ;;  %v3001_v55 = vpop.permute.xlu1 %3000 }
  0x9c   :  { %3947 = vmatmul.mubr.msk.f32.gmra.mrb[4].mxu0 %vm45_vm0, %v1181_v24  ;;  %4118 = vmatmul.mubr.msk.f32.gmra.mrb[4].mxu1 %vm45_vm0, %v3542_v25 }
  0x9d   :  { %3949 = vmatprep.mubr.msk.f32.mxu0 %vm45_vm0, %v1182_v26  ;;  %4120 = vmatprep.mubr.msk.f32.mxu1 %vm45_vm0, %v3543_v27 }
  0xa0   :  { %3950 = vmatmul.mubr.msk.f32.gmra.mrb[6].mxu0 %vm45_vm0, %v1183_v28  ;;  %4121 = vmatmul.mubr.msk.f32.gmra.mrb[6].mxu1 %vm45_vm0, %v3544_v29 }
  0xa1   :  { %3952 = vmatprep.mubr.msk.f32.mxu0 %vm45_vm0, %v1184_v30  ;;  %4123 = vmatprep.mubr.msk.f32.mxu1 %vm45_vm0, %v3545_v31  ;;  %v2996_v56 = vpop.permute.xlu0 %2995  ;;  %v3006_v57 = vpop.permute.xlu1 %3005 }
  0xa4   :  { %3953 = vmatmul.mubr.msk.f32.gmra.mrb[8].mxu0 %vm45_vm0, %v1185_v32  ;;  %4124 = vmatmul.mubr.msk.f32.gmra.mrb[8].mxu1 %vm45_vm0, %v3546_v33 }
  0xa5   :  { %3959 = vmatprep.mubr.msk.f32.mxu0 %vm45_vm0, %v1344_v34  ;;  %4130 = vmatprep.mubr.msk.f32.mxu1 %vm45_vm0, %v3557_v35  ;;  %v3011_v22 = vpop.permute.xlu0 %3010  ;;  %v3016_v23 = vpop.permute.xlu1 %3015 }
  0xa8   :  { %3960 = vmatmul.mubr.msk.f32.vlgmr.msra.gmra.mrb[0].mxu0 %vm45_vm0, %v1345_v36  ;;  %4131 = vmatmul.mubr.msk.f32.vlgmr.msra.gmra.mrb[0].mxu1 %vm45_vm0, %v3558_v37 }
  0xa9   :  { %3962 = vmatprep.mubr.msk.f32.mxu0 %vm45_vm0, %v1346_v38  ;;  %4133 = vmatprep.mubr.msk.f32.mxu1 %vm45_vm0, %v3559_v39 }
  0xac   :  { %3963 = vmatmul.mubr.msk.f32.gmra.mrb[2].mxu0 %vm45_vm0, %v1347_v40  ;;  %4134 = vmatmul.mubr.msk.f32.gmra.mrb[2].mxu1 %vm45_vm0, %v3560_v41 }
  0xad   :  { %3965 = vmatprep.mubr.msk.f32.mxu0 %vm45_vm0, %v1348_v42  ;;  %4136 = vmatprep.mubr.msk.f32.mxu1 %vm45_vm0, %v3561_v43 }
  0xb0   :  { %3966 = vmatmul.mubr.msk.f32.gmra.mrb[4].mxu0 %vm45_vm0, %v1349_v44  ;;  %4137 = vmatmul.mubr.msk.f32.gmra.mrb[4].mxu1 %vm45_vm0, %v3562_v45 }
  0xb1   :  { %3968 = vmatprep.mubr.msk.f32.mxu0 %vm45_vm0, %v1350_v46  ;;  %4139 = vmatprep.mubr.msk.f32.mxu1 %vm45_vm0, %v3563_v47 }
  0xb4   :  { %3969 = vmatmul.mubr.msk.f32.gmra.mrb[6].mxu0 %vm45_vm0, %v1351_v48  ;;  %4140 = vmatmul.mubr.msk.f32.gmra.mrb[6].mxu1 %vm45_vm0, %v3564_v49 }
  0xb5   :  { %3971 = vmatprep.mubr.msk.f32.mxu0 %vm45_vm0, %v1352_v50  ;;  %4142 = vmatprep.mubr.msk.f32.mxu1 %vm45_vm0, %v3565_v51 }
  0xb8   :  { %3972 = vmatmul.mubr.msk.f32.gmra.mrb[8].mxu0 %vm45_vm0, %v1353_v52  ;;  %4143 = vmatmul.mubr.msk.f32.gmra.mrb[8].mxu1 %vm45_vm0, %v3566_v53 }
 0x17b   :  { %v5109_v58 = vpop.f32.mrb[0].mxu0  ;;  %v5111_v59 = vpop.f32.mrb[0].mxu1 }
 0x17c   :  { %v3039_v60 = vmul.f32 %v5109_v58, %v2996_v56  ;;  %v3112_v61 = vmul.f32 %v5111_v59, %v2996_v56  ;;  %v5115_v62 = vpop.f32.mrb[1].mxu0  ;;  %v5117_v63 = vpop.f32.mrb[1].mxu1 }
 0x17d   :  { %v3038_v0 = vmul.f32 %v2991_v54, %v5115_v62  ;;  %v3111_v1 = vmul.f32 %v2991_v54, %v5117_v63 }
 0x17e   :  { %v3050_v2 = vsel %vm3048_vm1, %v3039_v60, 0.0  ;;  %v3076_v3 = vmul.f32 %v5109_v58, %v3039_v60  ;;  %v3122_v4 = vsel %vm3048_vm1, %v3112_v61, 0.0  ;;  %v3148_v5 = vmul.f32 %v5111_v59, %v3112_v61 }
 0x17f   :  { %v3049_v6 = vsel %vm3048_vm1, %v3038_v0, 0.0  ;;  %v3075_v7 = vmul.f32 %v3038_v0, %v5115_v62  ;;  %v3121_v8 = vsel %vm3048_vm1, %v3111_v1, 0.0  ;;  %v3147_v9 = vmul.f32 %v3111_v1, %v5117_v63  ;;  %v5129_v10 = vpop.f32.mrb[2].mxu0  ;;  %v5131_v11 = vpop.f32.mrb[2].mxu1 }
 0x180   :  { %v3086_v12 = vsel %vm3048_vm1, %v3076_v3, 0.0  ;;  %v3158_v13 = vsel %vm3048_vm1, %v3148_v5, 0.0  ;;  %v3051_v14 = vadd.f32 %v3050_v2, %v3049_v6  ;;  %v3123_v15 = vadd.f32 %v3122_v4, %v3121_v8  ;;  %v5135_v16 = vpop.f32.mrb[3].mxu0  ;;  %v5137_v17 = vpop.f32.mrb[3].mxu1 }
 0x181   :  { %v3085_v18 = vsel %vm3048_vm1, %v3075_v7, 0.0  ;;  %v3157_v19 = vsel %vm3048_vm1, %v3147_v9, 0.0  ;;  %v3041_v20 = vmul.f32 %v5129_v10, %v3006_v57  ;;  %v3114_v21 = vmul.f32 %v5131_v11, %v3006_v57  ;;  %v3021_v1 = vpop.permute.xlu0 %3020  ;;  %v3026_v2 = vpop.permute.xlu1 %3025 }
 0x182   :  { %v3087_v24 = vadd.f32 %v3086_v12, %v3085_v18  ;;  %v3159_v25 = vadd.f32 %v3158_v13, %v3157_v19  ;;  %v3040_v26 = vmul.f32 %v3001_v55, %v5135_v16  ;;  %v3113_v27 = vmul.f32 %v3001_v55, %v5137_v17 }
 0x183   :  { %v3078_v28 = vmul.f32 %v5129_v10, %v3041_v20  ;;  %v3150_v29 = vmul.f32 %v5131_v11, %v3114_v21  ;;  %v5147_v30 = vpop.f32.mrb[4].mxu0  ;;  %v5149_v31 = vpop.f32.mrb[4].mxu1  ;;  %v3054_v38 = vsel %vm3048_vm1, %v3041_v20, 0.0  ;;  %v3126_v52 = vsel %vm3048_vm1, %v3114_v21, 0.0 }
 0x184   :  { %v3052_v32 = vsel %vm3048_vm1, %v3040_v26, 0.0  ;;  %v3077_v33 = vmul.f32 %v3040_v26, %v5135_v16  ;;  %v3124_v34 = vsel %vm3048_vm1, %v3113_v27, 0.0  ;;  %v3149_v35 = vmul.f32 %v3113_v27, %v5137_v17  ;;  %v5155_v36 = vpop.f32.mrb[5].mxu0  ;;  %v5157_v37 = vpop.f32.mrb[5].mxu1 }
 0x185   :  { %v3053_v39 = vadd.f32 %v3052_v32, %v3051_v14  ;;  %v3125_v40 = vadd.f32 %v3124_v34, %v3123_v15  ;;  %v3043_v43 = vmul.f32 %v5147_v30, %v3016_v23  ;;  %v3116_v44 = vmul.f32 %v5149_v31, %v3016_v23 }
 0x186   :  { %v3088_v41 = vsel %vm3048_vm1, %v3077_v33, 0.0  ;;  %v3160_v42 = vsel %vm3048_vm1, %v3149_v35, 0.0  ;;  %v3042_v47 = vmul.f32 %v3011_v22, %v5155_v36  ;;  %v3090_v51 = vsel %vm3048_vm1, %v3078_v28, 0.0 }
 0x187   :  { %v3089_v45 = vadd.f32 %v3088_v41, %v3087_v24  ;;  %v3161_v46 = vadd.f32 %v3160_v42, %v3159_v25  ;;  %v3055_v48 = vadd.f32 %v3054_v38, %v3053_v39  ;;  %v5165_v49 = vpop.f32.mrb[6].mxu0  ;;  %v5167_v50 = vpop.f32.mrb[6].mxu1  ;;  %v3162_v53 = vsel %vm3048_vm1, %v3150_v29, 0.0 }
 0x188   :  { %v3058_v54 = vsel %vm3048_vm1, %v3043_v43, 0.0  ;;  %v5173_v55 = vpop.f32.mrb[7].mxu0  ;;  %v5175_v56 = vpop.f32.mrb[7].mxu1  ;;  %v3056_v57 = vsel %vm3048_vm1, %v3042_v47, 0.0  ;;  %v3079_v60 = vmul.f32 %v3042_v47, %v5155_v36  ;;  %v3115_v0 = vmul.f32 %v3011_v22, %v5157_v37 }
 0x189   :  { %v3091_v61 = vadd.f32 %v3090_v51, %v3089_v45  ;;  %v3080_v3 = vmul.f32 %v5147_v30, %v3043_v43  ;;  %v3152_v4 = vmul.f32 %v5149_v31, %v3116_v44  ;;  %v3057_v5 = vadd.f32 %v3056_v57, %v3055_v48  ;;  %v3036_v43 = vpop.permute.xlu1 %3035  ;;  %v3031_v48 = vpop.permute.xlu0 %3030 }
 0x18a   :  { %v3127_v6 = vadd.f32 %v3126_v52, %v3125_v40  ;;  %v3092_v7 = vsel %vm3048_vm1, %v3079_v60, 0.0  ;;  %v3128_v8 = vsel %vm3048_vm1, %v3115_v0, 0.0  ;;  %v3151_v9 = vmul.f32 %v3115_v0, %v5157_v37 }
 0x18b   :  { %v3163_v12 = vadd.f32 %v3162_v53, %v3161_v46  ;;  %v5185_v13 = vpop.f32.mrb[8].mxu0  ;;  %v5187_v14 = vpop.f32.mrb[8].mxu1  ;;  %v3093_v15 = vadd.f32 %v3092_v7, %v3091_v61  ;;  %v3045_v19 = vmul.f32 %v5165_v49, %v3026_v2  ;;  %v3118_v20 = vmul.f32 %v5167_v50, %v3026_v2 }
 0x18c   :  { %v3129_v18 = vadd.f32 %v3128_v8, %v3127_v6  ;;  %v5191_v21 = vpop.f32.mrb[9].mxu0  ;;  %v5193_v22 = vpop.f32.mrb[9].mxu1  ;;  %v3164_v23 = vsel %vm3048_vm1, %v3151_v9, 0.0  ;;  %v3044_v24 = vmul.f32 %v3021_v1, %v5173_v55  ;;  %v3059_v25 = vadd.f32 %v3058_v54, %v3057_v5 }
 0x18d   :  { %v3117_v26 = vmul.f32 %v3021_v1, %v5175_v56  ;;  %v3094_v27 = vsel %vm3048_vm1, %v3080_v3, 0.0  ;;  %v3130_v28 = vsel %vm3048_vm1, %v3116_v44, 0.0  ;;  %v3166_v29 = vsel %vm3048_vm1, %v3152_v4, 0.0 }
 0x18e   :  { %v3165_v32 = vadd.f32 %v3164_v23, %v3163_v12  ;;  %v3082_v33 = vmul.f32 %v5165_v49, %v3045_v19  ;;  %v3060_v34 = vsel %vm3048_vm1, %v3044_v24, 0.0  ;;  %v3081_v35 = vmul.f32 %v3044_v24, %v5173_v55 }
 0x18f   :  { %v3095_v38 = vadd.f32 %v3094_v27, %v3093_v15  ;;  %v3154_v39 = vmul.f32 %v5167_v50, %v3118_v20  ;;  %v3061_v40 = vadd.f32 %v3060_v34, %v3059_v25  ;;  %v3131_v41 = vadd.f32 %v3130_v28, %v3129_v18 }
 0x190   :  { %v3132_v42 = vsel %vm3048_vm1, %v3117_v26, 0.0  ;;  %v3062_v45 = vsel %vm3048_vm1, %v3045_v19, 0.0  ;;  %v3096_v44 = vsel %vm3048_vm1, %v3081_v35, 0.0  ;;  %v3153_v46 = vmul.f32 %v3117_v26, %v5175_v56 }
 0x191   :  { %v3167_v47 = vadd.f32 %v3166_v29, %v3165_v32  ;;  %v3097_v51 = vadd.f32 %v3096_v44, %v3095_v38  ;;  %v3133_v52 = vadd.f32 %v3132_v42, %v3131_v41  ;;  %v3047_v53 = vmul.f32 %v5185_v13, %v3036_v43 }
 0x192   :  { %v3120_v54 = vmul.f32 %v5187_v14, %v3036_v43  ;;  %v3168_v57 = vsel %vm3048_vm1, %v3153_v46, 0.0  ;;  %v3046_v60 = vmul.f32 %v3031_v48, %v5191_v21  ;;  %v3063_v61 = vadd.f32 %v3062_v45, %v3061_v40 }
 0x193   :  { %v3119_v0 = vmul.f32 %v3031_v48, %v5193_v22  ;;  %v3098_v1 = vsel %vm3048_vm1, %v3082_v33, 0.0  ;;  %v3134_v2 = vsel %vm3048_vm1, %v3118_v20, 0.0  ;;  %v3170_v3 = vsel %vm3048_vm1, %v3154_v39, 0.0 }
 0x194   :  { %v3169_v4 = vadd.f32 %v3168_v57, %v3167_v47  ;;  %v3084_v5 = vmul.f32 %v5185_v13, %v3047_v53  ;;  %v3064_v6 = vsel %vm3048_vm1, %v3046_v60, 0.0  ;;  %v3083_v7 = vmul.f32 %v3046_v60, %v5191_v21 }
 0x195   :  { %v3099_v8 = vadd.f32 %v3098_v1, %v3097_v51  ;;  %v3066_v9 = vsel %vm3048_vm1, %v3047_v53, 0.0  ;;  %v3065_v12 = vadd.f32 %v3064_v6, %v3063_v61  ;;  %v3135_v15 = vadd.f32 %v3134_v2, %v3133_v52 }
 0x196   :  { %v3136_v18 = vsel %vm3048_vm1, %v3119_v0, 0.0  ;;  %v3156_v19 = vmul.f32 %v5187_v14, %v3120_v54  ;;  %v3100_v20 = vsel %vm3048_vm1, %v3083_v7, 0.0  ;;  %v3155_v23 = vmul.f32 %v3119_v0, %v5193_v22 }
 0x197   :  { %v3171_v24 = vadd.f32 %v3170_v3, %v3169_v4  ;;  %v3067_v25 = vadd.f32 %v3066_v9, %v3065_v12  ;;  %v3101_v26 = vadd.f32 %v3100_v20, %v3099_v8  ;;  %v3137_v27 = vadd.f32 %v3136_v18, %v3135_v15 }
 0x198   :  { %v3102_v28 = vsel %vm3048_vm1, %v3084_v5, 0.0  ;;  %v3138_v29 = vsel %vm3048_vm1, %v3120_v54, 0.0  ;;  %v3172_v32 = vsel %vm3048_vm1, %v3155_v23, 0.0  ;;  %v3174_v39 = vsel %vm3048_vm1, %v3156_v19, 0.0 }
 0x199   :  { %v3068_v33 = vrot.slane %v3067_v25, 4  ;;  %v3103_v34 = vadd.f32 %v3102_v28, %v3101_v26  ;;  %v3139_v35 = vadd.f32 %v3138_v29, %v3137_v27  ;;  %v3173_v38 = vadd.f32 %v3172_v32, %v3171_v24  ;;  %v3191_v29 = vld [vmem:[%s5339_s3] sm:$0x1] }
 0x19a   :  { %v3195_v23 = vlaneseq }
 0x19b   :  { %v3069_v40 = vadd.f32 %v3068_v33, %v3067_v25  ;;  %v3104_v41 = vrot.slane %v3103_v34, 4  ;;  %v3140_v42 = vrot.slane %v3139_v35, 4  ;;  %v3175_v43 = vadd.f32 %v3174_v39, %v3173_v38  ;;  %v3187_v25 = vld [vmem:[%s5338_s2] sm:$0x1] }
 0x19c   :  { %v3196_v24 = vshrl.u32 %v3195_v23, 7 }
 0x19d   :  { %v3070_v45 = vrot.slane %v3069_v40, 2  ;;  %v3105_v44 = vadd.f32 %v3104_v41, %v3103_v34  ;;  %v3141_v46 = vadd.f32 %v3140_v42, %v3139_v35  ;;  %v3176_v47 = vrot.slane %v3175_v43, 4 }
 0x19e   :  { %v3197_v26 = vsub.s32 0, %v3196_v24 }
 0x19f   :  { %v3071_v48 = vadd.f32 %v3070_v45, %v3069_v40  ;;  %v3106_v51 = vrot.slane %v3105_v44, 2  ;;  %v3142_v52 = vrot.slane %v3141_v46, 2  ;;  %v3177_v53 = vadd.f32 %v3176_v47, %v3175_v43 }
 0x1a1   :  { %v3072_v54 = vrot.slane %v3071_v48, 1  ;;  %v3107_v57 = vadd.f32 %v3106_v51, %v3105_v44  ;;  %v3143_v60 = vadd.f32 %v3142_v52, %v3141_v46  ;;  %v3178_v61 = vrot.slane %v3177_v53, 2 }
 0x1a3   :  { %v3073_v0 = vadd.f32 %v3072_v54, %v3071_v48  ;;  %v3108_v1 = vrot.slane %v3107_v57, 1  ;;  %v3144_v2 = vrot.slane %v3143_v60, 1  ;;  %v3179_v3 = vadd.f32 %v3178_v61, %v3177_v53 }
 0x1a5   :  { %v3109_v4 = vadd.f32 %v3108_v1, %v3107_v57  ;;  %v3145_v5 = vadd.f32 %v3144_v2, %v3143_v60  ;;  %v3180_v6 = vrot.slane %v3179_v3, 1 }
 0x1a7   :  { %v3146_v7 = vadd.f32 %v3145_v5, %v3073_v0  ;;  %v3181_v8 = vadd.f32 %v3180_v6, %v3179_v3 }
 0x1a9   :  { %v3182_v9 = vadd.f32 %v3181_v8, %v3109_v4  ;;  %v3183_v12 = vmul.f32 0.0078125, %v3146_v7 }
 0x1ab   :  { %v3184_v15 = vmul.f32 0.0078125, %v3182_v9  ;;  %v3185_v18 = vmul.f32 %v3183_v12, %v3183_v12 }
 0x1ad   :  { %v3186_v19 = vsub.f32 %v3184_v15, %v3185_v18 }
 0x1af   :  { %v3188_v20 = vadd.f32 1e-05, %v3186_v19 }
 0x1b1   :  { %4380 = vrsqrt.f32 %v3188_v20 }
 0x1bb   :  { %v4381_v27 = vpop.eup %4380 }
 0x1bc   :  { %v3190_v28 = vmul.f32 %v4381_v27, %v3187_v25 }
 0x1be   :  { %v3192_v32 = vmul.f32 %v3190_v28, %v3183_v12  ;;  %v3198_v33 = vrot.slane %v3190_v28, %v3197_v26 }
 0x1c0   :  { %v3193_v34 = vsub.f32 %v3191_v29, %v3192_v32  ;;  %v3200_v35 = vmul.f32 %v3198_v33, %v5115_v62  ;;  %v3201_v38 = vmul.f32 %v5109_v58, %v3198_v33  ;;  %v3202_v39 = vmul.f32 %v3198_v33, %v5135_v16 }
 0x1c1   :  { %v3203_v40 = vmul.f32 %v5129_v10, %v3198_v33  ;;  %v3204_v41 = vmul.f32 %v3198_v33, %v5155_v36  ;;  %v3205_v42 = vmul.f32 %v5147_v30, %v3198_v33  ;;  %v3206_v43 = vmul.f32 %v3198_v33, %v5173_v55 }
 0x1c2   :  { %v3207_v45 = vmul.f32 %v5165_v49, %v3198_v33  ;;  %v3208_v44 = vmul.f32 %v3198_v33, %v5191_v21  ;;  %v3209_v46 = vmul.f32 %v5185_v13, %v3198_v33  ;;  %v3214_v47 = vrot.slane %v3193_v34, %v3197_v26 }
 0x1c3   :  { %v3246_v62 = vmul.f32 %v3198_v33, %v5117_v63  ;;  %v3247_v58 = vmul.f32 %v5111_v59, %v3198_v33  ;;  %v3248_v16 = vmul.f32 %v3198_v33, %v5137_v17  ;;  %v3249_v10 = vmul.f32 %v5131_v11, %v3198_v33 }
 0x1c4   :  { %v3216_v36 = vadd.f32 %v3214_v47, %v3200_v35  ;;  %v3217_v48 = vadd.f32 %v3214_v47, %v3201_v38  ;;  %v3218_v30 = vadd.f32 %v3214_v47, %v3202_v39  ;;  %v3219_v51 = vadd.f32 %v3214_v47, %v3203_v40 }
 0x1c5   :  { %v3220_v55 = vadd.f32 %v3214_v47, %v3204_v41  ;;  %v3221_v52 = vadd.f32 %v3214_v47, %v3205_v42  ;;  %v3222_v49 = vadd.f32 %v3214_v47, %v3206_v43  ;;  %v3223_v53 = vadd.f32 %v3214_v47, %v3207_v45 }
 0x1c6   :  { %v3224_v21 = vadd.f32 %v3214_v47, %v3208_v44  ;;  %v3225_v54 = vadd.f32 %v3214_v47, %v3209_v46  ;;  %v3226_v13 = vmax.f32 %v3216_v36, 0.0  ;;  %v3227_v57 = vmax.f32 %v3217_v48, 0.0 }
 0x1c7   :  { %v3228_v60 = vmax.f32 %v3218_v30, 0.0  ;;  %v3229_v63 = vmax.f32 %v3219_v51, 0.0  ;;  %v3230_v61 = vmax.f32 %v3220_v55, 0.0  ;;  %v3231_v59 = vmax.f32 %v3221_v52, 0.0 }
 0x1c8   :  { %v3232_v0 = vmax.f32 %v3222_v49, 0.0  ;;  %v3233_v17 = vmax.f32 %v3223_v53, 0.0  ;;  %v3234_v1 = vmax.f32 %v3224_v21, 0.0  ;;  %v3235_v11 = vmax.f32 %v3225_v54, 0.0  ;;  %3236 = vst.msk [vmem:[%s5340_s5] sm:$0xff] %vm3048_vm1, %v3226_v13  ;;  %3237 = vst.msk [vmem:[%s5340_s5 + $0x8] sm:$0xff] %vm3048_vm1, %v3227_v57 }
 0x1c9   :  { %3238 = vst.msk [vmem:[%s5340_s5 + $0x10] sm:$0xff] %vm3048_vm1, %v3228_v60  ;;  %3239 = vst.msk [vmem:[%s5340_s5 + $0x18] sm:$0xff] %vm3048_vm1, %v3229_v63  ;;  %v3250_v2 = vmul.f32 %v3198_v33, %v5157_v37  ;;  %v3251_v3 = vmul.f32 %v5149_v31, %v3198_v33  ;;  %v3252_v4 = vmul.f32 %v3198_v33, %v5175_v56 }
 0x1ca   :  { %3240 = vst.msk [vmem:[%s5340_s5 + $0x20] sm:$0xff] %vm3048_vm1, %v3230_v61  ;;  %3241 = vst.msk [vmem:[%s5340_s5 + $0x28] sm:$0xff] %vm3048_vm1, %v3231_v59  ;;  %v3253_v5 = vmul.f32 %v5167_v50, %v3198_v33  ;;  %v3254_v31 = vmul.f32 %v3198_v33, %v5193_v22  ;;  %v3255_v37 = vmul.f32 %v5187_v14, %v3198_v33 }
 0x1cb   :  { %3242 = vst.msk [vmem:[%s5340_s5 + $0x30] sm:$0xff] %vm3048_vm1, %v3232_v0  ;;  %3243 = vst.msk [vmem:[%s5340_s5 + $0x38] sm:$0xff] %vm3048_vm1, %v3233_v17  ;;  %v3256_v50 = vadd.f32 %v3246_v62, %v3214_v47  ;;  %v3257_v56 = vadd.f32 %v3247_v58, %v3214_v47  ;;  %v3258_v6 = vadd.f32 %v3248_v16, %v3214_v47 }
 0x1cc   :  { %3244 = vst.msk [vmem:[%s5340_s5 + $0x40] sm:$0xff] %vm3048_vm1, %v3234_v1  ;;  %3245 = vst.msk [vmem:[%s5340_s5 + $0x48] sm:$0xff] %vm3048_vm1, %v3235_v11  ;;  %v3259_v7 = vadd.f32 %v3249_v10, %v3214_v47  ;;  %v3260_v8 = vadd.f32 %v3250_v2, %v3214_v47  ;;  %v3261_v9 = vadd.f32 %v3251_v3, %v3214_v47 }
 0x1cd   :  { %v3262_v12 = vadd.f32 %v3252_v4, %v3214_v47  ;;  %v3263_v15 = vadd.f32 %v3253_v5, %v3214_v47  ;;  %v3264_v18 = vadd.f32 %v3254_v31, %v3214_v47  ;;  %v3265_v19 = vadd.f32 %v3255_v37, %v3214_v47 }
 0x1ce   :  { %v3266_v20 = vmax.f32 %v3256_v50, 0.0  ;;  %v3267_v23 = vmax.f32 %v3257_v56, 0.0  ;;  %v3268_v24 = vmax.f32 %v3258_v6, 0.0  ;;  %v3269_v25 = vmax.f32 %v3259_v7, 0.0 }
 0x1cf   :  { %v3270_v26 = vmax.f32 %v3260_v8, 0.0  ;;  %v3271_v27 = vmax.f32 %v3261_v9, 0.0  ;;  %v3272_v28 = vmax.f32 %v3262_v12, 0.0  ;;  %v3273_v22 = vmax.f32 %v3263_v15, 0.0 }
 0x1d0   :  { %v3274_v29 = vmax.f32 %v3264_v18, 0.0  ;;  %v3275_v14 = vmax.f32 %v3265_v19, 0.0  ;;  %3577 = vst.msk [vmem:[%s5340_s5 + $0x50] sm:$0xff] %vm3048_vm1, %v3266_v20  ;;  %3578 = vst.msk [vmem:[%s5340_s5 + $0x58] sm:$0xff] %vm3048_vm1, %v3267_v23 }
 0x1d1   :  { %3579 = vst.msk [vmem:[%s5340_s5 + $0x60] sm:$0xff] %vm3048_vm1, %v3268_v24  ;;  %3580 = vst.msk [vmem:[%s5340_s5 + $0x68] sm:$0xff] %vm3048_vm1, %v3269_v25 }
 0x1d2   :  { %3581 = vst.msk [vmem:[%s5340_s5 + $0x70] sm:$0xff] %vm3048_vm1, %v3270_v26  ;;  %3582 = vst.msk [vmem:[%s5340_s5 + $0x78] sm:$0xff] %vm3048_vm1, %v3271_v27 }
 0x1d3   :  { %3583 = vst.msk [vmem:[%s5340_s5 + $0x80] sm:$0xff] %vm3048_vm1, %v3272_v28  ;;  %3584 = vst.msk [vmem:[%s5340_s5 + $0x88] sm:$0xff] %vm3048_vm1, %v3273_v22 }
 0x1d4   :  { %3585 = vst.msk [vmem:[%s5340_s5 + $0x90] sm:$0xff] %vm3048_vm1, %v3274_v29  ;;  %3586 = vst.msk [vmem:[%s5340_s5 + $0x98] sm:$0xff] %vm3048_vm1, %v3275_v14 }

// kernel: hourglass_1_forward.11
= control target key start
LH: loop header
LB: loop body
LE: loop exit
PB: predicated region body
PF: predicated region fallthrough
CT: control target
= control target key end

     0   :  { %vm95_vm0 = vcmask 64512   ;;  %vm7797_vm1 = vcmask 31744   ;;  %s15657_s1 = inlined_call_operand.vmem [shape: f32[9,8,4], index: 1, kind: input, shape index: {}]   ;;  %s15658_s0 = inlined_call_operand.vmem [shape: f32[2,342,8], index: 0, kind: input, shape index: {}]   ;;  %s15659_s4 = inlined_call_operand.vmem [shape: f32[288,1], index: 4, kind: input, shape index: {}]   ;;  %s15660_s2 = inlined_call_operand.vmem [shape: f32[1,4], index: 2, kind: input, shape index: {}]   ;;  %s15661_s3 = inlined_call_operand.vmem [shape: f32[1,4], index: 3, kind: input, shape index: {}]   ;;  %s15662_s5 = inlined_call_operand.vmem [shape: f32[2,288,4], index: 5, kind: output, shape index: {}]  }
   0x1   :  { %v8462_v0 = vld [vmem:[%s15657_s1 + $0x8] sm:$0xff]  ;;  %v8830_v2 = vld [vmem:[%s15658_s0 + $0x159] sm:$0xff]  ;;  %v59_v6 = vld [vmem:[%s15658_s0 + $0x11] sm:$0xff] }
   0x2   :  { %v57_v1 = vld [vmem:[%s15658_s0 + $0x1] sm:$0xff]  ;;  %10144 = vmatprep.subr.mxu0 %v8462_v0  ;;  %10648 = vmatprep.subr.mxu1 %v8462_v0  ;;  %v58_v3 = vld [vmem:[%s15658_s0 + $0x9] sm:$0xff]  ;;  %v60_v8 = vld [vmem:[%s15658_s0 + $0x19] sm:$0xff] }
   0x3   :  { %v56_v4 = vld [vmem:[%s15657_s1] sm:$0xff]  ;;  %10145 = vmatpush3.msra.mxu0 %v8462_v0  ;;  %10146 = vmatprep.mubr.msk.f32.mxu0 %vm95_vm0, %v57_v1  ;;  %v8832_v7 = vld [vmem:[%s15658_s0 + $0x169] sm:$0xff]  ;;  %v8833_v9 = vld [vmem:[%s15658_s0 + $0x171] sm:$0xff] }
   0x4   :  { %v8831_v5 = vld [vmem:[%s15658_s0 + $0x161] sm:$0xff]  ;;  %10649 = vmatpush3.msra.mxu1 %v8462_v0  ;;  %10650 = vmatprep.mubr.msk.f32.mxu1 %vm95_vm0, %v8830_v2  ;;  %v8834_v11 = vld [vmem:[%s15658_s0 + $0x179] sm:$0xff]  ;;  %v62_v12 = vld [vmem:[%s15658_s0 + $0x29] sm:$0xff] }
   0x5   :  { %10147 = vmatmul.mubr.msk.f32.vlgmr.msra.gmra.mrb[0].mxu0 %vm95_vm0, %v58_v3  ;;  %10200 = vmatprep.subr.mxu0 %v56_v4  ;;  %v61_v10 = vld [vmem:[%s15658_s0 + $0x21] sm:$0xff]  ;;  %v63_v14 = vld [vmem:[%s15658_s0 + $0x31] sm:$0xff]  ;;  %v8836_v15 = vld [vmem:[%s15658_s0 + $0x189] sm:$0xff] }
   0x6   :  { %10651 = vmatmul.mubr.msk.f32.vlgmr.msra.gmra.mrb[0].mxu1 %vm95_vm0, %v8831_v5  ;;  %10704 = vmatprep.subr.mxu1 %v56_v4  ;;  %v8835_v13 = vld [vmem:[%s15658_s0 + $0x181] sm:$0xff]  ;;  %v64_v16 = vld [vmem:[%s15658_s0 + $0x39] sm:$0xff]  ;;  %v8837_v17 = vld [vmem:[%s15658_s0 + $0x191] sm:$0xff] }
   0x7   :  { %10201 = vmatpush3.msra.mxu0 %v56_v4  ;;  %10705 = vmatpush3.msra.mxu1 %v56_v4  ;;  %v65_v18 = vld [vmem:[%s15658_s0 + $0x41] sm:$0xff]  ;;  %v8838_v19 = vld [vmem:[%s15658_s0 + $0x199] sm:$0xff]  ;;  %v66_v20 = vld [vmem:[%s15658_s0 + $0x49] sm:$0xff] }
   0x8   :  { %10149 = vmatprep.mubr.msk.f32.mxu0 %vm95_vm0, %v59_v6  ;;  %10653 = vmatprep.mubr.msk.f32.mxu1 %vm95_vm0, %v8832_v7  ;;  %v8839_v21 = vld [vmem:[%s15658_s0 + $0x1a1] sm:$0xff]  ;;  %v67_v22 = vld [vmem:[%s15658_s0 + $0x51] sm:$0xff]  ;;  %v8840_v23 = vld [vmem:[%s15658_s0 + $0x1a9] sm:$0xff] }
   0x9   :  { %10150 = vmatmul.mubr.msk.f32.gmra.mrb[2].mxu0 %vm95_vm0, %v60_v8  ;;  %v68_v24 = vld [vmem:[%s15658_s0 + $0x59] sm:$0xff]  ;;  %v8841_v25 = vld [vmem:[%s15658_s0 + $0x1b1] sm:$0xff]  ;;  %v69_v26 = vld [vmem:[%s15658_s0 + $0x61] sm:$0xff] }
   0xa   :  { %10654 = vmatmul.mubr.msk.f32.gmra.mrb[2].mxu1 %vm95_vm0, %v8833_v9  ;;  %10152 = vmatprep.mubr.msk.f32.mxu0 %vm95_vm0, %v61_v10  ;;  %v8842_v27 = vld [vmem:[%s15658_s0 + $0x1b9] sm:$0xff]  ;;  %v70_v28 = vld [vmem:[%s15658_s0 + $0x69] sm:$0xff]  ;;  %v8843_v30 = vld [vmem:[%s15658_s0 + $0x1c1] sm:$0xff] }
   0xb   :  { %10656 = vmatprep.mubr.msk.f32.mxu1 %vm95_vm0, %v8834_v11  ;;  %v11879_v29 = vld [vmem:[%s15657_s1 + $0x10] sm:$0xff]  ;;  %v72_v33 = vld [vmem:[%s15658_s0 + $0x79] sm:$0xff]  ;;  %v73_v35 = vld [vmem:[%s15658_s0 + $0x81] sm:$0xff] }
   0xc   :  { %v71_v31 = vld [vmem:[%s15658_s0 + $0x71] sm:$0xff]  ;;  %10256 = vmatprep.subr.mxu0 %v11879_v29  ;;  %v8844_v32 = vld [vmem:[%s15658_s0 + $0x1c9] sm:$0xff]  ;;  %10760 = vmatprep.subr.mxu1 %v11879_v29  ;;  %v8846_v36 = vld [vmem:[%s15658_s0 + $0x1d9] sm:$0xff] }
   0xd   :  { %10153 = vmatmul.mubr.msk.f32.gmra.mrb[4].mxu0 %vm95_vm0, %v62_v12  ;;  %v8845_v34 = vld [vmem:[%s15658_s0 + $0x1d1] sm:$0xff]  ;;  %v74_v37 = vld [vmem:[%s15658_s0 + $0x89] sm:$0xff]  ;;  %v8847_v38 = vld [vmem:[%s15658_s0 + $0x1e1] sm:$0xff] }
   0xe   :  { %10657 = vmatmul.mubr.msk.f32.gmra.mrb[4].mxu1 %vm95_vm0, %v8835_v13  ;;  %10155 = vmatprep.mubr.msk.f32.mxu0 %vm95_vm0, %v63_v14  ;;  %v75_v39 = vld [vmem:[%s15658_s0 + $0x91] sm:$0xff]  ;;  %v8848_v40 = vld [vmem:[%s15658_s0 + $0x1e9] sm:$0xff]  ;;  %v76_v41 = vld [vmem:[%s15658_s0 + $0x99] sm:$0xff] }
   0xf   :  { %10659 = vmatprep.mubr.msk.f32.mxu1 %vm95_vm0, %v8836_v15  ;;  %v8849_v42 = vld [vmem:[%s15658_s0 + $0x1f1] sm:$0xff]  ;;  %v77_v43 = vld [vmem:[%s15658_s0 + $0xa1] sm:$0xff]  ;;  %v8850_v44 = vld [vmem:[%s15658_s0 + $0x1f9] sm:$0xff] }
  0x10   :  { %v78_v45 = vld [vmem:[%s15658_s0 + $0xa9] sm:$0xff]  ;;  %v8851_v46 = vld [vmem:[%s15658_s0 + $0x201] sm:$0xff]  ;;  %v79_v47 = vld [vmem:[%s15658_s0 + $0xb1] sm:$0xff] }
  0x11   :  { %10156 = vmatmul.mubr.msk.f32.gmra.mrb[6].mxu0 %vm95_vm0, %v64_v16  ;;  %v8852_v48 = vld [vmem:[%s15658_s0 + $0x209] sm:$0xff]  ;;  %v80_v49 = vld [vmem:[%s15658_s0 + $0xb9] sm:$0xff]  ;;  %v8853_v50 = vld [vmem:[%s15658_s0 + $0x211] sm:$0xff] }
  0x12   :  { %10660 = vmatmul.mubr.msk.f32.gmra.mrb[6].mxu1 %vm95_vm0, %v8837_v17  ;;  %10158 = vmatprep.mubr.msk.f32.mxu0 %vm95_vm0, %v65_v18  ;;  %v81_v51 = vld [vmem:[%s15658_s0 + $0xc1] sm:$0xff]  ;;  %v8854_v52 = vld [vmem:[%s15658_s0 + $0x219] sm:$0xff]  ;;  %v82_v53 = vld [vmem:[%s15658_s0 + $0xc9] sm:$0xff] }
  0x13   :  { %10662 = vmatprep.mubr.msk.f32.mxu1 %vm95_vm0, %v8838_v19  ;;  %v8855_v54 = vld [vmem:[%s15658_s0 + $0x221] sm:$0xff]  ;;  %v83_v55 = vld [vmem:[%s15658_s0 + $0xd1] sm:$0xff]  ;;  %v8856_v56 = vld [vmem:[%s15658_s0 + $0x229] sm:$0xff] }
  0x14   :  { %v84_v57 = vld [vmem:[%s15658_s0 + $0xd9] sm:$0xff]  ;;  %v8857_v58 = vld [vmem:[%s15658_s0 + $0x231] sm:$0xff]  ;;  %v85_v59 = vld [vmem:[%s15658_s0 + $0xe1] sm:$0xff] }
  0x15   :  { %10159 = vmatmul.mubr.msk.f32.gmra.mrb[8].mxu0 %vm95_vm0, %v66_v20  ;;  %v8858_v60 = vld [vmem:[%s15658_s0 + $0x239] sm:$0xff]  ;;  %v86_v61 = vld [vmem:[%s15658_s0 + $0xe9] sm:$0xff]  ;;  %v8859_v62 = vld [vmem:[%s15658_s0 + $0x241] sm:$0xff] }
  0x16   :  { %10663 = vmatmul.mubr.msk.f32.gmra.mrb[8].mxu1 %vm95_vm0, %v8839_v21  ;;  %10161 = vmatprep.mubr.msk.f32.mxu0 %vm95_vm0, %v67_v22  ;;  %v87_v63 = vld [vmem:[%s15658_s0 + $0xf1] sm:$0xff]  ;;  %v8860_v0 = vld [vmem:[%s15658_s0 + $0x249] sm:$0xff]  ;;  %v88_v1 = vld [vmem:[%s15658_s0 + $0xf9] sm:$0xff] }
  0x17   :  { %10665 = vmatprep.mubr.msk.f32.mxu1 %vm95_vm0, %v8840_v23  ;;  %v8861_v2 = vld [vmem:[%s15658_s0 + $0x251] sm:$0xff]  ;;  %v89_v3 = vld [vmem:[%s15658_s0 + $0x101] sm:$0xff]  ;;  %v8862_v4 = vld [vmem:[%s15658_s0 + $0x259] sm:$0xff] }
  0x18   :  { %v90_v5 = vld [vmem:[%s15658_s0 + $0x109] sm:$0xff]  ;;  %v8863_v6 = vld [vmem:[%s15658_s0 + $0x261] sm:$0xff]  ;;  %v91_v7 = vld [vmem:[%s15658_s0 + $0x111] sm:$0xff] }
  0x19   :  { %10162 = vmatmul.mubr.msk.f32.gmra.mrb[10].mxu0 %vm95_vm0, %v68_v24  ;;  %v8864_v8 = vld [vmem:[%s15658_s0 + $0x269] sm:$0xff]  ;;  %v92_v9 = vld [vmem:[%s15658_s0 + $0x119] sm:$0xff]  ;;  %v8865_v10 = vld [vmem:[%s15658_s0 + $0x271] sm:$0xff] }
  0x1a   :  { %10666 = vmatmul.mubr.msk.f32.gmra.mrb[10].mxu1 %vm95_vm0, %v8841_v25  ;;  %10164 = vmatprep.mubr.msk.f32.mxu0 %vm95_vm0, %v69_v26  ;;  %v20_v11 = vld [vmem:[%s15658_s0] sm:$0xff]  ;;  %v8794_v12 = vld [vmem:[%s15658_s0 + $0x158] sm:$0xff]  ;;  %v21_v13 = vld [vmem:[%s15658_s0 + $0x8] sm:$0xff] }
  0x1b   :  { %10668 = vmatprep.mubr.msk.f32.mxu1 %vm95_vm0, %v8842_v27  ;;  %v8795_v14 = vld [vmem:[%s15658_s0 + $0x160] sm:$0xff]  ;;  %v22_v15 = vld [vmem:[%s15658_s0 + $0x10] sm:$0xff]  ;;  %v8796_v16 = vld [vmem:[%s15658_s0 + $0x168] sm:$0xff] }
  0x1c   :  { %v12089_v17 = vld [vmem:[%s15657_s1 + $0x18] sm:$0xff]  ;;  %v8797_v19 = vld [vmem:[%s15658_s0 + $0x170] sm:$0xff]  ;;  %v24_v20 = vld [vmem:[%s15658_s0 + $0x20] sm:$0xff] }
  0x1d   :  { %10165 = vmatmul.mubr.msk.f32.gmra.mrb[12].mxu0 %vm95_vm0, %v70_v28  ;;  %v23_v18 = vld [vmem:[%s15658_s0 + $0x18] sm:$0xff]  ;;  %v25_v22 = vld [vmem:[%s15658_s0 + $0x28] sm:$0xff]  ;;  %v8799_v23 = vld [vmem:[%s15658_s0 + $0x180] sm:$0xff] }
  0x1e   :  { %10669 = vmatmul.mubr.msk.f32.gmra.mrb[12].mxu1 %vm95_vm0, %v8843_v30  ;;  %10167 = vmatprep.mubr.msk.f32.mxu0 %vm95_vm0, %v71_v31  ;;  %v8798_v21 = vld [vmem:[%s15658_s0 + $0x178] sm:$0xff]  ;;  %v26_v24 = vld [vmem:[%s15658_s0 + $0x30] sm:$0xff]  ;;  %v8800_v25 = vld [vmem:[%s15658_s0 + $0x188] sm:$0xff] }
  0x1f   :  { %10671 = vmatprep.mubr.msk.f32.mxu1 %vm95_vm0, %v8844_v32  ;;  %v27_v26 = vld [vmem:[%s15658_s0 + $0x38] sm:$0xff]  ;;  %v8801_v27 = vld [vmem:[%s15658_s0 + $0x190] sm:$0xff]  ;;  %v28_v28 = vld [vmem:[%s15658_s0 + $0x40] sm:$0xff] }
  0x20   :  { %v29_v30 = vld [vmem:[%s15658_s0 + $0x48] sm:$0xff]  ;;  %v8803_v31 = vld [vmem:[%s15658_s0 + $0x1a0] sm:$0xff]  ;;  %v30_v32 = vld [vmem:[%s15658_s0 + $0x50] sm:$0xff] }
  0x21   :  { %10168 = vmatmul.mubr.msk.f32.gmra.mrb[14].mxu0 %vm95_vm0, %v72_v33  ;;  %v8804_v33 = vld [vmem:[%s15658_s0 + $0x1a8] sm:$0xff] }
  0x22   :  { %10672 = vmatmul.mubr.msk.f32.gmra.mrb[14].mxu1 %vm95_vm0, %v8845_v34  ;;  %10170 = vmatprep.mubr.msk.f32.mxu0 %vm95_vm0, %v73_v35  ;;  %v31_v34 = vld [vmem:[%s15658_s0 + $0x58] sm:$0xff]  ;;  %v8805_v35 = vld [vmem:[%s15658_s0 + $0x1b0] sm:$0xff] }
  0x23   :  { %10674 = vmatprep.mubr.msk.f32.mxu1 %vm95_vm0, %v8846_v36  ;;  %v32_v36 = vld [vmem:[%s15658_s0 + $0x60] sm:$0xff] }
  0x25   :  { %10171 = vmatmul.mubr.msk.f32.gmra.mrb[16].mxu0 %vm95_vm0, %v74_v37  ;;  %v8806_v37 = vld [vmem:[%s15658_s0 + $0x1b8] sm:$0xff] }
  0x26   :  { %10675 = vmatmul.mubr.msk.f32.gmra.mrb[16].mxu1 %vm95_vm0, %v8847_v38  ;;  %10173 = vmatprep.mubr.msk.f32.mxu0 %vm95_vm0, %v75_v39  ;;  %v33_v38 = vld [vmem:[%s15658_s0 + $0x68] sm:$0xff]  ;;  %v8807_v39 = vld [vmem:[%s15658_s0 + $0x1c0] sm:$0xff] }
  0x27   :  { %10677 = vmatprep.mubr.msk.f32.mxu1 %vm95_vm0, %v8848_v40  ;;  %v34_v40 = vld [vmem:[%s15658_s0 + $0x70] sm:$0xff] }
  0x29   :  { %10174 = vmatmul.mubr.msk.f32.gmra.mrb[18].mxu0 %vm95_vm0, %v76_v41  ;;  %v8808_v41 = vld [vmem:[%s15658_s0 + $0x1c8] sm:$0xff] }
  0x2a   :  { %10678 = vmatmul.mubr.msk.f32.gmra.mrb[18].mxu1 %vm95_vm0, %v8849_v42  ;;  %10176 = vmatprep.mubr.msk.f32.mxu0 %vm95_vm0, %v77_v43  ;;  %v35_v42 = vld [vmem:[%s15658_s0 + $0x78] sm:$0xff]  ;;  %v8809_v43 = vld [vmem:[%s15658_s0 + $0x1d0] sm:$0xff] }
  0x2b   :  { %10680 = vmatprep.mubr.msk.f32.mxu1 %vm95_vm0, %v8850_v44  ;;  %v36_v44 = vld [vmem:[%s15658_s0 + $0x80] sm:$0xff] }
  0x2d   :  { %10177 = vmatmul.mubr.msk.f32.gmra.mrb[20].mxu0 %vm95_vm0, %v78_v45  ;;  %v8810_v45 = vld [vmem:[%s15658_s0 + $0x1d8] sm:$0xff] }
  0x2e   :  { %10681 = vmatmul.mubr.msk.f32.gmra.mrb[20].mxu1 %vm95_vm0, %v8851_v46  ;;  %10179 = vmatprep.mubr.msk.f32.mxu0 %vm95_vm0, %v79_v47  ;;  %v37_v46 = vld [vmem:[%s15658_s0 + $0x88] sm:$0xff]  ;;  %v8811_v47 = vld [vmem:[%s15658_s0 + $0x1e0] sm:$0xff] }
  0x2f   :  { %10683 = vmatprep.mubr.msk.f32.mxu1 %vm95_vm0, %v8852_v48  ;;  %v38_v48 = vld [vmem:[%s15658_s0 + $0x90] sm:$0xff] }
  0x31   :  { %10180 = vmatmul.mubr.msk.f32.gmra.mrb[22].mxu0 %vm95_vm0, %v80_v49  ;;  %v8812_v49 = vld [vmem:[%s15658_s0 + $0x1e8] sm:$0xff] }
  0x32   :  { %10684 = vmatmul.mubr.msk.f32.gmra.mrb[22].mxu1 %vm95_vm0, %v8853_v50  ;;  %10182 = vmatprep.mubr.msk.f32.mxu0 %vm95_vm0, %v81_v51  ;;  %v39_v50 = vld [vmem:[%s15658_s0 + $0x98] sm:$0xff]  ;;  %v8813_v51 = vld [vmem:[%s15658_s0 + $0x1f0] sm:$0xff] }
  0x33   :  { %10686 = vmatprep.mubr.msk.f32.mxu1 %vm95_vm0, %v8854_v52  ;;  %v40_v52 = vld [vmem:[%s15658_s0 + $0xa0] sm:$0xff] }
  0x35   :  { %10183 = vmatmul.mubr.msk.f32.gmra.mrb[24].mxu0 %vm95_vm0, %v82_v53  ;;  %v8814_v53 = vld [vmem:[%s15658_s0 + $0x1f8] sm:$0xff] }
  0x36   :  { %10687 = vmatmul.mubr.msk.f32.gmra.mrb[24].mxu1 %vm95_vm0, %v8855_v54  ;;  %10185 = vmatprep.mubr.msk.f32.mxu0 %vm95_vm0, %v83_v55  ;;  %v41_v54 = vld [vmem:[%s15658_s0 + $0xa8] sm:$0xff]  ;;  %v8815_v55 = vld [vmem:[%s15658_s0 + $0x200] sm:$0xff] }
  0x37   :  { %10689 = vmatprep.mubr.msk.f32.mxu1 %vm95_vm0, %v8856_v56  ;;  %v42_v56 = vld [vmem:[%s15658_s0 + $0xb0] sm:$0xff] }
  0x39   :  { %10186 = vmatmul.mubr.msk.f32.gmra.mrb[26].mxu0 %vm95_vm0, %v84_v57  ;;  %v8816_v57 = vld [vmem:[%s15658_s0 + $0x208] sm:$0xff] }
  0x3a   :  { %10690 = vmatmul.mubr.msk.f32.gmra.mrb[26].mxu1 %vm95_vm0, %v8857_v58  ;;  %10188 = vmatprep.mubr.msk.f32.mxu0 %vm95_vm0, %v85_v59  ;;  %v43_v58 = vld [vmem:[%s15658_s0 + $0xb8] sm:$0xff]  ;;  %v8817_v59 = vld [vmem:[%s15658_s0 + $0x210] sm:$0xff] }
  0x3b   :  { %10692 = vmatprep.mubr.msk.f32.mxu1 %vm95_vm0, %v8858_v60  ;;  %v44_v60 = vld [vmem:[%s15658_s0 + $0xc0] sm:$0xff] }
  0x3d   :  { %10189 = vmatmul.mubr.msk.f32.gmra.mrb[28].mxu0 %vm95_vm0, %v86_v61  ;;  %v8818_v61 = vld [vmem:[%s15658_s0 + $0x218] sm:$0xff] }
  0x3e   :  { %10693 = vmatmul.mubr.msk.f32.gmra.mrb[28].mxu1 %vm95_vm0, %v8859_v62  ;;  %10191 = vmatprep.mubr.msk.f32.mxu0 %vm95_vm0, %v87_v63  ;;  %v45_v62 = vld [vmem:[%s15658_s0 + $0xc8] sm:$0xff]  ;;  %v8819_v63 = vld [vmem:[%s15658_s0 + $0x220] sm:$0xff] }
  0x3f   :  { %10695 = vmatprep.mubr.msk.f32.mxu1 %vm95_vm0, %v8860_v0  ;;  %v46_v0 = vld [vmem:[%s15658_s0 + $0xd0] sm:$0xff] }
  0x41   :  { %10192 = vmatmul.mubr.msk.f32.gmra.mrb[30].mxu0 %vm95_vm0, %v88_v1  ;;  %v8820_v1 = vld [vmem:[%s15658_s0 + $0x228] sm:$0xff] }
  0x42   :  { %10696 = vmatmul.mubr.msk.f32.gmra.mrb[30].mxu1 %vm95_vm0, %v8861_v2  ;;  %10194 = vmatprep.mubr.msk.f32.mxu0 %vm95_vm0, %v89_v3  ;;  %v47_v2 = vld [vmem:[%s15658_s0 + $0xd8] sm:$0xff]  ;;  %v8821_v3 = vld [vmem:[%s15658_s0 + $0x230] sm:$0xff] }
  0x43   :  { %10698 = vmatprep.mubr.msk.f32.mxu1 %vm95_vm0, %v8862_v4  ;;  %v48_v4 = vld [vmem:[%s15658_s0 + $0xe0] sm:$0xff] }
  0x45   :  { %10195 = vmatmul.mubr.msk.f32.gmra.mrb[32].mxu0 %vm95_vm0, %v90_v5  ;;  %v8822_v5 = vld [vmem:[%s15658_s0 + $0x238] sm:$0xff] }
  0x46   :  { %10699 = vmatmul.mubr.msk.f32.gmra.mrb[32].mxu1 %vm95_vm0, %v8863_v6  ;;  %10197 = vmatprep.mubr.msk.f32.mxu0 %vm95_vm0, %v91_v7  ;;  %v49_v6 = vld [vmem:[%s15658_s0 + $0xe8] sm:$0xff]  ;;  %v8823_v7 = vld [vmem:[%s15658_s0 + $0x240] sm:$0xff] }
  0x47   :  { %10701 = vmatprep.mubr.msk.f32.mxu1 %vm95_vm0, %v8864_v8  ;;  %v50_v8 = vld [vmem:[%s15658_s0 + $0xf0] sm:$0xff] }
  0x49   :  { %10198 = vmatmul.mubr.msk.f32.gmra.mrb[34].mxu0 %vm95_vm0, %v92_v9  ;;  %v8824_v9 = vld [vmem:[%s15658_s0 + $0x248] sm:$0xff] }
  0x4a   :  { %10702 = vmatmul.mubr.msk.f32.gmra.mrb[34].mxu1 %vm95_vm0, %v8865_v10  ;;  %10202 = vmatprep.mubr.msk.f32.mxu0 %vm95_vm0, %v20_v11  ;;  %v51_v10 = vld [vmem:[%s15658_s0 + $0xf8] sm:$0xff]  ;;  %v8825_v11 = vld [vmem:[%s15658_s0 + $0x250] sm:$0xff] }
  0x4b   :  { %10706 = vmatprep.mubr.msk.f32.mxu1 %vm95_vm0, %v8794_v12  ;;  %v52_v12 = vld [vmem:[%s15658_s0 + $0x100] sm:$0xff] }
  0x4d   :  { %10203 = vmatmul.mubr.msk.f32.vlgmr.msra.gmra.mrb[0].mxu0 %vm95_vm0, %v21_v13  ;;  %v8826_v13 = vld [vmem:[%s15658_s0 + $0x258] sm:$0xff] }
  0x4e   :  { %10707 = vmatmul.mubr.msk.f32.vlgmr.msra.gmra.mrb[0].mxu1 %vm95_vm0, %v8795_v14  ;;  %10257 = vmatpush3.msra.mxu0 %v11879_v29  ;;  %v53_v14 = vld [vmem:[%s15658_s0 + $0x108] sm:$0xff] }
  0x4f   :  { %10761 = vmatpush3.msra.mxu1 %v11879_v29  ;;  %10205 = vmatprep.mubr.msk.f32.mxu0 %vm95_vm0, %v22_v15  ;;  %v8802_v29 = vld [vmem:[%s15658_s0 + $0x198] sm:$0xff]  ;;  %v8827_v15 = vld [vmem:[%s15658_s0 + $0x260] sm:$0xff] }
  0x50   :  { %10709 = vmatprep.mubr.msk.f32.mxu1 %vm95_vm0, %v8796_v16  ;;  %10312 = vmatprep.subr.mxu0 %v12089_v17  ;;  %v54_v16 = vld [vmem:[%s15658_s0 + $0x110] sm:$0xff] }
  0x51   :  { %10206 = vmatmul.mubr.msk.f32.gmra.mrb[2].mxu0 %vm95_vm0, %v23_v18  ;;  %10816 = vmatprep.subr.mxu1 %v12089_v17  ;;  %v8828_v18 = vld [vmem:[%s15658_s0 + $0x268] sm:$0xff] }
  0x52   :  { %10710 = vmatmul.mubr.msk.f32.gmra.mrb[2].mxu1 %vm95_vm0, %v8797_v19  ;;  %10208 = vmatprep.mubr.msk.f32.mxu0 %vm95_vm0, %v24_v20  ;;  %v55_v19 = vld [vmem:[%s15658_s0 + $0x118] sm:$0xff]  ;;  %v8829_v20 = vld [vmem:[%s15658_s0 + $0x270] sm:$0xff] }
  0x53   :  { %10712 = vmatprep.mubr.msk.f32.mxu1 %vm95_vm0, %v8798_v21  ;;  %v802_v21 = vld [vmem:[%s15658_s0 + $0x2] sm:$0xff] }
  0x55   :  { %10209 = vmatmul.mubr.msk.f32.gmra.mrb[4].mxu0 %vm95_vm0, %v25_v22  ;;  %v8938_v22 = vld [vmem:[%s15658_s0 + $0x15a] sm:$0xff] }
  0x56   :  { %10713 = vmatmul.mubr.msk.f32.gmra.mrb[4].mxu1 %vm95_vm0, %v8799_v23  ;;  %10211 = vmatprep.mubr.msk.f32.mxu0 %vm95_vm0, %v26_v24  ;;  %v803_v23 = vld [vmem:[%s15658_s0 + $0xa] sm:$0xff]  ;;  %v8939_v24 = vld [vmem:[%s15658_s0 + $0x162] sm:$0xff] }
  0x57   :  { %10715 = vmatprep.mubr.msk.f32.mxu1 %vm95_vm0, %v8800_v25  ;;  %v12379_v25 = vld [vmem:[%s15658_s0 + $0x12] sm:$0xff] }
  0x59   :  { %10212 = vmatmul.mubr.msk.f32.gmra.mrb[6].mxu0 %vm95_vm0, %v27_v26  ;;  %v12385_v26 = vld [vmem:[%s15658_s0 + $0x16a] sm:$0xff] }
  0x5a   :  { %10716 = vmatmul.mubr.msk.f32.gmra.mrb[6].mxu1 %vm95_vm0, %v8801_v27  ;;  %10214 = vmatprep.mubr.msk.f32.mxu0 %vm95_vm0, %v28_v28  ;;  %v12390_v27 = vld [vmem:[%s15657_s1 + $0x20] sm:$0xff] }
  0x5b   :  { %10718 = vmatprep.mubr.msk.f32.mxu1 %vm95_vm0, %v8802_v29  ;;  %v12397_v28 = vld [vmem:[%s15658_s0 + $0x1a] sm:$0xff]  ;;  %v12405_v29 = vld [vmem:[%s15658_s0 + $0x172] sm:$0xff] }
  0x5d   :  { %10215 = vmatmul.mubr.msk.f32.gmra.mrb[8].mxu0 %vm95_vm0, %v29_v30  ;;  %v12410_v30 = vld [vmem:[%s15658_s0 + $0x22] sm:$0xff] }
  0x5e   :  { %10719 = vmatmul.mubr.msk.f32.gmra.mrb[8].mxu1 %vm95_vm0, %v8803_v31  ;;  %10217 = vmatprep.mubr.msk.f32.mxu0 %vm95_vm0, %v30_v32  ;;  %v12430_v31 = vld [vmem:[%s15658_s0 + $0x2a] sm:$0xff]  ;;  %v12437_v32 = vld [vmem:[%s15658_s0 + $0x182] sm:$0xff] }
  0x5f   :  { %10721 = vmatprep.mubr.msk.f32.mxu1 %vm95_vm0, %v8804_v33  ;;  %v12442_v33 = vld [vmem:[%s15658_s0 + $0x32] sm:$0xff] }
  0x61   :  { %10218 = vmatmul.mubr.msk.f32.gmra.mrb[10].mxu0 %vm95_vm0, %v31_v34  ;;  %v12447_v34 = vld [vmem:[%s15658_s0 + $0x18a] sm:$0xff] }
  0x62   :  { %10722 = vmatmul.mubr.msk.f32.gmra.mrb[10].mxu1 %vm95_vm0, %v8805_v35  ;;  %10220 = vmatprep.mubr.msk.f32.mxu0 %vm95_vm0, %v32_v36  ;;  %v12458_v35 = vld [vmem:[%s15658_s0 + $0x3a] sm:$0xff]  ;;  %v12465_v36 = vld [vmem:[%s15658_s0 + $0x192] sm:$0xff] }
  0x63   :  { %10724 = vmatprep.mubr.msk.f32.mxu1 %vm95_vm0, %v8806_v37  ;;  %v12470_v37 = vld [vmem:[%s15658_s0 + $0x42] sm:$0xff] }
  0x65   :  { %10221 = vmatmul.mubr.msk.f32.gmra.mrb[12].mxu0 %vm95_vm0, %v33_v38  ;;  %v12475_v38 = vld [vmem:[%s15658_s0 + $0x19a] sm:$0xff] }
  0x66   :  { %10725 = vmatmul.mubr.msk.f32.gmra.mrb[12].mxu1 %vm95_vm0, %v8807_v39  ;;  %10223 = vmatprep.mubr.msk.f32.mxu0 %vm95_vm0, %v34_v40  ;;  %v12486_v39 = vld [vmem:[%s15658_s0 + $0x4a] sm:$0xff]  ;;  %v12493_v40 = vld [vmem:[%s15658_s0 + $0x1a2] sm:$0xff] }
  0x67   :  { %10727 = vmatprep.mubr.msk.f32.mxu1 %vm95_vm0, %v8808_v41  ;;  %v12498_v41 = vld [vmem:[%s15658_s0 + $0x52] sm:$0xff] }
  0x69   :  { %10224 = vmatmul.mubr.msk.f32.gmra.mrb[14].mxu0 %vm95_vm0, %v35_v42  ;;  %v12503_v42 = vld [vmem:[%s15658_s0 + $0x1aa] sm:$0xff] }
  0x6a   :  { %10728 = vmatmul.mubr.msk.f32.gmra.mrb[14].mxu1 %vm95_vm0, %v8809_v43  ;;  %10226 = vmatprep.mubr.msk.f32.mxu0 %vm95_vm0, %v36_v44  ;;  %v12514_v43 = vld [vmem:[%s15658_s0 + $0x5a] sm:$0xff]  ;;  %v12521_v44 = vld [vmem:[%s15658_s0 + $0x1b2] sm:$0xff] }
  0x6b   :  { %10730 = vmatprep.mubr.msk.f32.mxu1 %vm95_vm0, %v8810_v45  ;;  %v12526_v45 = vld [vmem:[%s15658_s0 + $0x62] sm:$0xff] }
  0x6d   :  { %10227 = vmatmul.mubr.msk.f32.gmra.mrb[16].mxu0 %vm95_vm0, %v37_v46  ;;  %v12531_v46 = vld [vmem:[%s15658_s0 + $0x1ba] sm:$0xff] }
  0x6e   :  { %10731 = vmatmul.mubr.msk.f32.gmra.mrb[16].mxu1 %vm95_vm0, %v8811_v47  ;;  %10229 = vmatprep.mubr.msk.f32.mxu0 %vm95_vm0, %v38_v48  ;;  %v12542_v47 = vld [vmem:[%s15658_s0 + $0x6a] sm:$0xff]  ;;  %v12549_v48 = vld [vmem:[%s15658_s0 + $0x1c2] sm:$0xff] }
  0x6f   :  { %10733 = vmatprep.mubr.msk.f32.mxu1 %vm95_vm0, %v8812_v49  ;;  %v12554_v49 = vld [vmem:[%s15658_s0 + $0x72] sm:$0xff] }
  0x71   :  { %10230 = vmatmul.mubr.msk.f32.gmra.mrb[18].mxu0 %vm95_vm0, %v39_v50  ;;  %v12559_v50 = vld [vmem:[%s15658_s0 + $0x1ca] sm:$0xff] }
  0x72   :  { %10734 = vmatmul.mubr.msk.f32.gmra.mrb[18].mxu1 %vm95_vm0, %v8813_v51  ;;  %10232 = vmatprep.mubr.msk.f32.mxu0 %vm95_vm0, %v40_v52  ;;  %v12570_v51 = vld [vmem:[%s15658_s0 + $0x7a] sm:$0xff]  ;;  %v12577_v52 = vld [vmem:[%s15658_s0 + $0x1d2] sm:$0xff] }
  0x73   :  { %10736 = vmatprep.mubr.msk.f32.mxu1 %vm95_vm0, %v8814_v53  ;;  %v12582_v53 = vld [vmem:[%s15658_s0 + $0x82] sm:$0xff] }
  0x75   :  { %10233 = vmatmul.mubr.msk.f32.gmra.mrb[20].mxu0 %vm95_vm0, %v41_v54  ;;  %v12587_v54 = vld [vmem:[%s15658_s0 + $0x1da] sm:$0xff] }
  0x76   :  { %10737 = vmatmul.mubr.msk.f32.gmra.mrb[20].mxu1 %vm95_vm0, %v8815_v55  ;;  %10235 = vmatprep.mubr.msk.f32.mxu0 %vm95_vm0, %v42_v56  ;;  %v12598_v55 = vld [vmem:[%s15658_s0 + $0x8a] sm:$0xff]  ;;  %v12605_v56 = vld [vmem:[%s15658_s0 + $0x1e2] sm:$0xff] }
  0x77   :  { %10739 = vmatprep.mubr.msk.f32.mxu1 %vm95_vm0, %v8816_v57  ;;  %v12610_v57 = vld [vmem:[%s15658_s0 + $0x92] sm:$0xff] }
  0x79   :  { %10236 = vmatmul.mubr.msk.f32.gmra.mrb[22].mxu0 %vm95_vm0, %v43_v58  ;;  %v12615_v58 = vld [vmem:[%s15658_s0 + $0x1ea] sm:$0xff] }
  0x7a   :  { %10740 = vmatmul.mubr.msk.f32.gmra.mrb[22].mxu1 %vm95_vm0, %v8817_v59  ;;  %10238 = vmatprep.mubr.msk.f32.mxu0 %vm95_vm0, %v44_v60  ;;  %v12626_v59 = vld [vmem:[%s15658_s0 + $0x9a] sm:$0xff]  ;;  %v12633_v60 = vld [vmem:[%s15658_s0 + $0x1f2] sm:$0xff] }
  0x7b   :  { %10742 = vmatprep.mubr.msk.f32.mxu1 %vm95_vm0, %v8818_v61  ;;  %v12638_v61 = vld [vmem:[%s15658_s0 + $0xa2] sm:$0xff] }
  0x7d   :  { %10239 = vmatmul.mubr.msk.f32.gmra.mrb[24].mxu0 %vm95_vm0, %v45_v62  ;;  %v12643_v62 = vld [vmem:[%s15658_s0 + $0x1fa] sm:$0xff] }
  0x7e   :  { %10743 = vmatmul.mubr.msk.f32.gmra.mrb[24].mxu1 %vm95_vm0, %v8819_v63  ;;  %10241 = vmatprep.mubr.msk.f32.mxu0 %vm95_vm0, %v46_v0  ;;  %v12654_v63 = vld [vmem:[%s15658_s0 + $0xaa] sm:$0xff]  ;;  %v12661_v0 = vld [vmem:[%s15658_s0 + $0x202] sm:$0xff] }
  0x7f   :  { %10745 = vmatprep.mubr.msk.f32.mxu1 %vm95_vm0, %v8820_v1  ;;  %v12666_v1 = vld [vmem:[%s15658_s0 + $0xb2] sm:$0xff] }
  0x81   :  { %10242 = vmatmul.mubr.msk.f32.gmra.mrb[26].mxu0 %vm95_vm0, %v47_v2  ;;  %v12671_v2 = vld [vmem:[%s15658_s0 + $0x20a] sm:$0xff] }
  0x82   :  { %10746 = vmatmul.mubr.msk.f32.gmra.mrb[26].mxu1 %vm95_vm0, %v8821_v3  ;;  %10244 = vmatprep.mubr.msk.f32.mxu0 %vm95_vm0, %v48_v4  ;;  %v12682_v3 = vld [vmem:[%s15658_s0 + $0xba] sm:$0xff]  ;;  %v12689_v4 = vld [vmem:[%s15658_s0 + $0x212] sm:$0xff] }
  0x83   :  { %10748 = vmatprep.mubr.msk.f32.mxu1 %vm95_vm0, %v8822_v5  ;;  %v12694_v5 = vld [vmem:[%s15658_s0 + $0xc2] sm:$0xff] }
  0x85   :  { %10245 = vmatmul.mubr.msk.f32.gmra.mrb[28].mxu0 %vm95_vm0, %v49_v6  ;;  %v12699_v6 = vld [vmem:[%s15658_s0 + $0x21a] sm:$0xff] }
  0x86   :  { %10749 = vmatmul.mubr.msk.f32.gmra.mrb[28].mxu1 %vm95_vm0, %v8823_v7  ;;  %10247 = vmatprep.mubr.msk.f32.mxu0 %vm95_vm0, %v50_v8  ;;  %v12710_v7 = vld [vmem:[%s15658_s0 + $0xca] sm:$0xff]  ;;  %v12717_v8 = vld [vmem:[%s15658_s0 + $0x222] sm:$0xff] }
  0x87   :  { %10751 = vmatprep.mubr.msk.f32.mxu1 %vm95_vm0, %v8824_v9  ;;  %v12722_v9 = vld [vmem:[%s15658_s0 + $0xd2] sm:$0xff] }
  0x89   :  { %10248 = vmatmul.mubr.msk.f32.gmra.mrb[30].mxu0 %vm95_vm0, %v51_v10  ;;  %v12727_v10 = vld [vmem:[%s15658_s0 + $0x22a] sm:$0xff] }
  0x8a   :  { %10752 = vmatmul.mubr.msk.f32.gmra.mrb[30].mxu1 %vm95_vm0, %v8825_v11  ;;  %10250 = vmatprep.mubr.msk.f32.mxu0 %vm95_vm0, %v52_v12  ;;  %v12738_v11 = vld [vmem:[%s15658_s0 + $0xda] sm:$0xff]  ;;  %v12745_v12 = vld [vmem:[%s15658_s0 + $0x232] sm:$0xff] }
  0x8b   :  { %10754 = vmatprep.mubr.msk.f32.mxu1 %vm95_vm0, %v8826_v13  ;;  %v12750_v13 = vld [vmem:[%s15658_s0 + $0xe2] sm:$0xff] }
  0x8d   :  { %10251 = vmatmul.mubr.msk.f32.gmra.mrb[32].mxu0 %vm95_vm0, %v53_v14  ;;  %v12755_v14 = vld [vmem:[%s15658_s0 + $0x23a] sm:$0xff] }
  0x8e   :  { %10755 = vmatmul.mubr.msk.f32.gmra.mrb[32].mxu1 %vm95_vm0, %v8827_v15  ;;  %10253 = vmatprep.mubr.msk.f32.mxu0 %vm95_vm0, %v54_v16  ;;  %v12766_v15 = vld [vmem:[%s15658_s0 + $0xea] sm:$0xff]  ;;  %v12773_v16 = vld [vmem:[%s15658_s0 + $0x242] sm:$0xff] }
  0x8f   :  { %10757 = vmatprep.mubr.msk.f32.mxu1 %vm95_vm0, %v8828_v18  ;;  %v12778_v18 = vld [vmem:[%s15658_s0 + $0xf2] sm:$0xff] }
  0x91   :  { %10254 = vmatmul.mubr.msk.f32.gmra.mrb[34].mxu0 %vm95_vm0, %v55_v19  ;;  %v12783_v19 = vld [vmem:[%s15658_s0 + $0x24a] sm:$0xff] }
  0x92   :  { %10758 = vmatmul.mubr.msk.f32.gmra.mrb[34].mxu1 %vm95_vm0, %v8829_v20  ;;  %10258 = vmatprep.mubr.msk.f32.mxu0 %vm95_vm0, %v802_v21  ;;  %15711 = vst [vmem:[#allocation2_spill] sm:$0xff] %v12783_v19  ;;  %v12794_v20 = vld [vmem:[%s15658_s0 + $0xfa] sm:$0xff]  ;;  %v12801_v21 = vld [vmem:[%s15658_s0 + $0x252] sm:$0xff] }
  0x93   :  { %10762 = vmatprep.mubr.msk.f32.mxu1 %vm95_vm0, %v8938_v22  ;;  %15712 = vst [vmem:[#allocation3_spill] sm:$0xff] %v12794_v20  ;;  %15713 = vst [vmem:[#allocation4_spill] sm:$0xff] %v12801_v21  ;;  %v12806_v22 = vld [vmem:[%s15658_s0 + $0x102] sm:$0xff] }
  0x94   :  { %15714 = vst [vmem:[#allocation5_spill] sm:$0xff] %v12806_v22 }
  0x95   :  { %10259 = vmatmul.mubr.msk.f32.vlgmr.msra.gmra.mrb[0].mxu0 %vm95_vm0, %v803_v23  ;;  %v12811_v23 = vld [vmem:[%s15658_s0 + $0x25a] sm:$0xff] }
  0x96   :  { %10763 = vmatmul.mubr.msk.f32.vlgmr.msra.gmra.mrb[0].mxu1 %vm95_vm0, %v8939_v24  ;;  %10313 = vmatpush3.msra.mxu0 %v12089_v17  ;;  %15715 = vst [vmem:[#allocation6_spill] sm:$0xff] %v12811_v23  ;;  %v12822_v24 = vld [vmem:[%s15658_s0 + $0x10a] sm:$0xff] }
  0x97   :  { %10817 = vmatpush3.msra.mxu1 %v12089_v17  ;;  %10261 = vmatprep.mubr.msk.f32.mxu0 %vm95_vm0, %v12379_v25  ;;  %v12417_v17 = vld [vmem:[%s15658_s0 + $0x17a] sm:$0xff] }
  0x98   :  { %10765 = vmatprep.mubr.msk.f32.mxu1 %vm95_vm0, %v12385_v26  ;;  %10368 = vmatprep.subr.mxu0 %v12390_v27 }
  0x99   :  { %10262 = vmatmul.mubr.msk.f32.gmra.mrb[2].mxu0 %vm95_vm0, %v12397_v28  ;;  %10872 = vmatprep.subr.mxu1 %v12390_v27 }
  0x9a   :  { %10766 = vmatmul.mubr.msk.f32.gmra.mrb[2].mxu1 %vm95_vm0, %v12405_v29  ;;  %10264 = vmatprep.mubr.msk.f32.mxu0 %vm95_vm0, %v12410_v30 }
  0x9b   :  { %10768 = vmatprep.mubr.msk.f32.mxu1 %vm95_vm0, %v12417_v17 }
  0x9d   :  { %10265 = vmatmul.mubr.msk.f32.gmra.mrb[4].mxu0 %vm95_vm0, %v12430_v31 }
  0x9e   :  { %10769 = vmatmul.mubr.msk.f32.gmra.mrb[4].mxu1 %vm95_vm0, %v12437_v32  ;;  %10267 = vmatprep.mubr.msk.f32.mxu0 %vm95_vm0, %v12442_v33 }
  0x9f   :  { %10771 = vmatprep.mubr.msk.f32.mxu1 %vm95_vm0, %v12447_v34 }
  0xa1   :  { %10268 = vmatmul.mubr.msk.f32.gmra.mrb[6].mxu0 %vm95_vm0, %v12458_v35 }
  0xa2   :  { %10772 = vmatmul.mubr.msk.f32.gmra.mrb[6].mxu1 %vm95_vm0, %v12465_v36  ;;  %10270 = vmatprep.mubr.msk.f32.mxu0 %vm95_vm0, %v12470_v37 }
  0xa3   :  { %10774 = vmatprep.mubr.msk.f32.mxu1 %vm95_vm0, %v12475_v38 }
  0xa5   :  { %10271 = vmatmul.mubr.msk.f32.gmra.mrb[8].mxu0 %vm95_vm0, %v12486_v39 }
  0xa6   :  { %10775 = vmatmul.mubr.msk.f32.gmra.mrb[8].mxu1 %vm95_vm0, %v12493_v40  ;;  %10273 = vmatprep.mubr.msk.f32.mxu0 %vm95_vm0, %v12498_v41 }
  0xa7   :  { %10777 = vmatprep.mubr.msk.f32.mxu1 %vm95_vm0, %v12503_v42 }
  0xa9   :  { %10274 = vmatmul.mubr.msk.f32.gmra.mrb[10].mxu0 %vm95_vm0, %v12514_v43 }
  0xaa   :  { %10778 = vmatmul.mubr.msk.f32.gmra.mrb[10].mxu1 %vm95_vm0, %v12521_v44  ;;  %10276 = vmatprep.mubr.msk.f32.mxu0 %vm95_vm0, %v12526_v45 }
  0xab   :  { %10780 = vmatprep.mubr.msk.f32.mxu1 %vm95_vm0, %v12531_v46 }
  0xad   :  { %10277 = vmatmul.mubr.msk.f32.gmra.mrb[12].mxu0 %vm95_vm0, %v12542_v47 }
  0xae   :  { %10781 = vmatmul.mubr.msk.f32.gmra.mrb[12].mxu1 %vm95_vm0, %v12549_v48  ;;  %10279 = vmatprep.mubr.msk.f32.mxu0 %vm95_vm0, %v12554_v49 }
  0xaf   :  { %10783 = vmatprep.mubr.msk.f32.mxu1 %vm95_vm0, %v12559_v50 }
  0xb1   :  { %10280 = vmatmul.mubr.msk.f32.gmra.mrb[14].mxu0 %vm95_vm0, %v12570_v51 }
  0xb2   :  { %10784 = vmatmul.mubr.msk.f32.gmra.mrb[14].mxu1 %vm95_vm0, %v12577_v52  ;;  %10282 = vmatprep.mubr.msk.f32.mxu0 %vm95_vm0, %v12582_v53 }
  0xb3   :  { %10786 = vmatprep.mubr.msk.f32.mxu1 %vm95_vm0, %v12587_v54 }
  0xb5   :  { %10283 = vmatmul.mubr.msk.f32.gmra.mrb[16].mxu0 %vm95_vm0, %v12598_v55 }
  0xb6   :  { %10787 = vmatmul.mubr.msk.f32.gmra.mrb[16].mxu1 %vm95_vm0, %v12605_v56  ;;  %10285 = vmatprep.mubr.msk.f32.mxu0 %vm95_vm0, %v12610_v57 }
  0xb7   :  { %10789 = vmatprep.mubr.msk.f32.mxu1 %vm95_vm0, %v12615_v58 }
  0xb9   :  { %10286 = vmatmul.mubr.msk.f32.gmra.mrb[18].mxu0 %vm95_vm0, %v12626_v59 }
  0xba   :  { %10790 = vmatmul.mubr.msk.f32.gmra.mrb[18].mxu1 %vm95_vm0, %v12633_v60  ;;  %10288 = vmatprep.mubr.msk.f32.mxu0 %vm95_vm0, %v12638_v61 }
  0xbb   :  { %10792 = vmatprep.mubr.msk.f32.mxu1 %vm95_vm0, %v12643_v62 }
  0xbd   :  { %10289 = vmatmul.mubr.msk.f32.gmra.mrb[20].mxu0 %vm95_vm0, %v12654_v63 }
  0xbe   :  { %10793 = vmatmul.mubr.msk.f32.gmra.mrb[20].mxu1 %vm95_vm0, %v12661_v0  ;;  %10291 = vmatprep.mubr.msk.f32.mxu0 %vm95_vm0, %v12666_v1 }
  0xbf   :  { %10795 = vmatprep.mubr.msk.f32.mxu1 %vm95_vm0, %v12671_v2 }
  0xc1   :  { %10292 = vmatmul.mubr.msk.f32.gmra.mrb[22].mxu0 %vm95_vm0, %v12682_v3 }
  0xc2   :  { %10796 = vmatmul.mubr.msk.f32.gmra.mrb[22].mxu1 %vm95_vm0, %v12689_v4  ;;  %10294 = vmatprep.mubr.msk.f32.mxu0 %vm95_vm0, %v12694_v5 }
  0xc3   :  { %10798 = vmatprep.mubr.msk.f32.mxu1 %vm95_vm0, %v12699_v6 }
  0xc5   :  { %10295 = vmatmul.mubr.msk.f32.gmra.mrb[24].mxu0 %vm95_vm0, %v12710_v7 }
  0xc6   :  { %10799 = vmatmul.mubr.msk.f32.gmra.mrb[24].mxu1 %vm95_vm0, %v12717_v8  ;;  %10297 = vmatprep.mubr.msk.f32.mxu0 %vm95_vm0, %v12722_v9 }
  0xc7   :  { %10801 = vmatprep.mubr.msk.f32.mxu1 %vm95_vm0, %v12727_v10 }
  0xc9   :  { %10298 = vmatmul.mubr.msk.f32.gmra.mrb[26].mxu0 %vm95_vm0, %v12738_v11 }
  0xca   :  { %10802 = vmatmul.mubr.msk.f32.gmra.mrb[26].mxu1 %vm95_vm0, %v12745_v12  ;;  %10300 = vmatprep.mubr.msk.f32.mxu0 %vm95_vm0, %v12750_v13 }
  0xcb   :  { %10804 = vmatprep.mubr.msk.f32.mxu1 %vm95_vm0, %v12755_v14 }
  0xcd   :  { %10301 = vmatmul.mubr.msk.f32.gmra.mrb[28].mxu0 %vm95_vm0, %v12766_v15 }
  0xce   :  { %10805 = vmatmul.mubr.msk.f32.gmra.mrb[28].mxu1 %vm95_vm0, %v12773_v16  ;;  %10303 = vmatprep.mubr.msk.f32.mxu0 %vm95_vm0, %v12778_v18 }
  0xcf   :  { %10807 = vmatprep.mubr.msk.f32.mxu1 %vm95_vm0, %v12783_v19  ;;  %v12829_v19 = vld [vmem:[%s15658_s0 + $0x262] sm:$0xff] }
  0xd1   :  { %10304 = vmatmul.mubr.msk.f32.gmra.mrb[30].mxu0 %vm95_vm0, %v12794_v20  ;;  %v12857_v20 = vld [vmem:[%s15658_s0 + $0x272] sm:$0xff] }
  0xd2   :  { %10808 = vmatmul.mubr.msk.f32.gmra.mrb[30].mxu1 %vm95_vm0, %v12801_v21  ;;  %10306 = vmatprep.mubr.msk.f32.mxu0 %vm95_vm0, %v12806_v22  ;;  %v12834_v21 = vld [vmem:[%s15658_s0 + $0x112] sm:$0xff]  ;;  %v12839_v22 = vld [vmem:[%s15658_s0 + $0x26a] sm:$0xff] }
  0xd3   :  { %10810 = vmatprep.mubr.msk.f32.mxu1 %vm95_vm0, %v12811_v23  ;;  %15716 = vst [vmem:[#allocation7_spill] sm:$0xff] %v12839_v22  ;;  %v12850_v23 = vld [vmem:[%s15658_s0 + $0x11a] sm:$0xff] }
  0xd5   :  { %10307 = vmatmul.mubr.msk.f32.gmra.mrb[32].mxu0 %vm95_vm0, %v12822_v24 }
  0xd6   :  { %10811 = vmatmul.mubr.msk.f32.gmra.mrb[32].mxu1 %vm95_vm0, %v12829_v19  ;;  %10309 = vmatprep.mubr.msk.f32.mxu0 %vm95_vm0, %v12834_v21 }
  0xd7   :  { %10813 = vmatprep.mubr.msk.f32.mxu1 %vm95_vm0, %v12839_v22  ;;  %v12872_v22 = vld [vmem:[%s15657_s1 + $0x28] sm:$0xff] }
  0xd9   :  { %10310 = vmatmul.mubr.msk.f32.gmra.mrb[34].mxu0 %vm95_vm0, %v12850_v23 }
  0xda   :  { %10814 = vmatmul.mubr.msk.f32.gmra.mrb[34].mxu1 %vm95_vm0, %v12857_v20  ;;  %10314 = vmatprep.mubr.msk.f32.mxu0 %vm95_vm0, %v12379_v25  ;;  %v15717_v25 = vld [vmem:[#allocation2_spill] sm:$0xff] }
  0xdb   :  { %10818 = vmatprep.mubr.msk.f32.mxu1 %vm95_vm0, %v12385_v26  ;;  %v15718_v26 = vld [vmem:[#allocation3_spill] sm:$0xff] }
  0xdd   :  { %10315 = vmatmul.mubr.msk.f32.vlgmr.msra.gmra.mrb[0].mxu0 %vm95_vm0, %v12397_v28  ;;  %v15720_v28 = vld [vmem:[#allocation5_spill] sm:$0xff] }
  0xde   :  { %10819 = vmatmul.mubr.msk.f32.vlgmr.msra.gmra.mrb[0].mxu1 %vm95_vm0, %v12405_v29  ;;  %10369 = vmatpush3.msra.mxu0 %v12390_v27  ;;  %v15721_v29 = vld [vmem:[#allocation6_spill] sm:$0xff] }
  0xdf   :  { %10873 = vmatpush3.msra.mxu1 %v12390_v27  ;;  %10317 = vmatprep.mubr.msk.f32.mxu0 %vm95_vm0, %v12410_v30  ;;  %v15719_v27 = vld [vmem:[#allocation4_spill] sm:$0xff]  ;;  %v15722_v30 = vld [vmem:[#allocation7_spill] sm:$0xff] }
  0xe0   :  { %10821 = vmatprep.mubr.msk.f32.mxu1 %vm95_vm0, %v12417_v17  ;;  %10424 = vmatprep.subr.mxu0 %v12872_v22  ;;  %v1263_v17 = vld [vmem:[%s15658_s0 + $0x122] sm:$0xff] }
  0xe1   :  { %10318 = vmatmul.mubr.msk.f32.gmra.mrb[2].mxu0 %vm95_vm0, %v12430_v31  ;;  %10928 = vmatprep.subr.mxu1 %v12872_v22  ;;  %v9044_v31 = vld [vmem:[%s15658_s0 + $0x27a] sm:$0xff] }
  0xe2   :  { %10822 = vmatmul.mubr.msk.f32.gmra.mrb[2].mxu1 %vm95_vm0, %v12437_v32  ;;  %10320 = vmatprep.mubr.msk.f32.mxu0 %vm95_vm0, %v12442_v33  ;;  %v1264_v32 = vld [vmem:[%s15658_s0 + $0x12a] sm:$0xff]  ;;  %v9045_v33 = vld [vmem:[%s15658_s0 + $0x282] sm:$0xff] }
  0xe3   :  { %10824 = vmatprep.mubr.msk.f32.mxu1 %vm95_vm0, %v12447_v34  ;;  %v1656_v34 = vld [vmem:[%s15658_s0 + $0x13] sm:$0xff] }
  0xe5   :  { %10321 = vmatmul.mubr.msk.f32.gmra.mrb[4].mxu0 %vm95_vm0, %v12458_v35  ;;  %v9082_v35 = vld [vmem:[%s15658_s0 + $0x16b] sm:$0xff] }
  0xe6   :  { %10825 = vmatmul.mubr.msk.f32.gmra.mrb[4].mxu1 %vm95_vm0, %v12465_v36  ;;  %10323 = vmatprep.mubr.msk.f32.mxu0 %vm95_vm0, %v12470_v37  ;;  %v1657_v36 = vld [vmem:[%s15658_s0 + $0x1b] sm:$0xff]  ;;  %v9083_v37 = vld [vmem:[%s15658_s0 + $0x173] sm:$0xff] }
  0xe7   :  { %10827 = vmatprep.mubr.msk.f32.mxu1 %vm95_vm0, %v12475_v38  ;;  %v1658_v38 = vld [vmem:[%s15658_s0 + $0x23] sm:$0xff] }
  0xe9   :  { %10324 = vmatmul.mubr.msk.f32.gmra.mrb[6].mxu0 %vm95_vm0, %v12486_v39  ;;  %v9084_v39 = vld [vmem:[%s15658_s0 + $0x17b] sm:$0xff] }
  0xea   :  { %10828 = vmatmul.mubr.msk.f32.gmra.mrb[6].mxu1 %vm95_vm0, %v12493_v40  ;;  %10326 = vmatprep.mubr.msk.f32.mxu0 %vm95_vm0, %v12498_v41  ;;  %v13048_v40 = vld [vmem:[%s15657_s1 + $0x30] sm:$0xff] }
  0xeb   :  { %10830 = vmatprep.mubr.msk.f32.mxu1 %vm95_vm0, %v12503_v42  ;;  %v1659_v41 = vld [vmem:[%s15658_s0 + $0x2b] sm:$0xff]  ;;  %v9085_v42 = vld [vmem:[%s15658_s0 + $0x183] sm:$0xff] }
  0xed   :  { %10327 = vmatmul.mubr.msk.f32.gmra.mrb[8].mxu0 %vm95_vm0, %v12514_v43  ;;  %v1660_v43 = vld [vmem:[%s15658_s0 + $0x33] sm:$0xff] }
  0xee   :  { %10831 = vmatmul.mubr.msk.f32.gmra.mrb[8].mxu1 %vm95_vm0, %v12521_v44  ;;  %10329 = vmatprep.mubr.msk.f32.mxu0 %vm95_vm0, %v12526_v45  ;;  %v9086_v44 = vld [vmem:[%s15658_s0 + $0x18b] sm:$0xff]  ;;  %v1661_v45 = vld [vmem:[%s15658_s0 + $0x3b] sm:$0xff] }
  0xef   :  { %10833 = vmatprep.mubr.msk.f32.mxu1 %vm95_vm0, %v12531_v46  ;;  %v9087_v46 = vld [vmem:[%s15658_s0 + $0x193] sm:$0xff] }
  0xf1   :  { %10330 = vmatmul.mubr.msk.f32.gmra.mrb[10].mxu0 %vm95_vm0, %v12542_v47  ;;  %v1662_v47 = vld [vmem:[%s15658_s0 + $0x43] sm:$0xff] }
  0xf2   :  { %10834 = vmatmul.mubr.msk.f32.gmra.mrb[10].mxu1 %vm95_vm0, %v12549_v48  ;;  %10332 = vmatprep.mubr.msk.f32.mxu0 %vm95_vm0, %v12554_v49  ;;  %v9088_v48 = vld [vmem:[%s15658_s0 + $0x19b] sm:$0xff]  ;;  %v1663_v49 = vld [vmem:[%s15658_s0 + $0x4b] sm:$0xff] }
  0xf3   :  { %10836 = vmatprep.mubr.msk.f32.mxu1 %vm95_vm0, %v12559_v50  ;;  %v9089_v50 = vld [vmem:[%s15658_s0 + $0x1a3] sm:$0xff] }
  0xf5   :  { %10333 = vmatmul.mubr.msk.f32.gmra.mrb[12].mxu0 %vm95_vm0, %v12570_v51  ;;  %v1664_v51 = vld [vmem:[%s15658_s0 + $0x53] sm:$0xff] }
  0xf6   :  { %10837 = vmatmul.mubr.msk.f32.gmra.mrb[12].mxu1 %vm95_vm0, %v12577_v52  ;;  %10335 = vmatprep.mubr.msk.f32.mxu0 %vm95_vm0, %v12582_v53  ;;  %v9090_v52 = vld [vmem:[%s15658_s0 + $0x1ab] sm:$0xff]  ;;  %v1665_v53 = vld [vmem:[%s15658_s0 + $0x5b] sm:$0xff] }
  0xf7   :  { %10839 = vmatprep.mubr.msk.f32.mxu1 %vm95_vm0, %v12587_v54  ;;  %v9091_v54 = vld [vmem:[%s15658_s0 + $0x1b3] sm:$0xff] }
  0xf9   :  { %10336 = vmatmul.mubr.msk.f32.gmra.mrb[14].mxu0 %vm95_vm0, %v12598_v55  ;;  %v1666_v55 = vld [vmem:[%s15658_s0 + $0x63] sm:$0xff] }
  0xfa   :  { %10840 = vmatmul.mubr.msk.f32.gmra.mrb[14].mxu1 %vm95_vm0, %v12605_v56  ;;  %10338 = vmatprep.mubr.msk.f32.mxu0 %vm95_vm0, %v12610_v57  ;;  %v9092_v56 = vld [vmem:[%s15658_s0 + $0x1bb] sm:$0xff]  ;;  %v1667_v57 = vld [vmem:[%s15658_s0 + $0x6b] sm:$0xff] }
  0xfb   :  { %10842 = vmatprep.mubr.msk.f32.mxu1 %vm95_vm0, %v12615_v58  ;;  %v9093_v58 = vld [vmem:[%s15658_s0 + $0x1c3] sm:$0xff] }
  0xfd   :  { %10339 = vmatmul.mubr.msk.f32.gmra.mrb[16].mxu0 %vm95_vm0, %v12626_v59  ;;  %v1668_v59 = vld [vmem:[%s15658_s0 + $0x73] sm:$0xff] }
  0xfe   :  { %10843 = vmatmul.mubr.msk.f32.gmra.mrb[16].mxu1 %vm95_vm0, %v12633_v60  ;;  %10341 = vmatprep.mubr.msk.f32.mxu0 %vm95_vm0, %v12638_v61  ;;  %v9094_v60 = vld [vmem:[%s15658_s0 + $0x1cb] sm:$0xff]  ;;  %v1669_v61 = vld [vmem:[%s15658_s0 + $0x7b] sm:$0xff] }
  0xff   :  { %10845 = vmatprep.mubr.msk.f32.mxu1 %vm95_vm0, %v12643_v62  ;;  %v9095_v62 = vld [vmem:[%s15658_s0 + $0x1d3] sm:$0xff] }
 0x101   :  { %10342 = vmatmul.mubr.msk.f32.gmra.mrb[18].mxu0 %vm95_vm0, %v12654_v63  ;;  %v1670_v63 = vld [vmem:[%s15658_s0 + $0x83] sm:$0xff] }
 0x102   :  { %10846 = vmatmul.mubr.msk.f32.gmra.mrb[18].mxu1 %vm95_vm0, %v12661_v0  ;;  %10344 = vmatprep.mubr.msk.f32.mxu0 %vm95_vm0, %v12666_v1  ;;  %v9096_v0 = vld [vmem:[%s15658_s0 + $0x1db] sm:$0xff]  ;;  %v1671_v1 = vld [vmem:[%s15658_s0 + $0x8b] sm:$0xff] }
 0x103   :  { %10848 = vmatprep.mubr.msk.f32.mxu1 %vm95_vm0, %v12671_v2  ;;  %v9097_v2 = vld [vmem:[%s15658_s0 + $0x1e3] sm:$0xff] }
 0x105   :  { %10345 = vmatmul.mubr.msk.f32.gmra.mrb[20].mxu0 %vm95_vm0, %v12682_v3  ;;  %v1672_v3 = vld [vmem:[%s15658_s0 + $0x93] sm:$0xff] }
 0x106   :  { %10849 = vmatmul.mubr.msk.f32.gmra.mrb[20].mxu1 %vm95_vm0, %v12689_v4  ;;  %10347 = vmatprep.mubr.msk.f32.mxu0 %vm95_vm0, %v12694_v5  ;;  %v9098_v4 = vld [vmem:[%s15658_s0 + $0x1eb] sm:$0xff]  ;;  %v1673_v5 = vld [vmem:[%s15658_s0 + $0x9b] sm:$0xff] }
 0x107   :  { %10851 = vmatprep.mubr.msk.f32.mxu1 %vm95_vm0, %v12699_v6  ;;  %v9099_v6 = vld [vmem:[%s15658_s0 + $0x1f3] sm:$0xff] }
 0x109   :  { %10348 = vmatmul.mubr.msk.f32.gmra.mrb[22].mxu0 %vm95_vm0, %v12710_v7  ;;  %v1674_v7 = vld [vmem:[%s15658_s0 + $0xa3] sm:$0xff] }
 0x10a   :  { %10852 = vmatmul.mubr.msk.f32.gmra.mrb[22].mxu1 %vm95_vm0, %v12717_v8  ;;  %10350 = vmatprep.mubr.msk.f32.mxu0 %vm95_vm0, %v12722_v9  ;;  %v9100_v8 = vld [vmem:[%s15658_s0 + $0x1fb] sm:$0xff]  ;;  %v1675_v9 = vld [vmem:[%s15658_s0 + $0xab] sm:$0xff] }
 0x10b   :  { %10854 = vmatprep.mubr.msk.f32.mxu1 %vm95_vm0, %v12727_v10  ;;  %v9101_v10 = vld [vmem:[%s15658_s0 + $0x203] sm:$0xff] }
 0x10d   :  { %10351 = vmatmul.mubr.msk.f32.gmra.mrb[24].mxu0 %vm95_vm0, %v12738_v11  ;;  %v1676_v11 = vld [vmem:[%s15658_s0 + $0xb3] sm:$0xff] }
 0x10e   :  { %10855 = vmatmul.mubr.msk.f32.gmra.mrb[24].mxu1 %vm95_vm0, %v12745_v12  ;;  %10353 = vmatprep.mubr.msk.f32.mxu0 %vm95_vm0, %v12750_v13  ;;  %v9102_v12 = vld [vmem:[%s15658_s0 + $0x20b] sm:$0xff]  ;;  %v1677_v13 = vld [vmem:[%s15658_s0 + $0xbb] sm:$0xff] }
 0x10f   :  { %10857 = vmatprep.mubr.msk.f32.mxu1 %vm95_vm0, %v12755_v14  ;;  %v9103_v14 = vld [vmem:[%s15658_s0 + $0x213] sm:$0xff] }
 0x111   :  { %10354 = vmatmul.mubr.msk.f32.gmra.mrb[26].mxu0 %vm95_vm0, %v12766_v15  ;;  %v1678_v15 = vld [vmem:[%s15658_s0 + $0xc3] sm:$0xff] }
 0x112   :  { %10858 = vmatmul.mubr.msk.f32.gmra.mrb[26].mxu1 %vm95_vm0, %v12773_v16  ;;  %10356 = vmatprep.mubr.msk.f32.mxu0 %vm95_vm0, %v12778_v18  ;;  %v9104_v16 = vld [vmem:[%s15658_s0 + $0x21b] sm:$0xff]  ;;  %v1679_v18 = vld [vmem:[%s15658_s0 + $0xcb] sm:$0xff] }
 0x113   :  { %10860 = vmatprep.mubr.msk.f32.mxu1 %vm95_vm0, %v15717_v25  ;;  %v9108_v25 = vld [vmem:[%s15658_s0 + $0x23b] sm:$0xff] }
 0x115   :  { %10357 = vmatmul.mubr.msk.f32.gmra.mrb[28].mxu0 %vm95_vm0, %v15718_v26  ;;  %v1683_v26 = vld [vmem:[%s15658_s0 + $0xeb] sm:$0xff] }
 0x116   :  { %10861 = vmatmul.mubr.msk.f32.gmra.mrb[28].mxu1 %vm95_vm0, %v15719_v27  ;;  %10359 = vmatprep.mubr.msk.f32.mxu0 %vm95_vm0, %v15720_v28  ;;  %v9109_v27 = vld [vmem:[%s15658_s0 + $0x243] sm:$0xff]  ;;  %v1684_v28 = vld [vmem:[%s15658_s0 + $0xf3] sm:$0xff] }
 0x117   :  { %10863 = vmatprep.mubr.msk.f32.mxu1 %vm95_vm0, %v15721_v29  ;;  %v9110_v29 = vld [vmem:[%s15658_s0 + $0x24b] sm:$0xff] }
 0x119   :  { %10360 = vmatmul.mubr.msk.f32.gmra.mrb[30].mxu0 %vm95_vm0, %v12822_v24  ;;  %v1682_v24 = vld [vmem:[%s15658_s0 + $0xe3] sm:$0xff] }
 0x11a   :  { %10864 = vmatmul.mubr.msk.f32.gmra.mrb[30].mxu1 %vm95_vm0, %v12829_v19  ;;  %10362 = vmatprep.mubr.msk.f32.mxu0 %vm95_vm0, %v12834_v21  ;;  %v9105_v19 = vld [vmem:[%s15658_s0 + $0x223] sm:$0xff]  ;;  %v9106_v21 = vld [vmem:[%s15658_s0 + $0x22b] sm:$0xff] }
 0x11b   :  { %10866 = vmatprep.mubr.msk.f32.mxu1 %vm95_vm0, %v15722_v30  ;;  %v1685_v30 = vld [vmem:[%s15658_s0 + $0xfb] sm:$0xff] }
 0x11d   :  { %10363 = vmatmul.mubr.msk.f32.gmra.mrb[32].mxu0 %vm95_vm0, %v12850_v23  ;;  %v9107_v23 = vld [vmem:[%s15658_s0 + $0x233] sm:$0xff] }
 0x11e   :  { %10867 = vmatmul.mubr.msk.f32.gmra.mrb[32].mxu1 %vm95_vm0, %v12857_v20  ;;  %10365 = vmatprep.mubr.msk.f32.mxu0 %vm95_vm0, %v1263_v17  ;;  %v1680_v20 = vld [vmem:[%s15658_s0 + $0xd3] sm:$0xff] }
 0x11f   :  { %10869 = vmatprep.mubr.msk.f32.mxu1 %vm95_vm0, %v9044_v31  ;;  %v9111_v17 = vld [vmem:[%s15658_s0 + $0x253] sm:$0xff]  ;;  %v1686_v31 = vld [vmem:[%s15658_s0 + $0x103] sm:$0xff] }
 0x121   :  { %10366 = vmatmul.mubr.msk.f32.gmra.mrb[34].mxu0 %vm95_vm0, %v1264_v32  ;;  %v9112_v32 = vld [vmem:[%s15658_s0 + $0x25b] sm:$0xff] }
 0x122   :  { %10870 = vmatmul.mubr.msk.f32.gmra.mrb[34].mxu1 %vm95_vm0, %v9045_v33  ;;  %10370 = vmatprep.mubr.msk.f32.mxu0 %vm95_vm0, %v1656_v34  ;;  %v1687_v33 = vld [vmem:[%s15658_s0 + $0x10b] sm:$0xff]  ;;  %v9113_v34 = vld [vmem:[%s15658_s0 + $0x263] sm:$0xff] }
 0x123   :  { %10874 = vmatprep.mubr.msk.f32.mxu1 %vm95_vm0, %v9082_v35  ;;  %v1688_v35 = vld [vmem:[%s15658_s0 + $0x113] sm:$0xff] }
 0x125   :  { %10371 = vmatmul.mubr.msk.f32.vlgmr.msra.gmra.mrb[0].mxu0 %vm95_vm0, %v1657_v36  ;;  %v9114_v36 = vld [vmem:[%s15658_s0 + $0x26b] sm:$0xff] }
 0x126   :  { %10875 = vmatmul.mubr.msk.f32.vlgmr.msra.gmra.mrb[0].mxu1 %vm95_vm0, %v9083_v37  ;;  %10425 = vmatpush3.msra.mxu0 %v12872_v22  ;;  %v1689_v37 = vld [vmem:[%s15658_s0 + $0x11b] sm:$0xff] }
 0x127   :  { %10929 = vmatpush3.msra.mxu1 %v12872_v22  ;;  %10373 = vmatprep.mubr.msk.f32.mxu0 %vm95_vm0, %v1658_v38  ;;  %v1681_v22 = vld [vmem:[%s15658_s0 + $0xdb] sm:$0xff]  ;;  %v9115_v38 = vld [vmem:[%s15658_s0 + $0x273] sm:$0xff] }
 0x128   :  { %10877 = vmatprep.mubr.msk.f32.mxu1 %vm95_vm0, %v9084_v39  ;;  %10480 = vmatprep.subr.mxu0 %v13048_v40  ;;  %v1690_v39 = vld [vmem:[%s15658_s0 + $0x123] sm:$0xff] }
 0x129   :  { %10374 = vmatmul.mubr.msk.f32.gmra.mrb[2].mxu0 %vm95_vm0, %v1659_v41  ;;  %10984 = vmatprep.subr.mxu1 %v13048_v40  ;;  %v9116_v41 = vld [vmem:[%s15658_s0 + $0x27b] sm:$0xff] }
 0x12a   :  { %10878 = vmatmul.mubr.msk.f32.gmra.mrb[2].mxu1 %vm95_vm0, %v9085_v42  ;;  %10376 = vmatprep.mubr.msk.f32.mxu0 %vm95_vm0, %v1660_v43  ;;  %v1691_v42 = vld [vmem:[%s15658_s0 + $0x12b] sm:$0xff]  ;;  %v9117_v43 = vld [vmem:[%s15658_s0 + $0x283] sm:$0xff] }
 0x12b   :  { %10880 = vmatprep.mubr.msk.f32.mxu1 %vm95_vm0, %v9086_v44  ;;  %v2083_v44 = vld [vmem:[%s15658_s0 + $0x14] sm:$0xff] }
 0x12d   :  { %10377 = vmatmul.mubr.msk.f32.gmra.mrb[4].mxu0 %vm95_vm0, %v1661_v45  ;;  %v9154_v45 = vld [vmem:[%s15658_s0 + $0x16c] sm:$0xff] }
 0x12e   :  { %10881 = vmatmul.mubr.msk.f32.gmra.mrb[4].mxu1 %vm95_vm0, %v9087_v46  ;;  %10379 = vmatprep.mubr.msk.f32.mxu0 %vm95_vm0, %v1662_v47  ;;  %v2084_v46 = vld [vmem:[%s15658_s0 + $0x1c] sm:$0xff]  ;;  %v9155_v47 = vld [vmem:[%s15658_s0 + $0x174] sm:$0xff] }
 0x12f   :  { %10883 = vmatprep.mubr.msk.f32.mxu1 %vm95_vm0, %v9088_v48  ;;  %v13338_v48 = vld [vmem:[%s15658_s0 + $0x24] sm:$0xff] }
 0x131   :  { %10380 = vmatmul.mubr.msk.f32.gmra.mrb[6].mxu0 %vm95_vm0, %v1663_v49  ;;  %v13344_v49 = vld [vmem:[%s15658_s0 + $0x17c] sm:$0xff] }
 0x132   :  { %10884 = vmatmul.mubr.msk.f32.gmra.mrb[6].mxu1 %vm95_vm0, %v9089_v50  ;;  %10382 = vmatprep.mubr.msk.f32.mxu0 %vm95_vm0, %v1664_v51  ;;  %v13349_v50 = vld [vmem:[%s15657_s1 + $0x38] sm:$0xff]  ;;  %v13356_v51 = vld [vmem:[%s15658_s0 + $0x2c] sm:$0xff] }
 0x133   :  { %10886 = vmatprep.mubr.msk.f32.mxu1 %vm95_vm0, %v9090_v52  ;;  %v13364_v52 = vld [vmem:[%s15658_s0 + $0x184] sm:$0xff] }
 0x135   :  { %10383 = vmatmul.mubr.msk.f32.gmra.mrb[8].mxu0 %vm95_vm0, %v1665_v53  ;;  %v13369_v53 = vld [vmem:[%s15658_s0 + $0x34] sm:$0xff] }
 0x136   :  { %10887 = vmatmul.mubr.msk.f32.gmra.mrb[8].mxu1 %vm95_vm0, %v9091_v54  ;;  %10385 = vmatprep.mubr.msk.f32.mxu0 %vm95_vm0, %v1666_v55  ;;  %v13389_v54 = vld [vmem:[%s15658_s0 + $0x3c] sm:$0xff]  ;;  %v13396_v55 = vld [vmem:[%s15658_s0 + $0x194] sm:$0xff] }
 0x137   :  { %10889 = vmatprep.mubr.msk.f32.mxu1 %vm95_vm0, %v9092_v56  ;;  %v13401_v56 = vld [vmem:[%s15658_s0 + $0x44] sm:$0xff] }
 0x139   :  { %10386 = vmatmul.mubr.msk.f32.gmra.mrb[10].mxu0 %vm95_vm0, %v1667_v57  ;;  %v13406_v57 = vld [vmem:[%s15658_s0 + $0x19c] sm:$0xff] }
 0x13a   :  { %10890 = vmatmul.mubr.msk.f32.gmra.mrb[10].mxu1 %vm95_vm0, %v9093_v58  ;;  %10388 = vmatprep.mubr.msk.f32.mxu0 %vm95_vm0, %v1668_v59  ;;  %v13417_v58 = vld [vmem:[%s15658_s0 + $0x4c] sm:$0xff]  ;;  %v13424_v59 = vld [vmem:[%s15658_s0 + $0x1a4] sm:$0xff] }
 0x13b   :  { %10892 = vmatprep.mubr.msk.f32.mxu1 %vm95_vm0, %v9094_v60  ;;  %v13429_v60 = vld [vmem:[%s15658_s0 + $0x54] sm:$0xff] }
 0x13d   :  { %10389 = vmatmul.mubr.msk.f32.gmra.mrb[12].mxu0 %vm95_vm0, %v1669_v61  ;;  %v13434_v61 = vld [vmem:[%s15658_s0 + $0x1ac] sm:$0xff] }
 0x13e   :  { %10893 = vmatmul.mubr.msk.f32.gmra.mrb[12].mxu1 %vm95_vm0, %v9095_v62  ;;  %10391 = vmatprep.mubr.msk.f32.mxu0 %vm95_vm0, %v1670_v63  ;;  %v13445_v62 = vld [vmem:[%s15658_s0 + $0x5c] sm:$0xff]  ;;  %v13452_v63 = vld [vmem:[%s15658_s0 + $0x1b4] sm:$0xff] }
 0x13f   :  { %10895 = vmatprep.mubr.msk.f32.mxu1 %vm95_vm0, %v9096_v0  ;;  %v13457_v0 = vld [vmem:[%s15658_s0 + $0x64] sm:$0xff] }
 0x141   :  { %10392 = vmatmul.mubr.msk.f32.gmra.mrb[14].mxu0 %vm95_vm0, %v1671_v1  ;;  %v13462_v1 = vld [vmem:[%s15658_s0 + $0x1bc] sm:$0xff] }
 0x142   :  { %10896 = vmatmul.mubr.msk.f32.gmra.mrb[14].mxu1 %vm95_vm0, %v9097_v2  ;;  %10394 = vmatprep.mubr.msk.f32.mxu0 %vm95_vm0, %v1672_v3  ;;  %v13473_v2 = vld [vmem:[%s15658_s0 + $0x6c] sm:$0xff]  ;;  %v13480_v3 = vld [vmem:[%s15658_s0 + $0x1c4] sm:$0xff] }
 0x143   :  { %10898 = vmatprep.mubr.msk.f32.mxu1 %vm95_vm0, %v9098_v4  ;;  %v13485_v4 = vld [vmem:[%s15658_s0 + $0x74] sm:$0xff] }
 0x145   :  { %10395 = vmatmul.mubr.msk.f32.gmra.mrb[16].mxu0 %vm95_vm0, %v1673_v5  ;;  %v13490_v5 = vld [vmem:[%s15658_s0 + $0x1cc] sm:$0xff] }
 0x146   :  { %10899 = vmatmul.mubr.msk.f32.gmra.mrb[16].mxu1 %vm95_vm0, %v9099_v6  ;;  %10397 = vmatprep.mubr.msk.f32.mxu0 %vm95_vm0, %v1674_v7  ;;  %v13501_v6 = vld [vmem:[%s15658_s0 + $0x7c] sm:$0xff]  ;;  %v13508_v7 = vld [vmem:[%s15658_s0 + $0x1d4] sm:$0xff] }
 0x147   :  { %10901 = vmatprep.mubr.msk.f32.mxu1 %vm95_vm0, %v9100_v8  ;;  %v13513_v8 = vld [vmem:[%s15658_s0 + $0x84] sm:$0xff] }
 0x149   :  { %10398 = vmatmul.mubr.msk.f32.gmra.mrb[18].mxu0 %vm95_vm0, %v1675_v9  ;;  %v13518_v9 = vld [vmem:[%s15658_s0 + $0x1dc] sm:$0xff] }
 0x14a   :  { %10902 = vmatmul.mubr.msk.f32.gmra.mrb[18].mxu1 %vm95_vm0, %v9101_v10  ;;  %10400 = vmatprep.mubr.msk.f32.mxu0 %vm95_vm0, %v1676_v11  ;;  %v13529_v10 = vld [vmem:[%s15658_s0 + $0x8c] sm:$0xff]  ;;  %v13536_v11 = vld [vmem:[%s15658_s0 + $0x1e4] sm:$0xff] }
 0x14b   :  { %10904 = vmatprep.mubr.msk.f32.mxu1 %vm95_vm0, %v9102_v12  ;;  %v13541_v12 = vld [vmem:[%s15658_s0 + $0x94] sm:$0xff] }
 0x14d   :  { %10401 = vmatmul.mubr.msk.f32.gmra.mrb[20].mxu0 %vm95_vm0, %v1677_v13  ;;  %v13546_v13 = vld [vmem:[%s15658_s0 + $0x1ec] sm:$0xff] }
 0x14e   :  { %10905 = vmatmul.mubr.msk.f32.gmra.mrb[20].mxu1 %vm95_vm0, %v9103_v14  ;;  %10403 = vmatprep.mubr.msk.f32.mxu0 %vm95_vm0, %v1678_v15  ;;  %v13557_v14 = vld [vmem:[%s15658_s0 + $0x9c] sm:$0xff]  ;;  %v13564_v15 = vld [vmem:[%s15658_s0 + $0x1f4] sm:$0xff] }
 0x14f   :  { %10907 = vmatprep.mubr.msk.f32.mxu1 %vm95_vm0, %v9104_v16  ;;  %v13569_v16 = vld [vmem:[%s15658_s0 + $0xa4] sm:$0xff] }
 0x151   :  { %10404 = vmatmul.mubr.msk.f32.gmra.mrb[22].mxu0 %vm95_vm0, %v1679_v18  ;;  %v13574_v18 = vld [vmem:[%s15658_s0 + $0x1fc] sm:$0xff] }
 0x152   :  { %10908 = vmatmul.mubr.msk.f32.gmra.mrb[22].mxu1 %vm95_vm0, %v9105_v19  ;;  %10406 = vmatprep.mubr.msk.f32.mxu0 %vm95_vm0, %v1680_v20  ;;  %v13585_v19 = vld [vmem:[%s15658_s0 + $0xac] sm:$0xff]  ;;  %v13592_v20 = vld [vmem:[%s15658_s0 + $0x204] sm:$0xff] }
 0x153   :  { %10910 = vmatprep.mubr.msk.f32.mxu1 %vm95_vm0, %v9106_v21  ;;  %v13597_v21 = vld [vmem:[%s15658_s0 + $0xb4] sm:$0xff] }
 0x155   :  { %10407 = vmatmul.mubr.msk.f32.gmra.mrb[24].mxu0 %vm95_vm0, %v1681_v22  ;;  %v13602_v22 = vld [vmem:[%s15658_s0 + $0x20c] sm:$0xff] }
 0x156   :  { %10911 = vmatmul.mubr.msk.f32.gmra.mrb[24].mxu1 %vm95_vm0, %v9107_v23  ;;  %10409 = vmatprep.mubr.msk.f32.mxu0 %vm95_vm0, %v1682_v24  ;;  %v13613_v23 = vld [vmem:[%s15658_s0 + $0xbc] sm:$0xff]  ;;  %v13620_v24 = vld [vmem:[%s15658_s0 + $0x214] sm:$0xff] }
 0x157   :  { %10913 = vmatprep.mubr.msk.f32.mxu1 %vm95_vm0, %v9108_v25  ;;  %v13625_v25 = vld [vmem:[%s15658_s0 + $0xc4] sm:$0xff] }
 0x159   :  { %10410 = vmatmul.mubr.msk.f32.gmra.mrb[26].mxu0 %vm95_vm0, %v1683_v26  ;;  %v13630_v26 = vld [vmem:[%s15658_s0 + $0x21c] sm:$0xff] }
 0x15a   :  { %10914 = vmatmul.mubr.msk.f32.gmra.mrb[26].mxu1 %vm95_vm0, %v9109_v27  ;;  %10412 = vmatprep.mubr.msk.f32.mxu0 %vm95_vm0, %v1684_v28  ;;  %v13641_v27 = vld [vmem:[%s15658_s0 + $0xcc] sm:$0xff]  ;;  %v13648_v28 = vld [vmem:[%s15658_s0 + $0x224] sm:$0xff] }
 0x15b   :  { %10916 = vmatprep.mubr.msk.f32.mxu1 %vm95_vm0, %v9110_v29  ;;  %v13653_v29 = vld [vmem:[%s15658_s0 + $0xd4] sm:$0xff] }
 0x15d   :  { %10413 = vmatmul.mubr.msk.f32.gmra.mrb[28].mxu0 %vm95_vm0, %v1685_v30  ;;  %v13658_v30 = vld [vmem:[%s15658_s0 + $0x22c] sm:$0xff] }
 0x15e   :  { %10917 = vmatmul.mubr.msk.f32.gmra.mrb[28].mxu1 %vm95_vm0, %v9111_v17  ;;  %10415 = vmatprep.mubr.msk.f32.mxu0 %vm95_vm0, %v1686_v31  ;;  %v13669_v17 = vld [vmem:[%s15658_s0 + $0xdc] sm:$0xff]  ;;  %v13676_v31 = vld [vmem:[%s15658_s0 + $0x234] sm:$0xff] }
 0x15f   :  { %10919 = vmatprep.mubr.msk.f32.mxu1 %vm95_vm0, %v9112_v32  ;;  %v13681_v32 = vld [vmem:[%s15658_s0 + $0xe4] sm:$0xff] }
 0x161   :  { %10416 = vmatmul.mubr.msk.f32.gmra.mrb[30].mxu0 %vm95_vm0, %v1687_v33  ;;  %v13686_v33 = vld [vmem:[%s15658_s0 + $0x23c] sm:$0xff] }
 0x162   :  { %10920 = vmatmul.mubr.msk.f32.gmra.mrb[30].mxu1 %vm95_vm0, %v9113_v34  ;;  %10418 = vmatprep.mubr.msk.f32.mxu0 %vm95_vm0, %v1688_v35  ;;  %v13697_v34 = vld [vmem:[%s15658_s0 + $0xec] sm:$0xff]  ;;  %v13704_v35 = vld [vmem:[%s15658_s0 + $0x244] sm:$0xff] }
 0x163   :  { %10922 = vmatprep.mubr.msk.f32.mxu1 %vm95_vm0, %v9114_v36  ;;  %v13709_v36 = vld [vmem:[%s15658_s0 + $0xf4] sm:$0xff] }
 0x165   :  { %10419 = vmatmul.mubr.msk.f32.gmra.mrb[32].mxu0 %vm95_vm0, %v1689_v37  ;;  %v13714_v37 = vld [vmem:[%s15658_s0 + $0x24c] sm:$0xff] }
 0x166   :  { %10923 = vmatmul.mubr.msk.f32.gmra.mrb[32].mxu1 %vm95_vm0, %v9115_v38  ;;  %10421 = vmatprep.mubr.msk.f32.mxu0 %vm95_vm0, %v1690_v39  ;;  %v13725_v38 = vld [vmem:[%s15658_s0 + $0xfc] sm:$0xff]  ;;  %v13732_v39 = vld [vmem:[%s15658_s0 + $0x254] sm:$0xff] }
 0x167   :  { %10925 = vmatprep.mubr.msk.f32.mxu1 %vm95_vm0, %v9116_v41  ;;  %v13737_v41 = vld [vmem:[%s15658_s0 + $0x104] sm:$0xff] }
 0x169   :  { %10422 = vmatmul.mubr.msk.f32.gmra.mrb[34].mxu0 %vm95_vm0, %v1691_v42  ;;  %v13742_v42 = vld [vmem:[%s15658_s0 + $0x25c] sm:$0xff] }
 0x16a   :  { %10926 = vmatmul.mubr.msk.f32.gmra.mrb[34].mxu1 %vm95_vm0, %v9117_v43  ;;  %10426 = vmatprep.mubr.msk.f32.mxu0 %vm95_vm0, %v2083_v44  ;;  %15723 = vst [vmem:[#allocation2_spill] sm:$0xff] %v13742_v42  ;;  %v13753_v43 = vld [vmem:[%s15658_s0 + $0x10c] sm:$0xff]  ;;  %v13760_v44 = vld [vmem:[%s15658_s0 + $0x264] sm:$0xff] }
 0x16b   :  { %10930 = vmatprep.mubr.msk.f32.mxu1 %vm95_vm0, %v9154_v45  ;;  %15724 = vst [vmem:[#allocation3_spill] sm:$0xff] %v13753_v43  ;;  %15725 = vst [vmem:[#allocation4_spill] sm:$0xff] %v13760_v44  ;;  %v13765_v45 = vld [vmem:[%s15658_s0 + $0x114] sm:$0xff] }
 0x16c   :  { %15726 = vst [vmem:[#allocation5_spill] sm:$0xff] %v13765_v45 }
 0x16d   :  { %10427 = vmatmul.mubr.msk.f32.vlgmr.msra.gmra.mrb[0].mxu0 %vm95_vm0, %v2084_v46  ;;  %v13770_v46 = vld [vmem:[%s15658_s0 + $0x26c] sm:$0xff] }
 0x16e   :  { %10931 = vmatmul.mubr.msk.f32.vlgmr.msra.gmra.mrb[0].mxu1 %vm95_vm0, %v9155_v47  ;;  %10481 = vmatpush3.msra.mxu0 %v13048_v40  ;;  %15727 = vst [vmem:[#allocation6_spill] sm:$0xff] %v13770_v46  ;;  %v13781_v47 = vld [vmem:[%s15658_s0 + $0x11c] sm:$0xff] }
 0x16f   :  { %10985 = vmatpush3.msra.mxu1 %v13048_v40  ;;  %10429 = vmatprep.mubr.msk.f32.mxu0 %vm95_vm0, %v13338_v48  ;;  %v13376_v40 = vld [vmem:[%s15658_s0 + $0x18c] sm:$0xff] }
 0x170   :  { %10933 = vmatprep.mubr.msk.f32.mxu1 %vm95_vm0, %v13344_v49  ;;  %10536 = vmatprep.subr.mxu0 %v13349_v50 }
 0x171   :  { %10430 = vmatmul.mubr.msk.f32.gmra.mrb[2].mxu0 %vm95_vm0, %v13356_v51  ;;  %11040 = vmatprep.subr.mxu1 %v13349_v50 }
 0x172   :  { %10934 = vmatmul.mubr.msk.f32.gmra.mrb[2].mxu1 %vm95_vm0, %v13364_v52  ;;  %10432 = vmatprep.mubr.msk.f32.mxu0 %vm95_vm0, %v13369_v53 }
 0x173   :  { %10936 = vmatprep.mubr.msk.f32.mxu1 %vm95_vm0, %v13376_v40 }
 0x175   :  { %10433 = vmatmul.mubr.msk.f32.gmra.mrb[4].mxu0 %vm95_vm0, %v13389_v54 }
 0x176   :  { %10937 = vmatmul.mubr.msk.f32.gmra.mrb[4].mxu1 %vm95_vm0, %v13396_v55  ;;  %10435 = vmatprep.mubr.msk.f32.mxu0 %vm95_vm0, %v13401_v56 }
 0x177   :  { %10939 = vmatprep.mubr.msk.f32.mxu1 %vm95_vm0, %v13406_v57 }
 0x179   :  { %10436 = vmatmul.mubr.msk.f32.gmra.mrb[6].mxu0 %vm95_vm0, %v13417_v58 }
 0x17a   :  { %10940 = vmatmul.mubr.msk.f32.gmra.mrb[6].mxu1 %vm95_vm0, %v13424_v59  ;;  %10438 = vmatprep.mubr.msk.f32.mxu0 %vm95_vm0, %v13429_v60 }
 0x17b   :  { %10942 = vmatprep.mubr.msk.f32.mxu1 %vm95_vm0, %v13434_v61 }
 0x17d   :  { %10439 = vmatmul.mubr.msk.f32.gmra.mrb[8].mxu0 %vm95_vm0, %v13445_v62 }
 0x17e   :  { %10943 = vmatmul.mubr.msk.f32.gmra.mrb[8].mxu1 %vm95_vm0, %v13452_v63  ;;  %10441 = vmatprep.mubr.msk.f32.mxu0 %vm95_vm0, %v13457_v0 }
 0x17f   :  { %10945 = vmatprep.mubr.msk.f32.mxu1 %vm95_vm0, %v13462_v1 }
 0x181   :  { %10442 = vmatmul.mubr.msk.f32.gmra.mrb[10].mxu0 %vm95_vm0, %v13473_v2 }
 0x182   :  { %10946 = vmatmul.mubr.msk.f32.gmra.mrb[10].mxu1 %vm95_vm0, %v13480_v3  ;;  %10444 = vmatprep.mubr.msk.f32.mxu0 %vm95_vm0, %v13485_v4 }
 0x183   :  { %10948 = vmatprep.mubr.msk.f32.mxu1 %vm95_vm0, %v13490_v5 }
 0x185   :  { %10445 = vmatmul.mubr.msk.f32.gmra.mrb[12].mxu0 %vm95_vm0, %v13501_v6 }
 0x186   :  { %10949 = vmatmul.mubr.msk.f32.gmra.mrb[12].mxu1 %vm95_vm0, %v13508_v7  ;;  %10447 = vmatprep.mubr.msk.f32.mxu0 %vm95_vm0, %v13513_v8 }
 0x187   :  { %10951 = vmatprep.mubr.msk.f32.mxu1 %vm95_vm0, %v13518_v9 }
 0x189   :  { %10448 = vmatmul.mubr.msk.f32.gmra.mrb[14].mxu0 %vm95_vm0, %v13529_v10 }
 0x18a   :  { %10952 = vmatmul.mubr.msk.f32.gmra.mrb[14].mxu1 %vm95_vm0, %v13536_v11  ;;  %10450 = vmatprep.mubr.msk.f32.mxu0 %vm95_vm0, %v13541_v12 }
 0x18b   :  { %10954 = vmatprep.mubr.msk.f32.mxu1 %vm95_vm0, %v13546_v13 }
 0x18d   :  { %10451 = vmatmul.mubr.msk.f32.gmra.mrb[16].mxu0 %vm95_vm0, %v13557_v14 }
 0x18e   :  { %10955 = vmatmul.mubr.msk.f32.gmra.mrb[16].mxu1 %vm95_vm0, %v13564_v15  ;;  %10453 = vmatprep.mubr.msk.f32.mxu0 %vm95_vm0, %v13569_v16 }
 0x18f   :  { %10957 = vmatprep.mubr.msk.f32.mxu1 %vm95_vm0, %v13574_v18 }
 0x191   :  { %10454 = vmatmul.mubr.msk.f32.gmra.mrb[18].mxu0 %vm95_vm0, %v13585_v19 }
 0x192   :  { %10958 = vmatmul.mubr.msk.f32.gmra.mrb[18].mxu1 %vm95_vm0, %v13592_v20  ;;  %10456 = vmatprep.mubr.msk.f32.mxu0 %vm95_vm0, %v13597_v21 }
 0x193   :  { %10960 = vmatprep.mubr.msk.f32.mxu1 %vm95_vm0, %v13602_v22 }
 0x195   :  { %10457 = vmatmul.mubr.msk.f32.gmra.mrb[20].mxu0 %vm95_vm0, %v13613_v23 }
 0x196   :  { %10961 = vmatmul.mubr.msk.f32.gmra.mrb[20].mxu1 %vm95_vm0, %v13620_v24  ;;  %10459 = vmatprep.mubr.msk.f32.mxu0 %vm95_vm0, %v13625_v25 }
 0x197   :  { %10963 = vmatprep.mubr.msk.f32.mxu1 %vm95_vm0, %v13630_v26 }
 0x199   :  { %10460 = vmatmul.mubr.msk.f32.gmra.mrb[22].mxu0 %vm95_vm0, %v13641_v27 }
 0x19a   :  { %10964 = vmatmul.mubr.msk.f32.gmra.mrb[22].mxu1 %vm95_vm0, %v13648_v28  ;;  %10462 = vmatprep.mubr.msk.f32.mxu0 %vm95_vm0, %v13653_v29 }
 0x19b   :  { %10966 = vmatprep.mubr.msk.f32.mxu1 %vm95_vm0, %v13658_v30 }
 0x19d   :  { %10463 = vmatmul.mubr.msk.f32.gmra.mrb[24].mxu0 %vm95_vm0, %v13669_v17 }
 0x19e   :  { %10967 = vmatmul.mubr.msk.f32.gmra.mrb[24].mxu1 %vm95_vm0, %v13676_v31  ;;  %10465 = vmatprep.mubr.msk.f32.mxu0 %vm95_vm0, %v13681_v32 }
 0x19f   :  { %10969 = vmatprep.mubr.msk.f32.mxu1 %vm95_vm0, %v13686_v33 }
 0x1a1   :  { %10466 = vmatmul.mubr.msk.f32.gmra.mrb[26].mxu0 %vm95_vm0, %v13697_v34 }
 0x1a2   :  { %10970 = vmatmul.mubr.msk.f32.gmra.mrb[26].mxu1 %vm95_vm0, %v13704_v35  ;;  %10468 = vmatprep.mubr.msk.f32.mxu0 %vm95_vm0, %v13709_v36 }
 0x1a3   :  { %10972 = vmatprep.mubr.msk.f32.mxu1 %vm95_vm0, %v13714_v37 }
 0x1a5   :  { %10469 = vmatmul.mubr.msk.f32.gmra.mrb[28].mxu0 %vm95_vm0, %v13725_v38 }
 0x1a6   :  { %10973 = vmatmul.mubr.msk.f32.gmra.mrb[28].mxu1 %vm95_vm0, %v13732_v39  ;;  %10471 = vmatprep.mubr.msk.f32.mxu0 %vm95_vm0, %v13737_v41 }
 0x1a7   :  { %10975 = vmatprep.mubr.msk.f32.mxu1 %vm95_vm0, %v13742_v42  ;;  %v13788_v42 = vld [vmem:[%s15658_s0 + $0x274] sm:$0xff] }
 0x1a9   :  { %10472 = vmatmul.mubr.msk.f32.gmra.mrb[30].mxu0 %vm95_vm0, %v13753_v43  ;;  %v13816_v43 = vld [vmem:[%s15658_s0 + $0x284] sm:$0xff] }
 0x1aa   :  { %10976 = vmatmul.mubr.msk.f32.gmra.mrb[30].mxu1 %vm95_vm0, %v13760_v44  ;;  %10474 = vmatprep.mubr.msk.f32.mxu0 %vm95_vm0, %v13765_v45  ;;  %v13793_v44 = vld [vmem:[%s15658_s0 + $0x124] sm:$0xff]  ;;  %v13798_v45 = vld [vmem:[%s15658_s0 + $0x27c] sm:$0xff] }
 0x1ab   :  { %10978 = vmatprep.mubr.msk.f32.mxu1 %vm95_vm0, %v13770_v46  ;;  %15728 = vst [vmem:[#allocation7_spill] sm:$0xff] %v13798_v45  ;;  %v13809_v46 = vld [vmem:[%s15658_s0 + $0x12c] sm:$0xff] }
 0x1ad   :  { %10475 = vmatmul.mubr.msk.f32.gmra.mrb[32].mxu0 %vm95_vm0, %v13781_v47 }
 0x1ae   :  { %10979 = vmatmul.mubr.msk.f32.gmra.mrb[32].mxu1 %vm95_vm0, %v13788_v42  ;;  %10477 = vmatprep.mubr.msk.f32.mxu0 %vm95_vm0, %v13793_v44 }
 0x1af   :  { %10981 = vmatprep.mubr.msk.f32.mxu1 %vm95_vm0, %v13798_v45  ;;  %v13831_v45 = vld [vmem:[%s15657_s1 + $0x40] sm:$0xff] }
 0x1b1   :  { %10478 = vmatmul.mubr.msk.f32.gmra.mrb[34].mxu0 %vm95_vm0, %v13809_v46 }
 0x1b2   :  { %10982 = vmatmul.mubr.msk.f32.gmra.mrb[34].mxu1 %vm95_vm0, %v13816_v43  ;;  %10482 = vmatprep.mubr.msk.f32.mxu0 %vm95_vm0, %v13338_v48  ;;  %v11733_v48 = vmov 0  }
 0x1b3   :  { %10986 = vmatprep.mubr.msk.f32.mxu1 %vm95_vm0, %v13344_v49  ;;  %11729 = vset.pattern.permute.xlu0 %v11733_v48  ;;  %v7545_v49 = vld [vmem:[%s15659_s4] sm:$0xff] }
 0x1b4   :  { %11730 = vset.pattern.permute.xlu1 %v11733_v48  ;;  %7583 = vperm.xlu0 %11729, %v7545_v49   ;;  %v7575_v48 = vld [vmem:[%s15659_s4 + $0xf0] sm:$0xff] }
 0x1b5   :  { %10483 = vmatmul.mubr.msk.f32.vlgmr.msra.gmra.mrb[0].mxu0 %vm95_vm0, %v13356_v51  ;;  %v7546_v51 = vld [vmem:[%s15659_s4 + $0x8] sm:$0xff]  ;;  %v9309_v49 = vld [vmem:[%s15658_s0 + $0x1d5] sm:$0xff] }
 0x1b6   :  { %10987 = vmatmul.mubr.msk.f32.vlgmr.msra.gmra.mrb[0].mxu1 %vm95_vm0, %v13364_v52  ;;  %10537 = vmatpush3.msra.mxu0 %v13349_v50  ;;  %v7548_v52 = vld [vmem:[%s15659_s4 + $0x18] sm:$0xff] }
 0x1b7   :  { %11041 = vmatpush3.msra.mxu1 %v13349_v50  ;;  %10485 = vmatprep.mubr.msk.f32.mxu0 %vm95_vm0, %v13369_v53  ;;  %v7547_v50 = vld [vmem:[%s15659_s4 + $0x10] sm:$0xff]  ;;  %v7549_v53 = vld [vmem:[%s15659_s4 + $0x20] sm:$0xff] }
 0x1b8   :  { %10989 = vmatprep.mubr.msk.f32.mxu1 %vm95_vm0, %v13376_v40  ;;  %10592 = vmatprep.subr.mxu0 %v13831_v45  ;;  %v7550_v40 = vld [vmem:[%s15659_s4 + $0x28] sm:$0xff] }
 0x1b9   :  { %10486 = vmatmul.mubr.msk.f32.gmra.mrb[2].mxu0 %vm95_vm0, %v13389_v54  ;;  %11096 = vmatprep.subr.mxu1 %v13831_v45  ;;  %v7551_v54 = vld [vmem:[%s15659_s4 + $0x30] sm:$0xff] }
 0x1ba   :  { %10990 = vmatmul.mubr.msk.f32.gmra.mrb[2].mxu1 %vm95_vm0, %v13396_v55  ;;  %10488 = vmatprep.mubr.msk.f32.mxu0 %vm95_vm0, %v13401_v56  ;;  %v7552_v55 = vld [vmem:[%s15659_s4 + $0x38] sm:$0xff]  ;;  %v7553_v56 = vld [vmem:[%s15659_s4 + $0x40] sm:$0xff] }
 0x1bb   :  { %10992 = vmatprep.mubr.msk.f32.mxu1 %vm95_vm0, %v13406_v57  ;;  %7593 = vperm.xlu1 %11730, %v7547_v50   ;;  %v7554_v57 = vld [vmem:[%s15659_s4 + $0x48] sm:$0xff] }
 0x1bc   :  { %7588 = vperm.xlu0 %11729, %v7546_v51   ;;  %v2949_v50 = vld [vmem:[%s15658_s0 + $0x85] sm:$0xff]  ;;  %v9310_v51 = vld [vmem:[%s15658_s0 + $0x1dd] sm:$0xff] }
 0x1bd   :  { %10489 = vmatmul.mubr.msk.f32.gmra.mrb[4].mxu0 %vm95_vm0, %v13417_v58  ;;  %v7555_v58 = vld [vmem:[%s15659_s4 + $0x50] sm:$0xff] }
 0x1be   :  { %10993 = vmatmul.mubr.msk.f32.gmra.mrb[4].mxu1 %vm95_vm0, %v13424_v59  ;;  %10491 = vmatprep.mubr.msk.f32.mxu0 %vm95_vm0, %v13429_v60  ;;  %v15729_v59 = vld [vmem:[#allocation2_spill] sm:$0xff]  ;;  %v7556_v60 = vld [vmem:[%s15659_s4 + $0x58] sm:$0xff] }
 0x1bf   :  { %10995 = vmatprep.mubr.msk.f32.mxu1 %vm95_vm0, %v13434_v61  ;;  %7598 = vperm.xlu1 %11730, %v7548_v52   ;;  %v7557_v61 = vld [vmem:[%s15659_s4 + $0x60] sm:$0xff]  ;;  %v7576_v52 = vld [vmem:[%s15659_s4 + $0xf8] sm:$0xff] }
 0x1c0   :  { %7603 = vperm.xlu0 %11729, %v7549_v53   ;;  %v2950_v53 = vld [vmem:[%s15658_s0 + $0x8d] sm:$0xff] }
 0x1c1   :  { %10492 = vmatmul.mubr.msk.f32.gmra.mrb[6].mxu0 %vm95_vm0, %v13445_v62  ;;  %v15730_v62 = vld [vmem:[#allocation3_spill] sm:$0xff] }
 0x1c2   :  { %10996 = vmatmul.mubr.msk.f32.gmra.mrb[6].mxu1 %vm95_vm0, %v13452_v63  ;;  %10494 = vmatprep.mubr.msk.f32.mxu0 %vm95_vm0, %v13457_v0  ;;  %v15731_v63 = vld [vmem:[#allocation4_spill] sm:$0xff]  ;;  %v15732_v0 = vld [vmem:[#allocation5_spill] sm:$0xff] }
 0x1c3   :  { %10998 = vmatprep.mubr.msk.f32.mxu1 %vm95_vm0, %v13462_v1  ;;  %7608 = vperm.xlu1 %11730, %v7550_v40   ;;  %v15733_v1 = vld [vmem:[#allocation6_spill] sm:$0xff] }
 0x1c4   :  { %7613 = vperm.xlu0 %11729, %v7551_v54   ;;  %v7577_v40 = vld [vmem:[%s15659_s4 + $0x100] sm:$0xff] }
 0x1c5   :  { %10495 = vmatmul.mubr.msk.f32.gmra.mrb[8].mxu0 %vm95_vm0, %v13473_v2  ;;  %v7558_v2 = vld [vmem:[%s15659_s4 + $0x68] sm:$0xff] }
 0x1c6   :  { %10999 = vmatmul.mubr.msk.f32.gmra.mrb[8].mxu1 %vm95_vm0, %v13480_v3  ;;  %10497 = vmatprep.mubr.msk.f32.mxu0 %vm95_vm0, %v13485_v4  ;;  %v7559_v3 = vld [vmem:[%s15659_s4 + $0x70] sm:$0xff]  ;;  %v15734_v4 = vld [vmem:[#allocation7_spill] sm:$0xff] }
 0x1c7   :  { %11001 = vmatprep.mubr.msk.f32.mxu1 %vm95_vm0, %v13490_v5  ;;  %7618 = vperm.xlu1 %11730, %v7552_v55   ;;  %v2544_v5 = vld [vmem:[%s15658_s0 + $0x134] sm:$0xff]  ;;  %v9311_v54 = vld [vmem:[%s15658_s0 + $0x1e5] sm:$0xff] }
 0x1c8   :  { %7623 = vperm.xlu0 %11729, %v7553_v56   ;;  %v2951_v55 = vld [vmem:[%s15658_s0 + $0x95] sm:$0xff]  ;;  %v9312_v56 = vld [vmem:[%s15658_s0 + $0x1ed] sm:$0xff] }
 0x1c9   :  { %10498 = vmatmul.mubr.msk.f32.gmra.mrb[10].mxu0 %vm95_vm0, %v13501_v6  ;;  %v7560_v6 = vld [vmem:[%s15659_s4 + $0x78] sm:$0xff] }
 0x1ca   :  { %11002 = vmatmul.mubr.msk.f32.gmra.mrb[10].mxu1 %vm95_vm0, %v13508_v7  ;;  %10500 = vmatprep.mubr.msk.f32.mxu0 %vm95_vm0, %v13513_v8  ;;  %v7561_v7 = vld [vmem:[%s15659_s4 + $0x80] sm:$0xff]  ;;  %v9260_v8 = vld [vmem:[%s15658_s0 + $0x28c] sm:$0xff] }
 0x1cb   :  { %11004 = vmatprep.mubr.msk.f32.mxu1 %vm95_vm0, %v13518_v9  ;;  %7628 = vperm.xlu1 %11730, %v7554_v57   ;;  %v2545_v9 = vld [vmem:[%s15658_s0 + $0x13c] sm:$0xff]  ;;  %v7578_v57 = vld [vmem:[%s15659_s4 + $0x108] sm:$0xff] }
 0x1cc   :  { %7633 = vperm.xlu0 %11729, %v7555_v58   ;;  %v2952_v58 = vld [vmem:[%s15658_s0 + $0x9d] sm:$0xff] }
 0x1cd   :  { %10501 = vmatmul.mubr.msk.f32.gmra.mrb[12].mxu0 %vm95_vm0, %v13529_v10  ;;  %v9261_v10 = vld [vmem:[%s15658_s0 + $0x294] sm:$0xff] }
 0x1ce   :  { %11005 = vmatmul.mubr.msk.f32.gmra.mrb[12].mxu1 %vm95_vm0, %v13536_v11  ;;  %10503 = vmatprep.mubr.msk.f32.mxu0 %vm95_vm0, %v13541_v12  ;;  %v2937_v11 = vld [vmem:[%s15658_s0 + $0x25] sm:$0xff] }
 0x1cf   :  { %11007 = vmatprep.mubr.msk.f32.mxu1 %vm95_vm0, %v13546_v13  ;;  %7638 = vperm.xlu1 %11730, %v7556_v60   ;;  %v7562_v12 = vld [vmem:[%s15659_s4 + $0x88] sm:$0xff]  ;;  %v7563_v13 = vld [vmem:[%s15659_s4 + $0x90] sm:$0xff] }
 0x1d0   :  { %7643 = vperm.xlu0 %11729, %v7557_v61   ;;  %v9313_v60 = vld [vmem:[%s15658_s0 + $0x1f5] sm:$0xff]  ;;  %v2953_v61 = vld [vmem:[%s15658_s0 + $0xa5] sm:$0xff] }
 0x1d1   :  { %10504 = vmatmul.mubr.msk.f32.gmra.mrb[14].mxu0 %vm95_vm0, %v13557_v14  ;;  %v9298_v14 = vld [vmem:[%s15658_s0 + $0x17d] sm:$0xff] }
 0x1d2   :  { %11008 = vmatmul.mubr.msk.f32.gmra.mrb[14].mxu1 %vm95_vm0, %v13564_v15  ;;  %10506 = vmatprep.mubr.msk.f32.mxu0 %vm95_vm0, %v13569_v16  ;;  %v2938_v15 = vld [vmem:[%s15658_s0 + $0x2d] sm:$0xff]  ;;  %v9299_v16 = vld [vmem:[%s15658_s0 + $0x185] sm:$0xff] }
 0x1d3   :  { %11010 = vmatprep.mubr.msk.f32.mxu1 %vm95_vm0, %v13574_v18  ;;  %7648 = vperm.xlu1 %11730, %v7558_v2   ;;  %v7564_v18 = vld [vmem:[%s15659_s4 + $0x98] sm:$0xff] }
 0x1d4   :  { %7653 = vperm.xlu0 %11729, %v7559_v3   ;;  %v2955_v2 = vld [vmem:[%s15658_s0 + $0xb5] sm:$0xff]  ;;  %v9316_v3 = vld [vmem:[%s15658_s0 + $0x20d] sm:$0xff] }
 0x1d5   :  { %10507 = vmatmul.mubr.msk.f32.gmra.mrb[16].mxu0 %vm95_vm0, %v13585_v19  ;;  %v7565_v19 = vld [vmem:[%s15659_s4 + $0xa0] sm:$0xff] }
 0x1d6   :  { %11011 = vmatmul.mubr.msk.f32.gmra.mrb[16].mxu1 %vm95_vm0, %v13592_v20  ;;  %10509 = vmatprep.mubr.msk.f32.mxu0 %vm95_vm0, %v13597_v21  ;;  %v2939_v20 = vld [vmem:[%s15658_s0 + $0x35] sm:$0xff]  ;;  %v9300_v21 = vld [vmem:[%s15658_s0 + $0x18d] sm:$0xff] }
 0x1d7   :  { %11013 = vmatprep.mubr.msk.f32.mxu1 %vm95_vm0, %v13602_v22  ;;  %7658 = vperm.xlu1 %11730, %v7560_v6   ;;  %v2940_v22 = vld [vmem:[%s15658_s0 + $0x3d] sm:$0xff]  ;;  %v2957_v6 = vld [vmem:[%s15658_s0 + $0xc5] sm:$0xff] }
 0x1d8   :  { %7663 = vperm.xlu0 %11729, %v7561_v7   ;;  %v9318_v7 = vld [vmem:[%s15658_s0 + $0x21d] sm:$0xff] }
 0x1d9   :  { %10510 = vmatmul.mubr.msk.f32.gmra.mrb[18].mxu0 %vm95_vm0, %v13613_v23  ;;  %v9301_v23 = vld [vmem:[%s15658_s0 + $0x195] sm:$0xff] }
 0x1da   :  { %11014 = vmatmul.mubr.msk.f32.gmra.mrb[18].mxu1 %vm95_vm0, %v13620_v24  ;;  %10512 = vmatprep.mubr.msk.f32.mxu0 %vm95_vm0, %v13625_v25  ;;  %v2941_v24 = vld [vmem:[%s15658_s0 + $0x45] sm:$0xff] }
 0x1db   :  { %11016 = vmatprep.mubr.msk.f32.mxu1 %vm95_vm0, %v13630_v26  ;;  %7668 = vperm.xlu1 %11730, %v7562_v12   ;;  %v7566_v25 = vld [vmem:[%s15659_s4 + $0xa8] sm:$0xff]  ;;  %v7567_v26 = vld [vmem:[%s15659_s4 + $0xb0] sm:$0xff]  ;;  %v2960_v12 = vld [vmem:[%s15658_s0 + $0xdd] sm:$0xff] }
 0x1dc   :  { %7673 = vperm.xlu0 %11729, %v7563_v13   ;;  %v9321_v13 = vld [vmem:[%s15658_s0 + $0x235] sm:$0xff] }
 0x1dd   :  { %10513 = vmatmul.mubr.msk.f32.gmra.mrb[20].mxu0 %vm95_vm0, %v13641_v27  ;;  %v9302_v27 = vld [vmem:[%s15658_s0 + $0x19d] sm:$0xff] }
 0x1de   :  { %11017 = vmatmul.mubr.msk.f32.gmra.mrb[20].mxu1 %vm95_vm0, %v13648_v28  ;;  %10515 = vmatprep.mubr.msk.f32.mxu0 %vm95_vm0, %v13653_v29  ;;  %v2942_v28 = vld [vmem:[%s15658_s0 + $0x4d] sm:$0xff]  ;;  %v9303_v29 = vld [vmem:[%s15658_s0 + $0x1a5] sm:$0xff] }
 0x1df   :  { %11019 = vmatprep.mubr.msk.f32.mxu1 %vm95_vm0, %v13658_v30  ;;  %7678 = vperm.xlu1 %11730, %v7564_v18   ;;  %v2943_v30 = vld [vmem:[%s15658_s0 + $0x55] sm:$0xff]  ;;  %v9323_v18 = vld [vmem:[%s15658_s0 + $0x245] sm:$0xff] }
 0x1e0   :  { %7683 = vperm.xlu0 %11729, %v7565_v19   ;;  %v2963_v19 = vld [vmem:[%s15658_s0 + $0xf5] sm:$0xff] }
 0x1e1   :  { %10516 = vmatmul.mubr.msk.f32.gmra.mrb[22].mxu0 %vm95_vm0, %v13669_v17  ;;  %v7568_v17 = vld [vmem:[%s15659_s4 + $0xb8] sm:$0xff] }
 0x1e2   :  { %11020 = vmatmul.mubr.msk.f32.gmra.mrb[22].mxu1 %vm95_vm0, %v13676_v31  ;;  %10518 = vmatprep.mubr.msk.f32.mxu0 %vm95_vm0, %v13681_v32  ;;  %v7569_v31 = vld [vmem:[%s15659_s4 + $0xc0] sm:$0xff]  ;;  %v9304_v32 = vld [vmem:[%s15658_s0 + $0x1ad] sm:$0xff] }
 0x1e3   :  { %11022 = vmatprep.mubr.msk.f32.mxu1 %vm95_vm0, %v13686_v33  ;;  %7688 = vperm.xlu1 %11730, %v7566_v25   ;;  %v2944_v33 = vld [vmem:[%s15658_s0 + $0x5d] sm:$0xff]  ;;  %v2966_v25 = vld [vmem:[%s15658_s0 + $0x10d] sm:$0xff] }
 0x1e4   :  { %7693 = vperm.xlu0 %11729, %v7567_v26   ;;  %v9327_v26 = vld [vmem:[%s15658_s0 + $0x265] sm:$0xff] }
 0x1e5   :  { %10519 = vmatmul.mubr.msk.f32.gmra.mrb[24].mxu0 %vm95_vm0, %v13697_v34  ;;  %v9305_v34 = vld [vmem:[%s15658_s0 + $0x1b5] sm:$0xff] }
 0x1e6   :  { %11023 = vmatmul.mubr.msk.f32.gmra.mrb[24].mxu1 %vm95_vm0, %v13704_v35  ;;  %10521 = vmatprep.mubr.msk.f32.mxu0 %vm95_vm0, %v13709_v36  ;;  %v2945_v35 = vld [vmem:[%s15658_s0 + $0x65] sm:$0xff] }
 0x1e7   :  { %11025 = vmatprep.mubr.msk.f32.mxu1 %vm95_vm0, %v13714_v37  ;;  %7698 = vperm.xlu1 %11730, %v7568_v17   ;;  %v7570_v36 = vld [vmem:[%s15659_s4 + $0xc8] sm:$0xff]  ;;  %v7571_v37 = vld [vmem:[%s15659_s4 + $0xd0] sm:$0xff] }
 0x1e8   :  { %7703 = vperm.xlu0 %11729, %v7569_v31   ;;  %v2969_v17 = vld [vmem:[%s15658_s0 + $0x125] sm:$0xff]  ;;  %v9330_v31 = vld [vmem:[%s15658_s0 + $0x27d] sm:$0xff] }
 0x1e9   :  { %10522 = vmatmul.mubr.msk.f32.gmra.mrb[26].mxu0 %vm95_vm0, %v13725_v38  ;;  %v9306_v38 = vld [vmem:[%s15658_s0 + $0x1bd] sm:$0xff] }
 0x1ea   :  { %11026 = vmatmul.mubr.msk.f32.gmra.mrb[26].mxu1 %vm95_vm0, %v13732_v39  ;;  %10524 = vmatprep.mubr.msk.f32.mxu0 %vm95_vm0, %v13737_v41  ;;  %v2946_v39 = vld [vmem:[%s15658_s0 + $0x6d] sm:$0xff]  ;;  %v7572_v41 = vld [vmem:[%s15659_s4 + $0xd8] sm:$0xff] }
 0x1eb   :  { %11028 = vmatprep.mubr.msk.f32.mxu1 %vm95_vm0, %v15729_v59  ;;  %7708 = vperm.xlu1 %11730, %v7570_v36   ;;  %v7579_v59 = vld [vmem:[%s15659_s4 + $0x110] sm:$0xff]  ;;  %v2972_v36 = vld [vmem:[%s15658_s0 + $0x13d] sm:$0xff] }
 0x1ec   :  { %7713 = vperm.xlu0 %11729, %v7571_v37   ;;  %v9333_v37 = vld [vmem:[%s15658_s0 + $0x295] sm:$0xff] }
 0x1ed   :  { %10525 = vmatmul.mubr.msk.f32.gmra.mrb[28].mxu0 %vm95_vm0, %v15730_v62  ;;  %v9314_v62 = vld [vmem:[%s15658_s0 + $0x1fd] sm:$0xff] }
 0x1ee   :  { %11029 = vmatmul.mubr.msk.f32.gmra.mrb[28].mxu1 %vm95_vm0, %v15731_v63  ;;  %10527 = vmatprep.mubr.msk.f32.mxu0 %vm95_vm0, %v15732_v0  ;;  %v7580_v63 = vld [vmem:[%s15659_s4 + $0x118] sm:$0xff]  ;;  %v2954_v0 = vld [vmem:[%s15658_s0 + $0xad] sm:$0xff] }
 0x1ef   :  { %11031 = vmatprep.mubr.msk.f32.mxu1 %vm95_vm0, %v15733_v1  ;;  %7718 = vperm.xlu1 %11730, %v7572_v41   ;;  %v9315_v1 = vld [vmem:[%s15658_s0 + $0x205] sm:$0xff]  ;;  %v3365_v41 = vld [vmem:[%s15658_s0 + $0x2e] sm:$0xff] }
 0x1f1   :  { %10528 = vmatmul.mubr.msk.f32.gmra.mrb[30].mxu0 %vm95_vm0, %v13781_v47  ;;  %v2948_v47 = vld [vmem:[%s15658_s0 + $0x7d] sm:$0xff] }
 0x1f2   :  { %11032 = vmatmul.mubr.msk.f32.gmra.mrb[30].mxu1 %vm95_vm0, %v13788_v42  ;;  %10530 = vmatprep.mubr.msk.f32.mxu0 %vm95_vm0, %v13793_v44  ;;  %v7573_v42 = vld [vmem:[%s15659_s4 + $0xe0] sm:$0xff]  ;;  %v2947_v44 = vld [vmem:[%s15658_s0 + $0x75] sm:$0xff] }
 0x1f3   :  { %11034 = vmatprep.mubr.msk.f32.mxu1 %vm95_vm0, %v15734_v4  ;;  %7723 = vperm.xlu0 %11729, %v7573_v42   ;;  %v2956_v4 = vld [vmem:[%s15658_s0 + $0xbd] sm:$0xff]  ;;  %v9371_v42 = vld [vmem:[%s15658_s0 + $0x186] sm:$0xff] }
 0x1f5   :  { %10531 = vmatmul.mubr.msk.f32.gmra.mrb[32].mxu0 %vm95_vm0, %v13809_v46  ;;  %v7574_v46 = vld [vmem:[%s15659_s4 + $0xe8] sm:$0xff] }
 0x1f6   :  { %11035 = vmatmul.mubr.msk.f32.gmra.mrb[32].mxu1 %vm95_vm0, %v13816_v43  ;;  %10533 = vmatprep.mubr.msk.f32.mxu0 %vm95_vm0, %v2544_v5  ;;  %v9307_v43 = vld [vmem:[%s15658_s0 + $0x1c5] sm:$0xff]  ;;  %v9317_v5 = vld [vmem:[%s15658_s0 + $0x215] sm:$0xff] }
 0x1f7   :  { %11037 = vmatprep.mubr.msk.f32.mxu1 %vm95_vm0, %v9260_v8  ;;  %7728 = vperm.xlu1 %11730, %v7574_v46   ;;  %v2958_v8 = vld [vmem:[%s15658_s0 + $0xcd] sm:$0xff]  ;;  %v9373_v46 = vld [vmem:[%s15658_s0 + $0x196] sm:$0xff] }
 0x1f8   :  { %7733 = vperm.xlu0 %11729, %v7575_v48   ;;  %v9374_v48 = vld [vmem:[%s15658_s0 + $0x19e] sm:$0xff] }
 0x1f9   :  { %10534 = vmatmul.mubr.msk.f32.gmra.mrb[34].mxu0 %vm95_vm0, %v2545_v9  ;;  %v9319_v9 = vld [vmem:[%s15658_s0 + $0x225] sm:$0xff] }
 0x1fa   :  { %11038 = vmatmul.mubr.msk.f32.gmra.mrb[34].mxu1 %vm95_vm0, %v9261_v10  ;;  %10538 = vmatprep.mubr.msk.f32.mxu0 %vm95_vm0, %v2937_v11  ;;  %v2959_v10 = vld [vmem:[%s15658_s0 + $0xd5] sm:$0xff]  ;;  %v9320_v11 = vld [vmem:[%s15658_s0 + $0x22d] sm:$0xff] }
 0x1fb   :  { %11042 = vmatprep.mubr.msk.f32.mxu1 %vm95_vm0, %v9298_v14  ;;  %7738 = vperm.xlu1 %11730, %v7576_v52   ;;  %v2961_v14 = vld [vmem:[%s15658_s0 + $0xe5] sm:$0xff]  ;;  %v9376_v52 = vld [vmem:[%s15658_s0 + $0x1ae] sm:$0xff] }
 0x1fc   :  { %7743 = vperm.xlu0 %11729, %v7577_v40   ;;  %v9377_v40 = vld [vmem:[%s15658_s0 + $0x1b6] sm:$0xff] }
 0x1fd   :  { %10539 = vmatmul.mubr.msk.f32.vlgmr.msra.gmra.mrb[0].mxu0 %vm95_vm0, %v2938_v15  ;;  %v9322_v15 = vld [vmem:[%s15658_s0 + $0x23d] sm:$0xff] }
 0x1fe   :  { %11043 = vmatmul.mubr.msk.f32.vlgmr.msra.gmra.mrb[0].mxu1 %vm95_vm0, %v9299_v16  ;;  %10593 = vmatpush3.msra.mxu0 %v13831_v45  ;;  %v2962_v16 = vld [vmem:[%s15658_s0 + $0xed] sm:$0xff] }
 0x1ff   :  { %11097 = vmatpush3.msra.mxu1 %v13831_v45  ;;  %10541 = vmatprep.mubr.msk.f32.mxu0 %vm95_vm0, %v2939_v20  ;;  %v9308_v45 = vld [vmem:[%s15658_s0 + $0x1cd] sm:$0xff] }
 0x200   :  { %11045 = vmatprep.mubr.msk.f32.mxu1 %vm95_vm0, %v9300_v21  ;;  %7748 = vperm.xlu1 %11730, %v7578_v57   ;;  %v9324_v20 = vld [vmem:[%s15658_s0 + $0x24d] sm:$0xff]  ;;  %v2964_v21 = vld [vmem:[%s15658_s0 + $0xfd] sm:$0xff] }
 0x201   :  { %10542 = vmatmul.mubr.msk.f32.gmra.mrb[2].mxu0 %vm95_vm0, %v2940_v22  ;;  %7753 = vperm.xlu0 %11729, %v7579_v59   ;;  %v9325_v22 = vld [vmem:[%s15658_s0 + $0x255] sm:$0xff]  ;;  %v9379_v57 = vld [vmem:[%s15658_s0 + $0x1c6] sm:$0xff] }
 0x202   :  { %11046 = vmatmul.mubr.msk.f32.gmra.mrb[2].mxu1 %vm95_vm0, %v9301_v23  ;;  %10544 = vmatprep.mubr.msk.f32.mxu0 %vm95_vm0, %v2941_v24  ;;  %v2965_v23 = vld [vmem:[%s15658_s0 + $0x105] sm:$0xff]  ;;  %v9326_v24 = vld [vmem:[%s15658_s0 + $0x25d] sm:$0xff]  ;;  %v9380_v59 = vld [vmem:[%s15658_s0 + $0x1ce] sm:$0xff] }
 0x203   :  { %11048 = vmatprep.mubr.msk.f32.mxu1 %vm95_vm0, %v9302_v27  ;;  %v2967_v27 = vld [vmem:[%s15658_s0 + $0x115] sm:$0xff] }
 0x204   :  { %7758 = vperm.xlu1 %11730, %v7580_v63   ;;  %v9382_v63 = vld [vmem:[%s15658_s0 + $0x1de] sm:$0xff] }
 0x205   :  { %10545 = vmatmul.mubr.msk.f32.gmra.mrb[4].mxu0 %vm95_vm0, %v2942_v28  ;;  %v9328_v28 = vld [vmem:[%s15658_s0 + $0x26d] sm:$0xff] }
 0x206   :  { %11049 = vmatmul.mubr.msk.f32.gmra.mrb[4].mxu1 %vm95_vm0, %v9303_v29  ;;  %10547 = vmatprep.mubr.msk.f32.mxu0 %vm95_vm0, %v2943_v30  ;;  %v2968_v29 = vld [vmem:[%s15658_s0 + $0x11d] sm:$0xff]  ;;  %v9329_v30 = vld [vmem:[%s15658_s0 + $0x275] sm:$0xff] }
 0x207   :  { %11051 = vmatprep.mubr.msk.f32.mxu1 %vm95_vm0, %v9304_v32  ;;  %v2970_v32 = vld [vmem:[%s15658_s0 + $0x12d] sm:$0xff] }
 0x209   :  { %10548 = vmatmul.mubr.msk.f32.gmra.mrb[6].mxu0 %vm95_vm0, %v2944_v33  ;;  %v9331_v33 = vld [vmem:[%s15658_s0 + $0x285] sm:$0xff] }
 0x20a   :  { %11052 = vmatmul.mubr.msk.f32.gmra.mrb[6].mxu1 %vm95_vm0, %v9305_v34  ;;  %10550 = vmatprep.mubr.msk.f32.mxu0 %vm95_vm0, %v2945_v35  ;;  %v2971_v34 = vld [vmem:[%s15658_s0 + $0x135] sm:$0xff]  ;;  %v9332_v35 = vld [vmem:[%s15658_s0 + $0x28d] sm:$0xff] }
 0x20b   :  { %11054 = vmatprep.mubr.msk.f32.mxu1 %vm95_vm0, %v9306_v38  ;;  %v3364_v38 = vld [vmem:[%s15658_s0 + $0x26] sm:$0xff] }
 0x20d   :  { %10551 = vmatmul.mubr.msk.f32.gmra.mrb[8].mxu0 %vm95_vm0, %v2946_v39  ;;  %v9370_v39 = vld [vmem:[%s15658_s0 + $0x17e] sm:$0xff] }
 0x20e   :  { %11055 = vmatmul.mubr.msk.f32.gmra.mrb[8].mxu1 %vm95_vm0, %v9307_v43  ;;  %10553 = vmatprep.mubr.msk.f32.mxu0 %vm95_vm0, %v2947_v44  ;;  %v3366_v43 = vld [vmem:[%s15658_s0 + $0x36] sm:$0xff]  ;;  %v9372_v44 = vld [vmem:[%s15658_s0 + $0x18e] sm:$0xff] }
 0x20f   :  { %11057 = vmatprep.mubr.msk.f32.mxu1 %vm95_vm0, %v9308_v45  ;;  %v3367_v45 = vld [vmem:[%s15658_s0 + $0x3e] sm:$0xff] }
 0x211   :  { %10554 = vmatmul.mubr.msk.f32.gmra.mrb[10].mxu0 %vm95_vm0, %v2948_v47  ;;  %v3368_v47 = vld [vmem:[%s15658_s0 + $0x46] sm:$0xff] }
 0x212   :  { %11058 = vmatmul.mubr.msk.f32.gmra.mrb[10].mxu1 %vm95_vm0, %v9309_v49  ;;  %10556 = vmatprep.mubr.msk.f32.mxu0 %vm95_vm0, %v2949_v50  ;;  %v3369_v49 = vld [vmem:[%s15658_s0 + $0x4e] sm:$0xff]  ;;  %v9375_v50 = vld [vmem:[%s15658_s0 + $0x1a6] sm:$0xff] }
 0x213   :  { %11060 = vmatprep.mubr.msk.f32.mxu1 %vm95_vm0, %v9310_v51  ;;  %v3370_v51 = vld [vmem:[%s15658_s0 + $0x56] sm:$0xff] }
 0x215   :  { %10557 = vmatmul.mubr.msk.f32.gmra.mrb[12].mxu0 %vm95_vm0, %v2950_v53  ;;  %v3371_v53 = vld [vmem:[%s15658_s0 + $0x5e] sm:$0xff] }
 0x216   :  { %11061 = vmatmul.mubr.msk.f32.gmra.mrb[12].mxu1 %vm95_vm0, %v9311_v54  ;;  %10559 = vmatprep.mubr.msk.f32.mxu0 %vm95_vm0, %v2951_v55  ;;  %v3372_v54 = vld [vmem:[%s15658_s0 + $0x66] sm:$0xff]  ;;  %v9378_v55 = vld [vmem:[%s15658_s0 + $0x1be] sm:$0xff] }
 0x217   :  { %11063 = vmatprep.mubr.msk.f32.mxu1 %vm95_vm0, %v9312_v56  ;;  %v3373_v56 = vld [vmem:[%s15658_s0 + $0x6e] sm:$0xff] }
 0x219   :  { %10560 = vmatmul.mubr.msk.f32.gmra.mrb[14].mxu0 %vm95_vm0, %v2952_v58  ;;  %v3374_v58 = vld [vmem:[%s15658_s0 + $0x76] sm:$0xff] }
 0x21a   :  { %11064 = vmatmul.mubr.msk.f32.gmra.mrb[14].mxu1 %vm95_vm0, %v9313_v60  ;;  %10562 = vmatprep.mubr.msk.f32.mxu0 %vm95_vm0, %v2953_v61  ;;  %v3375_v60 = vld [vmem:[%s15658_s0 + $0x7e] sm:$0xff]  ;;  %v9381_v61 = vld [vmem:[%s15658_s0 + $0x1d6] sm:$0xff] }
 0x21b   :  { %11066 = vmatprep.mubr.msk.f32.mxu1 %vm95_vm0, %v9314_v62  ;;  %v3376_v62 = vld [vmem:[%s15658_s0 + $0x86] sm:$0xff] }
 0x21d   :  { %10563 = vmatmul.mubr.msk.f32.gmra.mrb[16].mxu0 %vm95_vm0, %v2954_v0  ;;  %v3377_v0 = vld [vmem:[%s15658_s0 + $0x8e] sm:$0xff] }
 0x21e   :  { %11067 = vmatmul.mubr.msk.f32.gmra.mrb[16].mxu1 %vm95_vm0, %v9315_v1  ;;  %10565 = vmatprep.mubr.msk.f32.mxu0 %vm95_vm0, %v2955_v2  ;;  %v9383_v1 = vld [vmem:[%s15658_s0 + $0x1e6] sm:$0xff]  ;;  %v3378_v2 = vld [vmem:[%s15658_s0 + $0x96] sm:$0xff] }
 0x21f   :  { %11069 = vmatprep.mubr.msk.f32.mxu1 %vm95_vm0, %v9316_v3  ;;  %v9384_v3 = vld [vmem:[%s15658_s0 + $0x1ee] sm:$0xff] }
 0x221   :  { %10566 = vmatmul.mubr.msk.f32.gmra.mrb[18].mxu0 %vm95_vm0, %v2956_v4  ;;  %v3379_v4 = vld [vmem:[%s15658_s0 + $0x9e] sm:$0xff] }
 0x222   :  { %11070 = vmatmul.mubr.msk.f32.gmra.mrb[18].mxu1 %vm95_vm0, %v9317_v5  ;;  %10568 = vmatprep.mubr.msk.f32.mxu0 %vm95_vm0, %v2957_v6  ;;  %v9385_v5 = vld [vmem:[%s15658_s0 + $0x1f6] sm:$0xff]  ;;  %v3380_v6 = vld [vmem:[%s15658_s0 + $0xa6] sm:$0xff] }
 0x223   :  { %11072 = vmatprep.mubr.msk.f32.mxu1 %vm95_vm0, %v9318_v7  ;;  %v9386_v7 = vld [vmem:[%s15658_s0 + $0x1fe] sm:$0xff] }
 0x225   :  { %10569 = vmatmul.mubr.msk.f32.gmra.mrb[20].mxu0 %vm95_vm0, %v2958_v8  ;;  %v3381_v8 = vld [vmem:[%s15658_s0 + $0xae] sm:$0xff] }
 0x226   :  { %11073 = vmatmul.mubr.msk.f32.gmra.mrb[20].mxu1 %vm95_vm0, %v9319_v9  ;;  %10571 = vmatprep.mubr.msk.f32.mxu0 %vm95_vm0, %v2959_v10  ;;  %v9387_v9 = vld [vmem:[%s15658_s0 + $0x206] sm:$0xff]  ;;  %v3382_v10 = vld [vmem:[%s15658_s0 + $0xb6] sm:$0xff] }
 0x227   :  { %11075 = vmatprep.mubr.msk.f32.mxu1 %vm95_vm0, %v9320_v11  ;;  %v9388_v11 = vld [vmem:[%s15658_s0 + $0x20e] sm:$0xff] }
 0x229   :  { %10572 = vmatmul.mubr.msk.f32.gmra.mrb[22].mxu0 %vm95_vm0, %v2960_v12  ;;  %v3383_v12 = vld [vmem:[%s15658_s0 + $0xbe] sm:$0xff] }
 0x22a   :  { %11076 = vmatmul.mubr.msk.f32.gmra.mrb[22].mxu1 %vm95_vm0, %v9321_v13  ;;  %10574 = vmatprep.mubr.msk.f32.mxu0 %vm95_vm0, %v2961_v14  ;;  %v9389_v13 = vld [vmem:[%s15658_s0 + $0x216] sm:$0xff]  ;;  %v3384_v14 = vld [vmem:[%s15658_s0 + $0xc6] sm:$0xff] }
 0x22b   :  { %11078 = vmatprep.mubr.msk.f32.mxu1 %vm95_vm0, %v9322_v15  ;;  %v9390_v15 = vld [vmem:[%s15658_s0 + $0x21e] sm:$0xff] }
 0x22d   :  { %10575 = vmatmul.mubr.msk.f32.gmra.mrb[24].mxu0 %vm95_vm0, %v2962_v16  ;;  %v3385_v16 = vld [vmem:[%s15658_s0 + $0xce] sm:$0xff] }
 0x22e   :  { %11079 = vmatmul.mubr.msk.f32.gmra.mrb[24].mxu1 %vm95_vm0, %v9323_v18  ;;  %10577 = vmatprep.mubr.msk.f32.mxu0 %vm95_vm0, %v2963_v19  ;;  %v9391_v18 = vld [vmem:[%s15658_s0 + $0x226] sm:$0xff]  ;;  %v3386_v19 = vld [vmem:[%s15658_s0 + $0xd6] sm:$0xff] }
 0x22f   :  { %11081 = vmatprep.mubr.msk.f32.mxu1 %vm95_vm0, %v9324_v20  ;;  %v9392_v20 = vld [vmem:[%s15658_s0 + $0x22e] sm:$0xff] }
 0x231   :  { %10578 = vmatmul.mubr.msk.f32.gmra.mrb[26].mxu0 %vm95_vm0, %v2964_v21  ;;  %v3387_v21 = vld [vmem:[%s15658_s0 + $0xde] sm:$0xff] }
 0x232   :  { %11082 = vmatmul.mubr.msk.f32.gmra.mrb[26].mxu1 %vm95_vm0, %v9325_v22  ;;  %10580 = vmatprep.mubr.msk.f32.mxu0 %vm95_vm0, %v2965_v23  ;;  %v9393_v22 = vld [vmem:[%s15658_s0 + $0x236] sm:$0xff]  ;;  %v3388_v23 = vld [vmem:[%s15658_s0 + $0xe6] sm:$0xff] }
 0x233   :  { %11084 = vmatprep.mubr.msk.f32.mxu1 %vm95_vm0, %v9326_v24  ;;  %v9394_v24 = vld [vmem:[%s15658_s0 + $0x23e] sm:$0xff] }
 0x235   :  { %10581 = vmatmul.mubr.msk.f32.gmra.mrb[28].mxu0 %vm95_vm0, %v2966_v25  ;;  %v3389_v25 = vld [vmem:[%s15658_s0 + $0xee] sm:$0xff] }
 0x236   :  { %11085 = vmatmul.mubr.msk.f32.gmra.mrb[28].mxu1 %vm95_vm0, %v9327_v26  ;;  %10583 = vmatprep.mubr.msk.f32.mxu0 %vm95_vm0, %v2967_v27  ;;  %v9395_v26 = vld [vmem:[%s15658_s0 + $0x246] sm:$0xff]  ;;  %v3390_v27 = vld [vmem:[%s15658_s0 + $0xf6] sm:$0xff] }
 0x237   :  { %11087 = vmatprep.mubr.msk.f32.mxu1 %vm95_vm0, %v9328_v28  ;;  %v9396_v28 = vld [vmem:[%s15658_s0 + $0x24e] sm:$0xff] }
 0x239   :  { %10584 = vmatmul.mubr.msk.f32.gmra.mrb[30].mxu0 %vm95_vm0, %v2968_v29  ;;  %v3391_v29 = vld [vmem:[%s15658_s0 + $0xfe] sm:$0xff] }
 0x23a   :  { %11088 = vmatmul.mubr.msk.f32.gmra.mrb[30].mxu1 %vm95_vm0, %v9329_v30  ;;  %10586 = vmatprep.mubr.msk.f32.mxu0 %vm95_vm0, %v2969_v17  ;;  %v9397_v30 = vld [vmem:[%s15658_s0 + $0x256] sm:$0xff]  ;;  %v3392_v17 = vld [vmem:[%s15658_s0 + $0x106] sm:$0xff] }
 0x23b   :  { %11090 = vmatprep.mubr.msk.f32.mxu1 %vm95_vm0, %v9330_v31  ;;  %v9398_v31 = vld [vmem:[%s15658_s0 + $0x25e] sm:$0xff] }
 0x23d   :  { %10587 = vmatmul.mubr.msk.f32.gmra.mrb[32].mxu0 %vm95_vm0, %v2970_v32  ;;  %v3393_v32 = vld [vmem:[%s15658_s0 + $0x10e] sm:$0xff] }
 0x23e   :  { %11091 = vmatmul.mubr.msk.f32.gmra.mrb[32].mxu1 %vm95_vm0, %v9331_v33  ;;  %10589 = vmatprep.mubr.msk.f32.mxu0 %vm95_vm0, %v2971_v34  ;;  %v9399_v33 = vld [vmem:[%s15658_s0 + $0x266] sm:$0xff]  ;;  %v3394_v34 = vld [vmem:[%s15658_s0 + $0x116] sm:$0xff] }
 0x23f   :  { %11093 = vmatprep.mubr.msk.f32.mxu1 %vm95_vm0, %v9332_v35  ;;  %v9400_v35 = vld [vmem:[%s15658_s0 + $0x26e] sm:$0xff] }
 0x241   :  { %10590 = vmatmul.mubr.msk.f32.gmra.mrb[34].mxu0 %vm95_vm0, %v2972_v36  ;;  %v3395_v36 = vld [vmem:[%s15658_s0 + $0x11e] sm:$0xff] }
 0x242   :  { %11094 = vmatmul.mubr.msk.f32.gmra.mrb[34].mxu1 %vm95_vm0, %v9333_v37  ;;  %10594 = vmatprep.mubr.msk.f32.mxu0 %vm95_vm0, %v3364_v38  ;;  %v9401_v37 = vld [vmem:[%s15658_s0 + $0x276] sm:$0xff]  ;;  %v3396_v38 = vld [vmem:[%s15658_s0 + $0x126] sm:$0xff] }
 0x243   :  { %11098 = vmatprep.mubr.msk.f32.mxu1 %vm95_vm0, %v9370_v39  ;;  %v9402_v39 = vld [vmem:[%s15658_s0 + $0x27e] sm:$0xff] }
 0x245   :  { %10595 = vmatmul.mubr.msk.f32.vlgmr.msra.gmra.mrb[0].mxu0 %vm95_vm0, %v3365_v41  ;;  %v3397_v41 = vld [vmem:[%s15658_s0 + $0x12e] sm:$0xff] }
 0x246   :  { %11099 = vmatmul.mubr.msk.f32.vlgmr.msra.gmra.mrb[0].mxu1 %vm95_vm0, %v9371_v42  ;;  %10597 = vmatprep.mubr.msk.f32.mxu0 %vm95_vm0, %v3366_v43  ;;  %v9403_v42 = vld [vmem:[%s15658_s0 + $0x286] sm:$0xff]  ;;  %v3398_v43 = vld [vmem:[%s15658_s0 + $0x136] sm:$0xff] }
 0x247   :  { %11101 = vmatprep.mubr.msk.f32.mxu1 %vm95_vm0, %v9372_v44  ;;  %v9404_v44 = vld [vmem:[%s15658_s0 + $0x28e] sm:$0xff] }
 0x249   :  { %10598 = vmatmul.mubr.msk.f32.gmra.mrb[2].mxu0 %vm95_vm0, %v3367_v45  ;;  %v3399_v45 = vld [vmem:[%s15658_s0 + $0x13e] sm:$0xff] }
 0x24a   :  { %11102 = vmatmul.mubr.msk.f32.gmra.mrb[2].mxu1 %vm95_vm0, %v9373_v46  ;;  %10600 = vmatprep.mubr.msk.f32.mxu0 %vm95_vm0, %v3368_v47  ;;  %v9405_v46 = vld [vmem:[%s15658_s0 + $0x296] sm:$0xff]  ;;  %v7584_v47 = vpop.permute.xlu0 %7583 }
 0x24b   :  { %11104 = vmatprep.mubr.msk.f32.mxu1 %vm95_vm0, %v9374_v48  ;;  %v7594_v48 = vpop.permute.xlu1 %7593 }
 0x24d   :  { %10601 = vmatmul.mubr.msk.f32.gmra.mrb[4].mxu0 %vm95_vm0, %v3369_v49 }
 0x24e   :  { %11105 = vmatmul.mubr.msk.f32.gmra.mrb[4].mxu1 %vm95_vm0, %v9375_v50  ;;  %10603 = vmatprep.mubr.msk.f32.mxu0 %vm95_vm0, %v3370_v51  ;;  %v7589_v49 = vpop.permute.xlu0 %7588 }
 0x24f   :  { %11107 = vmatprep.mubr.msk.f32.mxu1 %vm95_vm0, %v9376_v52 }
 0x251   :  { %10604 = vmatmul.mubr.msk.f32.gmra.mrb[6].mxu0 %vm95_vm0, %v3371_v53 }
 0x252   :  { %11108 = vmatmul.mubr.msk.f32.gmra.mrb[6].mxu1 %vm95_vm0, %v9377_v40  ;;  %10606 = vmatprep.mubr.msk.f32.mxu0 %vm95_vm0, %v3372_v54 }
 0x253   :  { %11110 = vmatprep.mubr.msk.f32.mxu1 %vm95_vm0, %v9378_v55 }
 0x255   :  { %10607 = vmatmul.mubr.msk.f32.gmra.mrb[8].mxu0 %vm95_vm0, %v3373_v56 }
 0x256   :  { %11111 = vmatmul.mubr.msk.f32.gmra.mrb[8].mxu1 %vm95_vm0, %v9379_v57  ;;  %10609 = vmatprep.mubr.msk.f32.mxu0 %vm95_vm0, %v3374_v58 }
 0x257   :  { %11113 = vmatprep.mubr.msk.f32.mxu1 %vm95_vm0, %v9380_v59  ;;  %v7599_v59 = vpop.permute.xlu1 %7598 }
 0x259   :  { %10610 = vmatmul.mubr.msk.f32.gmra.mrb[10].mxu0 %vm95_vm0, %v3375_v60 }
 0x25a   :  { %11114 = vmatmul.mubr.msk.f32.gmra.mrb[10].mxu1 %vm95_vm0, %v9381_v61  ;;  %10612 = vmatprep.mubr.msk.f32.mxu0 %vm95_vm0, %v3376_v62 }
 0x25b   :  { %11116 = vmatprep.mubr.msk.f32.mxu1 %vm95_vm0, %v9382_v63 }
 0x25d   :  { %10613 = vmatmul.mubr.msk.f32.gmra.mrb[12].mxu0 %vm95_vm0, %v3377_v0 }
 0x25e   :  { %11117 = vmatmul.mubr.msk.f32.gmra.mrb[12].mxu1 %vm95_vm0, %v9383_v1  ;;  %10615 = vmatprep.mubr.msk.f32.mxu0 %vm95_vm0, %v3378_v2 }
 0x25f   :  { %11119 = vmatprep.mubr.msk.f32.mxu1 %vm95_vm0, %v9384_v3 }
 0x261   :  { %10616 = vmatmul.mubr.msk.f32.gmra.mrb[14].mxu0 %vm95_vm0, %v3379_v4 }
 0x262   :  { %11120 = vmatmul.mubr.msk.f32.gmra.mrb[14].mxu1 %vm95_vm0, %v9385_v5  ;;  %10618 = vmatprep.mubr.msk.f32.mxu0 %vm95_vm0, %v3380_v6 }
 0x263   :  { %11122 = vmatprep.mubr.msk.f32.mxu1 %vm95_vm0, %v9386_v7 }
 0x265   :  { %10619 = vmatmul.mubr.msk.f32.gmra.mrb[16].mxu0 %vm95_vm0, %v3381_v8 }
 0x266   :  { %11123 = vmatmul.mubr.msk.f32.gmra.mrb[16].mxu1 %vm95_vm0, %v9387_v9  ;;  %10621 = vmatprep.mubr.msk.f32.mxu0 %vm95_vm0, %v3382_v10 }
 0x267   :  { %11125 = vmatprep.mubr.msk.f32.mxu1 %vm95_vm0, %v9388_v11 }
 0x269   :  { %10622 = vmatmul.mubr.msk.f32.gmra.mrb[18].mxu0 %vm95_vm0, %v3383_v12 }
 0x26a   :  { %11126 = vmatmul.mubr.msk.f32.gmra.mrb[18].mxu1 %vm95_vm0, %v9389_v13  ;;  %10624 = vmatprep.mubr.msk.f32.mxu0 %vm95_vm0, %v3384_v14 }
 0x26b   :  { %11128 = vmatprep.mubr.msk.f32.mxu1 %vm95_vm0, %v9390_v15 }
 0x26d   :  { %10625 = vmatmul.mubr.msk.f32.gmra.mrb[20].mxu0 %vm95_vm0, %v3385_v16  ;;  %v7604_v16 = vpop.permute.xlu0 %7603 }
 0x26e   :  { %11129 = vmatmul.mubr.msk.f32.gmra.mrb[20].mxu1 %vm95_vm0, %v9391_v18  ;;  %10627 = vmatprep.mubr.msk.f32.mxu0 %vm95_vm0, %v3386_v19 }
 0x26f   :  { %11131 = vmatprep.mubr.msk.f32.mxu1 %vm95_vm0, %v9392_v20 }
 0x271   :  { %10628 = vmatmul.mubr.msk.f32.gmra.mrb[22].mxu0 %vm95_vm0, %v3387_v21 }
 0x272   :  { %11132 = vmatmul.mubr.msk.f32.gmra.mrb[22].mxu1 %vm95_vm0, %v9393_v22  ;;  %10630 = vmatprep.mubr.msk.f32.mxu0 %vm95_vm0, %v3388_v23 }
 0x273   :  { %11134 = vmatprep.mubr.msk.f32.mxu1 %vm95_vm0, %v9394_v24 }
 0x275   :  { %10631 = vmatmul.mubr.msk.f32.gmra.mrb[24].mxu0 %vm95_vm0, %v3389_v25 }
 0x276   :  { %11135 = vmatmul.mubr.msk.f32.gmra.mrb[24].mxu1 %vm95_vm0, %v9395_v26  ;;  %10633 = vmatprep.mubr.msk.f32.mxu0 %vm95_vm0, %v3390_v27  ;;  %v7609_v27 = vpop.permute.xlu1 %7608 }
 0x277   :  { %11137 = vmatprep.mubr.msk.f32.mxu1 %vm95_vm0, %v9396_v28 }
 0x279   :  { %10634 = vmatmul.mubr.msk.f32.gmra.mrb[26].mxu0 %vm95_vm0, %v3391_v29 }
 0x27a   :  { %11138 = vmatmul.mubr.msk.f32.gmra.mrb[26].mxu1 %vm95_vm0, %v9397_v30  ;;  %10636 = vmatprep.mubr.msk.f32.mxu0 %vm95_vm0, %v3392_v17 }
 0x27b   :  { %11140 = vmatprep.mubr.msk.f32.mxu1 %vm95_vm0, %v9398_v31 }
 0x27d   :  { %10637 = vmatmul.mubr.msk.f32.gmra.mrb[28].mxu0 %vm95_vm0, %v3393_v32 }
 0x27e   :  { %11141 = vmatmul.mubr.msk.f32.gmra.mrb[28].mxu1 %vm95_vm0, %v9399_v33  ;;  %10639 = vmatprep.mubr.msk.f32.mxu0 %vm95_vm0, %v3394_v34 }
 0x27f   :  { %11143 = vmatprep.mubr.msk.f32.mxu1 %vm95_vm0, %v9400_v35 }
 0x281   :  { %10640 = vmatmul.mubr.msk.f32.gmra.mrb[30].mxu0 %vm95_vm0, %v3395_v36 }
 0x282   :  { %11144 = vmatmul.mubr.msk.f32.gmra.mrb[30].mxu1 %vm95_vm0, %v9401_v37  ;;  %10642 = vmatprep.mubr.msk.f32.mxu0 %vm95_vm0, %v3396_v38 }
 0x283   :  { %11146 = vmatprep.mubr.msk.f32.mxu1 %vm95_vm0, %v9402_v39 }
 0x285   :  { %10643 = vmatmul.mubr.msk.f32.gmra.mrb[32].mxu0 %vm95_vm0, %v3397_v41 }
 0x286   :  { %11147 = vmatmul.mubr.msk.f32.gmra.mrb[32].mxu1 %vm95_vm0, %v9403_v42  ;;  %10645 = vmatprep.mubr.msk.f32.mxu0 %vm95_vm0, %v3398_v43 }
 0x287   :  { %11149 = vmatprep.mubr.msk.f32.mxu1 %vm95_vm0, %v9404_v44 }
 0x289   :  { %10646 = vmatmul.mubr.msk.f32.gmra.mrb[34].mxu0 %vm95_vm0, %v3399_v45 }
 0x28a   :  { %11150 = vmatmul.mubr.msk.f32.gmra.mrb[34].mxu1 %vm95_vm0, %v9405_v46 }
 0x318   :  { %v14669_v50 = vpop.f32.mrb[0].mxu0 }
 0x319   :  { %v7762_v51 = vmul.f32 %v14669_v50, %v7589_v49  ;;  %v14672_v52 = vpop.f32.mrb[0].mxu1  ;;  %v14674_v53 = vpop.f32.mrb[1].mxu0 }
 0x31a   :  { %15735 = vst [vmem:[#allocation2_spill] sm:$0xff] %v14672_v52  ;;  %v7991_v40 = vmul.f32 %v14672_v52, %v7589_v49  ;;  %v7761_v54 = vmul.f32 %v7584_v47, %v14674_v53  ;;  %v14678_v55 = vpop.f32.mrb[1].mxu1 }
 0x31b   :  { %15736 = vst [vmem:[#allocation3_spill] sm:$0xff] %v14678_v55  ;;  %v7799_v56 = vsel %vm7797_vm1, %v7762_v51, 0.0  ;;  %v7877_v57 = vmul.f32 %v14669_v50, %v7762_v51  ;;  %v7990_v58 = vmul.f32 %v7584_v47, %v14678_v55 }
 0x31c   :  { %v8027_v60 = vsel %vm7797_vm1, %v7991_v40, 0.0  ;;  %v8105_v61 = vmul.f32 %v14672_v52, %v7991_v40  ;;  %v7798_v62 = vsel %vm7797_vm1, %v7761_v54, 0.0  ;;  %v7876_v63 = vmul.f32 %v7761_v54, %v14674_v53  ;;  %v14687_v0 = vpop.f32.mrb[2].mxu0 }
 0x31d   :  { %v7913_v1 = vsel %vm7797_vm1, %v7877_v57, 0.0  ;;  %v7800_v2 = vadd.f32 %v7799_v56, %v7798_v62  ;;  %v8026_v3 = vsel %vm7797_vm1, %v7990_v58, 0.0  ;;  %v8104_v4 = vmul.f32 %v7990_v58, %v14678_v55  ;;  %v14692_v5 = vpop.f32.mrb[2].mxu1  ;;  %v14694_v6 = vpop.f32.mrb[3].mxu0 }
 0x31e   :  { %15737 = vst [vmem:[#allocation4_spill] sm:$0xff] %v14692_v5  ;;  %v8141_v7 = vsel %vm7797_vm1, %v8105_v61, 0.0  ;;  %v7912_v8 = vsel %vm7797_vm1, %v7876_v63, 0.0  ;;  %v8028_v9 = vadd.f32 %v8027_v60, %v8026_v3  ;;  %v7764_v10 = vmul.f32 %v14687_v0, %v7599_v59  ;;  %v14699_v11 = vpop.f32.mrb[3].mxu1  ;;  %v7614_v56 = vpop.permute.xlu0 %7613 }
 0x31f   :  { %15738 = vst [vmem:[#allocation5_spill] sm:$0xff] %v14699_v11  ;;  %v7914_v12 = vadd.f32 %v7913_v1, %v7912_v8  ;;  %v8140_v13 = vsel %vm7797_vm1, %v8104_v4, 0.0  ;;  %v7993_v14 = vmul.f32 %v14692_v5, %v7599_v59  ;;  %v7763_v15 = vmul.f32 %v7594_v48, %v14694_v6  ;;  %v7619_v61 = vpop.permute.xlu1 %7618 }
 0x320   :  { %v8142_v18 = vadd.f32 %v8141_v7, %v8140_v13  ;;  %v7992_v19 = vmul.f32 %v7594_v48, %v14699_v11  ;;  %v14705_v20 = vpop.f32.mrb[4].mxu0  ;;  %v7803_v21 = vsel %vm7797_vm1, %v7764_v10, 0.0  ;;  %v7879_v22 = vmul.f32 %v14687_v0, %v7764_v10 }
 0x321   :  { %v7801_v23 = vsel %vm7797_vm1, %v7763_v15, 0.0  ;;  %v7878_v24 = vmul.f32 %v7763_v15, %v14694_v6  ;;  %v14711_v25 = vpop.f32.mrb[4].mxu1  ;;  %v14713_v26 = vpop.f32.mrb[5].mxu0  ;;  %v8107_v28 = vmul.f32 %v14692_v5, %v7993_v14  ;;  %v8031_v32 = vsel %vm7797_vm1, %v7993_v14, 0.0 }
 0x322   :  { %15739 = vst [vmem:[#allocation6_spill] sm:$0xff] %v14711_v25  ;;  %v7802_v29 = vadd.f32 %v7801_v23, %v7800_v2  ;;  %v8029_v30 = vsel %vm7797_vm1, %v7992_v19, 0.0  ;;  %v8106_v17 = vmul.f32 %v7992_v19, %v14699_v11  ;;  %v14718_v31 = vpop.f32.mrb[5].mxu1  ;;  %v7766_v35 = vmul.f32 %v14705_v20, %v7609_v27 }
 0x323   :  { %15740 = vst [vmem:[#allocation7_spill] sm:$0xff] %v14718_v31  ;;  %v7915_v33 = vsel %vm7797_vm1, %v7878_v24, 0.0  ;;  %v8030_v34 = vadd.f32 %v8029_v30, %v8028_v9  ;;  %v7995_v38 = vmul.f32 %v14711_v25, %v7609_v27  ;;  %v7765_v39 = vmul.f32 %v7604_v16, %v14713_v26 }
 0x324   :  { %v7916_v36 = vadd.f32 %v7915_v33, %v7914_v12  ;;  %v8143_v37 = vsel %vm7797_vm1, %v8106_v17, 0.0  ;;  %v14726_v41 = vpop.f32.mrb[6].mxu0  ;;  %v7917_v42 = vsel %vm7797_vm1, %v7879_v22, 0.0  ;;  %v7881_v44 = vmul.f32 %v14705_v20, %v7766_v35 }
 0x325   :  { %v8144_v43 = vadd.f32 %v8143_v37, %v8142_v18  ;;  %v7804_v45 = vadd.f32 %v7803_v21, %v7802_v29  ;;  %v14730_v46 = vpop.f32.mrb[6].mxu1  ;;  %v14732_v47 = vpop.f32.mrb[7].mxu0  ;;  %v8145_v48 = vsel %vm7797_vm1, %v8107_v28, 0.0  ;;  %v7807_v49 = vsel %vm7797_vm1, %v7766_v35, 0.0 }
 0x326   :  { %15741 = vst [vmem:[#allocation8_spill] sm:$0xff] %v14730_v46  ;;  %v7805_v51 = vsel %vm7797_vm1, %v7765_v39, 0.0  ;;  %v7880_v40 = vmul.f32 %v7765_v39, %v14713_v26  ;;  %v14738_v54 = vpop.f32.mrb[7].mxu1  ;;  %v8109_v57 = vmul.f32 %v14711_v25, %v7995_v38  ;;  %v7918_v59 = vadd.f32 %v7917_v42, %v7916_v36  ;;  %v7629_v35 = vpop.permute.xlu1 %7628 }
 0x327   :  { %15742 = vst [vmem:[#allocation9_spill] sm:$0xff] %v14738_v54  ;;  %v7806_v58 = vadd.f32 %v7805_v51, %v7804_v45  ;;  %v7994_v60 = vmul.f32 %v7604_v16, %v14718_v31  ;;  %v7921_v62 = vsel %vm7797_vm1, %v7881_v44, 0.0  ;;  %v8032_v1 = vadd.f32 %v8031_v32, %v8030_v34 }
 0x328   :  { %v7919_v63 = vsel %vm7797_vm1, %v7880_v40, 0.0  ;;  %v8146_v2 = vadd.f32 %v8145_v48, %v8144_v43  ;;  %v14744_v3 = vpop.f32.mrb[8].mxu0  ;;  %v7768_v9 = vmul.f32 %v14726_v41, %v7619_v61  ;;  %v7997_v14 = vmul.f32 %v14730_v46, %v7619_v61  ;;  %v7624_v48 = vpop.permute.xlu0 %7623 }
 0x329   :  { %v7920_v4 = vadd.f32 %v7919_v63, %v7918_v59  ;;  %v8033_v7 = vsel %vm7797_vm1, %v7994_v60, 0.0  ;;  %v8108_v8 = vmul.f32 %v7994_v60, %v14718_v31  ;;  %v14749_v10 = vpop.f32.mrb[8].mxu1  ;;  %v14751_v12 = vpop.f32.mrb[9].mxu0  ;;  %v7767_v15 = vmul.f32 %v7614_v56, %v14732_v47 }
 0x32a   :  { %15743 = vst [vmem:[#allocation10_spill] sm:$0xff] %v14749_v10  ;;  %v8034_v13 = vadd.f32 %v8033_v7, %v8032_v1  ;;  %v7808_v16 = vadd.f32 %v7807_v49, %v7806_v58  ;;  %v14755_v18 = vpop.f32.mrb[9].mxu1  ;;  %v8035_v22 = vsel %vm7797_vm1, %v7995_v38, 0.0  ;;  %v8149_v23 = vsel %vm7797_vm1, %v8109_v57, 0.0 }
 0x32b   :  { %15744 = vst [vmem:[#allocation11_spill] sm:$0xff] %v14755_v18  ;;  %v8147_v19 = vsel %vm7797_vm1, %v8108_v8, 0.0  ;;  %v7922_v21 = vadd.f32 %v7921_v62, %v7920_v4  ;;  %v7809_v27 = vsel %vm7797_vm1, %v7767_v15, 0.0  ;;  %v7883_v29 = vmul.f32 %v14726_v41, %v7768_v9 }
 0x32c   :  { %v8148_v24 = vadd.f32 %v8147_v19, %v8146_v2  ;;  %v14761_v28 = vpop.f32.mrb[10].mxu0  ;;  %v7810_v30 = vadd.f32 %v7809_v27, %v7808_v16  ;;  %v7882_v17 = vmul.f32 %v7767_v15, %v14732_v47  ;;  %v7996_v32 = vmul.f32 %v7614_v56, %v14738_v54  ;;  %v7639_v16 = vpop.permute.xlu1 %7638 }
 0x32d   :  { %v14766_v33 = vpop.f32.mrb[10].mxu1  ;;  %v14768_v34 = vpop.f32.mrb[11].mxu0  ;;  %v8111_v36 = vmul.f32 %v14730_v46, %v7997_v14  ;;  %v8036_v37 = vadd.f32 %v8035_v22, %v8034_v13  ;;  %v7770_v45 = vmul.f32 %v14744_v3, %v7629_v35  ;;  %v7811_v49 = vsel %vm7797_vm1, %v7768_v9, 0.0 }
 0x32e   :  { %15745 = vst [vmem:[#allocation12_spill] sm:$0xff] %v14766_v33  ;;  %v8150_v38 = vadd.f32 %v8149_v23, %v8148_v24  ;;  %v14771_v39 = vpop.f32.mrb[11].mxu1  ;;  %v7923_v42 = vsel %vm7797_vm1, %v7882_v17, 0.0  ;;  %v8037_v43 = vsel %vm7797_vm1, %v7996_v32, 0.0  ;;  %v8110_v44 = vmul.f32 %v7996_v32, %v14738_v54 }
 0x32f   :  { %15746 = vst [vmem:[#allocation13_spill] sm:$0xff] %v14771_v39  ;;  %v7924_v51 = vadd.f32 %v7923_v42, %v7922_v21  ;;  %v8038_v40 = vadd.f32 %v8037_v43, %v8036_v37  ;;  %v7999_v56 = vmul.f32 %v14749_v10, %v7629_v35  ;;  %v7925_v58 = vsel %vm7797_vm1, %v7883_v29, 0.0 }
 0x330   :  { %v14779_v57 = vpop.f32.mrb[12].mxu0  ;;  %v8039_v59 = vsel %vm7797_vm1, %v7997_v14, 0.0  ;;  %v8151_v60 = vsel %vm7797_vm1, %v8110_v44, 0.0  ;;  %v7769_v61 = vmul.f32 %v7624_v48, %v14751_v12  ;;  %v8153_v1 = vsel %vm7797_vm1, %v8111_v36, 0.0  ;;  %v7634_v36 = vpop.permute.xlu0 %7633 }
 0x331   :  { %15747 = vst [vmem:[#allocation14_spill] sm:$0xff] %v14779_v57  ;;  %v14785_v62 = vpop.f32.mrb[12].mxu1  ;;  %v14787_v63 = vpop.f32.mrb[13].mxu0  ;;  %v8152_v2 = vadd.f32 %v8151_v60, %v8150_v38  ;;  %v7812_v4 = vadd.f32 %v7811_v49, %v7810_v30  ;;  %v7926_v7 = vadd.f32 %v7925_v58, %v7924_v51  ;;  %v7885_v9 = vmul.f32 %v14744_v3, %v7770_v45 }
 0x332   :  { %15748 = vst [vmem:[#allocation15_spill] sm:$0xff] %v14785_v62  ;;  %v14790_v8 = vpop.f32.mrb[13].mxu1  ;;  %v7813_v13 = vsel %vm7797_vm1, %v7769_v61, 0.0  ;;  %v7884_v14 = vmul.f32 %v7769_v61, %v14751_v12  ;;  %v7998_v15 = vmul.f32 %v7624_v48, %v14755_v18  ;;  %v8113_v19 = vmul.f32 %v14749_v10, %v7999_v56 }
 0x333   :  { %15749 = vst [vmem:[#allocation16_spill] sm:$0xff] %v14790_v8  ;;  %v7814_v21 = vadd.f32 %v7813_v13, %v7812_v4  ;;  %v8040_v22 = vadd.f32 %v8039_v59, %v8038_v40  ;;  %v8154_v23 = vadd.f32 %v8153_v1, %v8152_v2  ;;  %v7772_v17 = vmul.f32 %v14761_v28, %v7639_v16  ;;  %v7649_v13 = vpop.permute.xlu1 %7648 }
 0x334   :  { %v14797_v24 = vpop.f32.mrb[14].mxu0  ;;  %v7927_v27 = vsel %vm7797_vm1, %v7884_v14, 0.0  ;;  %v8041_v29 = vsel %vm7797_vm1, %v7998_v15, 0.0  ;;  %v8112_v30 = vmul.f32 %v7998_v15, %v14755_v18  ;;  %v7815_v37 = vsel %vm7797_vm1, %v7770_v45, 0.0 }
 0x335   :  { %15750 = vst [vmem:[#allocation17_spill] sm:$0xff] %v14797_v24  ;;  %v14803_v32 = vpop.f32.mrb[14].mxu1  ;;  %v14805_v35 = vpop.f32.mrb[15].mxu0  ;;  %v7928_v38 = vadd.f32 %v7927_v27, %v7926_v7  ;;  %v8042_v42 = vadd.f32 %v8041_v29, %v8040_v22  ;;  %v8001_v43 = vmul.f32 %v14766_v33, %v7639_v16  ;;  %v7929_v48 = vsel %vm7797_vm1, %v7885_v9, 0.0 }
 0x336   :  { %15751 = vst [vmem:[#allocation18_spill] sm:$0xff] %v14803_v32  ;;  %15752 = vst [vmem:[#allocation19_spill] sm:$0xff] %v14805_v35  ;;  %v14809_v44 = vpop.f32.mrb[15].mxu1  ;;  %v8043_v49 = vsel %vm7797_vm1, %v7999_v56, 0.0  ;;  %v8155_v51 = vsel %vm7797_vm1, %v8112_v30, 0.0  ;;  %v7771_v40 = vmul.f32 %v7634_v36, %v14768_v34  ;;  %v8157_v58 = vsel %vm7797_vm1, %v8113_v19, 0.0  ;;  %v7644_v30 = vpop.permute.xlu0 %7643 }
 0x337   :  { %15753 = vst [vmem:[#allocation20_spill] sm:$0xff] %v14809_v44  ;;  %v8156_v59 = vadd.f32 %v8155_v51, %v8154_v23  ;;  %v7816_v60 = vadd.f32 %v7815_v37, %v7814_v21  ;;  %v7930_v61 = vadd.f32 %v7929_v48, %v7928_v38  ;;  %v7887_v1 = vmul.f32 %v14761_v28, %v7772_v17 }
 0x338   :  { %v14816_v45 = vpop.f32.mrb[16].mxu0  ;;  %v7817_v2 = vsel %vm7797_vm1, %v7771_v40, 0.0  ;;  %v7886_v4 = vmul.f32 %v7771_v40, %v14768_v34  ;;  %v8000_v7 = vmul.f32 %v7634_v36, %v14771_v39  ;;  %v8115_v14 = vmul.f32 %v14766_v33, %v8001_v43 }
 0x339   :  { %15754 = vst [vmem:[#allocation21_spill] sm:$0xff] %v14816_v45  ;;  %v14822_v56 = vpop.f32.mrb[16].mxu1  ;;  %v14824_v9 = vpop.f32.mrb[17].mxu0  ;;  %v7818_v15 = vadd.f32 %v7817_v2, %v7816_v60  ;;  %v8044_v16 = vadd.f32 %v8043_v49, %v8042_v42  ;;  %v8158_v19 = vadd.f32 %v8157_v58, %v8156_v59  ;;  %v7774_v29 = vmul.f32 %v14779_v57, %v7649_v13 }
 0x33a   :  { %15755 = vst [vmem:[#allocation22_spill] sm:$0xff] %v14822_v56  ;;  %15756 = vst [vmem:[#allocation23_spill] sm:$0xff] %v14824_v9  ;;  %v14827_v21 = vpop.f32.mrb[17].mxu1  ;;  %v7931_v22 = vsel %vm7797_vm1, %v7886_v4, 0.0  ;;  %v8045_v23 = vsel %vm7797_vm1, %v8000_v7, 0.0  ;;  %v8114_v27 = vmul.f32 %v8000_v7, %v14771_v39  ;;  %v7819_v36 = vsel %vm7797_vm1, %v7772_v17, 0.0 }
 0x33b   :  { %15757 = vst [vmem:[#allocation24_spill] sm:$0xff] %v14827_v21  ;;  %v7932_v37 = vadd.f32 %v7931_v22, %v7930_v61  ;;  %v8046_v38 = vadd.f32 %v8045_v23, %v8044_v16  ;;  %v8003_v48 = vmul.f32 %v14785_v62, %v7649_v13  ;;  %v7933_v42 = vsel %vm7797_vm1, %v7887_v1, 0.0  ;;  %v7659_v22 = vpop.permute.xlu1 %7658 }
 0x33c   :  { %v14835_v51 = vpop.f32.mrb[18].mxu0  ;;  %v8047_v49 = vsel %vm7797_vm1, %v8001_v43, 0.0  ;;  %v8159_v40 = vsel %vm7797_vm1, %v8114_v27, 0.0  ;;  %v7773_v58 = vmul.f32 %v7644_v30, %v14787_v63  ;;  %v8161_v17 = vsel %vm7797_vm1, %v8115_v14, 0.0 }
 0x33d   :  { %15758 = vst [vmem:[#allocation25_spill] sm:$0xff] %v14835_v51  ;;  %v14841_v59 = vpop.f32.mrb[18].mxu1  ;;  %v14843_v60 = vpop.f32.mrb[19].mxu0  ;;  %v8160_v61 = vadd.f32 %v8159_v40, %v8158_v19  ;;  %v7820_v2 = vadd.f32 %v7819_v36, %v7818_v15  ;;  %v7934_v4 = vadd.f32 %v7933_v42, %v7932_v37  ;;  %v7889_v13 = vmul.f32 %v14779_v57, %v7774_v29 }
 0x33e   :  { %15759 = vst [vmem:[#allocation26_spill] sm:$0xff] %v14841_v59  ;;  %15760 = vst [vmem:[#allocation27_spill] sm:$0xff] %v14843_v60  ;;  %v14846_v7 = vpop.f32.mrb[19].mxu1  ;;  %v7821_v1 = vsel %vm7797_vm1, %v7773_v58, 0.0  ;;  %v7888_v43 = vmul.f32 %v7773_v58, %v14787_v63  ;;  %v8002_v16 = vmul.f32 %v7644_v30, %v14790_v8  ;;  %v8117_v23 = vmul.f32 %v14785_v62, %v8003_v48  ;;  %v7654_v30 = vpop.permute.xlu0 %7653 }
 0x33f   :  { %15761 = vst [vmem:[#allocation28_spill] sm:$0xff] %v14846_v7  ;;  %v7822_v27 = vadd.f32 %v7821_v1, %v7820_v2  ;;  %v8048_v33 = vadd.f32 %v8047_v49, %v8046_v38  ;;  %v8162_v39 = vadd.f32 %v8161_v17, %v8160_v61  ;;  %v7776_v37 = vmul.f32 %v14797_v24, %v7659_v22 }
 0x340   :  { %v14853_v14 = vpop.f32.mrb[20].mxu0  ;;  %v7935_v15 = vsel %vm7797_vm1, %v7888_v43, 0.0  ;;  %v8049_v19 = vsel %vm7797_vm1, %v8002_v16, 0.0  ;;  %v8116_v36 = vmul.f32 %v8002_v16, %v14790_v8  ;;  %v7823_v58 = vsel %vm7797_vm1, %v7774_v29, 0.0 }
 0x341   :  { %15762 = vst [vmem:[#allocation29_spill] sm:$0xff] %v14853_v14  ;;  %v14859_v42 = vpop.f32.mrb[20].mxu1  ;;  %v14861_v40 = vpop.f32.mrb[21].mxu0  ;;  %v7936_v2 = vadd.f32 %v7935_v15, %v7934_v4  ;;  %v8050_v38 = vadd.f32 %v8049_v19, %v8048_v33  ;;  %v8005_v49 = vmul.f32 %v14803_v32, %v7659_v22  ;;  %v7937_v61 = vsel %vm7797_vm1, %v7889_v13, 0.0 }
 0x342   :  { %15763 = vst [vmem:[#allocation30_spill] sm:$0xff] %v14859_v42  ;;  %15764 = vst [vmem:[#allocation31_spill] sm:$0xff] %v14861_v40  ;;  %v14865_v17 = vpop.f32.mrb[21].mxu1  ;;  %v8051_v1 = vsel %vm7797_vm1, %v8003_v48, 0.0  ;;  %v8163_v43 = vsel %vm7797_vm1, %v8116_v36, 0.0  ;;  %v7775_v16 = vmul.f32 %v7654_v30, %v14805_v35  ;;  %v8165_v62 = vsel %vm7797_vm1, %v8117_v23, 0.0  ;;  %v7669_v19 = vpop.permute.xlu1 %7668 }
 0x343   :  { %15765 = vst [vmem:[#allocation32_spill] sm:$0xff] %v14865_v17  ;;  %v8164_v8 = vadd.f32 %v8163_v43, %v8162_v39  ;;  %v7824_v10 = vadd.f32 %v7823_v58, %v7822_v27  ;;  %v7938_v18 = vadd.f32 %v7937_v61, %v7936_v2  ;;  %v7891_v33 = vmul.f32 %v14797_v24, %v7776_v37 }
 0x344   :  { %v14872_v29 = vpop.f32.mrb[22].mxu0  ;;  %v7825_v4 = vsel %vm7797_vm1, %v7775_v16, 0.0  ;;  %v7890_v22 = vmul.f32 %v7775_v16, %v14805_v35  ;;  %v8004_v13 = vmul.f32 %v7654_v30, %v14809_v44  ;;  %v8119_v23 = vmul.f32 %v14803_v32, %v8005_v49  ;;  %v7664_v16 = vpop.permute.xlu0 %7663 }
 0x345   :  { %15766 = vst [vmem:[#allocation33_spill] sm:$0xff] %v14872_v29  ;;  %v14878_v48 = vpop.f32.mrb[22].mxu1  ;;  %v14880_v15 = vpop.f32.mrb[23].mxu0  ;;  %v7826_v39 = vadd.f32 %v7825_v4, %v7824_v10  ;;  %v8052_v27 = vadd.f32 %v8051_v1, %v8050_v38  ;;  %v8166_v36 = vadd.f32 %v8165_v62, %v8164_v8  ;;  %v7778_v30 = vmul.f32 %v14816_v45, %v7669_v19 }
 0x346   :  { %15767 = vst [vmem:[#allocation34_spill] sm:$0xff] %v14878_v48  ;;  %15768 = vst [vmem:[#allocation35_spill] sm:$0xff] %v14880_v15  ;;  %v14883_v58 = vpop.f32.mrb[23].mxu1  ;;  %v7939_v2 = vsel %vm7797_vm1, %v7890_v22, 0.0  ;;  %v8053_v61 = vsel %vm7797_vm1, %v8004_v13, 0.0  ;;  %v8118_v43 = vmul.f32 %v8004_v13, %v14809_v44  ;;  %v7827_v46 = vsel %vm7797_vm1, %v7776_v37, 0.0 }
 0x347   :  { %15769 = vst [vmem:[#allocation36_spill] sm:$0xff] %v14883_v58  ;;  %v7940_v54 = vadd.f32 %v7939_v2, %v7938_v18  ;;  %v8054_v25 = vadd.f32 %v8053_v61, %v8052_v27  ;;  %v8007_v32 = vmul.f32 %v14822_v56, %v7669_v19  ;;  %v7941_v62 = vsel %vm7797_vm1, %v7891_v33, 0.0 }
 0x348   :  { %v14891_v10 = vpop.f32.mrb[24].mxu0  ;;  %v8055_v8 = vsel %vm7797_vm1, %v8005_v49, 0.0  ;;  %v8167_v38 = vsel %vm7797_vm1, %v8118_v43, 0.0  ;;  %v7777_v1 = vmul.f32 %v7664_v16, %v14824_v9  ;;  %v8169_v37 = vsel %vm7797_vm1, %v8119_v23, 0.0  ;;  %v7679_v43 = vpop.permute.xlu1 %7678 }
 0x349   :  { %v14897_v4 = vpop.f32.mrb[24].mxu1  ;;  %v14899_v22 = vpop.f32.mrb[25].mxu0  ;;  %v8168_v18 = vadd.f32 %v8167_v38, %v8166_v36  ;;  %v7828_v13 = vadd.f32 %v7827_v46, %v7826_v39  ;;  %v7942_v27 = vadd.f32 %v7941_v62, %v7940_v54  ;;  %v7893_v2 = vmul.f32 %v14816_v45, %v7778_v30 }
 0x34a   :  { %v14902_v19 = vpop.f32.mrb[25].mxu1  ;;  %v7829_v33 = vsel %vm7797_vm1, %v7777_v1, 0.0  ;;  %v7892_v49 = vmul.f32 %v7777_v1, %v14824_v9  ;;  %v8006_v61 = vmul.f32 %v7664_v16, %v14827_v21  ;;  %v8121_v44 = vmul.f32 %v14822_v56, %v8007_v32  ;;  %v7674_v16 = vpop.permute.xlu0 %7673 }
 0x34b   :  { %v7830_v31 = vadd.f32 %v7829_v33, %v7828_v13  ;;  %v8056_v5 = vadd.f32 %v8055_v8, %v8054_v25  ;;  %v8170_v11 = vadd.f32 %v8169_v37, %v8168_v18  ;;  %v7780_v36 = vmul.f32 %v14835_v51, %v7679_v43 }
 0x34c   :  { %v14909_v23 = vpop.f32.mrb[26].mxu0  ;;  %v7943_v46 = vsel %vm7797_vm1, %v7892_v49, 0.0  ;;  %v8057_v54 = vsel %vm7797_vm1, %v8006_v61, 0.0  ;;  %v8120_v39 = vmul.f32 %v8006_v61, %v14827_v21  ;;  %v7831_v1 = vsel %vm7797_vm1, %v7778_v30, 0.0 }
 0x34d   :  { %v14915_v62 = vpop.f32.mrb[26].mxu1  ;;  %v14917_v38 = vpop.f32.mrb[27].mxu0  ;;  %v7944_v13 = vadd.f32 %v7943_v46, %v7942_v27  ;;  %v8058_v25 = vadd.f32 %v8057_v54, %v8056_v5  ;;  %v8009_v8 = vmul.f32 %v14841_v59, %v7679_v43  ;;  %v7945_v18 = vsel %vm7797_vm1, %v7893_v2, 0.0 }
 0x34e   :  { %v14921_v37 = vpop.f32.mrb[27].mxu1  ;;  %v8059_v33 = vsel %vm7797_vm1, %v8007_v32, 0.0  ;;  %v8171_v49 = vsel %vm7797_vm1, %v8120_v39, 0.0  ;;  %v7779_v61 = vmul.f32 %v7674_v16, %v14843_v60  ;;  %v8173_v56 = vsel %vm7797_vm1, %v8121_v44, 0.0  ;;  %v7689_v54 = vpop.permute.xlu1 %7688 }
 0x34f   :  { %v8172_v21 = vadd.f32 %v8171_v49, %v8170_v11  ;;  %v7832_v52 = vadd.f32 %v7831_v1, %v7830_v31  ;;  %v7946_v55 = vadd.f32 %v7945_v18, %v7944_v13  ;;  %v7895_v5 = vmul.f32 %v14835_v51, %v7780_v36 }
 0x350   :  { %v14928_v30 = vpop.f32.mrb[28].mxu0  ;;  %v7833_v27 = vsel %vm7797_vm1, %v7779_v61, 0.0  ;;  %v7894_v43 = vmul.f32 %v7779_v61, %v14843_v60  ;;  %v8008_v2 = vmul.f32 %v7674_v16, %v14846_v7  ;;  %v8123_v44 = vmul.f32 %v14841_v59, %v8009_v8  ;;  %v7684_v61 = vpop.permute.xlu0 %7683 }
 0x351   :  { %v14934_v32 = vpop.f32.mrb[28].mxu1  ;;  %v14936_v46 = vpop.f32.mrb[29].mxu0  ;;  %v7834_v11 = vadd.f32 %v7833_v27, %v7832_v52  ;;  %v8060_v31 = vadd.f32 %v8059_v33, %v8058_v25  ;;  %v8174_v39 = vadd.f32 %v8173_v56, %v8172_v21  ;;  %v7782_v16 = vmul.f32 %v14853_v14, %v7689_v54 }
 0x352   :  { %v14939_v1 = vpop.f32.mrb[29].mxu1  ;;  %v7947_v13 = vsel %vm7797_vm1, %v7894_v43, 0.0  ;;  %v8061_v18 = vsel %vm7797_vm1, %v8008_v2, 0.0  ;;  %v8122_v49 = vmul.f32 %v8008_v2, %v14846_v7  ;;  %v7835_v51 = vsel %vm7797_vm1, %v7780_v36, 0.0 }
 0x353   :  { %v7948_v60 = vadd.f32 %v7947_v13, %v7946_v55  ;;  %v8062_v45 = vadd.f32 %v8061_v18, %v8060_v31  ;;  %v8011_v59 = vmul.f32 %v14859_v42, %v7689_v54  ;;  %v7949_v56 = vsel %vm7797_vm1, %v7895_v5, 0.0 }
 0x354   :  { %v14947_v52 = vpop.f32.mrb[30].mxu0  ;;  %v8063_v21 = vsel %vm7797_vm1, %v8009_v8, 0.0  ;;  %v8175_v25 = vsel %vm7797_vm1, %v8122_v49, 0.0  ;;  %v7781_v33 = vmul.f32 %v7684_v61, %v14861_v40  ;;  %v8177_v36 = vsel %vm7797_vm1, %v8123_v44, 0.0  ;;  %v7699_v49 = vpop.permute.xlu1 %7698 }
 0x355   :  { %v14953_v27 = vpop.f32.mrb[30].mxu1  ;;  %v14955_v43 = vpop.f32.mrb[31].mxu0  ;;  %v8176_v55 = vadd.f32 %v8175_v25, %v8174_v39  ;;  %v7836_v2 = vadd.f32 %v7835_v51, %v7834_v11  ;;  %v7950_v31 = vadd.f32 %v7949_v56, %v7948_v60  ;;  %v7897_v13 = vmul.f32 %v14853_v14, %v7782_v16 }
 0x356   :  { %v14958_v54 = vpop.f32.mrb[31].mxu1  ;;  %v7837_v5 = vsel %vm7797_vm1, %v7781_v33, 0.0  ;;  %v7896_v8 = vmul.f32 %v7781_v33, %v14861_v40  ;;  %v8010_v18 = vmul.f32 %v7684_v61, %v14865_v17  ;;  %v8125_v7 = vmul.f32 %v14859_v42, %v8011_v59  ;;  %v7694_v61 = vpop.permute.xlu0 %7693 }
 0x357   :  { %v7838_v9 = vadd.f32 %v7837_v5, %v7836_v2  ;;  %v8064_v24 = vadd.f32 %v8063_v21, %v8062_v45  ;;  %v8178_v35 = vadd.f32 %v8177_v36, %v8176_v55  ;;  %v7784_v39 = vmul.f32 %v14872_v29, %v7699_v49 }
 0x358   :  { %v14965_v44 = vpop.f32.mrb[32].mxu0  ;;  %v7951_v51 = vsel %vm7797_vm1, %v7896_v8, 0.0  ;;  %v8065_v60 = vsel %vm7797_vm1, %v8010_v18, 0.0  ;;  %v8124_v11 = vmul.f32 %v8010_v18, %v14865_v17  ;;  %v7839_v33 = vsel %vm7797_vm1, %v7782_v16, 0.0 }
 0x359   :  { %v14971_v56 = vpop.f32.mrb[32].mxu1  ;;  %v14973_v25 = vpop.f32.mrb[33].mxu0  ;;  %v7952_v2 = vadd.f32 %v7951_v51, %v7950_v31  ;;  %v8066_v45 = vadd.f32 %v8065_v60, %v8064_v24  ;;  %v8013_v21 = vmul.f32 %v14878_v48, %v7699_v49  ;;  %v7953_v55 = vsel %vm7797_vm1, %v7897_v13, 0.0 }
 0x35a   :  { %v14977_v36 = vpop.f32.mrb[33].mxu1  ;;  %v8067_v5 = vsel %vm7797_vm1, %v8011_v59, 0.0  ;;  %v8179_v8 = vsel %vm7797_vm1, %v8124_v11, 0.0  ;;  %v7783_v18 = vmul.f32 %v7694_v61, %v14880_v15  ;;  %v8181_v42 = vsel %vm7797_vm1, %v8125_v7, 0.0  ;;  %v7709_v60 = vpop.permute.xlu1 %7708 }
 0x35b   :  { %v8180_v17 = vadd.f32 %v8179_v8, %v8178_v35  ;;  %v7840_v14 = vadd.f32 %v7839_v33, %v7838_v9  ;;  %v7954_v40 = vadd.f32 %v7953_v55, %v7952_v2  ;;  %v7899_v24 = vmul.f32 %v14872_v29, %v7784_v39 }
 0x35c   :  { %v14984_v16 = vpop.f32.mrb[34].mxu0  ;;  %v7841_v31 = vsel %vm7797_vm1, %v7783_v18, 0.0  ;;  %v7898_v49 = vmul.f32 %v7783_v18, %v14880_v15  ;;  %v8012_v13 = vmul.f32 %v7694_v61, %v14883_v58  ;;  %v8127_v7 = vmul.f32 %v14878_v48, %v8013_v21  ;;  %v7704_v18 = vpop.permute.xlu0 %7703 }
 0x35d   :  { %v14990_v59 = vpop.f32.mrb[34].mxu1  ;;  %v14992_v51 = vpop.f32.mrb[35].mxu0  ;;  %v7842_v35 = vadd.f32 %v7841_v31, %v7840_v14  ;;  %v8068_v9 = vadd.f32 %v8067_v5, %v8066_v45  ;;  %v8182_v11 = vadd.f32 %v8181_v42, %v8180_v17  ;;  %v7786_v61 = vmul.f32 %v14891_v10, %v7709_v60 }
 0x35e   :  { %15770 = vst [vmem:[#allocation37_spill] sm:$0xff] %v14990_v59  ;;  %v14995_v33 = vpop.f32.mrb[35].mxu1  ;;  %v7955_v2 = vsel %vm7797_vm1, %v7898_v49, 0.0  ;;  %v8069_v55 = vsel %vm7797_vm1, %v8012_v13, 0.0  ;;  %v8126_v8 = vmul.f32 %v8012_v13, %v14883_v58  ;;  %v7843_v29 = vsel %vm7797_vm1, %v7784_v39, 0.0 }
 0x35f   :  { %v7956_v15 = vadd.f32 %v7955_v2, %v7954_v40  ;;  %v8070_v57 = vadd.f32 %v8069_v55, %v8068_v9  ;;  %v8015_v48 = vmul.f32 %v14897_v4, %v7709_v60  ;;  %v7957_v14 = vsel %vm7797_vm1, %v7899_v24, 0.0  ;;  %v7719_v24 = vpop.permute.xlu1 %7718 }
 0x360   :  { %v8071_v42 = vsel %vm7797_vm1, %v8013_v21, 0.0  ;;  %v8183_v17 = vsel %vm7797_vm1, %v8126_v8, 0.0  ;;  %v7785_v45 = vmul.f32 %v7704_v18, %v14899_v22  ;;  %v8185_v5 = vsel %vm7797_vm1, %v8127_v7, 0.0 }
 0x361   :  { %v8184_v31 = vadd.f32 %v8183_v17, %v8182_v11  ;;  %v7844_v49 = vadd.f32 %v7843_v29, %v7842_v35  ;;  %v7958_v13 = vadd.f32 %v7957_v14, %v7956_v15  ;;  %v7901_v58 = vmul.f32 %v14891_v10, %v7786_v61  ;;  %v7714_v35 = vpop.permute.xlu0 %7713 }
 0x362   :  { %v7845_v40 = vsel %vm7797_vm1, %v7785_v45, 0.0  ;;  %v7900_v39 = vmul.f32 %v7785_v45, %v14899_v22  ;;  %v8014_v60 = vmul.f32 %v7704_v18, %v14902_v19  ;;  %v8129_v21 = vmul.f32 %v14897_v4, %v8015_v48 }
 0x363   :  { %v7846_v9 = vadd.f32 %v7845_v40, %v7844_v49  ;;  %v8072_v2 = vadd.f32 %v8071_v42, %v8070_v57  ;;  %v8186_v55 = vadd.f32 %v8185_v5, %v8184_v31  ;;  %v7788_v15 = vmul.f32 %v14909_v23, %v7719_v24 }
 0x364   :  { %v7959_v8 = vsel %vm7797_vm1, %v7900_v39, 0.0  ;;  %v8073_v7 = vsel %vm7797_vm1, %v8014_v60, 0.0  ;;  %v8128_v29 = vmul.f32 %v8014_v60, %v14902_v19  ;;  %v7847_v11 = vsel %vm7797_vm1, %v7786_v61, 0.0 }
 0x365   :  { %v7960_v14 = vadd.f32 %v7959_v8, %v7958_v13  ;;  %v8074_v17 = vadd.f32 %v8073_v7, %v8072_v2  ;;  %v8017_v18 = vmul.f32 %v14915_v62, %v7719_v24  ;;  %v7961_v45 = vsel %vm7797_vm1, %v7901_v58, 0.0  ;;  %v7729_v58 = vpop.permute.xlu1 %7728 }
 0x366   :  { %v8075_v57 = vsel %vm7797_vm1, %v8015_v48, 0.0  ;;  %v8187_v42 = vsel %vm7797_vm1, %v8128_v29, 0.0  ;;  %v7787_v5 = vmul.f32 %v7714_v35, %v14917_v38  ;;  %v8189_v31 = vsel %vm7797_vm1, %v8129_v21, 0.0 }
 0x367   :  { %v8188_v49 = vadd.f32 %v8187_v42, %v8186_v55  ;;  %v7848_v40 = vadd.f32 %v7847_v11, %v7846_v9  ;;  %v7962_v39 = vadd.f32 %v7961_v45, %v7960_v14  ;;  %v7903_v60 = vmul.f32 %v14909_v23, %v7788_v15  ;;  %v7724_v11 = vpop.permute.xlu0 %7723 }
 0x368   :  { %v7849_v61 = vsel %vm7797_vm1, %v7787_v5, 0.0  ;;  %v7902_v13 = vmul.f32 %v7787_v5, %v14917_v38  ;;  %v8016_v24 = vmul.f32 %v7714_v35, %v14921_v37  ;;  %v8131_v48 = vmul.f32 %v14915_v62, %v8017_v18 }
 0x369   :  { %v7850_v2 = vadd.f32 %v7849_v61, %v7848_v40  ;;  %v8076_v8 = vadd.f32 %v8075_v57, %v8074_v17  ;;  %v8190_v7 = vadd.f32 %v8189_v31, %v8188_v49  ;;  %v7790_v55 = vmul.f32 %v14928_v30, %v7729_v58 }
 0x36a   :  { %v7963_v29 = vsel %vm7797_vm1, %v7902_v13, 0.0  ;;  %v8077_v21 = vsel %vm7797_vm1, %v8016_v24, 0.0  ;;  %v8130_v9 = vmul.f32 %v8016_v24, %v14921_v37  ;;  %v7851_v14 = vsel %vm7797_vm1, %v7788_v15, 0.0 }
 0x36b   :  { %v7964_v45 = vadd.f32 %v7963_v29, %v7962_v39  ;;  %v8078_v42 = vadd.f32 %v8077_v21, %v8076_v8  ;;  %v8019_v35 = vmul.f32 %v14934_v32, %v7729_v58  ;;  %v7965_v5 = vsel %vm7797_vm1, %v7903_v60, 0.0  ;;  %v7739_v60 = vpop.permute.xlu1 %7738 }
 0x36c   :  { %v8079_v17 = vsel %vm7797_vm1, %v8017_v18, 0.0  ;;  %v8191_v57 = vsel %vm7797_vm1, %v8130_v9, 0.0  ;;  %v7789_v31 = vmul.f32 %v7724_v11, %v14936_v46  ;;  %v8193_v49 = vsel %vm7797_vm1, %v8131_v48, 0.0 }
 0x36d   :  { %v8192_v40 = vadd.f32 %v8191_v57, %v8190_v7  ;;  %v7852_v61 = vadd.f32 %v7851_v14, %v7850_v2  ;;  %v7966_v13 = vadd.f32 %v7965_v5, %v7964_v45  ;;  %v7905_v24 = vmul.f32 %v14928_v30, %v7790_v55  ;;  %v7734_v14 = vpop.permute.xlu0 %7733 }
 0x36e   :  { %v7853_v15 = vsel %vm7797_vm1, %v7789_v31, 0.0  ;;  %v7904_v39 = vmul.f32 %v7789_v31, %v14936_v46  ;;  %v8018_v58 = vmul.f32 %v7724_v11, %v14939_v1  ;;  %v8133_v18 = vmul.f32 %v14934_v32, %v8019_v35 }
 0x36f   :  { %v7854_v8 = vadd.f32 %v7853_v15, %v7852_v61  ;;  %v8080_v29 = vadd.f32 %v8079_v17, %v8078_v42  ;;  %v8194_v21 = vadd.f32 %v8193_v49, %v8192_v40  ;;  %v7792_v7 = vmul.f32 %v14947_v52, %v7739_v60 }
 0x370   :  { %v7967_v9 = vsel %vm7797_vm1, %v7904_v39, 0.0  ;;  %v8081_v48 = vsel %vm7797_vm1, %v8018_v58, 0.0  ;;  %v8132_v2 = vmul.f32 %v8018_v58, %v14939_v1  ;;  %v7855_v45 = vsel %vm7797_vm1, %v7790_v55, 0.0 }
 0x371   :  { %v7968_v5 = vadd.f32 %v7967_v9, %v7966_v13  ;;  %v8082_v57 = vadd.f32 %v8081_v48, %v8080_v29  ;;  %v8021_v11 = vmul.f32 %v14953_v27, %v7739_v60  ;;  %v7969_v31 = vsel %vm7797_vm1, %v7905_v24, 0.0  ;;  %v7749_v24 = vpop.permute.xlu1 %7748 }
 0x372   :  { %v8083_v42 = vsel %vm7797_vm1, %v8019_v35, 0.0  ;;  %v8195_v17 = vsel %vm7797_vm1, %v8132_v2, 0.0  ;;  %v7791_v49 = vmul.f32 %v7734_v14, %v14955_v43  ;;  %v8197_v40 = vsel %vm7797_vm1, %v8133_v18, 0.0 }
 0x373   :  { %v8196_v61 = vadd.f32 %v8195_v17, %v8194_v21  ;;  %v7856_v15 = vadd.f32 %v7855_v45, %v7854_v8  ;;  %v7970_v39 = vadd.f32 %v7969_v31, %v7968_v5  ;;  %v7907_v58 = vmul.f32 %v14947_v52, %v7792_v7  ;;  %v7744_v45 = vpop.permute.xlu0 %7743 }
 0x374   :  { %v7857_v55 = vsel %vm7797_vm1, %v7791_v49, 0.0  ;;  %v7906_v13 = vmul.f32 %v7791_v49, %v14955_v43  ;;  %v8020_v60 = vmul.f32 %v7734_v14, %v14958_v54  ;;  %v8135_v35 = vmul.f32 %v14953_v27, %v8021_v11 }
 0x375   :  { %v7858_v29 = vadd.f32 %v7857_v55, %v7856_v15  ;;  %v8084_v9 = vadd.f32 %v8083_v42, %v8082_v57  ;;  %v8198_v48 = vadd.f32 %v8197_v40, %v8196_v61  ;;  %v7794_v21 = vmul.f32 %v14965_v44, %v7749_v24 }
 0x376   :  { %v7971_v2 = vsel %vm7797_vm1, %v7906_v13, 0.0  ;;  %v8085_v18 = vsel %vm7797_vm1, %v8020_v60, 0.0  ;;  %v8134_v8 = vmul.f32 %v8020_v60, %v14958_v54  ;;  %v7859_v5 = vsel %vm7797_vm1, %v7792_v7, 0.0 }
 0x377   :  { %v7972_v31 = vadd.f32 %v7971_v2, %v7970_v39  ;;  %v8086_v17 = vadd.f32 %v8085_v18, %v8084_v9  ;;  %v8023_v14 = vmul.f32 %v14971_v56, %v7749_v24  ;;  %v7973_v49 = vsel %vm7797_vm1, %v7907_v58, 0.0  ;;  %v7759_v58 = vpop.permute.xlu1 %7758 }
 0x378   :  { %v8087_v57 = vsel %vm7797_vm1, %v8021_v11, 0.0  ;;  %v8199_v42 = vsel %vm7797_vm1, %v8134_v8, 0.0  ;;  %v7793_v40 = vmul.f32 %v7744_v45, %v14973_v25  ;;  %v8201_v61 = vsel %vm7797_vm1, %v8135_v35, 0.0 }
 0x379   :  { %v8200_v15 = vadd.f32 %v8199_v42, %v8198_v48  ;;  %v7860_v55 = vadd.f32 %v7859_v5, %v7858_v29  ;;  %v7974_v13 = vadd.f32 %v7973_v49, %v7972_v31  ;;  %v7909_v60 = vmul.f32 %v14965_v44, %v7794_v21  ;;  %v7754_v5 = vpop.permute.xlu0 %7753 }
 0x37a   :  { %v7861_v7 = vsel %vm7797_vm1, %v7793_v40, 0.0  ;;  %v7908_v39 = vmul.f32 %v7793_v40, %v14973_v25  ;;  %v8022_v24 = vmul.f32 %v7744_v45, %v14977_v36  ;;  %v8137_v11 = vmul.f32 %v14971_v56, %v8023_v14 }
 0x37b   :  { %v7862_v9 = vadd.f32 %v7861_v7, %v7860_v55  ;;  %v8088_v2 = vadd.f32 %v8087_v57, %v8086_v17  ;;  %v8202_v18 = vadd.f32 %v8201_v61, %v8200_v15  ;;  %v7796_v48 = vmul.f32 %v14984_v16, %v7759_v58 }
 0x37c   :  { %v7975_v8 = vsel %vm7797_vm1, %v7908_v39, 0.0  ;;  %v8089_v35 = vsel %vm7797_vm1, %v8022_v24, 0.0  ;;  %v8136_v29 = vmul.f32 %v8022_v24, %v14977_v36  ;;  %v7863_v31 = vsel %vm7797_vm1, %v7794_v21, 0.0 }
 0x37d   :  { %v8091_v49 = vsel %vm7797_vm1, %v8023_v14, 0.0  ;;  %v7976_v45 = vadd.f32 %v7975_v8, %v7974_v13  ;;  %v8090_v42 = vadd.f32 %v8089_v35, %v8088_v2  ;;  %v7977_v40 = vsel %vm7797_vm1, %v7909_v60, 0.0 }
 0x37e   :  { %v8203_v17 = vsel %vm7797_vm1, %v8136_v29, 0.0  ;;  %v8025_v57 = vmul.f32 %v14990_v59, %v7759_v58  ;;  %v7795_v61 = vmul.f32 %v7754_v5, %v14992_v51  ;;  %v8205_v15 = vsel %vm7797_vm1, %v8137_v11, 0.0 }
 0x37f   :  { %v8204_v55 = vadd.f32 %v8203_v17, %v8202_v18  ;;  %v7864_v7 = vadd.f32 %v7863_v31, %v7862_v9  ;;  %v7978_v39 = vadd.f32 %v7977_v40, %v7976_v45  ;;  %v7911_v24 = vmul.f32 %v14984_v16, %v7796_v48 }
 0x380   :  { %v7865_v21 = vsel %vm7797_vm1, %v7795_v61, 0.0  ;;  %v7910_v14 = vmul.f32 %v7795_v61, %v14992_v51  ;;  %v8024_v13 = vmul.f32 %v7754_v5, %v14995_v33  ;;  %v7867_v60 = vsel %vm7797_vm1, %v7796_v48, 0.0 }
 0x381   :  { %v7866_v2 = vadd.f32 %v7865_v21, %v7864_v7  ;;  %v8092_v8 = vadd.f32 %v8091_v49, %v8090_v42  ;;  %v8206_v58 = vadd.f32 %v8205_v15, %v8204_v55  ;;  %v8139_v35 = vmul.f32 %v14990_v59, %v8025_v57 }
 0x382   :  { %v7979_v11 = vsel %vm7797_vm1, %v7910_v14, 0.0  ;;  %v8093_v9 = vsel %vm7797_vm1, %v8024_v13, 0.0  ;;  %v8138_v18 = vmul.f32 %v8024_v13, %v14995_v33  ;;  %v7981_v40 = vsel %vm7797_vm1, %v7911_v24, 0.0 }
 0x383   :  { %v7868_v29 = vadd.f32 %v7867_v60, %v7866_v2  ;;  %v7980_v31 = vadd.f32 %v7979_v11, %v7978_v39  ;;  %v8094_v45 = vadd.f32 %v8093_v9, %v8092_v8  ;;  %v8095_v5 = vsel %vm7797_vm1, %v8025_v57, 0.0 }
 0x384   :  { %v8207_v48 = vsel %vm7797_vm1, %v8138_v18, 0.0  ;;  %v8209_v15 = vsel %vm7797_vm1, %v8139_v35, 0.0 }
 0x385   :  { %v7869_v17 = vrot.slane %v7868_v29, 4  ;;  %v7982_v49 = vadd.f32 %v7981_v40, %v7980_v31  ;;  %v8096_v42 = vadd.f32 %v8095_v5, %v8094_v45  ;;  %v8208_v61 = vadd.f32 %v8207_v48, %v8206_v58 }
 0x387   :  { %v7870_v55 = vadd.f32 %v7869_v17, %v7868_v29  ;;  %v7983_v7 = vrot.slane %v7982_v49, 4  ;;  %v8097_v21 = vrot.slane %v8096_v42, 4  ;;  %v8210_v14 = vadd.f32 %v8209_v15, %v8208_v61 }
 0x389   :  { %v7871_v13 = vrot.slane %v7870_v55, 2  ;;  %v7984_v60 = vadd.f32 %v7983_v7, %v7982_v49  ;;  %v8098_v39 = vadd.f32 %v8097_v21, %v8096_v42  ;;  %v8211_v2 = vrot.slane %v8210_v14, 4 }
 0x38b   :  { %v7872_v8 = vadd.f32 %v7871_v13, %v7870_v55  ;;  %v7985_v24 = vrot.slane %v7984_v60, 2  ;;  %v8099_v11 = vrot.slane %v8098_v39, 2  ;;  %v8212_v57 = vadd.f32 %v8211_v2, %v8210_v14 }
 0x38c   :  { %v8230_v14 = vlaneseq }
 0x38d   :  { %v7873_v9 = vrot.slane %v7872_v8, 1  ;;  %v7986_v18 = vadd.f32 %v7985_v24, %v7984_v60  ;;  %v8100_v59 = vadd.f32 %v8099_v11, %v8098_v39  ;;  %v8213_v31 = vrot.slane %v8212_v57, 2  ;;  %v8222_v60 = vld [vmem:[%s15660_s2] sm:$0x1] }
 0x38e   :  { %v8231_v13 = vshrl.u32 %v8230_v14, 7  ;;  %v15780_v14 = vld [vmem:[#allocation35_spill] sm:$0xff] }
 0x38f   :  { %v7874_v45 = vadd.f32 %v7873_v9, %v7872_v8  ;;  %v7987_v58 = vrot.slane %v7986_v18, 1  ;;  %v8101_v40 = vrot.slane %v8100_v59, 1  ;;  %v8214_v35 = vadd.f32 %v8213_v31, %v8212_v57 }
 0x390   :  { %v8232_v39 = vsub.s32 0, %v8231_v13 }
 0x391   :  { %v7988_v29 = vadd.f32 %v7987_v58, %v7986_v18  ;;  %v8102_v5 = vadd.f32 %v8101_v40, %v8100_v59  ;;  %v8215_v48 = vrot.slane %v8214_v35, 1  ;;  %v8226_v59 = vld [vmem:[%s15661_s3] sm:$0x1] }
 0x393   :  { %v8103_v17 = vadd.f32 %v8102_v5, %v7874_v45  ;;  %v8216_v61 = vadd.f32 %v8215_v48, %v8214_v35  ;;  %v15772_v5 = vld [vmem:[#allocation19_spill] sm:$0xff] }
 0x395   :  { %v8217_v49 = vadd.f32 %v8216_v61, %v7988_v29  ;;  %v8218_v42 = vmul.f32 0.001953125, %v8103_v17  ;;  %v15774_v17 = vld [vmem:[#allocation23_spill] sm:$0xff] }
 0x397   :  { %v8219_v15 = vmul.f32 0.001953125, %v8217_v49  ;;  %v8220_v55 = vmul.f32 %v8218_v42, %v8218_v42  ;;  %v15776_v49 = vld [vmem:[#allocation27_spill] sm:$0xff] }
 0x399   :  { %v8221_v7 = vsub.f32 %v8219_v15, %v8220_v55  ;;  %v15778_v15 = vld [vmem:[#allocation31_spill] sm:$0xff] }
 0x39b   :  { %v8223_v21 = vadd.f32 1e-05, %v8221_v7  ;;  %v15779_v7 = vld [vmem:[#allocation29_spill] sm:$0xff] }
 0x39d   :  { %11731 = vrsqrt.f32 %v8223_v21 }
 0x3a7   :  { %v11732_v2 = vpop.eup %11731 }
 0x3a8   :  { %v8225_v8 = vmul.f32 %v11732_v2, %v8222_v60  ;;  %v15781_v60 = vld [vmem:[#allocation33_spill] sm:$0xff] }
 0x3aa   :  { %v8227_v24 = vmul.f32 %v8225_v8, %v8218_v42  ;;  %v15107_v11 = vrot.slane %v8225_v8, %v8232_v39 }
 0x3ac   :  { %v8228_v57 = vsub.f32 %v8226_v59, %v8227_v24  ;;  %v8235_v9 = vmul.f32 %v15107_v11, %v14674_v53  ;;  %v8236_v18 = vmul.f32 %v14669_v50, %v15107_v11  ;;  %v8237_v31 = vmul.f32 %v15107_v11, %v14694_v6 }
 0x3ad   :  { %v8238_v45 = vmul.f32 %v14687_v0, %v15107_v11  ;;  %v8239_v58 = vmul.f32 %v15107_v11, %v14713_v26  ;;  %v8240_v40 = vmul.f32 %v14705_v20, %v15107_v11  ;;  %v8241_v35 = vmul.f32 %v15107_v11, %v14732_v47  ;;  %v15771_v47 = vld [vmem:[#allocation14_spill] sm:$0xff] }
 0x3ae   :  { %v8242_v53 = vmul.f32 %v14726_v41, %v15107_v11  ;;  %v8243_v50 = vmul.f32 %v15107_v11, %v14751_v12  ;;  %v8244_v6 = vmul.f32 %v14744_v3, %v15107_v11  ;;  %v8245_v0 = vmul.f32 %v15107_v11, %v14768_v34  ;;  %v15773_v12 = vld [vmem:[#allocation17_spill] sm:$0xff] }
 0x3af   :  { %v8246_v26 = vmul.f32 %v14761_v28, %v15107_v11  ;;  %v8247_v20 = vmul.f32 %v15107_v11, %v14787_v63  ;;  %v8248_v29 = vmul.f32 %v15771_v47, %v15107_v11  ;;  %v8249_v41 = vmul.f32 %v15107_v11, %v15772_v5  ;;  %v15775_v34 = vld [vmem:[#allocation21_spill] sm:$0xff] }
 0x3b0   :  { %v8250_v48 = vmul.f32 %v15773_v12, %v15107_v11  ;;  %v8251_v3 = vmul.f32 %v15107_v11, %v15774_v17  ;;  %v8252_v61 = vmul.f32 %v15775_v34, %v15107_v11  ;;  %v8253_v28 = vmul.f32 %v15107_v11, %v15776_v49  ;;  %v15777_v63 = vld [vmem:[#allocation25_spill] sm:$0xff] }
 0x3b1   :  { %v8254_v42 = vmul.f32 %v15777_v63, %v15107_v11  ;;  %v8255_v55 = vmul.f32 %v15107_v11, %v15778_v15  ;;  %v8256_v21 = vmul.f32 %v15779_v7, %v15107_v11  ;;  %v8257_v13 = vmul.f32 %v15107_v11, %v15780_v14 }
 0x3b2   :  { %v8258_v2 = vmul.f32 %v15781_v60, %v15107_v11  ;;  %v8259_v8 = vmul.f32 %v15107_v11, %v14899_v22  ;;  %v8260_v59 = vmul.f32 %v14891_v10, %v15107_v11  ;;  %v8261_v24 = vmul.f32 %v15107_v11, %v14917_v38 }
 0x3b3   :  { %v8262_v47 = vmul.f32 %v14909_v23, %v15107_v11  ;;  %v15167_v5 = vmul.f32 %v15107_v11, %v14936_v46  ;;  %v15171_v12 = vmul.f32 %v14928_v30, %v15107_v11  ;;  %v15175_v22 = vmul.f32 %v15107_v11, %v14955_v43 }
 0x3b4   :  { %v15179_v10 = vmul.f32 %v14947_v52, %v15107_v11  ;;  %v15183_v38 = vmul.f32 %v15107_v11, %v14973_v25  ;;  %v15187_v23 = vmul.f32 %v14965_v44, %v15107_v11  ;;  %v15191_v30 = vmul.f32 %v15107_v11, %v14992_v51  ;;  %v15782_v52 = vld [vmem:[#allocation3_spill] sm:$0xff]  ;;  %v15783_v25 = vld [vmem:[#allocation2_spill] sm:$0xff]  ;;  %v15784_v44 = vld [vmem:[#allocation5_spill] sm:$0xff] }
 0x3b5   :  { %v15195_v46 = vmul.f32 %v14984_v16, %v15107_v11  ;;  %v15197_v43 = vrot.slane %v8228_v57, %v8232_v39  ;;  %v15201_v17 = vmul.f32 %v15107_v11, %v15782_v52  ;;  %v15205_v34 = vmul.f32 %v15783_v25, %v15107_v11  ;;  %v15785_v51 = vld [vmem:[#allocation4_spill] sm:$0xff]  ;;  %v15786_v16 = vld [vmem:[#allocation7_spill] sm:$0xff]  ;;  %v15788_v57 = vld [vmem:[#allocation6_spill] sm:$0xff] }
 0x3b6   :  { %v15209_v49 = vmul.f32 %v15107_v11, %v15784_v44  ;;  %v15213_v63 = vmul.f32 %v15785_v51, %v15107_v11  ;;  %v15217_v39 = vmul.f32 %v15107_v11, %v15786_v16  ;;  %v15221_v15 = vmul.f32 %v15788_v57, %v15107_v11 }
 0x3b7   :  { %v8277_v7 = vadd.f32 %v15197_v43, %v8235_v9  ;;  %v8278_v14 = vadd.f32 %v15197_v43, %v8236_v18  ;;  %v8279_v60 = vadd.f32 %v15197_v43, %v8237_v31  ;;  %v8280_v52 = vadd.f32 %v15197_v43, %v8238_v45 }
 0x3b8   :  { %15787 = vst [vmem:[#allocation14_spill] sm:$0xff] %v15217_v39  ;;  %v8281_v25 = vadd.f32 %v15197_v43, %v8239_v58  ;;  %v8282_v44 = vadd.f32 %v15197_v43, %v8240_v40  ;;  %v8283_v51 = vadd.f32 %v15197_v43, %v8241_v35  ;;  %v8284_v16 = vadd.f32 %v15197_v43, %v8242_v53 }
 0x3b9   :  { %v8285_v39 = vadd.f32 %v15197_v43, %v8243_v50  ;;  %v8286_v57 = vadd.f32 %v15197_v43, %v8244_v6  ;;  %v8287_v9 = vadd.f32 %v15197_v43, %v8245_v0  ;;  %v8288_v18 = vadd.f32 %v15197_v43, %v8246_v26  ;;  %8313 = vst.msk [vmem:[%s15662_s5] sm:$0xff] %vm7797_vm1, %v8277_v7 }
 0x3ba   :  { %8314 = vst.msk [vmem:[%s15662_s5 + $0x8] sm:$0xff] %vm7797_vm1, %v8278_v14  ;;  %8315 = vst.msk [vmem:[%s15662_s5 + $0x10] sm:$0xff] %vm7797_vm1, %v8279_v60  ;;  %v8289_v31 = vadd.f32 %v15197_v43, %v8247_v20  ;;  %v8290_v45 = vadd.f32 %v15197_v43, %v8248_v29  ;;  %v8291_v58 = vadd.f32 %v15197_v43, %v8249_v41  ;;  %v15795_v14 = vld [vmem:[#allocation16_spill] sm:$0xff] }
 0x3bb   :  { %8316 = vst.msk [vmem:[%s15662_s5 + $0x18] sm:$0xff] %vm7797_vm1, %v8280_v52  ;;  %v8292_v40 = vadd.f32 %v15197_v43, %v8250_v48  ;;  %8317 = vst.msk [vmem:[%s15662_s5 + $0x20] sm:$0xff] %vm7797_vm1, %v8281_v25  ;;  %v8293_v35 = vadd.f32 %v15197_v43, %v8251_v3  ;;  %v8294_v53 = vadd.f32 %v15197_v43, %v8252_v61  ;;  %v15796_v52 = vld [vmem:[#allocation15_spill] sm:$0xff] }
 0x3bc   :  { %8318 = vst.msk [vmem:[%s15662_s5 + $0x28] sm:$0xff] %vm7797_vm1, %v8282_v44  ;;  %8319 = vst.msk [vmem:[%s15662_s5 + $0x30] sm:$0xff] %vm7797_vm1, %v8283_v51  ;;  %v8295_v50 = vadd.f32 %v15197_v43, %v8253_v28  ;;  %v8296_v6 = vadd.f32 %v15197_v43, %v8254_v42  ;;  %v8297_v0 = vadd.f32 %v15197_v43, %v8255_v55  ;;  %v15797_v44 = vld [vmem:[#allocation20_spill] sm:$0xff] }
 0x3bd   :  { %8320 = vst.msk [vmem:[%s15662_s5 + $0x38] sm:$0xff] %vm7797_vm1, %v8284_v16  ;;  %8321 = vst.msk [vmem:[%s15662_s5 + $0x40] sm:$0xff] %vm7797_vm1, %v8285_v39  ;;  %v8298_v26 = vadd.f32 %v15197_v43, %v8256_v21  ;;  %v8299_v20 = vadd.f32 %v15197_v43, %v8257_v13  ;;  %v8300_v29 = vadd.f32 %v15197_v43, %v8258_v2  ;;  %v15794_v39 = vld [vmem:[#allocation12_spill] sm:$0xff]  ;;  %v15798_v16 = vld [vmem:[#allocation18_spill] sm:$0xff] }
 0x3be   :  { %8322 = vst.msk [vmem:[%s15662_s5 + $0x48] sm:$0xff] %vm7797_vm1, %v8286_v57  ;;  %8323 = vst.msk [vmem:[%s15662_s5 + $0x50] sm:$0xff] %vm7797_vm1, %v8287_v9  ;;  %v8301_v41 = vadd.f32 %v15197_v43, %v8259_v8  ;;  %v8302_v48 = vadd.f32 %v15197_v43, %v8260_v59  ;;  %v8303_v3 = vadd.f32 %v15197_v43, %v8261_v24  ;;  %v15789_v24 = vld [vmem:[#allocation9_spill] sm:$0xff]  ;;  %v15799_v9 = vld [vmem:[#allocation24_spill] sm:$0xff] }
 0x3bf   :  { %8324 = vst.msk [vmem:[%s15662_s5 + $0x58] sm:$0xff] %vm7797_vm1, %v8288_v18  ;;  %8325 = vst.msk [vmem:[%s15662_s5 + $0x60] sm:$0xff] %vm7797_vm1, %v8289_v31  ;;  %v8304_v61 = vadd.f32 %v15197_v43, %v8262_v47  ;;  %v8305_v28 = vadd.f32 %v15197_v43, %v15167_v5  ;;  %v8306_v42 = vadd.f32 %v15197_v43, %v15171_v12  ;;  %v15790_v5 = vld [vmem:[#allocation8_spill] sm:$0xff]  ;;  %v15800_v31 = vld [vmem:[#allocation22_spill] sm:$0xff] }
 0x3c0   :  { %8326 = vst.msk [vmem:[%s15662_s5 + $0x68] sm:$0xff] %vm7797_vm1, %v8290_v45  ;;  %8327 = vst.msk [vmem:[%s15662_s5 + $0x70] sm:$0xff] %vm7797_vm1, %v8291_v58  ;;  %v8307_v55 = vadd.f32 %v15197_v43, %v15175_v22  ;;  %v8308_v21 = vadd.f32 %v15197_v43, %v15179_v10  ;;  %v8309_v13 = vadd.f32 %v15197_v43, %v15183_v38  ;;  %v15791_v22 = vld [vmem:[#allocation11_spill] sm:$0xff]  ;;  %v15792_v38 = vld [vmem:[#allocation10_spill] sm:$0xff] }
 0x3c1   :  { %8328 = vst.msk [vmem:[%s15662_s5 + $0x78] sm:$0xff] %vm7797_vm1, %v8292_v40  ;;  %8329 = vst.msk [vmem:[%s15662_s5 + $0x80] sm:$0xff] %vm7797_vm1, %v8293_v35  ;;  %v8310_v2 = vadd.f32 %v15197_v43, %v15187_v23  ;;  %v8311_v8 = vadd.f32 %v15197_v43, %v15191_v30  ;;  %v8312_v59 = vadd.f32 %v15197_v43, %v15195_v46  ;;  %v15793_v30 = vld [vmem:[#allocation13_spill] sm:$0xff]  ;;  %v15801_v58 = vld [vmem:[#allocation28_spill] sm:$0xff] }
 0x3c2   :  { %8330 = vst.msk [vmem:[%s15662_s5 + $0x88] sm:$0xff] %vm7797_vm1, %v8294_v53  ;;  %8331 = vst.msk [vmem:[%s15662_s5 + $0x90] sm:$0xff] %vm7797_vm1, %v8295_v50  ;;  %v8355_v47 = vmul.f32 %v15107_v11, %v15789_v24  ;;  %v8356_v12 = vmul.f32 %v15790_v5, %v15107_v11  ;;  %v8357_v10 = vmul.f32 %v15107_v11, %v15791_v22  ;;  %v15802_v35 = vld [vmem:[#allocation26_spill] sm:$0xff]  ;;  %v15803_v50 = vld [vmem:[#allocation32_spill] sm:$0xff] }
 0x3c3   :  { %8332 = vst.msk [vmem:[%s15662_s5 + $0x98] sm:$0xff] %vm7797_vm1, %v8296_v6  ;;  %8333 = vst.msk [vmem:[%s15662_s5 + $0xa0] sm:$0xff] %vm7797_vm1, %v8297_v0  ;;  %v8358_v23 = vmul.f32 %v15792_v38, %v15107_v11  ;;  %v8359_v46 = vmul.f32 %v15107_v11, %v15793_v30  ;;  %v8360_v7 = vmul.f32 %v15794_v39, %v15107_v11  ;;  %v15804_v0 = vld [vmem:[#allocation30_spill] sm:$0xff] }
 0x3c4   :  { %8334 = vst.msk [vmem:[%s15662_s5 + $0xa8] sm:$0xff] %vm7797_vm1, %v8298_v26  ;;  %8335 = vst.msk [vmem:[%s15662_s5 + $0xb0] sm:$0xff] %vm7797_vm1, %v8299_v20  ;;  %v8361_v60 = vmul.f32 %v15107_v11, %v15795_v14  ;;  %v8362_v25 = vmul.f32 %v15796_v52, %v15107_v11  ;;  %v8363_v51 = vmul.f32 %v15107_v11, %v15797_v44  ;;  %v15805_v20 = vld [vmem:[#allocation36_spill] sm:$0xff] }
 0x3c5   :  { %8336 = vst.msk [vmem:[%s15662_s5 + $0xb8] sm:$0xff] %vm7797_vm1, %v8300_v29  ;;  %8337 = vst.msk [vmem:[%s15662_s5 + $0xc0] sm:$0xff] %vm7797_vm1, %v8301_v41  ;;  %v8364_v57 = vmul.f32 %v15798_v16, %v15107_v11  ;;  %v8365_v18 = vmul.f32 %v15107_v11, %v15799_v9  ;;  %v8366_v45 = vmul.f32 %v15800_v31, %v15107_v11  ;;  %v15806_v41 = vld [vmem:[#allocation34_spill] sm:$0xff] }
 0x3c6   :  { %8338 = vst.msk [vmem:[%s15662_s5 + $0xc8] sm:$0xff] %vm7797_vm1, %v8302_v48  ;;  %8339 = vst.msk [vmem:[%s15662_s5 + $0xd0] sm:$0xff] %vm7797_vm1, %v8303_v3  ;;  %v8367_v40 = vmul.f32 %v15107_v11, %v15801_v58  ;;  %v8368_v53 = vmul.f32 %v15802_v35, %v15107_v11  ;;  %v8369_v6 = vmul.f32 %v15107_v11, %v15803_v50 }
 0x3c7   :  { %8340 = vst.msk [vmem:[%s15662_s5 + $0xd8] sm:$0xff] %vm7797_vm1, %v8304_v61  ;;  %8341 = vst.msk [vmem:[%s15662_s5 + $0xe0] sm:$0xff] %vm7797_vm1, %v8305_v28  ;;  %v8370_v26 = vmul.f32 %v15804_v0, %v15107_v11  ;;  %v8371_v29 = vmul.f32 %v15107_v11, %v15805_v20  ;;  %v8372_v48 = vmul.f32 %v15806_v41, %v15107_v11 }
 0x3c8   :  { %8342 = vst.msk [vmem:[%s15662_s5 + $0xe8] sm:$0xff] %vm7797_vm1, %v8306_v42  ;;  %8343 = vst.msk [vmem:[%s15662_s5 + $0xf0] sm:$0xff] %vm7797_vm1, %v8307_v55  ;;  %v8373_v3 = vmul.f32 %v15107_v11, %v14902_v19  ;;  %v8374_v61 = vmul.f32 %v14897_v4, %v15107_v11  ;;  %v8375_v28 = vmul.f32 %v15107_v11, %v14921_v37 }
 0x3c9   :  { %8344 = vst.msk [vmem:[%s15662_s5 + $0xf8] sm:$0xff] %vm7797_vm1, %v8308_v21  ;;  %8345 = vst.msk [vmem:[%s15662_s5 + $0x100] sm:$0xff] %vm7797_vm1, %v8309_v13  ;;  %v8376_v42 = vmul.f32 %v14915_v62, %v15107_v11  ;;  %v8377_v55 = vmul.f32 %v15107_v11, %v14939_v1  ;;  %v8378_v21 = vmul.f32 %v14934_v32, %v15107_v11  ;;  %v15807_v1 = vld [vmem:[#allocation37_spill] sm:$0xff] }
 0x3ca   :  { %8346 = vst.msk [vmem:[%s15662_s5 + $0x108] sm:$0xff] %vm7797_vm1, %v8310_v2  ;;  %8347 = vst.msk [vmem:[%s15662_s5 + $0x110] sm:$0xff] %vm7797_vm1, %v8311_v8  ;;  %v8379_v13 = vmul.f32 %v15107_v11, %v14958_v54  ;;  %v8380_v19 = vmul.f32 %v14953_v27, %v15107_v11  ;;  %v8381_v4 = vmul.f32 %v15107_v11, %v14977_v36 }
 0x3cb   :  { %8348 = vst.msk [vmem:[%s15662_s5 + $0x118] sm:$0xff] %vm7797_vm1, %v8312_v59  ;;  %v8382_v37 = vmul.f32 %v14971_v56, %v15107_v11  ;;  %v8383_v62 = vmul.f32 %v15107_v11, %v14995_v33  ;;  %v8384_v2 = vmul.f32 %v15807_v1, %v15107_v11  ;;  %v8385_v32 = vadd.f32 %v15201_v17, %v15197_v43  ;;  %v15808_v56 = vld [vmem:[#allocation14_spill] sm:$0xff] }
 0x3cc   :  { %v8386_v54 = vadd.f32 %v15205_v34, %v15197_v43  ;;  %v8387_v27 = vadd.f32 %v15209_v49, %v15197_v43  ;;  %v8388_v36 = vadd.f32 %v15213_v63, %v15197_v43  ;;  %v8389_v8 = vadd.f32 %v15808_v56, %v15197_v43 }
 0x3cd   :  { %v8390_v33 = vadd.f32 %v15221_v15, %v15197_v43  ;;  %v8391_v11 = vadd.f32 %v8355_v47, %v15197_v43  ;;  %v8392_v59 = vadd.f32 %v8356_v12, %v15197_v43  ;;  %v8393_v17 = vadd.f32 %v8357_v10, %v15197_v43  ;;  %9442 = vst.msk [vmem:[%s15662_s5 + $0x120] sm:$0xff] %vm7797_vm1, %v8385_v32 }
 0x3ce   :  { %v8394_v34 = vadd.f32 %v8358_v23, %v15197_v43  ;;  %9443 = vst.msk [vmem:[%s15662_s5 + $0x128] sm:$0xff] %vm7797_vm1, %v8386_v54  ;;  %v8395_v49 = vadd.f32 %v8359_v46, %v15197_v43  ;;  %v8396_v63 = vadd.f32 %v8360_v7, %v15197_v43  ;;  %v8397_v15 = vadd.f32 %v8361_v60, %v15197_v43 }
 0x3cf   :  { %v8398_v24 = vadd.f32 %v8362_v25, %v15197_v43  ;;  %9444 = vst.msk [vmem:[%s15662_s5 + $0x130] sm:$0xff] %vm7797_vm1, %v8387_v27  ;;  %9445 = vst.msk [vmem:[%s15662_s5 + $0x138] sm:$0xff] %vm7797_vm1, %v8388_v36  ;;  %v8399_v47 = vadd.f32 %v8363_v51, %v15197_v43  ;;  %v8400_v5 = vadd.f32 %v8364_v57, %v15197_v43 }
 0x3d0   :  { %9446 = vst.msk [vmem:[%s15662_s5 + $0x140] sm:$0xff] %vm7797_vm1, %v8389_v8  ;;  %9447 = vst.msk [vmem:[%s15662_s5 + $0x148] sm:$0xff] %vm7797_vm1, %v8390_v33  ;;  %v8401_v12 = vadd.f32 %v8365_v18, %v15197_v43  ;;  %v8402_v22 = vadd.f32 %v8366_v45, %v15197_v43  ;;  %v8403_v10 = vadd.f32 %v8367_v40, %v15197_v43 }
 0x3d1   :  { %9448 = vst.msk [vmem:[%s15662_s5 + $0x150] sm:$0xff] %vm7797_vm1, %v8391_v11  ;;  %9449 = vst.msk [vmem:[%s15662_s5 + $0x158] sm:$0xff] %vm7797_vm1, %v8392_v59  ;;  %v8404_v38 = vadd.f32 %v8368_v53, %v15197_v43  ;;  %v8405_v23 = vadd.f32 %v8369_v6, %v15197_v43  ;;  %v8406_v30 = vadd.f32 %v8370_v26, %v15197_v43 }
 0x3d2   :  { %9450 = vst.msk [vmem:[%s15662_s5 + $0x160] sm:$0xff] %vm7797_vm1, %v8393_v17  ;;  %9451 = vst.msk [vmem:[%s15662_s5 + $0x168] sm:$0xff] %vm7797_vm1, %v8394_v34  ;;  %v8407_v46 = vadd.f32 %v8371_v29, %v15197_v43  ;;  %v8408_v39 = vadd.f32 %v8372_v48, %v15197_v43  ;;  %v8409_v7 = vadd.f32 %v8373_v3, %v15197_v43 }
 0x3d3   :  { %9452 = vst.msk [vmem:[%s15662_s5 + $0x170] sm:$0xff] %vm7797_vm1, %v8395_v49  ;;  %9453 = vst.msk [vmem:[%s15662_s5 + $0x178] sm:$0xff] %vm7797_vm1, %v8396_v63  ;;  %v8410_v14 = vadd.f32 %v8374_v61, %v15197_v43  ;;  %v8411_v60 = vadd.f32 %v8375_v28, %v15197_v43  ;;  %v8412_v52 = vadd.f32 %v8376_v42, %v15197_v43 }
 0x3d4   :  { %9454 = vst.msk [vmem:[%s15662_s5 + $0x180] sm:$0xff] %vm7797_vm1, %v8397_v15  ;;  %9455 = vst.msk [vmem:[%s15662_s5 + $0x188] sm:$0xff] %vm7797_vm1, %v8398_v24  ;;  %v8413_v25 = vadd.f32 %v8377_v55, %v15197_v43  ;;  %v8414_v44 = vadd.f32 %v8378_v21, %v15197_v43  ;;  %v8415_v51 = vadd.f32 %v8379_v13, %v15197_v43 }
 0x3d5   :  { %9456 = vst.msk [vmem:[%s15662_s5 + $0x190] sm:$0xff] %vm7797_vm1, %v8399_v47  ;;  %9457 = vst.msk [vmem:[%s15662_s5 + $0x198] sm:$0xff] %vm7797_vm1, %v8400_v5  ;;  %v8416_v16 = vadd.f32 %v8380_v19, %v15197_v43  ;;  %v8417_v57 = vadd.f32 %v8381_v4, %v15197_v43  ;;  %v8418_v9 = vadd.f32 %v8382_v37, %v15197_v43 }
 0x3d6   :  { %9458 = vst.msk [vmem:[%s15662_s5 + $0x1a0] sm:$0xff] %vm7797_vm1, %v8401_v12  ;;  %9459 = vst.msk [vmem:[%s15662_s5 + $0x1a8] sm:$0xff] %vm7797_vm1, %v8402_v22  ;;  %v8419_v18 = vadd.f32 %v8383_v62, %v15197_v43  ;;  %v8420_v31 = vadd.f32 %v8384_v2, %v15197_v43 }
 0x3d7   :  { %9460 = vst.msk [vmem:[%s15662_s5 + $0x1b0] sm:$0xff] %vm7797_vm1, %v8403_v10  ;;  %9461 = vst.msk [vmem:[%s15662_s5 + $0x1b8] sm:$0xff] %vm7797_vm1, %v8404_v38 }
 0x3d8   :  { %9462 = vst.msk [vmem:[%s15662_s5 + $0x1c0] sm:$0xff] %vm7797_vm1, %v8405_v23  ;;  %9463 = vst.msk [vmem:[%s15662_s5 + $0x1c8] sm:$0xff] %vm7797_vm1, %v8406_v30 }
 0x3d9   :  { %9464 = vst.msk [vmem:[%s15662_s5 + $0x1d0] sm:$0xff] %vm7797_vm1, %v8407_v46  ;;  %9465 = vst.msk [vmem:[%s15662_s5 + $0x1d8] sm:$0xff] %vm7797_vm1, %v8408_v39 }
 0x3da   :  { %9466 = vst.msk [vmem:[%s15662_s5 + $0x1e0] sm:$0xff] %vm7797_vm1, %v8409_v7  ;;  %9467 = vst.msk [vmem:[%s15662_s5 + $0x1e8] sm:$0xff] %vm7797_vm1, %v8410_v14 }
 0x3db   :  { %9468 = vst.msk [vmem:[%s15662_s5 + $0x1f0] sm:$0xff] %vm7797_vm1, %v8411_v60  ;;  %9469 = vst.msk [vmem:[%s15662_s5 + $0x1f8] sm:$0xff] %vm7797_vm1, %v8412_v52 }
 0x3dc   :  { %9470 = vst.msk [vmem:[%s15662_s5 + $0x200] sm:$0xff] %vm7797_vm1, %v8413_v25  ;;  %9471 = vst.msk [vmem:[%s15662_s5 + $0x208] sm:$0xff] %vm7797_vm1, %v8414_v44 }
 0x3dd   :  { %9472 = vst.msk [vmem:[%s15662_s5 + $0x210] sm:$0xff] %vm7797_vm1, %v8415_v51  ;;  %9473 = vst.msk [vmem:[%s15662_s5 + $0x218] sm:$0xff] %vm7797_vm1, %v8416_v16 }
 0x3de   :  { %9474 = vst.msk [vmem:[%s15662_s5 + $0x220] sm:$0xff] %vm7797_vm1, %v8417_v57  ;;  %9475 = vst.msk [vmem:[%s15662_s5 + $0x228] sm:$0xff] %vm7797_vm1, %v8418_v9 }
 0x3df   :  { %9476 = vst.msk [vmem:[%s15662_s5 + $0x230] sm:$0xff] %vm7797_vm1, %v8419_v18  ;;  %9477 = vst.msk [vmem:[%s15662_s5 + $0x238] sm:$0xff] %vm7797_vm1, %v8420_v31 }

</bundles_post_ra>
